<compile_context>
chip_gen: v5e
topology: v5e:2x2
jax: 0.10.0
libtpu: 0.0.40
codegen_flags: <defaults>
</compile_context>

<pallas_src>
import functools

import jax
import jax.numpy as jnp
from jax import lax
from jax.experimental import pallas as pl
from jax.experimental.pallas import tpu as pltpu
import numpy as np


# ----------------------------------------------------------------------------
# Pallas kernels
# ----------------------------------------------------------------------------
def _relu6(x):
    return jnp.minimum(jnp.maximum(x, 0.0), 6.0)


def _fused_1x1_relu6_kernel(x_ref, w_ref, o1_ref, o2_ref):
    # x_ref: (tm, Cin), w_ref: (Cin, C1+C2) -> relu6(x @ w), split along Cout.
    c1 = o1_ref.shape[-1]
    y = jnp.dot(x_ref[...], w_ref[...], preferred_element_type=jnp.float32)
    y = _relu6(y)
    o1_ref[...] = y[:, :c1].astype(o1_ref.dtype)
    o2_ref[...] = y[:, c1:].astype(o2_ref.dtype)


def _conv3x3_s1_relu6_kernel(x_ref, w_ref, o_ref):
    # x_ref: (1, H+2, W+2, Cin) zero-padded image, w_ref: (9, Cin, Cout),
    # o_ref: (1, H, W, Cout).  9 taps x (H*W, Cin) @ (Cin, Cout) on the MXU.
    _, H, W, cout = o_ref.shape
    cin = x_ref.shape[-1]
    acc = jnp.zeros((H * W, cout), jnp.float32)
    for ky in range(3):
        for kx in range(3):
            tap = x_ref[0, ky:ky + H, kx:kx + W, :]
            acc = acc + jnp.dot(tap.reshape(H * W, cin), w_ref[ky * 3 + kx],
                                preferred_element_type=jnp.float32)
    o_ref[0] = _relu6(acc).reshape(H, W, cout).astype(o_ref.dtype)


def _tail_kernel(p1_ref, p2_ref, p3_ref, w1_ref, w2_ref,
                 o1_ref, o2_ref, o3_ref):
    # Fused block tail (one batch image per grid step):
    #   branch1 tail: 3x3 stride-2 conv + ReLU6   (p1: phases of padded y1)
    #   branch2 tail: 3x3 stride-2 conv + ReLU6   (p2: phases of padded b2mid)
    #   branch3     : 3x3 stride-2 max pool       (p3: phases of -inf-padded x)
    # p*_ref: (1, 4, Ho+1, Wo+1, C)  with phase index = 2*(row%2) + (col%2);
    # tap (ky,kx) of the stride-2 window is a static contiguous slice of one
    # phase -> no strided loads, no HBM im2col.
    _, Ho, Wo, _ = o1_ref.shape

    def conv_s2_relu6(p_ref, w_ref, cout):
        cin = p_ref.shape[-1]
        acc = jnp.zeros((Ho * Wo, cout), jnp.float32)
        for ky in range(3):
            for kx in range(3):
                ph = 2 * (ky % 2) + (kx % 2)
                tap = p_ref[0, ph,
                            ky // 2:ky // 2 + Ho,
                            kx // 2:kx // 2 + Wo, :]
                acc = acc + jnp.dot(tap.reshape(Ho * Wo, cin),
                                    w_ref[ky * 3 + kx],
                                    preferred_element_type=jnp.float32)
        return _relu6(acc)

    o1_ref[0] = conv_s2_relu6(p1_ref, w1_ref, o1_ref.shape[-1]).reshape(
        Ho, Wo, o1_ref.shape[-1]).astype(o1_ref.dtype)
    o2_ref[0] = conv_s2_relu6(p2_ref, w2_ref, o2_ref.shape[-1]).reshape(
        Ho, Wo, o2_ref.shape[-1]).astype(o2_ref.dtype)

    m = None
    for ky in range(3):
        for kx in range(3):
            ph = 2 * (ky % 2) + (kx % 2)
            tap = p3_ref[0, ph,
                         ky // 2:ky // 2 + Ho,
                         kx // 2:kx // 2 + Wo, :]
            m = tap if m is None else jnp.maximum(m, tap)
    o3_ref[0] = m.astype(o3_ref.dtype)


# ----------------------------------------------------------------------------
# Pallas wrappers
# ----------------------------------------------------------------------------
def _pick_tm(M):
    # Biggest tile that still leaves >=2 grid steps (keeps both v7x cores busy);
    # falls back to an 8-aligned single tile for tiny M.
    for tm in (1024, 512, 256, 128):
        if M >= 2 * tm:
            return tm
    return max(8, min(256, -(-M // 8) * 8))


def conv1x1_fused_relu6(x_flat, w_fused, c1, c2):
    """x_flat: (M, Cin), w_fused: (Cin, c1+c2) -> (relu6 split into (M,c1),(M,c2))."""
    M, K = x_flat.shape
    tm = _pick_tm(M)
    Mp = -(-M // tm) * tm
    if Mp != M:
        x_flat = jnp.pad(x_flat, ((0, Mp - M), (0, 0)))
    y1, y2 = pl.pallas_call(
        _fused_1x1_relu6_kernel,
        out_shape=(jax.ShapeDtypeStruct((Mp, c1), x_flat.dtype),
                   jax.ShapeDtypeStruct((Mp, c2), x_flat.dtype)),
        grid=(Mp // tm,),
        in_specs=[pl.BlockSpec((tm, K), lambda i: (i, 0)),
                  pl.BlockSpec((K, c1 + c2), lambda i: (0, 0))],
        out_specs=[pl.BlockSpec((tm, c1), lambda i: (i, 0)),
                   pl.BlockSpec((tm, c2), lambda i: (i, 0))],
        compiler_params=pltpu.CompilerParams(
            dimension_semantics=("parallel",)),
    )(x_flat, w_fused)
    if Mp != M:
        y1, y2 = y1[:M], y2[:M]
    return y1, y2


def conv3x3_s1_relu6(x_nhwc, w9):
    """3x3 / stride 1 / pad 1 conv + ReLU6.  w9: (9, Cin, Cout)."""
    N, H, W, cin = x_nhwc.shape
    cout = w9.shape[-1]
    xp = jnp.pad(x_nhwc, ((0, 0), (1, 1), (1, 1), (0, 0)))
    return pl.pallas_call(
        _conv3x3_s1_relu6_kernel,
        out_shape=jax.ShapeDtypeStruct((N, H, W, cout), x_nhwc.dtype),
        grid=(N,),
        in_specs=[pl.BlockSpec((1, H + 2, W + 2, cin),
                               lambda n: (n, 0, 0, 0)),
                  pl.BlockSpec((9, cin, cout), lambda n: (0, 0, 0))],
        out_specs=pl.BlockSpec((1, H, W, cout), lambda n: (n, 0, 0, 0)),
        compiler_params=pltpu.CompilerParams(
            dimension_semantics=("parallel",)),
    )(xp, w9)


def _phase_decompose(x_nhwc, pad_value):
    """Pad by 1 and split into (N, 4, Hp/2, Wp/2, C) even/odd row/col phases.

    phase index = 2 * (row parity) + (col parity); element (i, j) of phase
    (r, c) is padded_x[2i + r, 2j + c].  Lets the stride-2 kernels use only
    static contiguous slices.  Requires even H, W.
    """
    N, H, W, C = x_nhwc.shape
    xp = jnp.pad(x_nhwc, ((0, 0), (1, 1), (1, 1), (0, 0)),
                 constant_values=pad_value)
    Hp, Wp = H + 2, W + 2
    ph = xp.reshape(N, Hp // 2, 2, Wp // 2, 2, C)
    ph = jnp.transpose(ph, (0, 2, 4, 1, 3, 5))
    return ph.reshape(N, 4, Hp // 2, Wp // 2, C)


def fused_tail(p1, p2, p3, w1, w2):
    """Fused (conv3x3/2+ReLU6, conv3x3/2+ReLU6, maxpool3x3/2) over phase inputs."""
    N, _, Hh, Wh, c1i = p1.shape
    c2i, c3 = p2.shape[-1], p3.shape[-1]
    c1o, c2o = w1.shape[-1], w2.shape[-1]
    Ho, Wo = Hh - 1, Wh - 1
    return pl.pallas_call(
        _tail_kernel,
        out_shape=(jax.ShapeDtypeStruct((N, Ho, Wo, c1o), p1.dtype),
                   jax.ShapeDtypeStruct((N, Ho, Wo, c2o), p2.dtype),
                   jax.ShapeDtypeStruct((N, Ho, Wo, c3), p3.dtype)),
        grid=(N,),
        in_specs=[pl.BlockSpec((1, 4, Hh, Wh, c1i), lambda n: (n, 0, 0, 0, 0)),
                  pl.BlockSpec((1, 4, Hh, Wh, c2i), lambda n: (n, 0, 0, 0, 0)),
                  pl.BlockSpec((1, 4, Hh, Wh, c3), lambda n: (n, 0, 0, 0, 0)),
                  pl.BlockSpec((9, c1i, c1o), lambda n: (0, 0, 0)),
                  pl.BlockSpec((9, c2i, c2o), lambda n: (0, 0, 0))],
        out_specs=[pl.BlockSpec((1, Ho, Wo, c1o), lambda n: (n, 0, 0, 0)),
                   pl.BlockSpec((1, Ho, Wo, c2o), lambda n: (n, 0, 0, 0)),
                   pl.BlockSpec((1, Ho, Wo, c3), lambda n: (n, 0, 0, 0))],
        compiler_params=pltpu.CompilerParams(
            dimension_semantics=("parallel",)),
    )(p1, p2, p3, w1, w2)


# ----------------------------------------------------------------------------
# Parameters (torch layout) + one-time kernel-layout preparation
# ----------------------------------------------------------------------------
def init_params(key, in_channel, layers=(128, 160, 64, 96, 96)):
    ks = jax.random.split(key, 5)

    def w(k, cout, cin, kh, kw):
        return 0.05 * jax.random.normal(k, (cout, cin, kh, kw), jnp.float32)

    return {
        "b1c1": w(ks[0], layers[0], in_channel, 1, 1),
        "b1c2": w(ks[1], layers[1], layers[0], 3, 3),
        "b2c1": w(ks[2], layers[2], in_channel, 1, 1),
        "b2c2": w(ks[3], layers[3], layers[2], 3, 3),
        "b2c3": w(ks[4], layers[4], layers[3], 3, 3),
    }


def prepare_params(params):
    """Hoisted, one-time weight relayout into the shapes the kernels DMA."""
    c1 = params["b1c1"].shape[0]          # 128
    c2 = params["b2c1"].shape[0]          # 64
    cin = params["b1c1"].shape[1]
    w_1x1 = jnp.concatenate(
        [params["b1c1"].reshape(c1, cin), params["b2c1"].reshape(c2, cin)],
        axis=0).T                          # (Cin, c1 + c2)

    def prep3(w_oihw):                     # (Cout, Cin, 3, 3) -> (9, Cin, Cout)
        cout, cin_, _, _ = w_oihw.shape
        return jnp.transpose(w_oihw, (2, 3, 1, 0)).reshape(9, cin_, cout)

    return {
        "w_1x1": w_1x1,
        "w_b1c2": prep3(params["b1c2"]),   # (9, 128, 160)
        "w_b2c2": prep3(params["b2c2"]),   # (9, 64, 96)
        "w_b2c3": prep3(params["b2c3"]),   # (9, 96, 96)
    }


# ----------------------------------------------------------------------------
# Module forward
# ----------------------------------------------------------------------------
@jax.jit
def inceptionv2_dicount(x_nchw, prep):
    x = jnp.transpose(x_nchw, (0, 2, 3, 1))          # -> NHWC
    N, H, W, cin = x.shape
    assert H % 2 == 0 and W % 2 == 0, "even spatial dims required"
    c1 = prep["w_b1c2"].shape[1]                     # 128
    c2 = prep["w_b2c2"].shape[1]                     # 64

    # Fused branch-entry 1x1 convs (+ ReLU6), split back into the two branches.
    y1f, y2f = conv1x1_fused_relu6(x.reshape(N * H * W, cin),
                                   prep["w_1x1"], c1, c2)
    y1 = y1f.reshape(N, H, W, c1)
    y2 = y2f.reshape(N, H, W, c2)

    # branch2 middle: 3x3 stride-1 conv + ReLU6.
    b2m = conv3x3_s1_relu6(y2, prep["w_b2c2"])

    # Stride-2 tails + maxpool, fused in one kernel (phase-decomposed inputs).
    p1 = _phase_decompose(y1, 0.0)
    p2 = _phase_decompose(b2m, 0.0)
    p3 = _phase_decompose(x, -jnp.inf)               # pool pads with -inf
    b1, b2, b3 = fused_tail(p1, p2, p3, prep["w_b1c2"], prep["w_b2c3"])

    # Channel concat + NCHW layout (single fused XLA layout pass).
    out = jnp.concatenate([b1, b2, b3], axis=-1)
    return jnp.transpose(out, (0, 3, 1, 2))


# ----------------------------------------------------------------------------
# Pure-JAX reference (for correctness check)
# ----------------------------------------------------------------------------
def ref_forward(x_nchw, params):
    def conv(x, w, stride, pad):
        return lax.conv_general_dilated(
            x, w, (stride, stride), [(pad, pad), (pad, pad)],
            dimension_numbers=("NCHW", "OIHW", "NCHW"))

    r6 = lambda t: jnp.clip(t, 0.0, 6.0)
    b1 = r6(conv(r6(conv(x_nchw, params["b1c1"], 1, 0)), params["b1c2"], 2, 1))
    b2 = r6(conv(x_nchw, params["b2c1"], 1, 0))
    b2 = r6(conv(b2, params["b2c2"], 1, 1))
    b2 = r6(conv(b2, params["b2c3"], 2, 1))
    b3 = lax.reduce_window(x_nchw, -jnp.inf, lax.max,
                           (1, 1, 3, 3), (1, 1, 2, 2),
                           [(0, 0), (0, 0), (1, 1), (1, 1)])
    return jnp.concatenate([b1, b2, b3], axis=1)


if __name__ == "__main__":
    key = jax.random.PRNGKey(0)
    kx, kp = jax.random.split(key)

    N, Cin, H, W = 2, 4, 16, 16
    x = jax.random.normal(kx, (N, Cin, H, W), jnp.float32)
    params = init_params(kp, Cin)
    prep = prepare_params(params)

    out = jax.block_until_ready(inceptionv2_dicount(x, prep))
    ref = jax.block_until_ready(ref_forward(x, params))

    assert out.shape == (N, 160 + 96 + Cin, H // 2, W // 2), out.shape
    np.testing.assert_allclose(np.asarray(out), np.asarray(ref),
                               rtol=1e-4, atol=1e-4)
    print("KERNEL_OK")
</pallas_src>

<mosaic_0001>
module attributes {stable_mosaic.version = 11 : i64} {
  func.func @_fused_1x1_relu6_kernel(%arg0: i32, %arg1: memref<256x4xf32, #tpu.memory_space<vmem>>, %arg2: memref<4x192xf32, #tpu.memory_space<vmem>>, %arg3: memref<256x128xf32, #tpu.memory_space<vmem>>, %arg4: memref<256x64xf32, #tpu.memory_space<vmem>>) attributes {dimension_semantics = [#tpu.dimension_semantics<parallel>], iteration_bounds = array<i64: 2>, scalar_prefetch = 0 : i64, scratch_operands = 0 : i64, tpu.core_type = #tpu.core_type<tc>, window_params = [{transform_indices = @transform_0, window_bounds = array<i64: 256, 4>}, {pipeline_mode = #tpu.pipeline_mode<synchronous>, transform_indices = @transform_1, window_bounds = array<i64: 4, 192>}, {transform_indices = @transform_2, window_bounds = array<i64: 256, 128>}, {transform_indices = @transform_3, window_bounds = array<i64: 256, 64>}]} {
    %c0 = arith.constant 0 : index
    %c0_0 = arith.constant 0 : index
    %0 = vector.load %arg1[%c0, %c0_0] : memref<256x4xf32, #tpu.memory_space<vmem>>, vector<256x4xf32>
    %c0_1 = arith.constant 0 : index
    %c0_2 = arith.constant 0 : index
    %1 = vector.load %arg2[%c0_1, %c0_2] : memref<4x192xf32, #tpu.memory_space<vmem>>, vector<4x192xf32>
    %cst = arith.constant dense<0.000000e+00> : vector<256x192xf32>
    %2 = tpu.matmul %0, %1, %cst {dimension_numbers = #tpu.dot_dimension_numbers<[1], [0], [0], [1], [0, 0, 1, 1], [], []>} : vector<256x4xf32>, vector<4x192xf32>, vector<256x192xf32> -> vector<256x192xf32>
    %cst_3 = arith.constant 0.000000e+00 : f32
    %3 = vector.broadcast %cst_3 : f32 to vector<256x192xf32>
    %4 = arith.maximumf %2, %3 : vector<256x192xf32>
    %cst_4 = arith.constant 6.000000e+00 : f32
    %5 = vector.broadcast %cst_4 : f32 to vector<256x192xf32>
    %6 = arith.minimumf %4, %5 : vector<256x192xf32>
    %7 = vector.extract_strided_slice %6 {offsets = [0, 0], sizes = [256, 128], strides = [1, 1]} : vector<256x192xf32> to vector<256x128xf32>
    %c0_5 = arith.constant 0 : index
    %c0_6 = arith.constant 0 : index
    %8 = vector.load %arg3[%c0_5, %c0_6] : memref<256x128xf32, #tpu.memory_space<vmem>>, vector<256x128xf32>
    tpu.vector_store %arg3[%c0_5, %c0_6], %7 {strides = array<i32>} : memref<256x128xf32, #tpu.memory_space<vmem>>, vector<256x128xf32>,
    %9 = vector.extract_strided_slice %6 {offsets = [0, 128], sizes = [256, 64], strides = [1, 1]} : vector<256x192xf32> to vector<256x64xf32>
    %c0_7 = arith.constant 0 : index
    %c0_8 = arith.constant 0 : index
    %10 = vector.load %arg4[%c0_7, %c0_8] : memref<256x64xf32, #tpu.memory_space<vmem>>, vector<256x64xf32>
    tpu.vector_store %arg4[%c0_7, %c0_8], %9 {strides = array<i32>} : memref<256x64xf32, #tpu.memory_space<vmem>>, vector<256x64xf32>,
    return
  }
  func.func @transform_0(%arg0: i32) -> (i32, i32) {
    %c0_i32 = arith.constant 0 : i32
    %c0_i32_0 = arith.constant 0 : i32
    return %arg0, %c0_i32 : i32, i32
  }
  func.func @transform_1(%arg0: i32) -> (i32, i32) {
    %c0_i32 = arith.constant 0 : i32
    %c0_i32_0 = arith.constant 0 : i32
    %c0_i32_1 = arith.constant 0 : i32
    return %c0_i32, %c0_i32_0 : i32, i32
  }
  func.func @transform_2(%arg0: i32) -> (i32, i32) {
    %c0_i32 = arith.constant 0 : i32
    %c0_i32_0 = arith.constant 0 : i32
    return %arg0, %c0_i32 : i32, i32
  }
  func.func @transform_3(%arg0: i32) -> (i32, i32) {
    %c0_i32 = arith.constant 0 : i32
    %c0_i32_0 = arith.constant 0 : i32
    return %arg0, %c0_i32 : i32, i32
  }
}

module attributes {stable_mosaic.version = 11 : i64} {
  func.func @_conv3x3_s1_relu6_kernel(%arg0: i32, %arg1: memref<1x18x18x64xf32, #tpu.memory_space<vmem>>, %arg2: memref<9x64x96xf32, #tpu.memory_space<vmem>>, %arg3: memref<1x16x16x96xf32, #tpu.memory_space<vmem>>) attributes {dimension_semantics = [#tpu.dimension_semantics<parallel>], iteration_bounds = array<i64: 2>, scalar_prefetch = 0 : i64, scratch_operands = 0 : i64, tpu.core_type = #tpu.core_type<tc>, window_params = [{transform_indices = @transform_0, window_bounds = array<i64: 1, 18, 18, 64>}, {pipeline_mode = #tpu.pipeline_mode<synchronous>, transform_indices = @transform_1, window_bounds = array<i64: 9, 64, 96>}, {transform_indices = @transform_2, window_bounds = array<i64: 1, 16, 16, 96>}]} {
    %cst = arith.constant 0.000000e+00 : f32
    %0 = vector.broadcast %cst : f32 to vector<256x96xf32>
    %c0 = arith.constant 0 : index
    %c0_0 = arith.constant 0 : index
    %c0_1 = arith.constant 0 : index
    %c0_2 = arith.constant 0 : index
    %1 = vector.load %arg1[%c0, %c0_0, %c0_1, %c0_2] : memref<1x18x18x64xf32, #tpu.memory_space<vmem>>, vector<1x16x16x64xf32>
    %2 = vector.shape_cast %1 : vector<1x16x16x64xf32> to vector<16x16x64xf32>
    %3 = vector.shape_cast %2 : vector<16x16x64xf32> to vector<256x64xf32>
    %c0_3 = arith.constant 0 : index
    %c0_4 = arith.constant 0 : index
    %c0_5 = arith.constant 0 : index
    %4 = vector.load %arg2[%c0_3, %c0_4, %c0_5] : memref<9x64x96xf32, #tpu.memory_space<vmem>>, vector<1x64x96xf32>
    %5 = vector.shape_cast %4 : vector<1x64x96xf32> to vector<64x96xf32>
    %cst_6 = arith.constant dense<0.000000e+00> : vector<256x96xf32>
    %6 = tpu.matmul %3, %5, %cst_6 {dimension_numbers = #tpu.dot_dimension_numbers<[1], [0], [0], [1], [0, 0, 1, 1], [], []>} : vector<256x64xf32>, vector<64x96xf32>, vector<256x96xf32> -> vector<256x96xf32>
    %7 = arith.addf %0, %6 : vector<256x96xf32>
    %c0_7 = arith.constant 0 : index
    %c0_8 = arith.constant 0 : index
    %c1 = arith.constant 1 : index
    %c0_9 = arith.constant 0 : index
    %8 = vector.load %arg1[%c0_7, %c0_8, %c1, %c0_9] : memref<1x18x18x64xf32, #tpu.memory_space<vmem>>, vector<1x16x16x64xf32>
    %9 = vector.shape_cast %8 : vector<1x16x16x64xf32> to vector<16x16x64xf32>
    %10 = vector.shape_cast %9 : vector<16x16x64xf32> to vector<256x64xf32>
    %c1_10 = arith.constant 1 : index
    %c0_11 = arith.constant 0 : index
    %c0_12 = arith.constant 0 : index
    %11 = vector.load %arg2[%c1_10, %c0_11, %c0_12] : memref<9x64x96xf32, #tpu.memory_space<vmem>>, vector<1x64x96xf32>
    %12 = vector.shape_cast %11 : vector<1x64x96xf32> to vector<64x96xf32>
    %cst_13 = arith.constant dense<0.000000e+00> : vector<256x96xf32>
    %13 = tpu.matmul %10, %12, %cst_13 {dimension_numbers = #tpu.dot_dimension_numbers<[1], [0], [0], [1], [0, 0, 1, 1], [], []>} : vector<256x64xf32>, vector<64x96xf32>, vector<256x96xf32> -> vector<256x96xf32>
    %14 = arith.addf %7, %13 : vector<256x96xf32>
    %c0_14 = arith.constant 0 : index
    %c0_15 = arith.constant 0 : index
    %c2 = arith.constant 2 : index
    %c0_16 = arith.constant 0 : index
    %15 = vector.load %arg1[%c0_14, %c0_15, %c2, %c0_16] : memref<1x18x18x64xf32, #tpu.memory_space<vmem>>, vector<1x16x16x64xf32>
    %16 = vector.shape_cast %15 : vector<1x16x16x64xf32> to vector<16x16x64xf32>
    %17 = vector.shape_cast %16 : vector<16x16x64xf32> to vector<256x64xf32>
    %c2_17 = arith.constant 2 : index
    %c0_18 = arith.constant 0 : index
    %c0_19 = arith.constant 0 : index
    %18 = vector.load %arg2[%c2_17, %c0_18, %c0_19] : memref<9x64x96xf32, #tpu.memory_space<vmem>>, vector<1x64x96xf32>
    %19 = vector.shape_cast %18 : vector<1x64x96xf32> to vector<64x96xf32>
    %cst_20 = arith.constant dense<0.000000e+00> : vector<256x96xf32>
    %20 = tpu.matmul %17, %19, %cst_20 {dimension_numbers = #tpu.dot_dimension_numbers<[1], [0], [0], [1], [0, 0, 1, 1], [], []>} : vector<256x64xf32>, vector<64x96xf32>, vector<256x96xf32> -> vector<256x96xf32>
    %21 = arith.addf %14, %20 : vector<256x96xf32>
    %c0_21 = arith.constant 0 : index
    %c1_22 = arith.constant 1 : index
    %c0_23 = arith.constant 0 : index
    %c0_24 = arith.constant 0 : index
    %22 = vector.load %arg1[%c0_21, %c1_22, %c0_23, %c0_24] : memref<1x18x18x64xf32, #tpu.memory_space<vmem>>, vector<1x16x16x64xf32>
    %23 = vector.shape_cast %22 : vector<1x16x16x64xf32> to vector<16x16x64xf32>
    %24 = vector.shape_cast %23 : vector<16x16x64xf32> to vector<256x64xf32>
    %c3 = arith.constant 3 : index
    %c0_25 = arith.constant 0 : index
    %c0_26 = arith.constant 0 : index
    %25 = vector.load %arg2[%c3, %c0_25, %c0_26] : memref<9x64x96xf32, #tpu.memory_space<vmem>>, vector<1x64x96xf32>
    %26 = vector.shape_cast %25 : vector<1x64x96xf32> to vector<64x96xf32>
    %cst_27 = arith.constant dense<0.000000e+00> : vector<256x96xf32>
    %27 = tpu.matmul %24, %26, %cst_27 {dimension_numbers = #tpu.dot_dimension_numbers<[1], [0], [0], [1], [0, 0, 1, 1], [], []>} : vector<256x64xf32>, vector<64x96xf32>, vector<256x96xf32> -> vector<256x96xf32>
    %28 = arith.addf %21, %27 : vector<256x96xf32>
    %c0_28 = arith.constant 0 : index
    %c1_29 = arith.constant 1 : index
    %c1_30 = arith.constant 1 : index
    %c0_31 = arith.constant 0 : index
    %29 = vector.load %arg1[%c0_28, %c1_29, %c1_30, %c0_31] : memref<1x18x18x64xf32, #tpu.memory_space<vmem>>, vector<1x16x16x64xf32>
    %30 = vector.shape_cast %29 : vector<1x16x16x64xf32> to vector<16x16x64xf32>
    %31 = vector.shape_cast %30 : vector<16x16x64xf32> to vector<256x64xf32>
    %c4 = arith.constant 4 : index
    %c0_32 = arith.constant 0 : index
    %c0_33 = arith.constant 0 : index
    %32 = vector.load %arg2[%c4, %c0_32, %c0_33] : memref<9x64x96xf32, #tpu.memory_space<vmem>>, vector<1x64x96xf32>
    %33 = vector.shape_cast %32 : vector<1x64x96xf32> to vector<64x96xf32>
    %cst_34 = arith.constant dense<0.000000e+00> : vector<256x96xf32>
    %34 = tpu.matmul %31, %33, %cst_34 {dimension_numbers = #tpu.dot_dimension_numbers<[1], [0], [0], [1], [0, 0, 1, 1], [], []>} : vector<256x64xf32>, vector<64x96xf32>, vector<256x96xf32> -> vector<256x96xf32>
    %35 = arith.addf %28, %34 : vector<256x96xf32>
    %c0_35 = arith.constant 0 : index
    %c1_36 = arith.constant 1 : index
    %c2_37 = arith.constant 2 : index
    %c0_38 = arith.constant 0 : index
    %36 = vector.load %arg1[%c0_35, %c1_36, %c2_37, %c0_38] : memref<1x18x18x64xf32, #tpu.memory_space<vmem>>, vector<1x16x16x64xf32>
    %37 = vector.shape_cast %36 : vector<1x16x16x64xf32> to vector<16x16x64xf32>
    %38 = vector.shape_cast %37 : vector<16x16x64xf32> to vector<256x64xf32>
    %c5 = arith.constant 5 : index
    %c0_39 = arith.constant 0 : index
    %c0_40 = arith.constant 0 : index
    %39 = vector.load %arg2[%c5, %c0_39, %c0_40] : memref<9x64x96xf32, #tpu.memory_space<vmem>>, vector<1x64x96xf32>
    %40 = vector.shape_cast %39 : vector<1x64x96xf32> to vector<64x96xf32>
    %cst_41 = arith.constant dense<0.000000e+00> : vector<256x96xf32>
    %41 = tpu.matmul %38, %40, %cst_41 {dimension_numbers = #tpu.dot_dimension_numbers<[1], [0], [0], [1], [0, 0, 1, 1], [], []>} : vector<256x64xf32>, vector<64x96xf32>, vector<256x96xf32> -> vector<256x96xf32>
    %42 = arith.addf %35, %41 : vector<256x96xf32>
    %c0_42 = arith.constant 0 : index
    %c2_43 = arith.constant 2 : index
    %c0_44 = arith.constant 0 : index
    %c0_45 = arith.constant 0 : index
    %43 = vector.load %arg1[%c0_42, %c2_43, %c0_44, %c0_45] : memref<1x18x18x64xf32, #tpu.memory_space<vmem>>, vector<1x16x16x64xf32>
    %44 = vector.shape_cast %43 : vector<1x16x16x64xf32> to vector<16x16x64xf32>
    %45 = vector.shape_cast %44 : vector<16x16x64xf32> to vector<256x64xf32>
    %c6 = arith.constant 6 : index
    %c0_46 = arith.constant 0 : index
    %c0_47 = arith.constant 0 : index
    %46 = vector.load %arg2[%c6, %c0_46, %c0_47] : memref<9x64x96xf32, #tpu.memory_space<vmem>>, vector<1x64x96xf32>
    %47 = vector.shape_cast %46 : vector<1x64x96xf32> to vector<64x96xf32>
    %cst_48 = arith.constant dense<0.000000e+00> : vector<256x96xf32>
    %48 = tpu.matmul %45, %47, %cst_48 {dimension_numbers = #tpu.dot_dimension_numbers<[1], [0], [0], [1], [0, 0, 1, 1], [], []>} : vector<256x64xf32>, vector<64x96xf32>, vector<256x96xf32> -> vector<256x96xf32>
    %49 = arith.addf %42, %48 : vector<256x96xf32>
    %c0_49 = arith.constant 0 : index
    %c2_50 = arith.constant 2 : index
    %c1_51 = arith.constant 1 : index
    %c0_52 = arith.constant 0 : index
    %50 = vector.load %arg1[%c0_49, %c2_50, %c1_51, %c0_52] : memref<1x18x18x64xf32, #tpu.memory_space<vmem>>, vector<1x16x16x64xf32>
    %51 = vector.shape_cast %50 : vector<1x16x16x64xf32> to vector<16x16x64xf32>
    %52 = vector.shape_cast %51 : vector<16x16x64xf32> to vector<256x64xf32>
    %c7 = arith.constant 7 : index
    %c0_53 = arith.constant 0 : index
    %c0_54 = arith.constant 0 : index
    %53 = vector.load %arg2[%c7, %c0_53, %c0_54] : memref<9x64x96xf32, #tpu.memory_space<vmem>>, vector<1x64x96xf32>
    %54 = vector.shape_cast %53 : vector<1x64x96xf32> to vector<64x96xf32>
    %cst_55 = arith.constant dense<0.000000e+00> : vector<256x96xf32>
    %55 = tpu.matmul %52, %54, %cst_55 {dimension_numbers = #tpu.dot_dimension_numbers<[1], [0], [0], [1], [0, 0, 1, 1], [], []>} : vector<256x64xf32>, vector<64x96xf32>, vector<256x96xf32> -> vector<256x96xf32>
    %56 = arith.addf %49, %55 : vector<256x96xf32>
    %c0_56 = arith.constant 0 : index
    %c2_57 = arith.constant 2 : index
    %c2_58 = arith.constant 2 : index
    %c0_59 = arith.constant 0 : index
    %57 = vector.load %arg1[%c0_56, %c2_57, %c2_58, %c0_59] : memref<1x18x18x64xf32, #tpu.memory_space<vmem>>, vector<1x16x16x64xf32>
    %58 = vector.shape_cast %57 : vector<1x16x16x64xf32> to vector<16x16x64xf32>
    %59 = vector.shape_cast %58 : vector<16x16x64xf32> to vector<256x64xf32>
    %c8 = arith.constant 8 : index
    %c0_60 = arith.constant 0 : index
    %c0_61 = arith.constant 0 : index
    %60 = vector.load %arg2[%c8, %c0_60, %c0_61] : memref<9x64x96xf32, #tpu.memory_space<vmem>>, vector<1x64x96xf32>
    %61 = vector.shape_cast %60 : vector<1x64x96xf32> to vector<64x96xf32>
    %cst_62 = arith.constant dense<0.000000e+00> : vector<256x96xf32>
    %62 = tpu.matmul %59, %61, %cst_62 {dimension_numbers = #tpu.dot_dimension_numbers<[1], [0], [0], [1], [0, 0, 1, 1], [], []>} : vector<256x64xf32>, vector<64x96xf32>, vector<256x96xf32> -> vector<256x96xf32>
    %63 = arith.addf %56, %62 : vector<256x96xf32>
    %cst_63 = arith.constant 0.000000e+00 : f32
    %64 = vector.broadcast %cst_63 : f32 to vector<256x96xf32>
    %65 = arith.maximumf %63, %64 : vector<256x96xf32>
    %cst_64 = arith.constant 6.000000e+00 : f32
    %66 = vector.broadcast %cst_64 : f32 to vector<256x96xf32>
    %67 = arith.minimumf %65, %66 : vector<256x96xf32>
    %68 = vector.shape_cast %67 : vector<256x96xf32> to vector<16x16x96xf32>
    %c0_65 = arith.constant 0 : index
    %c0_66 = arith.constant 0 : index
    %c0_67 = arith.constant 0 : index
    %c0_68 = arith.constant 0 : index
    %69 = vector.load %arg3[%c0_65, %c0_66, %c0_67, %c0_68] : memref<1x16x16x96xf32, #tpu.memory_space<vmem>>, vector<1x16x16x96xf32>
    %70 = vector.shape_cast %69 : vector<1x16x16x96xf32> to vector<16x16x96xf32>
    %71 = vector.shape_cast %68 : vector<16x16x96xf32> to vector<1x16x16x96xf32>
    tpu.vector_store %arg3[%c0_65, %c0_66, %c0_67, %c0_68], %71 {strides = array<i32>} : memref<1x16x16x96xf32, #tpu.memory_space<vmem>>, vector<1x16x16x96xf32>,
    return
  }
  func.func @transform_0(%arg0: i32) -> (i32, i32, i32, i32) {
    %c0_i32 = arith.constant 0 : i32
    %c0_i32_0 = arith.constant 0 : i32
    %c0_i32_1 = arith.constant 0 : i32
    %c0_i32_2 = arith.constant 0 : i32
    return %arg0, %c0_i32, %c0_i32_0, %c0_i32_1 : i32, i32, i32, i32
  }
  func.func @transform_1(%arg0: i32) -> (i32, i32, i32) {
    %c0_i32 = arith.constant 0 : i32
    %c0_i32_0 = arith.constant 0 : i32
    %c0_i32_1 = arith.constant 0 : i32
    %c0_i32_2 = arith.constant 0 : i32
    return %c0_i32, %c0_i32_0, %c0_i32_1 : i32, i32, i32
  }
  func.func @transform_2(%arg0: i32) -> (i32, i32, i32, i32) {
    %c0_i32 = arith.constant 0 : i32
    %c0_i32_0 = arith.constant 0 : i32
    %c0_i32_1 = arith.constant 0 : i32
    %c0_i32_2 = arith.constant 0 : i32
    return %arg0, %c0_i32, %c0_i32_0, %c0_i32_1 : i32, i32, i32, i32
  }
}

module attributes {stable_mosaic.version = 11 : i64} {
  func.func @_tail_kernel(%arg0: i32, %arg1: memref<1x4x9x9x128xf32, #tpu.memory_space<vmem>>, %arg2: memref<1x4x9x9x96xf32, #tpu.memory_space<vmem>>, %arg3: memref<1x4x9x9x4xf32, #tpu.memory_space<vmem>>, %arg4: memref<9x128x160xf32, #tpu.memory_space<vmem>>, %arg5: memref<9x96x96xf32, #tpu.memory_space<vmem>>, %arg6: memref<1x8x8x160xf32, #tpu.memory_space<vmem>>, %arg7: memref<1x8x8x96xf32, #tpu.memory_space<vmem>>, %arg8: memref<1x8x8x4xf32, #tpu.memory_space<vmem>>) attributes {dimension_semantics = [#tpu.dimension_semantics<parallel>], iteration_bounds = array<i64: 2>, scalar_prefetch = 0 : i64, scratch_operands = 0 : i64, tpu.core_type = #tpu.core_type<tc>, window_params = [{transform_indices = @transform_0, window_bounds = array<i64: 1, 4, 9, 9, 128>}, {transform_indices = @transform_1, window_bounds = array<i64: 1, 4, 9, 9, 96>}, {transform_indices = @transform_2, window_bounds = array<i64: 1, 4, 9, 9, 4>}, {pipeline_mode = #tpu.pipeline_mode<synchronous>, transform_indices = @transform_3, window_bounds = array<i64: 9, 128, 160>}, {pipeline_mode = #tpu.pipeline_mode<synchronous>, transform_indices = @transform_4, window_bounds = array<i64: 9, 96, 96>}, {transform_indices = @transform_5, window_bounds = array<i64: 1, 8, 8, 160>}, {transform_indices = @transform_6, window_bounds = array<i64: 1, 8, 8, 96>}, {transform_indices = @transform_7, window_bounds = array<i64: 1, 8, 8, 4>}]} {
    %cst = arith.constant 0.000000e+00 : f32
    %0 = vector.broadcast %cst : f32 to vector<64x160xf32>
    %c0 = arith.constant 0 : index
    %c0_0 = arith.constant 0 : index
    %c0_1 = arith.constant 0 : index
    %c0_2 = arith.constant 0 : index
    %c0_3 = arith.constant 0 : index
    %1 = vector.load %arg1[%c0, %c0_0, %c0_1, %c0_2, %c0_3] : memref<1x4x9x9x128xf32, #tpu.memory_space<vmem>>, vector<1x1x8x8x128xf32>
    %2 = vector.shape_cast %1 : vector<1x1x8x8x128xf32> to vector<8x8x128xf32>
    %3 = vector.shape_cast %2 : vector<8x8x128xf32> to vector<64x128xf32>
    %c0_4 = arith.constant 0 : index
    %c0_5 = arith.constant 0 : index
    %c0_6 = arith.constant 0 : index
    %4 = vector.load %arg4[%c0_4, %c0_5, %c0_6] : memref<9x128x160xf32, #tpu.memory_space<vmem>>, vector<1x128x160xf32>
    %5 = vector.shape_cast %4 : vector<1x128x160xf32> to vector<128x160xf32>
    %cst_7 = arith.constant dense<0.000000e+00> : vector<64x160xf32>
    %6 = tpu.matmul %3, %5, %cst_7 {dimension_numbers = #tpu.dot_dimension_numbers<[1], [0], [0], [1], [0, 0, 1, 1], [], []>} : vector<64x128xf32>, vector<128x160xf32>, vector<64x160xf32> -> vector<64x160xf32>
    %7 = arith.addf %0, %6 : vector<64x160xf32>
    %c0_8 = arith.constant 0 : index
    %c1 = arith.constant 1 : index
    %c0_9 = arith.constant 0 : index
    %c0_10 = arith.constant 0 : index
    %c0_11 = arith.constant 0 : index
    %8 = vector.load %arg1[%c0_8, %c1, %c0_9, %c0_10, %c0_11] : memref<1x4x9x9x128xf32, #tpu.memory_space<vmem>>, vector<1x1x8x8x128xf32>
    %9 = vector.shape_cast %8 : vector<1x1x8x8x128xf32> to vector<8x8x128xf32>
    %10 = vector.shape_cast %9 : vector<8x8x128xf32> to vector<64x128xf32>
    %c1_12 = arith.constant 1 : index
    %c0_13 = arith.constant 0 : index
    %c0_14 = arith.constant 0 : index
    %11 = vector.load %arg4[%c1_12, %c0_13, %c0_14] : memref<9x128x160xf32, #tpu.memory_space<vmem>>, vector<1x128x160xf32>
    %12 = vector.shape_cast %11 : vector<1x128x160xf32> to vector<128x160xf32>
    %cst_15 = arith.constant dense<0.000000e+00> : vector<64x160xf32>
    %13 = tpu.matmul %10, %12, %cst_15 {dimension_numbers = #tpu.dot_dimension_numbers<[1], [0], [0], [1], [0, 0, 1, 1], [], []>} : vector<64x128xf32>, vector<128x160xf32>, vector<64x160xf32> -> vector<64x160xf32>
    %14 = arith.addf %7, %13 : vector<64x160xf32>
    %c0_16 = arith.constant 0 : index
    %c0_17 = arith.constant 0 : index
    %c0_18 = arith.constant 0 : index
    %c1_19 = arith.constant 1 : index
    %c0_20 = arith.constant 0 : index
    %15 = vector.load %arg1[%c0_16, %c0_17, %c0_18, %c1_19, %c0_20] : memref<1x4x9x9x128xf32, #tpu.memory_space<vmem>>, vector<1x1x8x8x128xf32>
    %16 = vector.shape_cast %15 : vector<1x1x8x8x128xf32> to vector<8x8x128xf32>
    %17 = vector.shape_cast %16 : vector<8x8x128xf32> to vector<64x128xf32>
    %c2 = arith.constant 2 : index
    %c0_21 = arith.constant 0 : index
    %c0_22 = arith.constant 0 : index
    %18 = vector.load %arg4[%c2, %c0_21, %c0_22] : memref<9x128x160xf32, #tpu.memory_space<vmem>>, vector<1x128x160xf32>
    %19 = vector.shape_cast %18 : vector<1x128x160xf32> to vector<128x160xf32>
    %cst_23 = arith.constant dense<0.000000e+00> : vector<64x160xf32>
    %20 = tpu.matmul %17, %19, %cst_23 {dimension_numbers = #tpu.dot_dimension_numbers<[1], [0], [0], [1], [0, 0, 1, 1], [], []>} : vector<64x128xf32>, vector<128x160xf32>, vector<64x160xf32> -> vector<64x160xf32>
    %21 = arith.addf %14, %20 : vector<64x160xf32>
    %c0_24 = arith.constant 0 : index
    %c2_25 = arith.constant 2 : index
    %c0_26 = arith.constant 0 : index
    %c0_27 = arith.constant 0 : index
    %c0_28 = arith.constant 0 : index
    %22 = vector.load %arg1[%c0_24, %c2_25, %c0_26, %c0_27, %c0_28] : memref<1x4x9x9x128xf32, #tpu.memory_space<vmem>>, vector<1x1x8x8x128xf32>
    %23 = vector.shape_cast %22 : vector<1x1x8x8x128xf32> to vector<8x8x128xf32>
    %24 = vector.shape_cast %23 : vector<8x8x128xf32> to vector<64x128xf32>
    %c3 = arith.constant 3 : index
    %c0_29 = arith.constant 0 : index
    %c0_30 = arith.constant 0 : index
    %25 = vector.load %arg4[%c3, %c0_29, %c0_30] : memref<9x128x160xf32, #tpu.memory_space<vmem>>, vector<1x128x160xf32>
    %26 = vector.shape_cast %25 : vector<1x128x160xf32> to vector<128x160xf32>
    %cst_31 = arith.constant dense<0.000000e+00> : vector<64x160xf32>
    %27 = tpu.matmul %24, %26, %cst_31 {dimension_numbers = #tpu.dot_dimension_numbers<[1], [0], [0], [1], [0, 0, 1, 1], [], []>} : vector<64x128xf32>, vector<128x160xf32>, vector<64x160xf32> -> vector<64x160xf32>
    %28 = arith.addf %21, %27 : vector<64x160xf32>
    %c0_32 = arith.constant 0 : index
    %c3_33 = arith.constant 3 : index
    %c0_34 = arith.constant 0 : index
    %c0_35 = arith.constant 0 : index
    %c0_36 = arith.constant 0 : index
    %29 = vector.load %arg1[%c0_32, %c3_33, %c0_34, %c0_35, %c0_36] : memref<1x4x9x9x128xf32, #tpu.memory_space<vmem>>, vector<1x1x8x8x128xf32>
    %30 = vector.shape_cast %29 : vector<1x1x8x8x128xf32> to vector<8x8x128xf32>
    %31 = vector.shape_cast %30 : vector<8x8x128xf32> to vector<64x128xf32>
    %c4 = arith.constant 4 : index
    %c0_37 = arith.constant 0 : index
    %c0_38 = arith.constant 0 : index
    %32 = vector.load %arg4[%c4, %c0_37, %c0_38] : memref<9x128x160xf32, #tpu.memory_space<vmem>>, vector<1x128x160xf32>
    %33 = vector.shape_cast %32 : vector<1x128x160xf32> to vector<128x160xf32>
    %cst_39 = arith.constant dense<0.000000e+00> : vector<64x160xf32>
    %34 = tpu.matmul %31, %33, %cst_39 {dimension_numbers = #tpu.dot_dimension_numbers<[1], [0], [0], [1], [0, 0, 1, 1], [], []>} : vector<64x128xf32>, vector<128x160xf32>, vector<64x160xf32> -> vector<64x160xf32>
    %35 = arith.addf %28, %34 : vector<64x160xf32>
    %c0_40 = arith.constant 0 : index
    %c2_41 = arith.constant 2 : index
    %c0_42 = arith.constant 0 : index
    %c1_43 = arith.constant 1 : index
    %c0_44 = arith.constant 0 : index
    %36 = vector.load %arg1[%c0_40, %c2_41, %c0_42, %c1_43, %c0_44] : memref<1x4x9x9x128xf32, #tpu.memory_space<vmem>>, vector<1x1x8x8x128xf32>
    %37 = vector.shape_cast %36 : vector<1x1x8x8x128xf32> to vector<8x8x128xf32>
    %38 = vector.shape_cast %37 : vector<8x8x128xf32> to vector<64x128xf32>
    %c5 = arith.constant 5 : index
    %c0_45 = arith.constant 0 : index
    %c0_46 = arith.constant 0 : index
    %39 = vector.load %arg4[%c5, %c0_45, %c0_46] : memref<9x128x160xf32, #tpu.memory_space<vmem>>, vector<1x128x160xf32>
    %40 = vector.shape_cast %39 : vector<1x128x160xf32> to vector<128x160xf32>
    %cst_47 = arith.constant dense<0.000000e+00> : vector<64x160xf32>
    %41 = tpu.matmul %38, %40, %cst_47 {dimension_numbers = #tpu.dot_dimension_numbers<[1], [0], [0], [1], [0, 0, 1, 1], [], []>} : vector<64x128xf32>, vector<128x160xf32>, vector<64x160xf32> -> vector<64x160xf32>
    %42 = arith.addf %35, %41 : vector<64x160xf32>
    %c0_48 = arith.constant 0 : index
    %c0_49 = arith.constant 0 : index
    %c1_50 = arith.constant 1 : index
    %c0_51 = arith.constant 0 : index
    %c0_52 = arith.constant 0 : index
    %43 = vector.load %arg1[%c0_48, %c0_49, %c1_50, %c0_51, %c0_52] : memref<1x4x9x9x128xf32, #tpu.memory_space<vmem>>, vector<1x1x8x8x128xf32>
    %44 = vector.shape_cast %43 : vector<1x1x8x8x128xf32> to vector<8x8x128xf32>
    %45 = vector.shape_cast %44 : vector<8x8x128xf32> to vector<64x128xf32>
    %c6 = arith.constant 6 : index
    %c0_53 = arith.constant 0 : index
    %c0_54 = arith.constant 0 : index
    %46 = vector.load %arg4[%c6, %c0_53, %c0_54] : memref<9x128x160xf32, #tpu.memory_space<vmem>>, vector<1x128x160xf32>
    %47 = vector.shape_cast %46 : vector<1x128x160xf32> to vector<128x160xf32>
    %cst_55 = arith.constant dense<0.000000e+00> : vector<64x160xf32>
    %48 = tpu.matmul %45, %47, %cst_55 {dimension_numbers = #tpu.dot_dimension_numbers<[1], [0], [0], [1], [0, 0, 1, 1], [], []>} : vector<64x128xf32>, vector<128x160xf32>, vector<64x160xf32> -> vector<64x160xf32>
    %49 = arith.addf %42, %48 : vector<64x160xf32>
    %c0_56 = arith.constant 0 : index
    %c1_57 = arith.constant 1 : index
    %c1_58 = arith.constant 1 : index
    %c0_59 = arith.constant 0 : index
    %c0_60 = arith.constant 0 : index
    %50 = vector.load %arg1[%c0_56, %c1_57, %c1_58, %c0_59, %c0_60] : memref<1x4x9x9x128xf32, #tpu.memory_space<vmem>>, vector<1x1x8x8x128xf32>
    %51 = vector.shape_cast %50 : vector<1x1x8x8x128xf32> to vector<8x8x128xf32>
    %52 = vector.shape_cast %51 : vector<8x8x128xf32> to vector<64x128xf32>
    %c7 = arith.constant 7 : index
    %c0_61 = arith.constant 0 : index
    %c0_62 = arith.constant 0 : index
    %53 = vector.load %arg4[%c7, %c0_61, %c0_62] : memref<9x128x160xf32, #tpu.memory_space<vmem>>, vector<1x128x160xf32>
    %54 = vector.shape_cast %53 : vector<1x128x160xf32> to vector<128x160xf32>
    %cst_63 = arith.constant dense<0.000000e+00> : vector<64x160xf32>
    %55 = tpu.matmul %52, %54, %cst_63 {dimension_numbers = #tpu.dot_dimension_numbers<[1], [0], [0], [1], [0, 0, 1, 1], [], []>} : vector<64x128xf32>, vector<128x160xf32>, vector<64x160xf32> -> vector<64x160xf32>
    %56 = arith.addf %49, %55 : vector<64x160xf32>
    %c0_64 = arith.constant 0 : index
    %c0_65 = arith.constant 0 : index
    %c1_66 = arith.constant 1 : index
    %c1_67 = arith.constant 1 : index
    %c0_68 = arith.constant 0 : index
    %57 = vector.load %arg1[%c0_64, %c0_65, %c1_66, %c1_67, %c0_68] : memref<1x4x9x9x128xf32, #tpu.memory_space<vmem>>, vector<1x1x8x8x128xf32>
    %58 = vector.shape_cast %57 : vector<1x1x8x8x128xf32> to vector<8x8x128xf32>
    %59 = vector.shape_cast %58 : vector<8x8x128xf32> to vector<64x128xf32>
    %c8 = arith.constant 8 : index
    %c0_69 = arith.constant 0 : index
    %c0_70 = arith.constant 0 : index
    %60 = vector.load %arg4[%c8, %c0_69, %c0_70] : memref<9x128x160xf32, #tpu.memory_space<vmem>>, vector<1x128x160xf32>
    %61 = vector.shape_cast %60 : vector<1x128x160xf32> to vector<128x160xf32>
    %cst_71 = arith.constant dense<0.000000e+00> : vector<64x160xf32>
    %62 = tpu.matmul %59, %61, %cst_71 {dimension_numbers = #tpu.dot_dimension_numbers<[1], [0], [0], [1], [0, 0, 1, 1], [], []>} : vector<64x128xf32>, vector<128x160xf32>, vector<64x160xf32> -> vector<64x160xf32>
    %63 = arith.addf %56, %62 : vector<64x160xf32>
    %cst_72 = arith.constant 0.000000e+00 : f32
    %64 = vector.broadcast %cst_72 : f32 to vector<64x160xf32>
    %65 = arith.maximumf %63, %64 : vector<64x160xf32>
    %cst_73 = arith.constant 6.000000e+00 : f32
    %66 = vector.broadcast %cst_73 : f32 to vector<64x160xf32>
    %67 = arith.minimumf %65, %66 : vector<64x160xf32>
    %68 = vector.shape_cast %67 : vector<64x160xf32> to vector<8x8x160xf32>
    %c0_74 = arith.constant 0 : index
    %c0_75 = arith.constant 0 : index
    %c0_76 = arith.constant 0 : index
    %c0_77 = arith.constant 0 : index
    %69 = vector.load %arg6[%c0_74, %c0_75, %c0_76, %c0_77] : memref<1x8x8x160xf32, #tpu.memory_space<vmem>>, vector<1x8x8x160xf32>
    %70 = vector.shape_cast %69 : vector<1x8x8x160xf32> to vector<8x8x160xf32>
    %71 = vector.shape_cast %68 : vector<8x8x160xf32> to vector<1x8x8x160xf32>
    tpu.vector_store %arg6[%c0_74, %c0_75, %c0_76, %c0_77], %71 {strides = array<i32>} : memref<1x8x8x160xf32, #tpu.memory_space<vmem>>, vector<1x8x8x160xf32>,
    %cst_78 = arith.constant 0.000000e+00 : f32
    %72 = vector.broadcast %cst_78 : f32 to vector<64x96xf32>
    %c0_79 = arith.constant 0 : index
    %c0_80 = arith.constant 0 : index
    %c0_81 = arith.constant 0 : index
    %c0_82 = arith.constant 0 : index
    %c0_83 = arith.constant 0 : index
    %73 = vector.load %arg2[%c0_79, %c0_80, %c0_81, %c0_82, %c0_83] : memref<1x4x9x9x96xf32, #tpu.memory_space<vmem>>, vector<1x1x8x8x96xf32>
    %74 = vector.shape_cast %73 : vector<1x1x8x8x96xf32> to vector<8x8x96xf32>
    %75 = vector.shape_cast %74 : vector<8x8x96xf32> to vector<64x96xf32>
    %c0_84 = arith.constant 0 : index
    %c0_85 = arith.constant 0 : index
    %c0_86 = arith.constant 0 : index
    %76 = vector.load %arg5[%c0_84, %c0_85, %c0_86] : memref<9x96x96xf32, #tpu.memory_space<vmem>>, vector<1x96x96xf32>
    %77 = vector.shape_cast %76 : vector<1x96x96xf32> to vector<96x96xf32>
    %cst_87 = arith.constant dense<0.000000e+00> : vector<64x96xf32>
    %78 = tpu.matmul %75, %77, %cst_87 {dimension_numbers = #tpu.dot_dimension_numbers<[1], [0], [0], [1], [0, 0, 1, 1], [], []>} : vector<64x96xf32>, vector<96x96xf32>, vector<64x96xf32> -> vector<64x96xf32>
    %79 = arith.addf %72, %78 : vector<64x96xf32>
    %c0_88 = arith.constant 0 : index
    %c1_89 = arith.constant 1 : index
    %c0_90 = arith.constant 0 : index
    %c0_91 = arith.constant 0 : index
    %c0_92 = arith.constant 0 : index
    %80 = vector.load %arg2[%c0_88, %c1_89, %c0_90, %c0_91, %c0_92] : memref<1x4x9x9x96xf32, #tpu.memory_space<vmem>>, vector<1x1x8x8x96xf32>
    %81 = vector.shape_cast %80 : vector<1x1x8x8x96xf32> to vector<8x8x96xf32>
    %82 = vector.shape_cast %81 : vector<8x8x96xf32> to vector<64x96xf32>
    %c1_93 = arith.constant 1 : index
    %c0_94 = arith.constant 0 : index
    %c0_95 = arith.constant 0 : index
    %83 = vector.load %arg5[%c1_93, %c0_94, %c0_95] : memref<9x96x96xf32, #tpu.memory_space<vmem>>, vector<1x96x96xf32>
    %84 = vector.shape_cast %83 : vector<1x96x96xf32> to vector<96x96xf32>
    %cst_96 = arith.constant dense<0.000000e+00> : vector<64x96xf32>
    %85 = tpu.matmul %82, %84, %cst_96 {dimension_numbers = #tpu.dot_dimension_numbers<[1], [0], [0], [1], [0, 0, 1, 1], [], []>} : vector<64x96xf32>, vector<96x96xf32>, vector<64x96xf32> -> vector<64x96xf32>
    %86 = arith.addf %79, %85 : vector<64x96xf32>
    %c0_97 = arith.constant 0 : index
    %c0_98 = arith.constant 0 : index
    %c0_99 = arith.constant 0 : index
    %c1_100 = arith.constant 1 : index
    %c0_101 = arith.constant 0 : index
    %87 = vector.load %arg2[%c0_97, %c0_98, %c0_99, %c1_100, %c0_101] : memref<1x4x9x9x96xf32, #tpu.memory_space<vmem>>, vector<1x1x8x8x96xf32>
    %88 = vector.shape_cast %87 : vector<1x1x8x8x96xf32> to vector<8x8x96xf32>
    %89 = vector.shape_cast %88 : vector<8x8x96xf32> to vector<64x96xf32>
    %c2_102 = arith.constant 2 : index
    %c0_103 = arith.constant 0 : index
    %c0_104 = arith.constant 0 : index
    %90 = vector.load %arg5[%c2_102, %c0_103, %c0_104] : memref<9x96x96xf32, #tpu.memory_space<vmem>>, vector<1x96x96xf32>
    %91 = vector.shape_cast %90 : vector<1x96x96xf32> to vector<96x96xf32>
    %cst_105 = arith.constant dense<0.000000e+00> : vector<64x96xf32>
    %92 = tpu.matmul %89, %91, %cst_105 {dimension_numbers = #tpu.dot_dimension_numbers<[1], [0], [0], [1], [0, 0, 1, 1], [], []>} : vector<64x96xf32>, vector<96x96xf32>, vector<64x96xf32> -> vector<64x96xf32>
    %93 = arith.addf %86, %92 : vector<64x96xf32>
    %c0_106 = arith.constant 0 : index
    %c2_107 = arith.constant 2 : index
    %c0_108 = arith.constant 0 : index
    %c0_109 = arith.constant 0 : index
    %c0_110 = arith.constant 0 : index
    %94 = vector.load %arg2[%c0_106, %c2_107, %c0_108, %c0_109, %c0_110] : memref<1x4x9x9x96xf32, #tpu.memory_space<vmem>>, vector<1x1x8x8x96xf32>
    %95 = vector.shape_cast %94 : vector<1x1x8x8x96xf32> to vector<8x8x96xf32>
    %96 = vector.shape_cast %95 : vector<8x8x96xf32> to vector<64x96xf32>
    %c3_111 = arith.constant 3 : index
    %c0_112 = arith.constant 0 : index
    %c0_113 = arith.constant 0 : index
    %97 = vector.load %arg5[%c3_111, %c0_112, %c0_113] : memref<9x96x96xf32, #tpu.memory_space<vmem>>, vector<1x96x96xf32>
    %98 = vector.shape_cast %97 : vector<1x96x96xf32> to vector<96x96xf32>
    %cst_114 = arith.constant dense<0.000000e+00> : vector<64x96xf32>
    %99 = tpu.matmul %96, %98, %cst_114 {dimension_numbers = #tpu.dot_dimension_numbers<[1], [0], [0], [1], [0, 0, 1, 1], [], []>} : vector<64x96xf32>, vector<96x96xf32>, vector<64x96xf32> -> vector<64x96xf32>
    %100 = arith.addf %93, %99 : vector<64x96xf32>
    %c0_115 = arith.constant 0 : index
    %c3_116 = arith.constant 3 : index
    %c0_117 = arith.constant 0 : index
    %c0_118 = arith.constant 0 : index
    %c0_119 = arith.constant 0 : index
    %101 = vector.load %arg2[%c0_115, %c3_116, %c0_117, %c0_118, %c0_119] : memref<1x4x9x9x96xf32, #tpu.memory_space<vmem>>, vector<1x1x8x8x96xf32>
    %102 = vector.shape_cast %101 : vector<1x1x8x8x96xf32> to vector<8x8x96xf32>
    %103 = vector.shape_cast %102 : vector<8x8x96xf32> to vector<64x96xf32>
    %c4_120 = arith.constant 4 : index
    %c0_121 = arith.constant 0 : index
    %c0_122 = arith.constant 0 : index
    %104 = vector.load %arg5[%c4_120, %c0_121, %c0_122] : memref<9x96x96xf32, #tpu.memory_space<vmem>>, vector<1x96x96xf32>
    %105 = vector.shape_cast %104 : vector<1x96x96xf32> to vector<96x96xf32>
    %cst_123 = arith.constant dense<0.000000e+00> : vector<64x96xf32>
    %106 = tpu.matmul %103, %105, %cst_123 {dimension_numbers = #tpu.dot_dimension_numbers<[1], [0], [0], [1], [0, 0, 1, 1], [], []>} : vector<64x96xf32>, vector<96x96xf32>, vector<64x96xf32> -> vector<64x96xf32>
    %107 = arith.addf %100, %106 : vector<64x96xf32>
    %c0_124 = arith.constant 0 : index
    %c2_125 = arith.constant 2 : index
    %c0_126 = arith.constant 0 : index
    %c1_127 = arith.constant 1 : index
    %c0_128 = arith.constant 0 : index
    %108 = vector.load %arg2[%c0_124, %c2_125, %c0_126, %c1_127, %c0_128] : memref<1x4x9x9x96xf32, #tpu.memory_space<vmem>>, vector<1x1x8x8x96xf32>
    %109 = vector.shape_cast %108 : vector<1x1x8x8x96xf32> to vector<8x8x96xf32>
    %110 = vector.shape_cast %109 : vector<8x8x96xf32> to vector<64x96xf32>
    %c5_129 = arith.constant 5 : index
    %c0_130 = arith.constant 0 : index
    %c0_131 = arith.constant 0 : index
    %111 = vector.load %arg5[%c5_129, %c0_130, %c0_131] : memref<9x96x96xf32, #tpu.memory_space<vmem>>, vector<1x96x96xf32>
    %112 = vector.shape_cast %111 : vector<1x96x96xf32> to vector<96x96xf32>
    %cst_132 = arith.constant dense<0.000000e+00> : vector<64x96xf32>
    %113 = tpu.matmul %110, %112, %cst_132 {dimension_numbers = #tpu.dot_dimension_numbers<[1], [0], [0], [1], [0, 0, 1, 1], [], []>} : vector<64x96xf32>, vector<96x96xf32>, vector<64x96xf32> -> vector<64x96xf32>
    %114 = arith.addf %107, %113 : vector<64x96xf32>
    %c0_133 = arith.constant 0 : index
    %c0_134 = arith.constant 0 : index
    %c1_135 = arith.constant 1 : index
    %c0_136 = arith.constant 0 : index
    %c0_137 = arith.constant 0 : index
    %115 = vector.load %arg2[%c0_133, %c0_134, %c1_135, %c0_136, %c0_137] : memref<1x4x9x9x96xf32, #tpu.memory_space<vmem>>, vector<1x1x8x8x96xf32>
    %116 = vector.shape_cast %115 : vector<1x1x8x8x96xf32> to vector<8x8x96xf32>
    %117 = vector.shape_cast %116 : vector<8x8x96xf32> to vector<64x96xf32>
    %c6_138 = arith.constant 6 : index
    %c0_139 = arith.constant 0 : index
    %c0_140 = arith.constant 0 : index
    %118 = vector.load %arg5[%c6_138, %c0_139, %c0_140] : memref<9x96x96xf32, #tpu.memory_space<vmem>>, vector<1x96x96xf32>
    %119 = vector.shape_cast %118 : vector<1x96x96xf32> to vector<96x96xf32>
    %cst_141 = arith.constant dense<0.000000e+00> : vector<64x96xf32>
    %120 = tpu.matmul %117, %119, %cst_141 {dimension_numbers = #tpu.dot_dimension_numbers<[1], [0], [0], [1], [0, 0, 1, 1], [], []>} : vector<64x96xf32>, vector<96x96xf32>, vector<64x96xf32> -> vector<64x96xf32>
    %121 = arith.addf %114, %120 : vector<64x96xf32>
    %c0_142 = arith.constant 0 : index
    %c1_143 = arith.constant 1 : index
    %c1_144 = arith.constant 1 : index
    %c0_145 = arith.constant 0 : index
    %c0_146 = arith.constant 0 : index
    %122 = vector.load %arg2[%c0_142, %c1_143, %c1_144, %c0_145, %c0_146] : memref<1x4x9x9x96xf32, #tpu.memory_space<vmem>>, vector<1x1x8x8x96xf32>
    %123 = vector.shape_cast %122 : vector<1x1x8x8x96xf32> to vector<8x8x96xf32>
    %124 = vector.shape_cast %123 : vector<8x8x96xf32> to vector<64x96xf32>
    %c7_147 = arith.constant 7 : index
    %c0_148 = arith.constant 0 : index
    %c0_149 = arith.constant 0 : index
    %125 = vector.load %arg5[%c7_147, %c0_148, %c0_149] : memref<9x96x96xf32, #tpu.memory_space<vmem>>, vector<1x96x96xf32>
    %126 = vector.shape_cast %125 : vector<1x96x96xf32> to vector<96x96xf32>
    %cst_150 = arith.constant dense<0.000000e+00> : vector<64x96xf32>
    %127 = tpu.matmul %124, %126, %cst_150 {dimension_numbers = #tpu.dot_dimension_numbers<[1], [0], [0], [1], [0, 0, 1, 1], [], []>} : vector<64x96xf32>, vector<96x96xf32>, vector<64x96xf32> -> vector<64x96xf32>
    %128 = arith.addf %121, %127 : vector<64x96xf32>
    %c0_151 = arith.constant 0 : index
    %c0_152 = arith.constant 0 : index
    %c1_153 = arith.constant 1 : index
    %c1_154 = arith.constant 1 : index
    %c0_155 = arith.constant 0 : index
    %129 = vector.load %arg2[%c0_151, %c0_152, %c1_153, %c1_154, %c0_155] : memref<1x4x9x9x96xf32, #tpu.memory_space<vmem>>, vector<1x1x8x8x96xf32>
    %130 = vector.shape_cast %129 : vector<1x1x8x8x96xf32> to vector<8x8x96xf32>
    %131 = vector.shape_cast %130 : vector<8x8x96xf32> to vector<64x96xf32>
    %c8_156 = arith.constant 8 : index
    %c0_157 = arith.constant 0 : index
    %c0_158 = arith.constant 0 : index
    %132 = vector.load %arg5[%c8_156, %c0_157, %c0_158] : memref<9x96x96xf32, #tpu.memory_space<vmem>>, vector<1x96x96xf32>
    %133 = vector.shape_cast %132 : vector<1x96x96xf32> to vector<96x96xf32>
    %cst_159 = arith.constant dense<0.000000e+00> : vector<64x96xf32>
    %134 = tpu.matmul %131, %133, %cst_159 {dimension_numbers = #tpu.dot_dimension_numbers<[1], [0], [0], [1], [0, 0, 1, 1], [], []>} : vector<64x96xf32>, vector<96x96xf32>, vector<64x96xf32> -> vector<64x96xf32>
    %135 = arith.addf %128, %134 : vector<64x96xf32>
    %cst_160 = arith.constant 0.000000e+00 : f32
    %136 = vector.broadcast %cst_160 : f32 to vector<64x96xf32>
    %137 = arith.maximumf %135, %136 : vector<64x96xf32>
    %cst_161 = arith.constant 6.000000e+00 : f32
    %138 = vector.broadcast %cst_161 : f32 to vector<64x96xf32>
    %139 = arith.minimumf %137, %138 : vector<64x96xf32>
    %140 = vector.shape_cast %139 : vector<64x96xf32> to vector<8x8x96xf32>
    %c0_162 = arith.constant 0 : index
    %c0_163 = arith.constant 0 : index
    %c0_164 = arith.constant 0 : index
    %c0_165 = arith.constant 0 : index
    %141 = vector.load %arg7[%c0_162, %c0_163, %c0_164, %c0_165] : memref<1x8x8x96xf32, #tpu.memory_space<vmem>>, vector<1x8x8x96xf32>
    %142 = vector.shape_cast %141 : vector<1x8x8x96xf32> to vector<8x8x96xf32>
    %143 = vector.shape_cast %140 : vector<8x8x96xf32> to vector<1x8x8x96xf32>
    tpu.vector_store %arg7[%c0_162, %c0_163, %c0_164, %c0_165], %143 {strides = array<i32>} : memref<1x8x8x96xf32, #tpu.memory_space<vmem>>, vector<1x8x8x96xf32>,
    %c0_166 = arith.constant 0 : index
    %c0_167 = arith.constant 0 : index
    %c0_168 = arith.constant 0 : index
    %c0_169 = arith.constant 0 : index
    %c0_170 = arith.constant 0 : index
    %144 = vector.load %arg3[%c0_166, %c0_167, %c0_168, %c0_169, %c0_170] : memref<1x4x9x9x4xf32, #tpu.memory_space<vmem>>, vector<1x1x8x8x4xf32>
    %145 = vector.shape_cast %144 : vector<1x1x8x8x4xf32> to vector<8x8x4xf32>
    %c0_171 = arith.constant 0 : index
    %c1_172 = arith.constant 1 : index
    %c0_173 = arith.constant 0 : index
    %c0_174 = arith.constant 0 : index
    %c0_175 = arith.constant 0 : index
    %146 = vector.load %arg3[%c0_171, %c1_172, %c0_173, %c0_174, %c0_175] : memref<1x4x9x9x4xf32, #tpu.memory_space<vmem>>, vector<1x1x8x8x4xf32>
    %147 = vector.shape_cast %146 : vector<1x1x8x8x4xf32> to vector<8x8x4xf32>
    %148 = arith.maximumf %145, %147 : vector<8x8x4xf32>
    %c0_176 = arith.constant 0 : index
    %c0_177 = arith.constant 0 : index
    %c0_178 = arith.constant 0 : index
    %c1_179 = arith.constant 1 : index
    %c0_180 = arith.constant 0 : index
    %149 = vector.load %arg3[%c0_176, %c0_177, %c0_178, %c1_179, %c0_180] : memref<1x4x9x9x4xf32, #tpu.memory_space<vmem>>, vector<1x1x8x8x4xf32>
    %150 = vector.shape_cast %149 : vector<1x1x8x8x4xf32> to vector<8x8x4xf32>
    %151 = arith.maximumf %148, %150 : vector<8x8x4xf32>
    %c0_181 = arith.constant 0 : index
    %c2_182 = arith.constant 2 : index
    %c0_183 = arith.constant 0 : index
    %c0_184 = arith.constant 0 : index
    %c0_185 = arith.constant 0 : index
    %152 = vector.load %arg3[%c0_181, %c2_182, %c0_183, %c0_184, %c0_185] : memref<1x4x9x9x4xf32, #tpu.memory_space<vmem>>, vector<1x1x8x8x4xf32>
    %153 = vector.shape_cast %152 : vector<1x1x8x8x4xf32> to vector<8x8x4xf32>
    %154 = arith.maximumf %151, %153 : vector<8x8x4xf32>
    %c0_186 = arith.constant 0 : index
    %c3_187 = arith.constant 3 : index
    %c0_188 = arith.constant 0 : index
    %c0_189 = arith.constant 0 : index
    %c0_190 = arith.constant 0 : index
    %155 = vector.load %arg3[%c0_186, %c3_187, %c0_188, %c0_189, %c0_190] : memref<1x4x9x9x4xf32, #tpu.memory_space<vmem>>, vector<1x1x8x8x4xf32>
    %156 = vector.shape_cast %155 : vector<1x1x8x8x4xf32> to vector<8x8x4xf32>
    %157 = arith.maximumf %154, %156 : vector<8x8x4xf32>
    %c0_191 = arith.constant 0 : index
    %c2_192 = arith.constant 2 : index
    %c0_193 = arith.constant 0 : index
    %c1_194 = arith.constant 1 : index
    %c0_195 = arith.constant 0 : index
    %158 = vector.load %arg3[%c0_191, %c2_192, %c0_193, %c1_194, %c0_195] : memref<1x4x9x9x4xf32, #tpu.memory_space<vmem>>, vector<1x1x8x8x4xf32>
    %159 = vector.shape_cast %158 : vector<1x1x8x8x4xf32> to vector<8x8x4xf32>
    %160 = arith.maximumf %157, %159 : vector<8x8x4xf32>
    %c0_196 = arith.constant 0 : index
    %c0_197 = arith.constant 0 : index
    %c1_198 = arith.constant 1 : index
    %c0_199 = arith.constant 0 : index
    %c0_200 = arith.constant 0 : index
    %161 = vector.load %arg3[%c0_196, %c0_197, %c1_198, %c0_199, %c0_200] : memref<1x4x9x9x4xf32, #tpu.memory_space<vmem>>, vector<1x1x8x8x4xf32>
    %162 = vector.shape_cast %161 : vector<1x1x8x8x4xf32> to vector<8x8x4xf32>
    %163 = arith.maximumf %160, %162 : vector<8x8x4xf32>
    %c0_201 = arith.constant 0 : index
    %c1_202 = arith.constant 1 : index
    %c1_203 = arith.constant 1 : index
    %c0_204 = arith.constant 0 : index
    %c0_205 = arith.constant 0 : index
    %164 = vector.load %arg3[%c0_201, %c1_202, %c1_203, %c0_204, %c0_205] : memref<1x4x9x9x4xf32, #tpu.memory_space<vmem>>, vector<1x1x8x8x4xf32>
    %165 = vector.shape_cast %164 : vector<1x1x8x8x4xf32> to vector<8x8x4xf32>
    %166 = arith.maximumf %163, %165 : vector<8x8x4xf32>
    %c0_206 = arith.constant 0 : index
    %c0_207 = arith.constant 0 : index
    %c1_208 = arith.constant 1 : index
    %c1_209 = arith.constant 1 : index
    %c0_210 = arith.constant 0 : index
    %167 = vector.load %arg3[%c0_206, %c0_207, %c1_208, %c1_209, %c0_210] : memref<1x4x9x9x4xf32, #tpu.memory_space<vmem>>, vector<1x1x8x8x4xf32>
    %168 = vector.shape_cast %167 : vector<1x1x8x8x4xf32> to vector<8x8x4xf32>
    %169 = arith.maximumf %166, %168 : vector<8x8x4xf32>
    %c0_211 = arith.constant 0 : index
    %c0_212 = arith.constant 0 : index
    %c0_213 = arith.constant 0 : index
    %c0_214 = arith.constant 0 : index
    %170 = vector.load %arg8[%c0_211, %c0_212, %c0_213, %c0_214] : memref<1x8x8x4xf32, #tpu.memory_space<vmem>>, vector<1x8x8x4xf32>
    %171 = vector.shape_cast %170 : vector<1x8x8x4xf32> to vector<8x8x4xf32>
    %172 = vector.shape_cast %169 : vector<8x8x4xf32> to vector<1x8x8x4xf32>
    tpu.vector_store %arg8[%c0_211, %c0_212, %c0_213, %c0_214], %172 {strides = array<i32>} : memref<1x8x8x4xf32, #tpu.memory_space<vmem>>, vector<1x8x8x4xf32>,
    return
  }
  func.func @transform_0(%arg0: i32) -> (i32, i32, i32, i32, i32) {
    %c0_i32 = arith.constant 0 : i32
    %c0_i32_0 = arith.constant 0 : i32
    %c0_i32_1 = arith.constant 0 : i32
    %c0_i32_2 = arith.constant 0 : i32
    %c0_i32_3 = arith.constant 0 : i32
    return %arg0, %c0_i32, %c0_i32_0, %c0_i32_1, %c0_i32_2 : i32, i32, i32, i32, i32
  }
  func.func @transform_1(%arg0: i32) -> (i32, i32, i32, i32, i32) {
    %c0_i32 = arith.constant 0 : i32
    %c0_i32_0 = arith.constant 0 : i32
    %c0_i32_1 = arith.constant 0 : i32
    %c0_i32_2 = arith.constant 0 : i32
    %c0_i32_3 = arith.constant 0 : i32
    return %arg0, %c0_i32, %c0_i32_0, %c0_i32_1, %c0_i32_2 : i32, i32, i32, i32, i32
  }
  func.func @transform_2(%arg0: i32) -> (i32, i32, i32, i32, i32) {
    %c0_i32 = arith.constant 0 : i32
    %c0_i32_0 = arith.constant 0 : i32
    %c0_i32_1 = arith.constant 0 : i32
    %c0_i32_2 = arith.constant 0 : i32
    %c0_i32_3 = arith.constant 0 : i32
    return %arg0, %c0_i32, %c0_i32_0, %c0_i32_1, %c0_i32_2 : i32, i32, i32, i32, i32
  }
  func.func @transform_3(%arg0: i32) -> (i32, i32, i32) {
    %c0_i32 = arith.constant 0 : i32
    %c0_i32_0 = arith.constant 0 : i32
    %c0_i32_1 = arith.constant 0 : i32
    %c0_i32_2 = arith.constant 0 : i32
    return %c0_i32, %c0_i32_0, %c0_i32_1 : i32, i32, i32
  }
  func.func @transform_4(%arg0: i32) -> (i32, i32, i32) {
    %c0_i32 = arith.constant 0 : i32
    %c0_i32_0 = arith.constant 0 : i32
    %c0_i32_1 = arith.constant 0 : i32
    %c0_i32_2 = arith.constant 0 : i32
    return %c0_i32, %c0_i32_0, %c0_i32_1 : i32, i32, i32
  }
  func.func @transform_5(%arg0: i32) -> (i32, i32, i32, i32) {
    %c0_i32 = arith.constant 0 : i32
    %c0_i32_0 = arith.constant 0 : i32
    %c0_i32_1 = arith.constant 0 : i32
    %c0_i32_2 = arith.constant 0 : i32
    return %arg0, %c0_i32, %c0_i32_0, %c0_i32_1 : i32, i32, i32, i32
  }
  func.func @transform_6(%arg0: i32) -> (i32, i32, i32, i32) {
    %c0_i32 = arith.constant 0 : i32
    %c0_i32_0 = arith.constant 0 : i32
    %c0_i32_1 = arith.constant 0 : i32
    %c0_i32_2 = arith.constant 0 : i32
    return %arg0, %c0_i32, %c0_i32_0, %c0_i32_1 : i32, i32, i32, i32
  }
  func.func @transform_7(%arg0: i32) -> (i32, i32, i32, i32) {
    %c0_i32 = arith.constant 0 : i32
    %c0_i32_0 = arith.constant 0 : i32
    %c0_i32_1 = arith.constant 0 : i32
    %c0_i32_2 = arith.constant 0 : i32
    return %arg0, %c0_i32, %c0_i32_0, %c0_i32_1 : i32, i32, i32, i32
  }
}

</mosaic_0001>

<bundles_post_ra>
// kernel: inceptionv2_dicount.3
= control target key start
LH: loop header
LB: loop body
LE: loop exit
PB: predicated region body
PF: predicated region fallthrough
CT: control target
= control target key end

     0   :  { %s953_s12 = smov 0   ;;  %s1179_s0 = inlined_call_operand.vmem [shape: f32[512,4], index: 0, kind: input, shape index: {}]   ;;  %s1180_s1 = inlined_call_operand.vmem [shape: f32[4,192], index: 1, kind: input, shape index: {}]   ;;  %s1181_s2 = inlined_call_operand.vmem [shape: f32[512,128], index: 2, kind: output, shape index: {0}]   ;;  %s1182_s3 = inlined_call_operand.vmem [shape: f32[512,64], index: 3, kind: output, shape index: {1}]  }
   0x1 LB: > { %s836_s13 = sadd.s32 4294967295, %s931_s12   ;;  %p840_p0 = scmp.ge.s32.totalorder %s931_s12, 1  ;;  %s931_s12 = sphi %s953_s12, %s14_s12  }
   0x2   : > { %p141_p1 = scmp.lt.s32.totalorder %s931_s12, 3 }
   0x4   : > { %p142_p2 = pnand %p840_p0, %p141_p1 }
   0x5   : > { %s841_s16 = sshll.u32 (!%p142_p2), %s836_s13, 5 }
   0x6   : > { %145 = sbr.rel (%p142_p2) target bundleno = 279 (0x117), region = 28  ;;  %p171_p3 = scmp.lt.s32.totalorder (!%p142_p2), %s841_s16, 63 }
   0xb   : > { %v220_v0 = vld [vmem:[%s1180_s1] sm:$0xff]  ;;  %s1184_s16 = smov (!%p171_p3, %s841_s16), 63  ;;  %vm322_vm0 = vcmask 1043456   ;;  %vm225_vm1 = vcmask 31744   ;;  %vm713_vm2 = vcmask 523264  }
   0xc   : > { %222 = vst [vmem:[#allocation1] ss:$2 sm:$0xff] %v220_v0  ;;  %s964_s17 = sshll.u32 %s1184_s16, 3 }
   0xd   : > { %s970_s20 = scalar_lea.vmem %s1179_s0, %s964_s17  ;;  %s1072_s23 = scalar_lea.vmem %s1181_s2, %s964_s17 }
   0xe   : > { %v204_v1 = vld [vmem:[%s970_s20 + $0x80] sm:$0xff]  ;;  %v205_v5 = vld [vmem:[%s970_s20 + $0x88] sm:$0xff]  ;;  %v206_v7 = vld [vmem:[%s970_s20 + $0x90] sm:$0xff]  ;;  %s1078_s26 = scalar_lea.vmem %s1182_s3, %s964_s17 }
   0xf   : > { %v188_v4 = vld [vmem:[%s970_s20] sm:$0xff]  ;;  %v189_v6 = vld [vmem:[%s970_s20 + $0x8] sm:$0xff]  ;;  %v190_v8 = vld [vmem:[%s970_s20 + $0x10] sm:$0xff] }
  0x10   : > { %v207_v9 = vld [vmem:[%s970_s20 + $0x98] sm:$0xff]  ;;  %v208_v11 = vld [vmem:[%s970_s20 + $0xa0] sm:$0xff]  ;;  %v209_v13 = vld [vmem:[%s970_s20 + $0xa8] sm:$0xff] }
  0x11   : > { %v191_v10 = vld [vmem:[%s970_s20 + $0x18] sm:$0xff]  ;;  %v192_v12 = vld [vmem:[%s970_s20 + $0x20] sm:$0xff]  ;;  %v193_v14 = vld [vmem:[%s970_s20 + $0x28] sm:$0xff] }
  0x12   : > { %v210_v15 = vld [vmem:[%s970_s20 + $0xb0] sm:$0xff]  ;;  %v211_v17 = vld [vmem:[%s970_s20 + $0xb8] sm:$0xff]  ;;  %v212_v19 = vld [vmem:[%s970_s20 + $0xc0] sm:$0xff] }
  0x13   : > { %v223_v2 = vld.sshfl [vmem:[#allocation1] sm:$0xff pattern:$0x75316420]  ;;  %v224_v3 = vld.sshfl [vmem:[#allocation1 + $0x8] sm:$0xff pattern:$0x75316420] }
  0x14   : > { %915 = vmatpush.msk.msra.mxu2 %vm322_vm0, %v223_v2  ;;  %916 = vmatpush.msk.msra.mxu3 %vm322_vm0, %v224_v3  ;;  %v194_v16 = vld [vmem:[%s970_s20 + $0x30] sm:$0xff]  ;;  %v195_v18 = vld [vmem:[%s970_s20 + $0x38] sm:$0xff]  ;;  %v196_v20 = vld [vmem:[%s970_s20 + $0x40] sm:$0xff] }
  0x15   : > { %864 = vmatmul.msk.f32.vlgmr.msra.gmra.mxu2 %vm225_vm1, %v204_v1  ;;  %897 = vmatmul.msk.f32.vlgmr.msra.gmra.mxu3 %vm225_vm1, %v204_v1  ;;  %v213_v21 = vld [vmem:[%s970_s20 + $0xc8] sm:$0xff]  ;;  %v214_v23 = vld [vmem:[%s970_s20 + $0xd0] sm:$0xff]  ;;  %v215_v25 = vld [vmem:[%s970_s20 + $0xd8] sm:$0xff] }
  0x16   : > { %847 = vmatpush.msk.msra.mxu0 %vm322_vm0, %v223_v2  ;;  %880 = vmatpush.msk.msra.mxu1 %vm322_vm0, %v224_v3  ;;  %v197_v22 = vld [vmem:[%s970_s20 + $0x48] sm:$0xff]  ;;  %v198_v24 = vld [vmem:[%s970_s20 + $0x50] sm:$0xff]  ;;  %v199_v26 = vld [vmem:[%s970_s20 + $0x58] sm:$0xff] }
  0x17   : > { %848 = vmatmul.msk.f32.vlgmr.msra.gmra.mxu0 %vm225_vm1, %v188_v4  ;;  %881 = vmatmul.msk.f32.vlgmr.msra.gmra.mxu1 %vm225_vm1, %v188_v4  ;;  %v216_v27 = vld [vmem:[%s970_s20 + $0xe0] sm:$0xff]  ;;  %v217_v29 = vld [vmem:[%s970_s20 + $0xe8] sm:$0xff]  ;;  %v218_v31 = vld [vmem:[%s970_s20 + $0xf0] sm:$0xff] }
  0x18   : > { %v200_v28 = vld [vmem:[%s970_s20 + $0x60] sm:$0xff]  ;;  %v201_v30 = vld [vmem:[%s970_s20 + $0x68] sm:$0xff]  ;;  %v202_v32 = vld [vmem:[%s970_s20 + $0x70] sm:$0xff] }
  0x19   : > { %v219_v33 = vld [vmem:[%s970_s20 + $0xf8] sm:$0xff] }
  0x1a   : > { %v203_v34 = vld [vmem:[%s970_s20 + $0x78] sm:$0xff] }
  0x1d   : > { %865 = vmatmul.msk.f32.gmra.mxu2 %vm225_vm1, %v205_v5  ;;  %898 = vmatmul.msk.f32.gmra.mxu3 %vm225_vm1, %v205_v5 }
  0x1f   : > { %849 = vmatmul.msk.f32.gmra.mxu0 %vm225_vm1, %v189_v6  ;;  %882 = vmatmul.msk.f32.gmra.mxu1 %vm225_vm1, %v189_v6 }
  0x25   : > { %866 = vmatmul.msk.f32.gmra.mxu2 %vm225_vm1, %v206_v7  ;;  %899 = vmatmul.msk.f32.gmra.mxu3 %vm225_vm1, %v206_v7 }
  0x27   : > { %850 = vmatmul.msk.f32.gmra.mxu0 %vm225_vm1, %v190_v8  ;;  %883 = vmatmul.msk.f32.gmra.mxu1 %vm225_vm1, %v190_v8 }
  0x2d   : > { %867 = vmatmul.msk.f32.gmra.mxu2 %vm225_vm1, %v207_v9  ;;  %900 = vmatmul.msk.f32.gmra.mxu3 %vm225_vm1, %v207_v9 }
  0x2f   : > { %851 = vmatmul.msk.f32.gmra.mxu0 %vm225_vm1, %v191_v10  ;;  %884 = vmatmul.msk.f32.gmra.mxu1 %vm225_vm1, %v191_v10 }
  0x35   : > { %868 = vmatmul.msk.f32.gmra.mxu2 %vm225_vm1, %v208_v11  ;;  %901 = vmatmul.msk.f32.gmra.mxu3 %vm225_vm1, %v208_v11 }
  0x37   : > { %852 = vmatmul.msk.f32.gmra.mxu0 %vm225_vm1, %v192_v12  ;;  %885 = vmatmul.msk.f32.gmra.mxu1 %vm225_vm1, %v192_v12 }
  0x3d   : > { %869 = vmatmul.msk.f32.gmra.mxu2 %vm225_vm1, %v209_v13  ;;  %902 = vmatmul.msk.f32.gmra.mxu3 %vm225_vm1, %v209_v13 }
  0x3f   : > { %853 = vmatmul.msk.f32.gmra.mxu0 %vm225_vm1, %v193_v14  ;;  %886 = vmatmul.msk.f32.gmra.mxu1 %vm225_vm1, %v193_v14 }
  0x45   : > { %870 = vmatmul.msk.f32.gmra.mxu2 %vm225_vm1, %v210_v15  ;;  %903 = vmatmul.msk.f32.gmra.mxu3 %vm225_vm1, %v210_v15 }
  0x47   : > { %854 = vmatmul.msk.f32.gmra.mxu0 %vm225_vm1, %v194_v16  ;;  %887 = vmatmul.msk.f32.gmra.mxu1 %vm225_vm1, %v194_v16 }
  0x4d   : > { %871 = vmatmul.msk.f32.gmra.mxu2 %vm225_vm1, %v211_v17  ;;  %904 = vmatmul.msk.f32.gmra.mxu3 %vm225_vm1, %v211_v17 }
  0x4f   : > { %855 = vmatmul.msk.f32.gmra.mxu0 %vm225_vm1, %v195_v18  ;;  %888 = vmatmul.msk.f32.gmra.mxu1 %vm225_vm1, %v195_v18 }
  0x55   : > { %872 = vmatmul.msk.f32.gmra.mxu2 %vm225_vm1, %v212_v19  ;;  %905 = vmatmul.msk.f32.gmra.mxu3 %vm225_vm1, %v212_v19 }
  0x57   : > { %856 = vmatmul.msk.f32.gmra.mxu0 %vm225_vm1, %v196_v20  ;;  %889 = vmatmul.msk.f32.gmra.mxu1 %vm225_vm1, %v196_v20 }
  0x5d   : > { %873 = vmatmul.msk.f32.gmra.mxu2 %vm225_vm1, %v213_v21  ;;  %906 = vmatmul.msk.f32.gmra.mxu3 %vm225_vm1, %v213_v21 }
  0x5f   : > { %857 = vmatmul.msk.f32.gmra.mxu0 %vm225_vm1, %v197_v22  ;;  %890 = vmatmul.msk.f32.gmra.mxu1 %vm225_vm1, %v197_v22 }
  0x65   : > { %874 = vmatmul.msk.f32.gmra.mxu2 %vm225_vm1, %v214_v23  ;;  %907 = vmatmul.msk.f32.gmra.mxu3 %vm225_vm1, %v214_v23 }
  0x67   : > { %858 = vmatmul.msk.f32.gmra.mxu0 %vm225_vm1, %v198_v24  ;;  %891 = vmatmul.msk.f32.gmra.mxu1 %vm225_vm1, %v198_v24 }
  0x6d   : > { %875 = vmatmul.msk.f32.gmra.mxu2 %vm225_vm1, %v215_v25  ;;  %908 = vmatmul.msk.f32.gmra.mxu3 %vm225_vm1, %v215_v25 }
  0x6f   : > { %859 = vmatmul.msk.f32.gmra.mxu0 %vm225_vm1, %v199_v26  ;;  %892 = vmatmul.msk.f32.gmra.mxu1 %vm225_vm1, %v199_v26 }
  0x75   : > { %876 = vmatmul.msk.f32.gmra.mxu2 %vm225_vm1, %v216_v27  ;;  %909 = vmatmul.msk.f32.gmra.mxu3 %vm225_vm1, %v216_v27 }
  0x77   : > { %860 = vmatmul.msk.f32.gmra.mxu0 %vm225_vm1, %v200_v28  ;;  %893 = vmatmul.msk.f32.gmra.mxu1 %vm225_vm1, %v200_v28 }
  0x7d   : > { %877 = vmatmul.msk.f32.gmra.mxu2 %vm225_vm1, %v217_v29  ;;  %910 = vmatmul.msk.f32.gmra.mxu3 %vm225_vm1, %v217_v29 }
  0x7f   : > { %861 = vmatmul.msk.f32.gmra.mxu0 %vm225_vm1, %v201_v30  ;;  %894 = vmatmul.msk.f32.gmra.mxu1 %vm225_vm1, %v201_v30 }
  0x85   : > { %878 = vmatmul.msk.f32.gmra.mxu2 %vm225_vm1, %v218_v31  ;;  %911 = vmatmul.msk.f32.gmra.mxu3 %vm225_vm1, %v218_v31 }
  0x87   : > { %862 = vmatmul.msk.f32.gmra.mxu0 %vm225_vm1, %v202_v32  ;;  %895 = vmatmul.msk.f32.gmra.mxu1 %vm225_vm1, %v202_v32 }
  0x8d   : > { %879 = vmatmul.msk.f32.gmra.mxu2 %vm225_vm1, %v219_v33  ;;  %912 = vmatmul.msk.f32.gmra.mxu3 %vm225_vm1, %v219_v33 }
  0x8f   : > { %863 = vmatmul.msk.f32.gmra.mxu0 %vm225_vm1, %v203_v34  ;;  %896 = vmatmul.msk.f32.gmra.mxu1 %vm225_vm1, %v203_v34 }
  0x94   : > { %v344_v35 = vpop.f32.mrf.mxu0  ;;  %v457_v36 = vpop.f32.mrf.mxu1 }
  0x95   : > { %v553_v37 = vmax.f32 %v344_v35, 0.0  ;;  %v554_v38 = vmax.f32 %v457_v36, 0.0 }
  0x97   : > { %v617_v39 = vmin.f32 %v553_v37, 6.0  ;;  %v618_v40 = vmin.f32 %v554_v38, 6.0 }
  0x98   : > { %v392_v41 = vpop.f32.mrf.mxu2  ;;  %v505_v42 = vpop.f32.mrf.mxu3 }
  0x99   : > { %681 = vst [vmem:[%s1072_s23] sm:$0xff] %v617_v39  ;;  %v585_v43 = vmax.f32 %v392_v41, 0.0  ;;  %v586_v44 = vmax.f32 %v505_v42, 0.0 }
  0x9a   : > { %714 = vst.msk [vmem:[%s1078_s26] sm:$0xff] %vm713_vm2, %v618_v40 }
  0x9b   : > { %v649_v45 = vmin.f32 %v585_v43, 6.0  ;;  %v650_v46 = vmin.f32 %v586_v44, 6.0 }
  0x9c   : > { %v347_v47 = vpop.f32.mrf.mxu0  ;;  %v460_v48 = vpop.f32.mrf.mxu1 }
  0x9d   : > { %697 = vst [vmem:[%s1072_s23 + $0x80] sm:$0xff] %v649_v45  ;;  %v555_v49 = vmax.f32 %v347_v47, 0.0  ;;  %v556_v50 = vmax.f32 %v460_v48, 0.0 }
  0x9e   : > { %730 = vst.msk [vmem:[%s1078_s26 + $0x80] sm:$0xff] %vm713_vm2, %v650_v46 }
  0x9f   : > { %v619_v51 = vmin.f32 %v555_v49, 6.0  ;;  %v620_v52 = vmin.f32 %v556_v50, 6.0 }
  0xa0   : > { %v395_v53 = vpop.f32.mrf.mxu2  ;;  %v508_v54 = vpop.f32.mrf.mxu3 }
  0xa1   : > { %682 = vst [vmem:[%s1072_s23 + $0x8] sm:$0xff] %v619_v51  ;;  %v587_v55 = vmax.f32 %v395_v53, 0.0  ;;  %v588_v56 = vmax.f32 %v508_v54, 0.0 }
  0xa2   : > { %715 = vst.msk [vmem:[%s1078_s26 + $0x8] sm:$0xff] %vm713_vm2, %v620_v52 }
  0xa3   : > { %v651_v57 = vmin.f32 %v587_v55, 6.0  ;;  %v652_v58 = vmin.f32 %v588_v56, 6.0 }
  0xa4   : > { %v350_v59 = vpop.f32.mrf.mxu0  ;;  %v463_v60 = vpop.f32.mrf.mxu1 }
  0xa5   : > { %698 = vst [vmem:[%s1072_s23 + $0x88] sm:$0xff] %v651_v57  ;;  %v557_v61 = vmax.f32 %v350_v59, 0.0  ;;  %v558_v62 = vmax.f32 %v463_v60, 0.0 }
  0xa6   : > { %731 = vst.msk [vmem:[%s1078_s26 + $0x88] sm:$0xff] %vm713_vm2, %v652_v58 }
  0xa7   : > { %v621_v63 = vmin.f32 %v557_v61, 6.0  ;;  %v622_v0 = vmin.f32 %v558_v62, 6.0 }
  0xa8   : > { %v398_v1 = vpop.f32.mrf.mxu2  ;;  %v511_v2 = vpop.f32.mrf.mxu3 }
  0xa9   : > { %683 = vst [vmem:[%s1072_s23 + $0x10] sm:$0xff] %v621_v63  ;;  %v589_v3 = vmax.f32 %v398_v1, 0.0  ;;  %v590_v4 = vmax.f32 %v511_v2, 0.0 }
  0xaa   : > { %716 = vst.msk [vmem:[%s1078_s26 + $0x10] sm:$0xff] %vm713_vm2, %v622_v0 }
  0xab   : > { %v653_v5 = vmin.f32 %v589_v3, 6.0  ;;  %v654_v6 = vmin.f32 %v590_v4, 6.0 }
  0xac   : > { %v353_v7 = vpop.f32.mrf.mxu0  ;;  %v466_v8 = vpop.f32.mrf.mxu1 }
  0xad   : > { %699 = vst [vmem:[%s1072_s23 + $0x90] sm:$0xff] %v653_v5  ;;  %v559_v9 = vmax.f32 %v353_v7, 0.0  ;;  %v560_v10 = vmax.f32 %v466_v8, 0.0 }
  0xae   : > { %732 = vst.msk [vmem:[%s1078_s26 + $0x90] sm:$0xff] %vm713_vm2, %v654_v6 }
  0xaf   : > { %v623_v11 = vmin.f32 %v559_v9, 6.0  ;;  %v624_v12 = vmin.f32 %v560_v10, 6.0 }
  0xb0   : > { %v401_v13 = vpop.f32.mrf.mxu2  ;;  %v514_v14 = vpop.f32.mrf.mxu3 }
  0xb1   : > { %684 = vst [vmem:[%s1072_s23 + $0x18] sm:$0xff] %v623_v11  ;;  %v591_v15 = vmax.f32 %v401_v13, 0.0  ;;  %v592_v16 = vmax.f32 %v514_v14, 0.0 }
  0xb2   : > { %717 = vst.msk [vmem:[%s1078_s26 + $0x18] sm:$0xff] %vm713_vm2, %v624_v12 }
  0xb3   : > { %v655_v17 = vmin.f32 %v591_v15, 6.0  ;;  %v656_v18 = vmin.f32 %v592_v16, 6.0 }
  0xb4   : > { %v356_v19 = vpop.f32.mrf.mxu0  ;;  %v469_v20 = vpop.f32.mrf.mxu1 }
  0xb5   : > { %700 = vst [vmem:[%s1072_s23 + $0x98] sm:$0xff] %v655_v17  ;;  %v561_v21 = vmax.f32 %v356_v19, 0.0  ;;  %v562_v22 = vmax.f32 %v469_v20, 0.0 }
  0xb6   : > { %733 = vst.msk [vmem:[%s1078_s26 + $0x98] sm:$0xff] %vm713_vm2, %v656_v18 }
  0xb7   : > { %v625_v23 = vmin.f32 %v561_v21, 6.0  ;;  %v626_v24 = vmin.f32 %v562_v22, 6.0 }
  0xb8   : > { %v404_v25 = vpop.f32.mrf.mxu2  ;;  %v517_v26 = vpop.f32.mrf.mxu3 }
  0xb9   : > { %685 = vst [vmem:[%s1072_s23 + $0x20] sm:$0xff] %v625_v23  ;;  %v593_v27 = vmax.f32 %v404_v25, 0.0  ;;  %v594_v28 = vmax.f32 %v517_v26, 0.0 }
  0xba   : > { %718 = vst.msk [vmem:[%s1078_s26 + $0x20] sm:$0xff] %vm713_vm2, %v626_v24 }
  0xbb   : > { %v657_v29 = vmin.f32 %v593_v27, 6.0  ;;  %v658_v30 = vmin.f32 %v594_v28, 6.0 }
  0xbc   : > { %v359_v31 = vpop.f32.mrf.mxu0  ;;  %v472_v32 = vpop.f32.mrf.mxu1 }
  0xbd   : > { %701 = vst [vmem:[%s1072_s23 + $0xa0] sm:$0xff] %v657_v29  ;;  %v563_v33 = vmax.f32 %v359_v31, 0.0  ;;  %v564_v34 = vmax.f32 %v472_v32, 0.0 }
  0xbe   : > { %734 = vst.msk [vmem:[%s1078_s26 + $0xa0] sm:$0xff] %vm713_vm2, %v658_v30 }
  0xbf   : > { %v627_v35 = vmin.f32 %v563_v33, 6.0  ;;  %v628_v36 = vmin.f32 %v564_v34, 6.0 }
  0xc0   : > { %v407_v37 = vpop.f32.mrf.mxu2  ;;  %v520_v38 = vpop.f32.mrf.mxu3 }
  0xc1   : > { %686 = vst [vmem:[%s1072_s23 + $0x28] sm:$0xff] %v627_v35  ;;  %v595_v39 = vmax.f32 %v407_v37, 0.0  ;;  %v596_v40 = vmax.f32 %v520_v38, 0.0 }
  0xc2   : > { %719 = vst.msk [vmem:[%s1078_s26 + $0x28] sm:$0xff] %vm713_vm2, %v628_v36 }
  0xc3   : > { %v659_v41 = vmin.f32 %v595_v39, 6.0  ;;  %v660_v42 = vmin.f32 %v596_v40, 6.0 }
  0xc4   : > { %v362_v43 = vpop.f32.mrf.mxu0  ;;  %v475_v44 = vpop.f32.mrf.mxu1 }
  0xc5   : > { %702 = vst [vmem:[%s1072_s23 + $0xa8] sm:$0xff] %v659_v41  ;;  %v565_v45 = vmax.f32 %v362_v43, 0.0  ;;  %v566_v46 = vmax.f32 %v475_v44, 0.0 }
  0xc6   : > { %735 = vst.msk [vmem:[%s1078_s26 + $0xa8] sm:$0xff] %vm713_vm2, %v660_v42 }
  0xc7   : > { %v629_v47 = vmin.f32 %v565_v45, 6.0  ;;  %v630_v48 = vmin.f32 %v566_v46, 6.0 }
  0xc8   : > { %v410_v49 = vpop.f32.mrf.mxu2  ;;  %v523_v50 = vpop.f32.mrf.mxu3 }
  0xc9   : > { %687 = vst [vmem:[%s1072_s23 + $0x30] sm:$0xff] %v629_v47  ;;  %v597_v51 = vmax.f32 %v410_v49, 0.0  ;;  %v598_v52 = vmax.f32 %v523_v50, 0.0 }
  0xca   : > { %720 = vst.msk [vmem:[%s1078_s26 + $0x30] sm:$0xff] %vm713_vm2, %v630_v48 }
  0xcb   : > { %v661_v53 = vmin.f32 %v597_v51, 6.0  ;;  %v662_v54 = vmin.f32 %v598_v52, 6.0 }
  0xcc   : > { %v365_v55 = vpop.f32.mrf.mxu0  ;;  %v478_v56 = vpop.f32.mrf.mxu1 }
  0xcd   : > { %703 = vst [vmem:[%s1072_s23 + $0xb0] sm:$0xff] %v661_v53  ;;  %v567_v57 = vmax.f32 %v365_v55, 0.0  ;;  %v568_v58 = vmax.f32 %v478_v56, 0.0 }
  0xce   : > { %736 = vst.msk [vmem:[%s1078_s26 + $0xb0] sm:$0xff] %vm713_vm2, %v662_v54 }
  0xcf   : > { %v631_v59 = vmin.f32 %v567_v57, 6.0  ;;  %v632_v60 = vmin.f32 %v568_v58, 6.0 }
  0xd0   : > { %v413_v61 = vpop.f32.mrf.mxu2  ;;  %v526_v62 = vpop.f32.mrf.mxu3 }
  0xd1   : > { %688 = vst [vmem:[%s1072_s23 + $0x38] sm:$0xff] %v631_v59  ;;  %v599_v63 = vmax.f32 %v413_v61, 0.0  ;;  %v600_v0 = vmax.f32 %v526_v62, 0.0 }
  0xd2   : > { %721 = vst.msk [vmem:[%s1078_s26 + $0x38] sm:$0xff] %vm713_vm2, %v632_v60 }
  0xd3   : > { %v663_v1 = vmin.f32 %v599_v63, 6.0  ;;  %v664_v2 = vmin.f32 %v600_v0, 6.0 }
  0xd4   : > { %v368_v3 = vpop.f32.mrf.mxu0  ;;  %v481_v4 = vpop.f32.mrf.mxu1 }
  0xd5   : > { %704 = vst [vmem:[%s1072_s23 + $0xb8] sm:$0xff] %v663_v1  ;;  %v569_v5 = vmax.f32 %v368_v3, 0.0  ;;  %v570_v6 = vmax.f32 %v481_v4, 0.0 }
  0xd6   : > { %737 = vst.msk [vmem:[%s1078_s26 + $0xb8] sm:$0xff] %vm713_vm2, %v664_v2 }
  0xd7   : > { %v633_v7 = vmin.f32 %v569_v5, 6.0  ;;  %v634_v8 = vmin.f32 %v570_v6, 6.0 }
  0xd8   : > { %v416_v9 = vpop.f32.mrf.mxu2  ;;  %v529_v10 = vpop.f32.mrf.mxu3 }
  0xd9   : > { %689 = vst [vmem:[%s1072_s23 + $0x40] sm:$0xff] %v633_v7  ;;  %v601_v11 = vmax.f32 %v416_v9, 0.0  ;;  %v602_v12 = vmax.f32 %v529_v10, 0.0 }
  0xda   : > { %722 = vst.msk [vmem:[%s1078_s26 + $0x40] sm:$0xff] %vm713_vm2, %v634_v8 }
  0xdb   : > { %v665_v13 = vmin.f32 %v601_v11, 6.0  ;;  %v666_v14 = vmin.f32 %v602_v12, 6.0 }
  0xdc   : > { %v371_v15 = vpop.f32.mrf.mxu0  ;;  %v484_v16 = vpop.f32.mrf.mxu1 }
  0xdd   : > { %705 = vst [vmem:[%s1072_s23 + $0xc0] sm:$0xff] %v665_v13  ;;  %v571_v17 = vmax.f32 %v371_v15, 0.0  ;;  %v572_v18 = vmax.f32 %v484_v16, 0.0 }
  0xde   : > { %738 = vst.msk [vmem:[%s1078_s26 + $0xc0] sm:$0xff] %vm713_vm2, %v666_v14 }
  0xdf   : > { %v635_v19 = vmin.f32 %v571_v17, 6.0  ;;  %v636_v20 = vmin.f32 %v572_v18, 6.0 }
  0xe0   : > { %v419_v21 = vpop.f32.mrf.mxu2  ;;  %v532_v22 = vpop.f32.mrf.mxu3 }
  0xe1   : > { %690 = vst [vmem:[%s1072_s23 + $0x48] sm:$0xff] %v635_v19  ;;  %v603_v23 = vmax.f32 %v419_v21, 0.0  ;;  %v604_v24 = vmax.f32 %v532_v22, 0.0 }
  0xe2   : > { %723 = vst.msk [vmem:[%s1078_s26 + $0x48] sm:$0xff] %vm713_vm2, %v636_v20 }
  0xe3   : > { %v667_v25 = vmin.f32 %v603_v23, 6.0  ;;  %v668_v26 = vmin.f32 %v604_v24, 6.0 }
  0xe4   : > { %v374_v27 = vpop.f32.mrf.mxu0  ;;  %v487_v28 = vpop.f32.mrf.mxu1 }
  0xe5   : > { %706 = vst [vmem:[%s1072_s23 + $0xc8] sm:$0xff] %v667_v25  ;;  %v573_v29 = vmax.f32 %v374_v27, 0.0  ;;  %v574_v30 = vmax.f32 %v487_v28, 0.0 }
  0xe6   : > { %739 = vst.msk [vmem:[%s1078_s26 + $0xc8] sm:$0xff] %vm713_vm2, %v668_v26 }
  0xe7   : > { %v637_v31 = vmin.f32 %v573_v29, 6.0  ;;  %v638_v32 = vmin.f32 %v574_v30, 6.0 }
  0xe8   : > { %v422_v33 = vpop.f32.mrf.mxu2  ;;  %v535_v34 = vpop.f32.mrf.mxu3 }
  0xe9   : > { %691 = vst [vmem:[%s1072_s23 + $0x50] sm:$0xff] %v637_v31  ;;  %v605_v35 = vmax.f32 %v422_v33, 0.0  ;;  %v606_v36 = vmax.f32 %v535_v34, 0.0 }
  0xea   : > { %724 = vst.msk [vmem:[%s1078_s26 + $0x50] sm:$0xff] %vm713_vm2, %v638_v32 }
  0xeb   : > { %v669_v37 = vmin.f32 %v605_v35, 6.0  ;;  %v670_v38 = vmin.f32 %v606_v36, 6.0 }
  0xec   : > { %v377_v39 = vpop.f32.mrf.mxu0  ;;  %v490_v40 = vpop.f32.mrf.mxu1 }
  0xed   : > { %707 = vst [vmem:[%s1072_s23 + $0xd0] sm:$0xff] %v669_v37  ;;  %v575_v41 = vmax.f32 %v377_v39, 0.0  ;;  %v576_v42 = vmax.f32 %v490_v40, 0.0 }
  0xee   : > { %740 = vst.msk [vmem:[%s1078_s26 + $0xd0] sm:$0xff] %vm713_vm2, %v670_v38 }
  0xef   : > { %v639_v43 = vmin.f32 %v575_v41, 6.0  ;;  %v640_v44 = vmin.f32 %v576_v42, 6.0 }
  0xf0   : > { %v425_v45 = vpop.f32.mrf.mxu2  ;;  %v538_v46 = vpop.f32.mrf.mxu3 }
  0xf1   : > { %692 = vst [vmem:[%s1072_s23 + $0x58] sm:$0xff] %v639_v43  ;;  %v607_v47 = vmax.f32 %v425_v45, 0.0  ;;  %v608_v48 = vmax.f32 %v538_v46, 0.0 }
  0xf2   : > { %725 = vst.msk [vmem:[%s1078_s26 + $0x58] sm:$0xff] %vm713_vm2, %v640_v44 }
  0xf3   : > { %v671_v49 = vmin.f32 %v607_v47, 6.0  ;;  %v672_v50 = vmin.f32 %v608_v48, 6.0 }
  0xf4   : > { %v380_v51 = vpop.f32.mrf.mxu0  ;;  %v493_v52 = vpop.f32.mrf.mxu1 }
  0xf5   : > { %708 = vst [vmem:[%s1072_s23 + $0xd8] sm:$0xff] %v671_v49  ;;  %v577_v53 = vmax.f32 %v380_v51, 0.0  ;;  %v578_v54 = vmax.f32 %v493_v52, 0.0 }
  0xf6   : > { %741 = vst.msk [vmem:[%s1078_s26 + $0xd8] sm:$0xff] %vm713_vm2, %v672_v50 }
  0xf7   : > { %v641_v55 = vmin.f32 %v577_v53, 6.0  ;;  %v642_v56 = vmin.f32 %v578_v54, 6.0 }
  0xf8   : > { %v428_v57 = vpop.f32.mrf.mxu2  ;;  %v541_v58 = vpop.f32.mrf.mxu3 }
  0xf9   : > { %693 = vst [vmem:[%s1072_s23 + $0x60] sm:$0xff] %v641_v55  ;;  %v609_v59 = vmax.f32 %v428_v57, 0.0  ;;  %v610_v60 = vmax.f32 %v541_v58, 0.0 }
  0xfa   : > { %726 = vst.msk [vmem:[%s1078_s26 + $0x60] sm:$0xff] %vm713_vm2, %v642_v56 }
  0xfb   : > { %v673_v61 = vmin.f32 %v609_v59, 6.0  ;;  %v674_v62 = vmin.f32 %v610_v60, 6.0 }
  0xfc   : > { %v383_v63 = vpop.f32.mrf.mxu0  ;;  %v496_v0 = vpop.f32.mrf.mxu1 }
  0xfd   : > { %709 = vst [vmem:[%s1072_s23 + $0xe0] sm:$0xff] %v673_v61  ;;  %v579_v1 = vmax.f32 %v383_v63, 0.0  ;;  %v580_v2 = vmax.f32 %v496_v0, 0.0 }
  0xfe   : > { %742 = vst.msk [vmem:[%s1078_s26 + $0xe0] sm:$0xff] %vm713_vm2, %v674_v62 }
  0xff   : > { %v643_v3 = vmin.f32 %v579_v1, 6.0  ;;  %v644_v4 = vmin.f32 %v580_v2, 6.0 }
 0x100   : > { %v431_v5 = vpop.f32.mrf.mxu2  ;;  %v544_v6 = vpop.f32.mrf.mxu3 }
 0x101   : > { %694 = vst [vmem:[%s1072_s23 + $0x68] sm:$0xff] %v643_v3  ;;  %v611_v7 = vmax.f32 %v431_v5, 0.0  ;;  %v612_v8 = vmax.f32 %v544_v6, 0.0 }
 0x102   : > { %727 = vst.msk [vmem:[%s1078_s26 + $0x68] sm:$0xff] %vm713_vm2, %v644_v4 }
 0x103   : > { %v675_v9 = vmin.f32 %v611_v7, 6.0  ;;  %v676_v10 = vmin.f32 %v612_v8, 6.0 }
 0x104   : > { %v386_v11 = vpop.f32.mrf.mxu0  ;;  %v499_v12 = vpop.f32.mrf.mxu1 }
 0x105   : > { %710 = vst [vmem:[%s1072_s23 + $0xe8] sm:$0xff] %v675_v9  ;;  %v581_v13 = vmax.f32 %v386_v11, 0.0  ;;  %v582_v14 = vmax.f32 %v499_v12, 0.0 }
 0x106   : > { %743 = vst.msk [vmem:[%s1078_s26 + $0xe8] sm:$0xff] %vm713_vm2, %v676_v10 }
 0x107   : > { %v645_v15 = vmin.f32 %v581_v13, 6.0  ;;  %v646_v16 = vmin.f32 %v582_v14, 6.0 }
 0x108   : > { %v434_v17 = vpop.f32.mrf.mxu2  ;;  %v547_v18 = vpop.f32.mrf.mxu3 }
 0x109   : > { %695 = vst [vmem:[%s1072_s23 + $0x70] sm:$0xff] %v645_v15  ;;  %v613_v19 = vmax.f32 %v434_v17, 0.0  ;;  %v614_v20 = vmax.f32 %v547_v18, 0.0 }
 0x10a   : > { %728 = vst.msk [vmem:[%s1078_s26 + $0x70] sm:$0xff] %vm713_vm2, %v646_v16 }
 0x10b   : > { %v677_v21 = vmin.f32 %v613_v19, 6.0  ;;  %v678_v22 = vmin.f32 %v614_v20, 6.0 }
 0x10c   : > { %v389_v23 = vpop.f32.mrf.mxu0  ;;  %v502_v24 = vpop.f32.mrf.mxu1 }
 0x10d   : > { %711 = vst [vmem:[%s1072_s23 + $0xf0] sm:$0xff] %v677_v21  ;;  %v583_v25 = vmax.f32 %v389_v23, 0.0  ;;  %v584_v26 = vmax.f32 %v502_v24, 0.0 }
 0x10e   : > { %744 = vst.msk [vmem:[%s1078_s26 + $0xf0] sm:$0xff] %vm713_vm2, %v678_v22 }
 0x10f   : > { %v647_v27 = vmin.f32 %v583_v25, 6.0  ;;  %v648_v28 = vmin.f32 %v584_v26, 6.0 }
 0x110   : > { %v437_v29 = vpop.f32.mrf.mxu2  ;;  %v550_v30 = vpop.f32.mrf.mxu3 }
 0x111   : > { %696 = vst [vmem:[%s1072_s23 + $0x78] sm:$0xff] %v647_v27  ;;  %v615_v31 = vmax.f32 %v437_v29, 0.0  ;;  %v616_v32 = vmax.f32 %v550_v30, 0.0 }
 0x112   : > { %729 = vst.msk [vmem:[%s1078_s26 + $0x78] sm:$0xff] %vm713_vm2, %v648_v28 }
 0x113   : > { %v679_v33 = vmin.f32 %v615_v31, 6.0  ;;  %v680_v34 = vmin.f32 %v616_v32, 6.0 }
 0x115   : > { %712 = vst [vmem:[%s1072_s23 + $0xf8] sm:$0xff] %v679_v33 }
 0x116   : > { %745 = vst.msk [vmem:[%s1078_s26 + $0xf8] sm:$0xff] %vm713_vm2, %v680_v34 }
 0x117 PF: > { %s14_s12 = sadd.s32 1, %s931_s12  }
 0x118   : > { %p11_p4 = scmp.ge.s32.totalorder %s14_s12, 4  }
 0x11a   :  { %13 = sbr.rel (!%p11_p4) target bundleno = 1 (0x1), region = 70 }

// kernel: inceptionv2_dicount.4
= control target key start
LH: loop header
LB: loop body
LE: loop exit
PB: predicated region body
PF: predicated region fallthrough
CT: control target
= control target key end

     0   :  { %s3383_s9 = smov 0   ;;  %s4690_s0 = inlined_call_operand.vmem [shape: f32[2,18,18,64], index: 0, kind: input, shape index: {}]   ;;  %s4691_s1 = inlined_call_operand.vmem [shape: f32[9,64,96], index: 1, kind: input, shape index: {}]   ;;  %s4692_s2 = inlined_call_operand.vmem [shape: f32[2,16,16,96], index: 2, kind: output, shape index: {}]  }
   0x1 LB: > { %s2772_s10 = sadd.s32 4294967295, %s3366_s9   ;;  %p2776_p0 = scmp.ge.s32.totalorder %s3366_s9, 1  ;;  %s3366_s9 = sphi %s3383_s9, %s12_s9  }
   0x2   : > { %p112_p1 = scmp.lt.s32.totalorder %s3366_s9, 3 }
   0x4   : > { %p113_p2 = pnand %p2776_p0, %p112_p1 }
   0x6   : > { %116 = sbr.rel (%p113_p2) target bundleno = 738 (0x2e2), region = 28 }
   0xb   : > { %v2787_v0 = vld [vmem:[%s4691_s1 + $0x78] sm:$0xff]  ;;  %v2786_v1 = vld [vmem:[%s4691_s1 + $0x70] sm:$0xff]  ;;  %p134_p3 = scmp.lt.s32.totalorder %s2772_s10, 1  ;;  %v2785_v2 = vld [vmem:[%s4691_s1 + $0x68] sm:$0xff]  ;;  %vm225_vm0 = vcmask 523264   ;;  %vm2684_vm1 = vcmask 785408  }
   0xc   : > { %3327 = vmatpush.msra.mxu1 %v2787_v0  ;;  %3328 = vmatpush.msra.mxu2 %v2787_v0  ;;  %v2784_v3 = vld [vmem:[%s4691_s1 + $0x60] sm:$0xff]  ;;  %v2783_v4 = vld [vmem:[%s4691_s1 + $0x58] sm:$0xff]  ;;  %v2782_v5 = vld [vmem:[%s4691_s1 + $0x50] sm:$0xff] }
   0xd   : > { %3329 = vmatpush.msra.mxu3 %v2787_v0  ;;  %330 = vmatpush.msra.mxu0 %v2787_v0  ;;  %s4789_s10 = smov (!%p134_p3, %s2772_s10), 1  ;;  %v2781_v6 = vld [vmem:[%s4691_s1 + $0x48] sm:$0xff]  ;;  %v2780_v7 = vld [vmem:[%s4691_s1 + $0x40] sm:$0xff]  ;;  %v2859_v10 = vld [vmem:[%s4691_s1 + $0xb8] sm:$0xff] }
   0xe   : > { %3330 = vmatpush.msra.mxu1 %v2786_v1  ;;  %3331 = vmatpush.msra.mxu2 %v2786_v1  ;;  %s3351_s21 = smul.u32 432, %s4789_s10  ;;  %v183_v12 = vld [vmem:[%s4691_s1 + $0x38] sm:$0xff]  ;;  %v2858_v14 = vld [vmem:[%s4691_s1 + $0xb0] sm:$0xff]  ;;  %v2857_v19 = vld [vmem:[%s4691_s1 + $0xa8] sm:$0xff]  ;;  %s3326_s6 = sshll.u32 %s4789_s10, 8 }
   0xf   : > { %3332 = vmatpush.msra.mxu3 %v2786_v1  ;;  %331 = vmatpush.msra.mxu0 %v2786_v1  ;;  %v2931_v13 = vld [vmem:[%s4691_s1 + $0xf8] sm:$0xff]  ;;  %v182_v15 = vld [vmem:[%s4691_s1 + $0x30] sm:$0xff]  ;;  %v2929_v20 = vld [vmem:[%s4691_s1 + $0xe8] sm:$0xff]  ;;  %s4479_s11 = scalar_lea.vmem %s4692_s2, %s3326_s6 }
  0x10   : > { %3333 = vmatpush.msra.mxu1 %v2785_v2  ;;  %3334 = vmatpush.msra.mxu2 %v2785_v2  ;;  %s3418_s28 = scalar_lea.vmem %s4690_s0, %s3351_s21  ;;  %v2930_v17 = vld [vmem:[%s4691_s1 + $0xf0] sm:$0xff]  ;;  %v3003_v18 = vld [vmem:[%s4691_s1 + $0x138] sm:$0xff]  ;;  %v181_v21 = vld [vmem:[%s4691_s1 + $0x28] sm:$0xff] }
  0x11   : > { %3335 = vmatpush.msra.mxu3 %v2785_v2  ;;  %332 = vmatpush.msra.mxu0 %v2785_v2  ;;  %v3424_v8 = vld [vmem:[%s3418_s28 + $0x61] sm:$0xff]  ;;  %v3470_v22 = vld [vmem:[%s3418_s28 + $0x69] sm:$0xff]  ;;  %v2855_v30 = vld [vmem:[%s4691_s1 + $0x98] sm:$0xff] }
  0x12   : > { %3336 = vmatpush.msra.mxu1 %v2784_v3  ;;  %3337 = vmatpush.msra.mxu2 %v2784_v3  ;;  %v3427_v9 = vld [vmem:[%s3418_s28 + $0xc1] sm:$0xff]  ;;  %v3473_v23 = vld [vmem:[%s3418_s28 + $0xc9] sm:$0xff]  ;;  %v179_v31 = vld [vmem:[%s4691_s1 + $0x18] sm:$0xff] }
  0x13   : > { %3338 = vmatpush.msra.mxu3 %v2784_v3  ;;  %333 = vmatpush.msra.mxu0 %v2784_v3  ;;  %v3433_v11 = vld [vmem:[%s3418_s28 + $0x121] sm:$0xff]  ;;  %v3002_v24 = vld [vmem:[%s4691_s1 + $0x130] sm:$0xff]  ;;  %v2927_v33 = vld [vmem:[%s4691_s1 + $0xd8] sm:$0xff] }
  0x14   : > { %3339 = vmatpush.msra.mxu1 %v2783_v4  ;;  %3340 = vmatpush.msra.mxu2 %v2783_v4  ;;  %v184_v16 = vld [vmem:[%s3418_s28 + $0x1] sm:$0xff]  ;;  %v3483_v26 = vld [vmem:[%s3418_s28 + $0x129] sm:$0xff]  ;;  %v3523_v38 = vld [vmem:[%s3418_s28 + $0x79] sm:$0xff] }
  0x15   : > { %3341 = vmatpush.msra.mxu3 %v2783_v4  ;;  %334 = vmatpush.msra.mxu0 %v2783_v4  ;;  %v2856_v25 = vld [vmem:[%s4691_s1 + $0xa0] sm:$0xff]  ;;  %v3001_v29 = vld [vmem:[%s4691_s1 + $0x128] sm:$0xff]  ;;  %v2854_v35 = vld [vmem:[%s4691_s1 + $0x90] sm:$0xff] }
  0x16   : > { %3342 = vmatpush.msra.mxu1 %v2782_v5  ;;  %3343 = vmatpush.msra.mxu2 %v2782_v5  ;;  %v180_v27 = vld [vmem:[%s4691_s1 + $0x20] sm:$0xff]  ;;  %v185_v32 = vld [vmem:[%s3418_s28 + $0x9] sm:$0xff]  ;;  %v2999_v40 = vld [vmem:[%s4691_s1 + $0x118] sm:$0xff] }
  0x17   : > { %3344 = vmatpush.msra.mxu3 %v2782_v5  ;;  %335 = vmatpush.msra.mxu0 %v2782_v5  ;;  %v2928_v28 = vld [vmem:[%s4691_s1 + $0xe0] sm:$0xff]  ;;  %v2926_v36 = vld [vmem:[%s4691_s1 + $0xd0] sm:$0xff]  ;;  %v2853_v42 = vld [vmem:[%s4691_s1 + $0x88] sm:$0xff] }
  0x18   : > { %3345 = vmatpush.msra.mxu1 %v2781_v6  ;;  %3346 = vmatpush.msra.mxu2 %v2781_v6  ;;  %v3000_v34 = vld [vmem:[%s4691_s1 + $0x120] sm:$0xff]  ;;  %v178_v37 = vld [vmem:[%s4691_s1 + $0x10] sm:$0xff]  ;;  %v2925_v44 = vld [vmem:[%s4691_s1 + $0xc8] sm:$0xff] }
  0x19   : > { %3347 = vmatpush.msra.mxu3 %v2781_v6  ;;  %336 = vmatpush.msra.mxu0 %v2781_v6  ;;  %v3526_v39 = vld [vmem:[%s3418_s28 + $0xd9] sm:$0xff]  ;;  %v2998_v45 = vld [vmem:[%s4691_s1 + $0x110] sm:$0xff]  ;;  %v177_v46 = vld [vmem:[%s4691_s1 + $0x8] sm:$0xff] }
  0x1a   : > { %3348 = vmatpush.msra.mxu1 %v2780_v7  ;;  %3349 = vmatpush.msra.mxu2 %v2780_v7  ;;  %v3533_v41 = vld [vmem:[%s3418_s28 + $0x139] sm:$0xff]  ;;  %v3557_v47 = vld [vmem:[%s3418_s28 + $0x81] sm:$0xff]  ;;  %v3589_v55 = vld [vmem:[%s3418_s28 + $0x91] sm:$0xff] }
  0x1b   : > { %2796 = vmatmul.msk.f32.vlgmr.msra.gmra.mxu1 %vm225_vm0, %v3424_v8  ;;  %2804 = vmatmul.msk.f32.vlgmr.msra.gmra.mxu2 %vm225_vm0, %v3427_v9  ;;  %v3543_v43 = vld [vmem:[%s3418_s28 + $0x19] sm:$0xff]  ;;  %v3560_v48 = vld [vmem:[%s3418_s28 + $0xe1] sm:$0xff]  ;;  %v3592_v56 = vld [vmem:[%s3418_s28 + $0xf1] sm:$0xff] }
  0x1c   : > { %789 = vmatpush.msrb.mxu2 %v2859_v10  ;;  %3350 = vmatpush.msra.mxu3 %v2780_v7  ;;  %v3565_v49 = vld [vmem:[%s3418_s28 + $0x141] sm:$0xff]  ;;  %v3597_v57 = vld [vmem:[%s3418_s28 + $0x151] sm:$0xff]  ;;  %v3621_v63 = vld [vmem:[%s3418_s28 + $0x99] sm:$0xff] }
  0x1d   : > { %2812 = vmatmul.msk.f32.vlgmr.msra.gmra.mxu3 %vm225_vm0, %v3433_v11  ;;  %539 = vmatpush.msrb.mxu1 %v183_v12  ;;  %v2852_v50 = vld [vmem:[%s4691_s1 + $0x80] sm:$0xff]  ;;  %v2997_v53 = vld [vmem:[%s4691_s1 + $0x108] sm:$0xff]  ;;  %v3147_v58 = vld [vmem:[%s4691_s1 + $0x1b8] sm:$0xff] }
  0x1e   : > { %1072 = vmatpush.msrb.mxu3 %v2931_v13  ;;  %790 = vmatpush.msrb.mxu2 %v2858_v14  ;;  %v3575_v51 = vld [vmem:[%s3418_s28 + $0x21] sm:$0xff]  ;;  %v3607_v59 = vld [vmem:[%s3418_s28 + $0x31] sm:$0xff]  ;;  %v3624_v0 = vld [vmem:[%s3418_s28 + $0xf9] sm:$0xff] }
  0x1f   : > { %337 = vmatpush.msra.mxu0 %v2780_v7  ;;  %540 = vmatpush.msrb.mxu1 %v182_v15  ;;  %v2924_v52 = vld [vmem:[%s4691_s1 + $0xc0] sm:$0xff]  ;;  %v3219_v61 = vld [vmem:[%s4691_s1 + $0x1f8] sm:$0xff]  ;;  %v3642_v4 = vld [vmem:[%s3418_s28 + $0xa9] sm:$0xff] }
  0x20   : > { %2788 = vmatmul.msk.f32.vlgmr.msra.gmra.mxu0 %vm225_vm0, %v184_v16  ;;  %1073 = vmatpush.msrb.mxu3 %v2930_v17  ;;  %v176_v54 = vld [vmem:[%s4691_s1] sm:$0xff]  ;;  %v3075_v62 = vld [vmem:[%s4691_s1 + $0x178] sm:$0xff]  ;;  %v3645_v5 = vld [vmem:[%s3418_s28 + $0x109] sm:$0xff] }
  0x21   : > { %1354 = vmatpush.msrb.mxu0 %v3003_v18  ;;  %791 = vmatpush.msrb.mxu2 %v2857_v19  ;;  %v2996_v60 = vld [vmem:[%s4691_s1 + $0x100] sm:$0xff]  ;;  %v3291_v3 = vld [vmem:[%s4691_s1 + $0x238] sm:$0xff]  ;;  %v3649_v6 = vld [vmem:[%s3418_s28 + $0x169] sm:$0xff] }
  0x22   : > { %1074 = vmatpush.msrb.mxu3 %v2929_v20  ;;  %541 = vmatpush.msrb.mxu1 %v181_v21  ;;  %v3629_v1 = vld [vmem:[%s3418_s28 + $0x159] sm:$0xff]  ;;  %v190_v7 = vld [vmem:[%s3418_s28 + $0x49] sm:$0xff]  ;;  %v3659_v10 = vld [vmem:[%s3418_s28 + $0xb1] sm:$0xff] }
  0x23   : > { %2797 = vmatmul.msk.f32.gmra.mxu1 %vm225_vm0, %v3470_v22  ;;  %2805 = vmatmul.msk.f32.gmra.mxu2 %vm225_vm0, %v3473_v23  ;;  %v189_v2 = vld [vmem:[%s3418_s28 + $0x39] sm:$0xff]  ;;  %v3662_v12 = vld [vmem:[%s3418_s28 + $0x111] sm:$0xff]  ;;  %v644_v16 = vld [vmem:[%s3418_s28 + $0x2] sm:$0xff] }
  0x24   : > { %1355 = vmatpush.msrb.mxu0 %v3002_v24  ;;  %792 = vmatpush.msrb.mxu2 %v2856_v25  ;;  %v3666_v13 = vld [vmem:[%s3418_s28 + $0x171] sm:$0xff]  ;;  %v144_v15 = vld [vmem:[%s3418_s28] sm:$0xff]  ;;  %v145_v21 = vld [vmem:[%s3418_s28 + $0x8] sm:$0xff] }
  0x25   : > { %2813 = vmatmul.msk.f32.gmra.mxu3 %vm225_vm0, %v3483_v26  ;;  %542 = vmatpush.msrb.mxu1 %v180_v27  ;;  %v191_v14 = vld [vmem:[%s3418_s28 + $0x51] sm:$0xff]  ;;  %v2893_v25 = vld [vmem:[%s3418_s28 + $0x20] sm:$0xff] }
  0x26   : > { %1075 = vmatpush.msrb.mxu3 %v2928_v28  ;;  %1356 = vmatpush.msrb.mxu0 %v3001_v29  ;;  %v2892_v17 = vld [vmem:[%s3418_s28 + $0x18] sm:$0xff]  ;;  %v3146_v18 = vld [vmem:[%s4691_s1 + $0x1b0] sm:$0xff] }
  0x27   : > { %793 = vmatpush.msrb.mxu2 %v2855_v30  ;;  %543 = vmatpush.msrb.mxu1 %v179_v31  ;;  %v3218_v19 = vld [vmem:[%s4691_s1 + $0x1f0] sm:$0xff]  ;;  %v3703_v28 = vld [vmem:[%s3418_s28 + $0x1a] sm:$0xff]  ;;  %v3716_v30 = vld [vmem:[%s3418_s28 + $0x22] sm:$0xff] }
  0x28   : > { %2789 = vmatmul.msk.f32.gmra.mxu0 %vm225_vm0, %v185_v32  ;;  %1076 = vmatpush.msrb.mxu3 %v2927_v33  ;;  %v3074_v20 = vld [vmem:[%s4691_s1 + $0x170] sm:$0xff]  ;;  %v3721_v31 = vld [vmem:[%s3418_s28 + $0x38] sm:$0xff]  ;;  %v3733_v33 = vld [vmem:[%s3418_s28 + $0x48] sm:$0xff] }
  0x29   : > { %1357 = vmatpush.msrb.mxu0 %v3000_v34  ;;  %794 = vmatpush.msrb.mxu2 %v2854_v35  ;;  %v645_v24 = vld [vmem:[%s3418_s28 + $0xa] sm:$0xff]  ;;  %v3729_v32 = vld [vmem:[%s3418_s28 + $0x32] sm:$0xff] }
  0x2a   : > { %1077 = vmatpush.msrb.mxu3 %v2926_v36  ;;  %544 = vmatpush.msrb.mxu1 %v178_v37  ;;  %v3290_v27 = vld [vmem:[%s4691_s1 + $0x230] sm:$0xff]  ;;  %v3145_v34 = vld [vmem:[%s4691_s1 + $0x1a8] sm:$0xff]  ;;  %v3751_v37 = vld [vmem:[%s3418_s28 + $0x3a] sm:$0xff] }
  0x2b   : > { %2798 = vmatmul.msk.f32.gmra.mxu1 %vm225_vm0, %v3523_v38  ;;  %2806 = vmatmul.msk.f32.gmra.mxu2 %vm225_vm0, %v3526_v39  ;;  %v3708_v29 = vld [vmem:[%s3418_s28 + $0x30] sm:$0xff]  ;;  %v3217_v35 = vld [vmem:[%s4691_s1 + $0x1e8] sm:$0xff] }
  0x2c   : > { %1358 = vmatpush.msrb.mxu0 %v2999_v40  ;;  %795 = vmatpush.msrb.mxu2 %v2853_v42  ;;  %v3073_v36 = vld [vmem:[%s4691_s1 + $0x168] sm:$0xff]  ;;  %v3755_v40 = vld [vmem:[%s3418_s28 + $0x50] sm:$0xff] }
  0x2d   : > { %2814 = vmatmul.msk.f32.gmra.mxu3 %vm225_vm0, %v3533_v41  ;;  %545 = vmatpush.msrb.mxu1 %v177_v46  ;;  %v3289_v42 = vld [vmem:[%s4691_s1 + $0x228] sm:$0xff] }
  0x2e   : > { %1078 = vmatpush.msrb.mxu3 %v2925_v44  ;;  %1359 = vmatpush.msrb.mxu0 %v2998_v45  ;;  %v3771_v44 = vld [vmem:[%s3418_s28 + $0x60] sm:$0xff]  ;;  %v3780_v45 = vld [vmem:[%s3418_s28 + $0x52] sm:$0xff]  ;;  %v3785_v46 = vld [vmem:[%s3418_s28 + $0x68] sm:$0xff] }
  0x2f   : > { %796 = vmatpush.msrb.mxu2 %v2852_v50  ;;  %546 = vmatpush.msrb.mxu1 %v176_v54 }
  0x30   : > { %2790 = vmatmul.msk.f32.gmra.mxu0 %vm225_vm0, %v3543_v43  ;;  %1079 = vmatpush.msrb.mxu3 %v2924_v52  ;;  %v3144_v52 = vld [vmem:[%s4691_s1 + $0x1a0] sm:$0xff] }
  0x31   : > { %1360 = vmatpush.msrb.mxu0 %v2997_v53  ;;  %1919 = vmatpush.msra.mxu2 %v3147_v58  ;;  %v3072_v58 = vld [vmem:[%s4691_s1 + $0x160] sm:$0xff] }
  0x32   : > { %2201 = vmatpush.msra.mxu3 %v3219_v61  ;;  %1636 = vmatpush.msra.mxu1 %v3075_v62  ;;  %v3827_v61 = vld [vmem:[%s3418_s28 + $0x6a] sm:$0xff]  ;;  %v3832_v62 = vld [vmem:[%s3418_s28 + $0x80] sm:$0xff] }
  0x33   : > { %2799 = vmatmul.msk.f32.gmra.mxu1 %vm225_vm0, %v3557_v47  ;;  %2807 = vmatmul.msk.f32.gmra.mxu2 %vm225_vm0, %v3560_v48  ;;  %4717 = vst [vmem:[#allocation3_spill] sm:$0xff] %v3832_v62 }
  0x34   : > { %1361 = vmatpush.msrb.mxu0 %v2996_v60  ;;  %1920 = vmatpush.msra.mxu2 %v3146_v18 }
  0x35   : > { %2815 = vmatmul.msk.f32.gmra.mxu3 %vm225_vm0, %v3565_v49  ;;  %1637 = vmatpush.msra.mxu1 %v3074_v20  ;;  %v3874_v20 = vld [vmem:[%s3418_s28 + $0x82] sm:$0xff] }
  0x36   : > { %2483 = vmatpush.msra.mxu0 %v3291_v3  ;;  %2202 = vmatpush.msra.mxu3 %v3218_v19  ;;  %v3288_v3 = vld [vmem:[%s4691_s1 + $0x220] sm:$0xff]  ;;  %4722 = vst [vmem:[#allocation8_spill] sm:$0xff] %v3874_v20 }
  0x37   : > { %1921 = vmatpush.msra.mxu2 %v3145_v34  ;;  %1638 = vmatpush.msra.mxu1 %v3073_v36  ;;  %v3143_v36 = vld [vmem:[%s4691_s1 + $0x198] sm:$0xff] }
  0x38   : > { %2791 = vmatmul.msk.f32.gmra.mxu0 %vm225_vm0, %v3575_v51  ;;  %2203 = vmatpush.msra.mxu3 %v3217_v35  ;;  %v3901_v35 = vld [vmem:[%s3418_s28 + $0xa8] sm:$0xff] }
  0x39   : > { %2484 = vmatpush.msra.mxu0 %v3290_v27  ;;  %1922 = vmatpush.msra.mxu2 %v3144_v52  ;;  %4726 = vst [vmem:[#allocation12_spill] sm:$0xff] %v3901_v35 }
  0x3a   : > { %1639 = vmatpush.msra.mxu1 %v3072_v58 }
  0x3b   : > { %2800 = vmatmul.msk.f32.gmra.mxu1 %vm225_vm0, %v3589_v55  ;;  %2808 = vmatmul.msk.f32.gmra.mxu2 %vm225_vm0, %v3592_v56 }
  0x3c   : > { %2485 = vmatpush.msra.mxu0 %v3289_v42  ;;  %1923 = vmatpush.msra.mxu2 %v3143_v36  ;;  %v3927_v36 = vld [vmem:[%s3418_s28 + $0x9a] sm:$0xff] }
  0x3d   : > { %2816 = vmatmul.msk.f32.gmra.mxu3 %vm225_vm0, %v3597_v57  ;;  %4728 = vst [vmem:[#allocation14_spill] sm:$0xff] %v3927_v36 }
  0x3e   : > { %2486 = vmatpush.msra.mxu0 %v3288_v3 }
  0x40   : > { %2792 = vmatmul.msk.f32.gmra.mxu0 %vm225_vm0, %v3607_v59 }
  0x43   : > { %2801 = vmatmul.msk.f32.gmra.mxu1 %vm225_vm0, %v3621_v63  ;;  %2809 = vmatmul.msk.f32.gmra.mxu2 %vm225_vm0, %v3624_v0 }
  0x45   : > { %2817 = vmatmul.msk.f32.gmra.mxu3 %vm225_vm0, %v3629_v1 }
  0x48   : > { %2793 = vmatmul.msk.f32.gmra.mxu0 %vm225_vm0, %v189_v2 }
  0x4b   : > { %2802 = vmatmul.msk.f32.gmra.mxu1 %vm225_vm0, %v3642_v4  ;;  %2810 = vmatmul.msk.f32.gmra.mxu2 %vm225_vm0, %v3645_v5 }
  0x4d   : > { %2818 = vmatmul.msk.f32.gmra.mxu3 %vm225_vm0, %v3649_v6 }
  0x50   : > { %2794 = vmatmul.msk.f32.gmra.mxu0 %vm225_vm0, %v190_v7 }
  0x53   : > { %2803 = vmatmul.msk.f32.gmra.mxu1 %vm225_vm0, %v3659_v10  ;;  %2811 = vmatmul.msk.f32.gmra.mxu2 %vm225_vm0, %v3662_v12 }
  0x55   : > { %2819 = vmatmul.msk.f32.gmra.mxu3 %vm225_vm0, %v3666_v13 }
  0x58   : > { %2795 = vmatmul.msk.f32.gmra.mxu0 %vm225_vm0, %v191_v14 }
  0x5b   : > { %2820 = vmatmul.msk.f32.vlgmr.msrb.gmra.mxu1 %vm225_vm0, %v144_v15  ;;  %2860 = vmatmul.msk.f32.vlgmr.msrb.gmra.mxu2 %vm225_vm0, %v644_v16  ;;  %v3852_v15 = vld [vmem:[%s3418_s28 + $0x7a] sm:$0xff]  ;;  %v3857_v16 = vld [vmem:[%s3418_s28 + $0x90] sm:$0xff] }
  0x5c   : > { %4719 = vst [vmem:[#allocation5_spill] sm:$0xff] %v3852_v15 }
  0x5d   : > { %2932 = vmatmul.msk.f32.vlgmr.msrb.gmra.mxu3 %vm225_vm0, %v2892_v17  ;;  %4720 = vst [vmem:[#allocation6_spill] sm:$0xff] %v3857_v16 }
  0x60   : > { %3004 = vmatmul.msk.f32.vlgmr.msrb.gmra.mxu0 %vm225_vm0, %v3543_v43  ;;  %v3767_v43 = vld [vmem:[%s3418_s28 + $0x4a] sm:$0xff] }
  0x63   : > { %2821 = vmatmul.msk.f32.gmra.mxu1 %vm225_vm0, %v145_v21  ;;  %2861 = vmatmul.msk.f32.gmra.mxu2 %vm225_vm0, %v645_v24  ;;  %v3879_v21 = vld [vmem:[%s3418_s28 + $0x98] sm:$0xff] }
  0x64   : > { %4723 = vst [vmem:[#allocation9_spill] sm:$0xff] %v3879_v21 }
  0x65   : > { %2933 = vmatmul.msk.f32.gmra.mxu3 %vm225_vm0, %v2893_v25 }
  0x68   : > { %3005 = vmatmul.msk.f32.gmra.mxu0 %vm225_vm0, %v3575_v51  ;;  %v3796_v51 = vld [vmem:[%s3418_s28 + $0x62] sm:$0xff] }
  0x6b   : > { %2822 = vmatmul.msk.f32.gmra.mxu1 %vm225_vm0, %v2892_v17  ;;  %2862 = vmatmul.msk.f32.gmra.mxu2 %vm225_vm0, %v3703_v28 }
  0x6d   : > { %2934 = vmatmul.msk.f32.gmra.mxu3 %vm225_vm0, %v3708_v29 }
  0x70   : > { %3006 = vmatmul.msk.f32.gmra.mxu0 %vm225_vm0, %v3607_v59 }
  0x73   : > { %2823 = vmatmul.msk.f32.gmra.mxu1 %vm225_vm0, %v2893_v25  ;;  %2863 = vmatmul.msk.f32.gmra.mxu2 %vm225_vm0, %v3716_v30 }
  0x75   : > { %2935 = vmatmul.msk.f32.gmra.mxu3 %vm225_vm0, %v3721_v31 }
  0x78   : > { %3007 = vmatmul.msk.f32.gmra.mxu0 %vm225_vm0, %v189_v2 }
  0x7b   : > { %2824 = vmatmul.msk.f32.gmra.mxu1 %vm225_vm0, %v3708_v29  ;;  %2864 = vmatmul.msk.f32.gmra.mxu2 %vm225_vm0, %v3729_v32 }
  0x7d   : > { %2936 = vmatmul.msk.f32.gmra.mxu3 %vm225_vm0, %v3733_v33 }
  0x80   : > { %3008 = vmatmul.msk.f32.gmra.mxu0 %vm225_vm0, %v190_v7 }
  0x83   : > { %2825 = vmatmul.msk.f32.gmra.mxu1 %vm225_vm0, %v3721_v31  ;;  %2865 = vmatmul.msk.f32.gmra.mxu2 %vm225_vm0, %v3751_v37 }
  0x85   : > { %2937 = vmatmul.msk.f32.gmra.mxu3 %vm225_vm0, %v3755_v40 }
  0x88   : > { %3009 = vmatmul.msk.f32.gmra.mxu0 %vm225_vm0, %v191_v14 }
  0x8b   : > { %2826 = vmatmul.msk.f32.gmra.mxu1 %vm225_vm0, %v3733_v33  ;;  %2866 = vmatmul.msk.f32.gmra.mxu2 %vm225_vm0, %v3767_v43 }
  0x8d   : > { %2938 = vmatmul.msk.f32.gmra.mxu3 %vm225_vm0, %v3771_v44 }
  0x90   : > { %3010 = vmatmul.msk.f32.gmra.mxu0 %vm225_vm0, %v3424_v8  ;;  %v3801_v8 = vld [vmem:[%s3418_s28 + $0x78] sm:$0xff] }
  0x93   : > { %2827 = vmatmul.msk.f32.gmra.mxu1 %vm225_vm0, %v3755_v40  ;;  %2867 = vmatmul.msk.f32.gmra.mxu2 %vm225_vm0, %v3780_v45 }
  0x95   : > { %2939 = vmatmul.msk.f32.gmra.mxu3 %vm225_vm0, %v3785_v46 }
  0x98   : > { %v3793_v50 = vpop.f32.mrf.mxu1  ;;  %3011 = vmatmul.msk.f32.gmra.mxu0 %vm225_vm0, %v3470_v22  ;;  %v3216_v22 = vld [vmem:[%s4691_s1 + $0x1e0] sm:$0xff] }
  0x99   : > { %2204 = vmatpush.msra.mxu3 %v3216_v22  ;;  %v3071_v22 = vld [vmem:[%s4691_s1 + $0x158] sm:$0xff] }
  0x9a   : > { %1640 = vmatpush.msra.mxu1 %v3071_v22 }
  0x9b   : > { %2828 = vmatmul.msk.f32.gmra.mxu1 %vm225_vm0, %v3771_v44  ;;  %2868 = vmatmul.msk.f32.gmra.mxu2 %vm225_vm0, %v3796_v51 }
  0x9d   : > { %2940 = vmatmul.msk.f32.gmra.mxu3 %vm225_vm0, %v3801_v8  ;;  %v3812_v53 = vpop.f32.mrf.mxu0 }
  0x9e   : > { %v3817_v54 = vpop.f32.mrf.mxu2 }
  0xa0   : > { %v3822_v59 = vpop.f32.mrf.mxu1  ;;  %v3824_v60 = vpop.f32.mrf.mxu3  ;;  %3012 = vmatmul.msk.f32.gmra.mxu0 %vm225_vm0, %v3523_v38 }
  0xa1   : > { %4716 = vst [vmem:[#allocation2_spill] sm:$0xff] %v3824_v60 }
  0xa3   : > { %2829 = vmatmul.msk.f32.gmra.mxu1 %vm225_vm0, %v3785_v46  ;;  %2869 = vmatmul.msk.f32.gmra.mxu2 %vm225_vm0, %v3827_v61 }
  0xa5   : > { %2941 = vmatmul.msk.f32.gmra.mxu3 %vm225_vm0, %v3832_v62  ;;  %v3840_v2 = vpop.f32.mrf.mxu0 }
  0xa6   : > { %v3845_v7 = vpop.f32.mrf.mxu2 }
  0xa8   : > { %v3847_v38 = vpop.f32.mrf.mxu1  ;;  %v3849_v14 = vpop.f32.mrf.mxu3  ;;  %3013 = vmatmul.msk.f32.gmra.mxu0 %vm225_vm0, %v3557_v47 }
  0xa9   : > { %4718 = vst [vmem:[#allocation4_spill] sm:$0xff] %v3849_v14  ;;  %v3952_v14 = vld [vmem:[%s3418_s28 + $0xaa] sm:$0xff] }
  0xaa   : > { %4731 = vst [vmem:[#allocation17_spill] sm:$0xff] %v3952_v14 }
  0xab   : > { %2830 = vmatmul.msk.f32.gmra.mxu1 %vm225_vm0, %v3801_v8  ;;  %2870 = vmatmul.msk.f32.gmra.mxu2 %vm225_vm0, %v3852_v15 }
  0xad   : > { %2942 = vmatmul.msk.f32.gmra.mxu3 %vm225_vm0, %v3857_v16  ;;  %v3865_v17 = vpop.f32.mrf.mxu0 }
  0xae   : > { %v3867_v18 = vpop.f32.mrf.mxu2 }
  0xb0   : > { %v3869_v19 = vpop.f32.mrf.mxu1  ;;  %v3871_v47 = vpop.f32.mrf.mxu3  ;;  %3014 = vmatmul.msk.f32.gmra.mxu0 %vm225_vm0, %v3589_v55  ;;  %v3896_v55 = vld [vmem:[%s3418_s28 + $0x92] sm:$0xff] }
  0xb1   : > { %4721 = vst [vmem:[#allocation7_spill] sm:$0xff] %v3871_v47 }
  0xb2   : > { %4725 = vst [vmem:[#allocation11_spill] sm:$0xff] %v3896_v55 }
  0xb3   : > { %2831 = vmatmul.msk.f32.gmra.mxu1 %vm225_vm0, %v3832_v62  ;;  %2871 = vmatmul.msk.f32.gmra.mxu2 %vm225_vm0, %v3874_v20  ;;  %v3994_v20 = vld [vmem:[%s3418_s28 + $0xc2] sm:$0xff] }
  0xb4   : > { %4738 = vst [vmem:[#allocation24_spill] sm:$0xff] %v3994_v20 }
  0xb5   : > { %2943 = vmatmul.msk.f32.gmra.mxu3 %vm225_vm0, %v3879_v21  ;;  %v3887_v24 = vpop.f32.mrf.mxu0 }
  0xb6   : > { %v3889_v25 = vpop.f32.mrf.mxu2 }
  0xb8   : > { %v3891_v27 = vpop.f32.mrf.mxu1  ;;  %v3893_v34 = vpop.f32.mrf.mxu3  ;;  %3015 = vmatmul.msk.f32.gmra.mxu0 %vm225_vm0, %v3621_v63  ;;  %v3215_v63 = vld [vmem:[%s4691_s1 + $0x1d8] sm:$0xff] }
  0xb9   : > { %4724 = vst [vmem:[#allocation10_spill] sm:$0xff] %v3893_v34  ;;  %2205 = vmatpush.msra.mxu3 %v3215_v63  ;;  %v3932_v34 = vld [vmem:[%s3418_s28 + $0xb0] sm:$0xff] }
  0xba   : > { %4729 = vst [vmem:[#allocation15_spill] sm:$0xff] %v3932_v34 }
  0xbb   : > { %2832 = vmatmul.msk.f32.gmra.mxu1 %vm225_vm0, %v3857_v16  ;;  %2872 = vmatmul.msk.f32.gmra.mxu2 %vm225_vm0, %v3896_v55  ;;  %v3974_v55 = vld [vmem:[%s3418_s28 + $0xb2] sm:$0xff] }
  0xbc   : > { %4735 = vst [vmem:[#allocation21_spill] sm:$0xff] %v3974_v55 }
  0xbd   : > { %2944 = vmatmul.msk.f32.gmra.mxu3 %vm225_vm0, %v3901_v35  ;;  %v3912_v42 = vpop.f32.mrf.mxu0 }
  0xbe   : > { %v3917_v52 = vpop.f32.mrf.mxu2 }
  0xc0   : > { %v3922_v58 = vpop.f32.mrf.mxu1  ;;  %v3924_v3 = vpop.f32.mrf.mxu3  ;;  %3016 = vmatmul.msk.f32.gmra.mxu0 %vm225_vm0, %v3642_v4 }
  0xc1   : > { %4727 = vst [vmem:[#allocation13_spill] sm:$0xff] %v3924_v3  ;;  %v3287_v3 = vld [vmem:[%s4691_s1 + $0x218] sm:$0xff] }
  0xc2   : > { %2487 = vmatpush.msra.mxu0 %v3287_v3 }
  0xc3   : > { %2833 = vmatmul.msk.f32.gmra.mxu1 %vm225_vm0, %v3879_v21  ;;  %2873 = vmatmul.msk.f32.gmra.mxu2 %vm225_vm0, %v3927_v36  ;;  %v3957_v36 = vld [vmem:[%s3418_s28 + $0xc0] sm:$0xff] }
  0xc4   : > { %4732 = vst [vmem:[#allocation18_spill] sm:$0xff] %v3957_v36 }
  0xc5   : > { %2945 = vmatmul.msk.f32.gmra.mxu3 %vm225_vm0, %v3932_v34  ;;  %v3940_v63 = vpop.f32.mrf.mxu0 }
  0xc6   : > { %v3945_v4 = vpop.f32.mrf.mxu2 }
  0xc8   : > { %v3947_v22 = vpop.f32.mrf.mxu1  ;;  %v3949_v47 = vpop.f32.mrf.mxu3  ;;  %3017 = vmatmul.msk.f32.gmra.mxu0 %vm225_vm0, %v3659_v10 }
  0xc9   : > { %4730 = vst [vmem:[#allocation16_spill] sm:$0xff] %v3949_v47 }
  0xcb   : > { %2834 = vmatmul.msk.f32.gmra.mxu1 %vm225_vm0, %v3901_v35  ;;  %2874 = vmatmul.msk.f32.gmra.mxu2 %vm225_vm0, %v3952_v14  ;;  %v3979_v35 = vld [vmem:[%s3418_s28 + $0xc8] sm:$0xff] }
  0xcd   : > { %2946 = vmatmul.msk.f32.gmra.mxu3 %vm225_vm0, %v3957_v36  ;;  %v3965_v3 = vpop.f32.mrf.mxu0 }
  0xce   : > { %v3967_v47 = vpop.f32.mrf.mxu2 }
  0xcf   : > { %4733 = vst [vmem:[#allocation19_spill] sm:$0xff] %v3967_v47 }
  0xd0   : > { %v3969_v21 = vpop.f32.mrf.mxu1  ;;  %v3971_v10 = vpop.f32.mrf.mxu3  ;;  %3018 = vmatmul.msk.f32.gmra.mxu0 %vm225_vm0, %v3427_v9  ;;  %v3999_v9 = vld [vmem:[%s3418_s28 + $0xd8] sm:$0xff] }
  0xd1   : > { %4734 = vst [vmem:[#allocation20_spill] sm:$0xff] %v3971_v10 }
  0xd3   : > { %2835 = vmatmul.msk.f32.gmra.mxu1 %vm225_vm0, %v3932_v34  ;;  %2875 = vmatmul.msk.f32.gmra.mxu2 %vm225_vm0, %v3974_v55  ;;  %v3142_v55 = vld [vmem:[%s4691_s1 + $0x190] sm:$0xff] }
  0xd4   : > { %1924 = vmatpush.msra.mxu2 %v3142_v55  ;;  %v3214_v34 = vld [vmem:[%s4691_s1 + $0x1d0] sm:$0xff] }
  0xd5   : > { %2947 = vmatmul.msk.f32.gmra.mxu3 %vm225_vm0, %v3979_v35  ;;  %v3987_v14 = vpop.f32.mrf.mxu0  ;;  %v4018_v55 = vld [vmem:[%s3418_s28 + $0xca] sm:$0xff] }
  0xd6   : > { %v3989_v60 = vpop.f32.mrf.mxu2  ;;  %2206 = vmatpush.msra.mxu3 %v3214_v34 }
  0xd7   : > { %4736 = vst [vmem:[#allocation22_spill] sm:$0xff] %v3989_v60 }
  0xd8   : > { %v3991_v10 = vpop.f32.mrf.mxu3  ;;  %v548_v16 = vpop.f32.mrf.mxu1  ;;  %3019 = vmatmul.msk.f32.gmra.mxu0 %vm225_vm0, %v3473_v23 }
  0xd9   : > { %4737 = vst [vmem:[#allocation23_spill] sm:$0xff] %v3991_v10  ;;  %v549_v10 = vadd.f32 %v548_v16, %v3812_v53  ;;  %v4023_v16 = vld [vmem:[%s3418_s28 + $0xe0] sm:$0xff] }
  0xdb   : > { %2836 = vmatmul.msk.f32.gmra.mxu1 %vm225_vm0, %v3957_v36  ;;  %2876 = vmatmul.msk.f32.gmra.mxu2 %vm225_vm0, %v3994_v20  ;;  %v3070_v20 = vld [vmem:[%s4691_s1 + $0x150] sm:$0xff] }
  0xdc   : > { %1641 = vmatpush.msra.mxu1 %v3070_v20 }
  0xdd   : > { %2948 = vmatmul.msk.f32.gmra.mxu3 %vm225_vm0, %v3999_v9  ;;  %v1363_v23 = vpop.f32.mrf.mxu0 }
  0xde   : > { %v798_v36 = vpop.f32.mrf.mxu2 }
  0xdf   : > { %v894_v60 = vadd.f32 %v798_v36, %v549_v10 }
  0xe0   : > { %v551_v62 = vpop.f32.mrf.mxu1  ;;  %v1081_v15 = vpop.f32.mrf.mxu3  ;;  %3020 = vmatmul.msk.f32.gmra.mxu0 %vm225_vm0, %v3526_v39 }
  0xe1   : > { %v1177_v53 = vadd.f32 %v1081_v15, %v894_v60  ;;  %v552_v34 = vadd.f32 %v551_v62, %v3840_v2  ;;  %v3286_v60 = vld [vmem:[%s4691_s1 + $0x210] sm:$0xff] }
  0xe2   : > { %2488 = vmatpush.msra.mxu0 %v3286_v60  ;;  %v4043_v2 = vld [vmem:[%s3418_s28 + $0xf0] sm:$0xff] }
  0xe3   : > { %v4025_v47 = vadd.f32 %v1363_v23, %v1177_v53  ;;  %2837 = vmatmul.msk.f32.gmra.mxu1 %vm225_vm0, %v3979_v35  ;;  %2877 = vmatmul.msk.f32.gmra.mxu2 %vm225_vm0, %v4018_v55  ;;  %v4038_v23 = vld [vmem:[%s3418_s28 + $0xda] sm:$0xff] }
  0xe5   : > { %4739 = vst [vmem:[#allocation25_spill] sm:$0xff] %v4025_v47  ;;  %2949 = vmatmul.msk.f32.gmra.mxu3 %vm225_vm0, %v4023_v16  ;;  %v1366_v39 = vpop.f32.mrf.mxu0 }
  0xe6   : > { %v801_v15 = vpop.f32.mrf.mxu2 }
  0xe7   : > { %v895_v20 = vadd.f32 %v801_v15, %v552_v34 }
  0xe8   : > { %v554_v36 = vpop.f32.mrf.mxu1  ;;  %v1084_v10 = vpop.f32.mrf.mxu3  ;;  %3021 = vmatmul.msk.f32.gmra.mxu0 %vm225_vm0, %v3560_v48 }
  0xe9   : > { %v1178_v62 = vadd.f32 %v1084_v10, %v895_v20  ;;  %v555_v34 = vadd.f32 %v554_v36, %v3865_v17  ;;  %v4055_v10 = vld [vmem:[%s3418_s28 + $0xe2] sm:$0xff] }
  0xeb   : > { %v4045_v53 = vadd.f32 %v1366_v39, %v1178_v62  ;;  %2838 = vmatmul.msk.f32.gmra.mxu1 %vm225_vm0, %v3999_v9  ;;  %2878 = vmatmul.msk.f32.gmra.mxu2 %vm225_vm0, %v4038_v23  ;;  %v4060_v62 = vld [vmem:[%s3418_s28 + $0xf8] sm:$0xff] }
  0xed   : > { %4740 = vst [vmem:[#allocation26_spill] sm:$0xff] %v4045_v53  ;;  %2950 = vmatmul.msk.f32.gmra.mxu3 %vm225_vm0, %v4043_v2  ;;  %v1369_v60 = vpop.f32.mrf.mxu0 }
  0xee   : > { %v804_v15 = vpop.f32.mrf.mxu2 }
  0xef   : > { %v896_v48 = vadd.f32 %v804_v15, %v555_v34 }
  0xf0   : > { %v557_v47 = vpop.f32.mrf.mxu1  ;;  %v1087_v20 = vpop.f32.mrf.mxu3  ;;  %3022 = vmatmul.msk.f32.gmra.mxu0 %vm225_vm0, %v3592_v56 }
  0xf1   : > { %v1179_v39 = vadd.f32 %v1087_v20, %v896_v48  ;;  %v558_v17 = vadd.f32 %v557_v47, %v3887_v24  ;;  %v4072_v20 = vld [vmem:[%s3418_s28 + $0xf2] sm:$0xff]  ;;  %v3141_v47 = vld [vmem:[%s4691_s1 + $0x188] sm:$0xff] }
  0xf2   : > { %1925 = vmatpush.msra.mxu2 %v3141_v47  ;;  %v4098_v47 = vld [vmem:[%s3418_s28 + $0xfa] sm:$0xff] }
  0xf3   : > { %v4062_v53 = vadd.f32 %v1369_v60, %v1179_v39  ;;  %2839 = vmatmul.msk.f32.gmra.mxu1 %vm225_vm0, %v4023_v16  ;;  %2879 = vmatmul.msk.f32.gmra.mxu2 %vm225_vm0, %v4055_v10  ;;  %v4077_v39 = vld [vmem:[%s3418_s28 + $0x108] sm:$0xff] }
  0xf5   : > { %4741 = vst [vmem:[#allocation27_spill] sm:$0xff] %v4062_v53  ;;  %2951 = vmatmul.msk.f32.gmra.mxu3 %vm225_vm0, %v4060_v62  ;;  %v1372_v36 = vpop.f32.mrf.mxu0 }
  0xf6   : > { %v807_v34 = vpop.f32.mrf.mxu2 }
  0xf7   : > { %v897_v56 = vadd.f32 %v807_v34, %v558_v17  ;;  %v3213_v17 = vld [vmem:[%s4691_s1 + $0x1c8] sm:$0xff] }
  0xf8   : > { %v560_v15 = vpop.f32.mrf.mxu1  ;;  %v1090_v48 = vpop.f32.mrf.mxu3  ;;  %3023 = vmatmul.msk.f32.gmra.mxu0 %vm225_vm0, %v3624_v0  ;;  %2207 = vmatpush.msra.mxu3 %v3213_v17  ;;  %v3285_v17 = vld [vmem:[%s4691_s1 + $0x208] sm:$0xff] }
  0xf9   : > { %v1180_v60 = vadd.f32 %v1090_v48, %v897_v56  ;;  %v561_v0 = vadd.f32 %v560_v15, %v3912_v42  ;;  %v3069_v56 = vld [vmem:[%s4691_s1 + $0x148] sm:$0xff]  ;;  %v4103_v15 = vld [vmem:[%s3418_s28 + $0x110] sm:$0xff]  ;;  %2489 = vmatpush.msra.mxu0 %v3285_v17 }
  0xfa   : > { %1642 = vmatpush.msra.mxu1 %v3069_v56 }
  0xfb   : > { %v4079_v53 = vadd.f32 %v1372_v36, %v1180_v60  ;;  %2840 = vmatmul.msk.f32.gmra.mxu1 %vm225_vm0, %v4043_v2  ;;  %2880 = vmatmul.msk.f32.gmra.mxu2 %vm225_vm0, %v4072_v20 }
  0xfd   : > { %4742 = vst [vmem:[#allocation28_spill] sm:$0xff] %v4079_v53  ;;  %2952 = vmatmul.msk.f32.gmra.mxu3 %vm225_vm0, %v4077_v39  ;;  %v1375_v24 = vpop.f32.mrf.mxu0 }
  0xfe   : > { %v810_v36 = vpop.f32.mrf.mxu2 }
  0xff   : > { %v898_v34 = vadd.f32 %v810_v36, %v561_v0 }
 0x100   : > { %v563_v48 = vpop.f32.mrf.mxu1  ;;  %v1093_v60 = vpop.f32.mrf.mxu3  ;;  %3024 = vmatmul.msk.f32.gmra.mxu0 %vm225_vm0, %v3645_v5 }
 0x101   : > { %v1181_v42 = vadd.f32 %v1093_v60, %v898_v34  ;;  %v564_v0 = vadd.f32 %v563_v48, %v3940_v63  ;;  %v4118_v60 = vld [vmem:[%s3418_s28 + $0x10a] sm:$0xff]  ;;  %v4123_v48 = vld [vmem:[%s3418_s28 + $0x120] sm:$0xff] }
 0x103   : > { %v4105_v53 = vadd.f32 %v1375_v24, %v1181_v42  ;;  %2841 = vmatmul.msk.f32.gmra.mxu1 %vm225_vm0, %v4060_v62  ;;  %2881 = vmatmul.msk.f32.gmra.mxu2 %vm225_vm0, %v4098_v47 }
 0x105   : > { %4743 = vst [vmem:[#allocation29_spill] sm:$0xff] %v4105_v53  ;;  %2953 = vmatmul.msk.f32.gmra.mxu3 %vm225_vm0, %v4103_v15  ;;  %v1378_v5 = vpop.f32.mrf.mxu0 }
 0x106   : > { %v813_v36 = vpop.f32.mrf.mxu2 }
 0x107   : > { %v899_v24 = vadd.f32 %v813_v36, %v564_v0 }
 0x108   : > { %v566_v34 = vpop.f32.mrf.mxu1  ;;  %v1096_v56 = vpop.f32.mrf.mxu3  ;;  %3025 = vmatmul.msk.f32.gmra.mxu0 %vm225_vm0, %v3662_v12 }
 0x109   : > { %v1182_v63 = vadd.f32 %v1096_v56, %v899_v24  ;;  %v567_v0 = vadd.f32 %v566_v34, %v3965_v3  ;;  %v4135_v56 = vld [vmem:[%s3418_s28 + $0x112] sm:$0xff] }
 0x10b   : > { %v4125_v42 = vadd.f32 %v1378_v5, %v1182_v63  ;;  %2842 = vmatmul.msk.f32.gmra.mxu1 %vm225_vm0, %v4077_v39  ;;  %2882 = vmatmul.msk.f32.gmra.mxu2 %vm225_vm0, %v4118_v60  ;;  %v4140_v63 = vld [vmem:[%s3418_s28 + $0x128] sm:$0xff] }
 0x10c   : > { %4745 = vst [vmem:[#allocation31_spill] sm:$0xff] %v4140_v63 }
 0x10d   : > { %4744 = vst [vmem:[#allocation30_spill] sm:$0xff] %v4125_v42  ;;  %2954 = vmatmul.msk.f32.gmra.mxu3 %vm225_vm0, %v4123_v48  ;;  %v1381_v17 = vpop.f32.mrf.mxu0 }
 0x10e   : > { %v816_v36 = vpop.f32.mrf.mxu2 }
 0x10f   : > { %v900_v12 = vadd.f32 %v816_v36, %v567_v0 }
 0x110   : > { %v569_v53 = vpop.f32.mrf.mxu1  ;;  %v1099_v24 = vpop.f32.mrf.mxu3  ;;  %3026 = vmatmul.msk.f32.gmra.mxu0 %vm225_vm0, %v3433_v11 }
 0x111   : > { %v1183_v5 = vadd.f32 %v1099_v24, %v900_v12  ;;  %v570_v3 = vadd.f32 %v569_v53, %v3987_v14  ;;  %v4152_v24 = vld [vmem:[%s3418_s28 + $0x122] sm:$0xff] }
 0x112   : > { %v3140_v14 = vld [vmem:[%s4691_s1 + $0x180] sm:$0xff] }
 0x113   : > { %v4142_v42 = vadd.f32 %v1381_v17, %v1183_v5  ;;  %2843 = vmatmul.msk.f32.gmra.mxu1 %vm225_vm0, %v4103_v15  ;;  %2883 = vmatmul.msk.f32.gmra.mxu2 %vm225_vm0, %v4135_v56  ;;  %v2916_v5 = vld [vmem:[%s3418_s28 + $0x138] sm:$0xff] }
 0x114   : > { %1926 = vmatpush.msra.mxu2 %v3140_v14 }
 0x115   : > { %4746 = vst [vmem:[#allocation32_spill] sm:$0xff] %v4142_v42  ;;  %2955 = vmatmul.msk.f32.gmra.mxu3 %vm225_vm0, %v4140_v63  ;;  %v1384_v34 = vpop.f32.mrf.mxu0 }
 0x116   : > { %v819_v0 = vpop.f32.mrf.mxu2 }
 0x117   : > { %v901_v11 = vadd.f32 %v819_v0, %v570_v3  ;;  %v3212_v3 = vld [vmem:[%s4691_s1 + $0x1c0] sm:$0xff] }
 0x118   : > { %v572_v36 = vpop.f32.mrf.mxu1  ;;  %v1102_v12 = vpop.f32.mrf.mxu3  ;;  %3027 = vmatmul.msk.f32.gmra.mxu0 %vm225_vm0, %v3483_v26  ;;  %2208 = vmatpush.msra.mxu3 %v3212_v3  ;;  %v3284_v3 = vld [vmem:[%s4691_s1 + $0x200] sm:$0xff] }
 0x119   : > { %v1184_v17 = vadd.f32 %v1102_v12, %v901_v11  ;;  %v573_v53 = vadd.f32 %v572_v36, %v3793_v50  ;;  %v3068_v11 = vld [vmem:[%s4691_s1 + $0x140] sm:$0xff]  ;;  %2490 = vmatpush.msra.mxu0 %v3284_v3 }
 0x11a   : > { %1643 = vmatpush.msra.mxu1 %v3068_v11  ;;  %v4180_v36 = vld [vmem:[%s3418_s28 + $0x140] sm:$0xff] }
 0x11b   : > { %v4157_v42 = vadd.f32 %v1384_v34, %v1184_v17  ;;  %2844 = vmatmul.msk.f32.gmra.mxu1 %vm225_vm0, %v4123_v48  ;;  %2884 = vmatmul.msk.f32.gmra.mxu2 %vm225_vm0, %v4152_v24 }
 0x11d   : > { %4747 = vst [vmem:[#allocation33_spill] sm:$0xff] %v4157_v42  ;;  %2956 = vmatmul.msk.f32.gmra.mxu3 %vm225_vm0, %v2916_v5  ;;  %v1387_v26 = vpop.f32.mrf.mxu0  ;;  %v4175_v42 = vld [vmem:[%s3418_s28 + $0x12a] sm:$0xff] }
 0x11e   : > { %v822_v34 = vpop.f32.mrf.mxu2  ;;  %4748 = vst [vmem:[#allocation34_spill] sm:$0xff] %v4175_v42 }
 0x11f   : > { %v902_v0 = vadd.f32 %v822_v34, %v573_v53 }
 0x120   : > { %v575_v12 = vpop.f32.mrf.mxu1  ;;  %v1105_v17 = vpop.f32.mrf.mxu3  ;;  %3028 = vmatmul.msk.f32.gmra.mxu0 %vm225_vm0, %v3533_v41 }
 0x121   : > { %v1185_v50 = vadd.f32 %v1105_v17, %v902_v0  ;;  %v576_v53 = vadd.f32 %v575_v12, %v3822_v59  ;;  %v4195_v17 = vld [vmem:[%s3418_s28 + $0x13a] sm:$0xff]  ;;  %v2918_v12 = vld [vmem:[%s3418_s28 + $0x150] sm:$0xff] }
 0x123   : > { %v4182_v14 = vadd.f32 %v1387_v26, %v1185_v50  ;;  %2845 = vmatmul.msk.f32.gmra.mxu1 %vm225_vm0, %v4140_v63  ;;  %2885 = vmatmul.msk.f32.gmra.mxu2 %vm225_vm0, %v4175_v42  ;;  %v4208_v63 = vld [vmem:[%s3418_s28 + $0x142] sm:$0xff] }
 0x125   : > { %4749 = vst [vmem:[#allocation35_spill] sm:$0xff] %v4182_v14  ;;  %2957 = vmatmul.msk.f32.gmra.mxu3 %vm225_vm0, %v4180_v36  ;;  %v1390_v41 = vpop.f32.mrf.mxu0 }
 0x126   : > { %v825_v34 = vpop.f32.mrf.mxu2 }
 0x127   : > { %v903_v26 = vadd.f32 %v825_v34, %v576_v53 }
 0x128   : > { %v578_v0 = vpop.f32.mrf.mxu1  ;;  %v1108_v11 = vpop.f32.mrf.mxu3  ;;  %3029 = vmatmul.msk.f32.gmra.mxu0 %vm225_vm0, %v3565_v49 }
 0x129   : > { %v1186_v59 = vadd.f32 %v1108_v11, %v903_v26  ;;  %v579_v53 = vadd.f32 %v578_v0, %v3847_v38 }
 0x12b   : > { %v4200_v50 = vadd.f32 %v1390_v41, %v1186_v59  ;;  %2846 = vmatmul.msk.f32.gmra.mxu1 %vm225_vm0, %v2916_v5  ;;  %2886 = vmatmul.msk.f32.gmra.mxu2 %vm225_vm0, %v4195_v17  ;;  %v2919_v41 = vld [vmem:[%s3418_s28 + $0x158] sm:$0xff] }
 0x12d   : > { %2958 = vmatmul.msk.f32.gmra.mxu3 %vm225_vm0, %v2918_v12  ;;  %v1393_v3 = vpop.f32.mrf.mxu0 }
 0x12e   : > { %v828_v34 = vpop.f32.mrf.mxu2 }
 0x12f   : > { %v904_v14 = vadd.f32 %v828_v34, %v579_v53  ;;  %v2920_v34 = vld [vmem:[%s3418_s28 + $0x168] sm:$0xff] }
 0x130   : > { %v581_v42 = vpop.f32.mrf.mxu1  ;;  %v1111_v49 = vpop.f32.mrf.mxu3  ;;  %3030 = vmatmul.msk.f32.gmra.mxu0 %vm225_vm0, %v3597_v57 }
 0x131   : > { %v1187_v5 = vadd.f32 %v1111_v49, %v904_v14  ;;  %v582_v38 = vadd.f32 %v581_v42, %v3869_v19  ;;  %v4222_v14 = vld [vmem:[%s3418_s28 + $0x152] sm:$0xff] }
 0x133   : > { %v4213_v26 = vadd.f32 %v1393_v3, %v1187_v5  ;;  %2847 = vmatmul.msk.f32.gmra.mxu1 %vm225_vm0, %v4180_v36  ;;  %2887 = vmatmul.msk.f32.gmra.mxu2 %vm225_vm0, %v4208_v63 }
 0x135   : > { %4750 = vst [vmem:[#allocation36_spill] sm:$0xff] %v4213_v26  ;;  %2959 = vmatmul.msk.f32.gmra.mxu3 %vm225_vm0, %v2919_v41  ;;  %v1396_v0 = vpop.f32.mrf.mxu0  ;;  %v4235_v26 = vld [vmem:[%s3418_s28 + $0x15a] sm:$0xff] }
 0x136   : > { %v831_v11 = vpop.f32.mrf.mxu2 }
 0x137   : > { %v905_v59 = vadd.f32 %v831_v11, %v582_v38 }
 0x138   : > { %v584_v53 = vpop.f32.mrf.mxu1  ;;  %v1114_v57 = vpop.f32.mrf.mxu3  ;;  %3031 = vmatmul.msk.f32.gmra.mxu0 %vm225_vm0, %v3629_v1 }
 0x139   : > { %v1188_v3 = vadd.f32 %v1114_v57, %v905_v59  ;;  %v585_v19 = vadd.f32 %v584_v53, %v3891_v27 }
 0x13b   : > { %v4227_v49 = vadd.f32 %v1396_v0, %v1188_v3  ;;  %2848 = vmatmul.msk.f32.gmra.mxu1 %vm225_vm0, %v2918_v12  ;;  %2888 = vmatmul.msk.f32.gmra.mxu2 %vm225_vm0, %v4222_v14  ;;  %v2921_v0 = vld [vmem:[%s3418_s28 + $0x170] sm:$0xff] }
 0x13d   : > { %2960 = vmatmul.msk.f32.gmra.mxu3 %vm225_vm0, %v2920_v34  ;;  %v1399_v42 = vpop.f32.mrf.mxu0 }
 0x13e   : > { %v834_v5 = vpop.f32.mrf.mxu2 }
 0x13f   : > { %v906_v38 = vadd.f32 %v834_v5, %v585_v19  ;;  %v4248_v5 = vld [vmem:[%s3418_s28 + $0x16a] sm:$0xff] }
 0x140   : > { %v587_v11 = vpop.f32.mrf.mxu1  ;;  %v1117_v1 = vpop.f32.mrf.mxu3  ;;  %3032 = vmatmul.msk.f32.gmra.mxu0 %vm225_vm0, %v3649_v6 }
 0x141   : > { %v1189_v12 = vadd.f32 %v1117_v1, %v906_v38  ;;  %v588_v27 = vadd.f32 %v587_v11, %v3922_v58  ;;  %v4261_v1 = vld [vmem:[%s3418_s28 + $0x181] sm:$0xff] }
 0x143   : > { %v4240_v59 = vadd.f32 %v1399_v42, %v1189_v12  ;;  %2849 = vmatmul.msk.f32.gmra.mxu1 %vm225_vm0, %v2919_v41  ;;  %2889 = vmatmul.msk.f32.gmra.mxu2 %vm225_vm0, %v4235_v26  ;;  %v2922_v42 = vld [vmem:[%s3418_s28 + $0x180] sm:$0xff] }
 0x145   : > { %2961 = vmatmul.msk.f32.gmra.mxu3 %vm225_vm0, %v2921_v0  ;;  %v1402_v53 = vpop.f32.mrf.mxu0 }
 0x146   : > { %v837_v57 = vpop.f32.mrf.mxu2 }
 0x147   : > { %v907_v3 = vadd.f32 %v837_v57, %v588_v27 }
 0x148   : > { %v590_v19 = vpop.f32.mrf.mxu1  ;;  %v1120_v6 = vpop.f32.mrf.mxu3  ;;  %3033 = vmatmul.msk.f32.gmra.mxu0 %vm225_vm0, %v3666_v13 }
 0x149   : > { %v1190_v41 = vadd.f32 %v1120_v6, %v907_v3  ;;  %v591_v58 = vadd.f32 %v590_v19, %v3947_v22  ;;  %v4264_v3 = vld [vmem:[%s3418_s28 + $0x172] sm:$0xff] }
 0x14b   : > { %v4253_v38 = vadd.f32 %v1402_v53, %v1190_v41  ;;  %2850 = vmatmul.msk.f32.gmra.mxu1 %vm225_vm0, %v2920_v34  ;;  %2890 = vmatmul.msk.f32.gmra.mxu2 %vm225_vm0, %v4248_v5  ;;  %v2923_v53 = vld [vmem:[%s3418_s28 + $0x188] sm:$0xff] }
 0x14c   : > { %v4277_v41 = vld [vmem:[%s3418_s28 + $0x189] sm:$0xff] }
 0x14d   : > { %4751 = vst [vmem:[#allocation37_spill] sm:$0xff] %v4253_v38  ;;  %2962 = vmatmul.msk.f32.gmra.mxu3 %vm225_vm0, %v2922_v42  ;;  %v1405_v11 = vpop.f32.mrf.mxu0 }
 0x14e   : > { %v840_v12 = vpop.f32.mrf.mxu2 }
 0x14f   : > { %v908_v13 = vadd.f32 %v840_v12, %v591_v58 }
 0x150   : > { %v593_v27 = vpop.f32.mrf.mxu1  ;;  %v1123_v57 = vpop.f32.mrf.mxu3  ;;  %3034 = vmatmul.msk.f32.gmra.mxu0 %vm225_vm0, %v4261_v1 }
 0x151   : > { %v1191_v34 = vadd.f32 %v1123_v57, %v908_v13  ;;  %v594_v22 = vadd.f32 %v593_v27, %v3969_v21 }
 0x153   : > { %v4269_v6 = vadd.f32 %v1405_v11, %v1191_v34  ;;  %2851 = vmatmul.msk.f32.gmra.mxu1 %vm225_vm0, %v2921_v0  ;;  %2891 = vmatmul.msk.f32.gmra.mxu2 %vm225_vm0, %v4264_v3  ;;  %v3180_v0 = vld [vmem:[%s3418_s28 + $0x31] sm:$0xff] }
 0x155   : > { %2963 = vmatmul.msk.f32.gmra.mxu3 %vm225_vm0, %v2923_v53  ;;  %v1408_v19 = vpop.f32.mrf.mxu0 }
 0x156   : > { %v843_v42 = vpop.f32.mrf.mxu2 }
 0x157   : > { %v909_v58 = vadd.f32 %v843_v42, %v594_v22 }
 0x158   : > { %v596_v12 = vpop.f32.mrf.mxu1  ;;  %v1126_v38 = vpop.f32.mrf.mxu3  ;;  %3035 = vmatmul.msk.f32.gmra.mxu0 %vm225_vm0, %v4277_v41 }
 0x159   : > { %v1192_v11 = vadd.f32 %v1126_v38, %v909_v58  ;;  %v597_v21 = vadd.f32 %v596_v12, %v3817_v54 }
 0x15b   : > { %v4282_v13 = vadd.f32 %v1408_v19, %v1192_v11  ;;  %3076 = vmatmul.msk.f32.vlgmr.msra.gmra.mxu1 %vm225_vm0, %v3703_v28  ;;  %3148 = vmatmul.msk.f32.vlgmr.msra.gmra.mxu2 %vm225_vm0, %v3708_v29  ;;  %v3181_v19 = vld [vmem:[%s3418_s28 + $0x39] sm:$0xff] }
 0x15d   : > { %3220 = vmatmul.msk.f32.vlgmr.msra.gmra.mxu3 %vm225_vm0, %v3180_v0  ;;  %v1411_v27 = vpop.f32.mrf.mxu0 }
 0x15e   : > { %v846_v57 = vpop.f32.mrf.mxu2 }
 0x15f   : > { %v910_v34 = vadd.f32 %v846_v57, %v597_v21  ;;  %v3182_v21 = vld [vmem:[%s3418_s28 + $0x49] sm:$0xff] }
 0x160   : > { %v599_v53 = vpop.f32.mrf.mxu1  ;;  %v1129_v22 = vpop.f32.mrf.mxu3  ;;  %3292 = vmatmul.msk.f32.vlgmr.msra.gmra.mxu0 %vm225_vm0, %v3729_v32 }
 0x161   : > { %v1193_v38 = vadd.f32 %v1129_v22, %v910_v34  ;;  %v600_v28 = vadd.f32 %v599_v53, %v3845_v7 }
 0x163   : > { %v4293_v42 = vadd.f32 %v1411_v27, %v1193_v38  ;;  %3077 = vmatmul.msk.f32.gmra.mxu1 %vm225_vm0, %v3716_v30  ;;  %3149 = vmatmul.msk.f32.gmra.mxu2 %vm225_vm0, %v3721_v31  ;;  %v3183_v38 = vld [vmem:[%s3418_s28 + $0x51] sm:$0xff] }
 0x165   : > { %3221 = vmatmul.msk.f32.gmra.mxu3 %vm225_vm0, %v3181_v19  ;;  %v1414_v29 = vpop.f32.mrf.mxu0 }
 0x166   : > { %v849_v54 = vpop.f32.mrf.mxu2 }
 0x167   : > { %v911_v58 = vadd.f32 %v849_v54, %v600_v28 }
 0x168   : > { %v602_v12 = vpop.f32.mrf.mxu1  ;;  %v1132_v11 = vpop.f32.mrf.mxu3  ;;  %3293 = vmatmul.msk.f32.gmra.mxu0 %vm225_vm0, %v3751_v37 }
 0x169   : > { %v1194_v0 = vadd.f32 %v1132_v11, %v911_v58  ;;  %v603_v30 = vadd.f32 %v602_v12, %v3867_v18  ;;  %v3184_v12 = vld [vmem:[%s3418_s28 + $0x61] sm:$0xff] }
 0x16b   : > { %v4304_v27 = vadd.f32 %v1414_v29, %v1194_v0  ;;  %3078 = vmatmul.msk.f32.gmra.mxu1 %vm225_vm0, %v3729_v32  ;;  %3150 = vmatmul.msk.f32.gmra.mxu2 %vm225_vm0, %v3733_v33 }
 0x16d   : > { %3222 = vmatmul.msk.f32.gmra.mxu3 %vm225_vm0, %v3182_v21  ;;  %v1417_v31 = vpop.f32.mrf.mxu0 }
 0x16e   : > { %v852_v7 = vpop.f32.mrf.mxu2 }
 0x16f   : > { %v912_v57 = vadd.f32 %v852_v7, %v603_v30  ;;  %v3185_v7 = vld [vmem:[%s3418_s28 + $0x69] sm:$0xff] }
 0x170   : > { %v605_v34 = vpop.f32.mrf.mxu1  ;;  %v1135_v53 = vpop.f32.mrf.mxu3  ;;  %3294 = vmatmul.msk.f32.gmra.mxu0 %vm225_vm0, %v3767_v43 }
 0x171   : > { %v1195_v22 = vadd.f32 %v1135_v53, %v912_v57  ;;  %v606_v32 = vadd.f32 %v605_v34, %v3889_v25 }
 0x173   : > { %v4315_v19 = vadd.f32 %v1417_v31, %v1195_v22  ;;  %3079 = vmatmul.msk.f32.gmra.mxu1 %vm225_vm0, %v3751_v37  ;;  %3151 = vmatmul.msk.f32.gmra.mxu2 %vm225_vm0, %v3755_v40 }
 0x175   : > { %3223 = vmatmul.msk.f32.gmra.mxu3 %vm225_vm0, %v3183_v38  ;;  %v1420_v33 = vpop.f32.mrf.mxu0 }
 0x176   : > { %v855_v18 = vpop.f32.mrf.mxu2 }
 0x177   : > { %v913_v28 = vadd.f32 %v855_v18, %v606_v32  ;;  %v3186_v32 = vld [vmem:[%s3418_s28 + $0x79] sm:$0xff] }
 0x178   : > { %v608_v29 = vpop.f32.mrf.mxu1  ;;  %v1138_v54 = vpop.f32.mrf.mxu3  ;;  %3295 = vmatmul.msk.f32.gmra.mxu0 %vm225_vm0, %v3780_v45 }
 0x179   : > { %v1196_v58 = vadd.f32 %v1138_v54, %v913_v28  ;;  %v609_v37 = vadd.f32 %v608_v29, %v3917_v52 }
 0x17b   : > { %v4326_v11 = vadd.f32 %v1420_v33, %v1196_v58  ;;  %3080 = vmatmul.msk.f32.gmra.mxu1 %vm225_vm0, %v3767_v43  ;;  %3152 = vmatmul.msk.f32.gmra.mxu2 %vm225_vm0, %v3771_v44  ;;  %v4753_v58 = vld [vmem:[#allocation5_spill] sm:$0xff] }
 0x17d   : > { %3224 = vmatmul.msk.f32.gmra.mxu3 %vm225_vm0, %v3184_v12  ;;  %v1423_v40 = vpop.f32.mrf.mxu0 }
 0x17e   : > { %v858_v25 = vpop.f32.mrf.mxu2 }
 0x17f   : > { %v914_v0 = vadd.f32 %v858_v25, %v609_v37  ;;  %v3187_v37 = vld [vmem:[%s3418_s28 + $0x81] sm:$0xff] }
 0x180   : > { %v611_v21 = vpop.f32.mrf.mxu1  ;;  %v1141_v30 = vpop.f32.mrf.mxu3  ;;  %3296 = vmatmul.msk.f32.gmra.mxu0 %vm225_vm0, %v3796_v51 }
 0x181   : > { %v1197_v31 = vadd.f32 %v1141_v30, %v914_v0  ;;  %v612_v43 = vadd.f32 %v611_v21, %v3945_v4 }
 0x183   : > { %v4337_v57 = vadd.f32 %v1423_v40, %v1197_v31  ;;  %3081 = vmatmul.msk.f32.gmra.mxu1 %vm225_vm0, %v3780_v45  ;;  %3153 = vmatmul.msk.f32.gmra.mxu2 %vm225_vm0, %v3785_v46  ;;  %v4752_v45 = vld [vmem:[#allocation19_spill] sm:$0xff] }
 0x185   : > { %3225 = vmatmul.msk.f32.gmra.mxu3 %vm225_vm0, %v3185_v7  ;;  %v1426_v44 = vpop.f32.mrf.mxu0 }
 0x186   : > { %v861_v52 = vpop.f32.mrf.mxu2 }
 0x187   : > { %v915_v34 = vadd.f32 %v861_v52, %v612_v43  ;;  %v4756_v43 = vld [vmem:[#allocation8_spill] sm:$0xff] }
 0x188   : > { %v614_v53 = vpop.f32.mrf.mxu1  ;;  %v1144_v22 = vpop.f32.mrf.mxu3  ;;  %3297 = vmatmul.msk.f32.gmra.mxu0 %vm225_vm0, %v3827_v61  ;;  %v3188_v52 = vld [vmem:[%s3418_s28 + $0x91] sm:$0xff] }
 0x189   : > { %v1198_v38 = vadd.f32 %v1144_v22, %v915_v34  ;;  %v615_v46 = vadd.f32 %v614_v53, %v4752_v45  ;;  %v4758_v53 = vld [vmem:[#allocation2_spill] sm:$0xff] }
 0x18b   : > { %v4348_v33 = vadd.f32 %v1426_v44, %v1198_v38  ;;  %3082 = vmatmul.msk.f32.gmra.mxu1 %vm225_vm0, %v3796_v51  ;;  %3154 = vmatmul.msk.f32.gmra.mxu2 %vm225_vm0, %v3801_v8  ;;  %v4754_v51 = vld [vmem:[#allocation3_spill] sm:$0xff]  ;;  %v4755_v8 = vld [vmem:[#allocation22_spill] sm:$0xff] }
 0x18d   : > { %3226 = vmatmul.msk.f32.gmra.mxu3 %vm225_vm0, %v3186_v32  ;;  %v1429_v4 = vpop.f32.mrf.mxu0 }
 0x18e   : > { %v864_v18 = vpop.f32.mrf.mxu2 }
 0x18f   : > { %v916_v28 = vadd.f32 %v864_v18, %v615_v46  ;;  %v4759_v18 = vld [vmem:[#allocation11_spill] sm:$0xff] }
 0x190   : > { %v617_v29 = vpop.f32.mrf.mxu1  ;;  %v1147_v54 = vpop.f32.mrf.mxu3  ;;  %3298 = vmatmul.msk.f32.gmra.mxu0 %vm225_vm0, %v4753_v58 }
 0x191   : > { %v1199_v12 = vadd.f32 %v1147_v54, %v916_v28  ;;  %v618_v25 = vadd.f32 %v617_v29, %v4755_v8  ;;  %v3189_v29 = vld [vmem:[%s3418_s28 + $0x99] sm:$0xff] }
 0x193   : > { %v4359_v40 = vadd.f32 %v1429_v4, %v1199_v12  ;;  %3083 = vmatmul.msk.f32.gmra.mxu1 %vm225_vm0, %v3827_v61  ;;  %3155 = vmatmul.msk.f32.gmra.mxu2 %vm225_vm0, %v4754_v51  ;;  %v4757_v61 = vld [vmem:[#allocation6_spill] sm:$0xff]  ;;  %v4761_v12 = vld [vmem:[#allocation4_spill] sm:$0xff] }
 0x195   : > { %3227 = vmatmul.msk.f32.gmra.mxu3 %vm225_vm0, %v3187_v37  ;;  %v1432_v0 = vpop.f32.mrf.mxu0 }
 0x196   : > { %v867_v21 = vpop.f32.mrf.mxu2 }
 0x197   : > { %v917_v30 = vadd.f32 %v867_v21, %v618_v25 }
 0x198   : > { %v620_v31 = vpop.f32.mrf.mxu1  ;;  %v1150_v7 = vpop.f32.mrf.mxu3  ;;  %3299 = vmatmul.msk.f32.gmra.mxu0 %vm225_vm0, %v4756_v43 }
 0x199   : > { %v1200_v44 = vadd.f32 %v1150_v7, %v917_v30  ;;  %v621_v22 = vadd.f32 %v620_v31, %v4758_v53  ;;  %v4762_v30 = vld [vmem:[#allocation14_spill] sm:$0xff]  ;;  %v3190_v7 = vld [vmem:[%s3418_s28 + $0xa9] sm:$0xff] }
 0x19b   : > { %v4370_v34 = vadd.f32 %v1432_v0, %v1200_v44  ;;  %3084 = vmatmul.msk.f32.gmra.mxu1 %vm225_vm0, %v4753_v58  ;;  %3156 = vmatmul.msk.f32.gmra.mxu2 %vm225_vm0, %v4757_v61  ;;  %v4760_v58 = vld [vmem:[#allocation9_spill] sm:$0xff] }
 0x19d   : > { %3228 = vmatmul.msk.f32.gmra.mxu3 %vm225_vm0, %v3188_v52  ;;  %v1435_v38 = vpop.f32.mrf.mxu0  ;;  %v4764_v52 = vld [vmem:[#allocation7_spill] sm:$0xff] }
 0x19e   : > { %v870_v32 = vpop.f32.mrf.mxu2 }
 0x19f   : > { %v918_v45 = vadd.f32 %v870_v32, %v621_v22 }
 0x1a0   : > { %v623_v46 = vpop.f32.mrf.mxu1  ;;  %v1153_v4 = vpop.f32.mrf.mxu3  ;;  %3300 = vmatmul.msk.f32.gmra.mxu0 %vm225_vm0, %v4759_v18 }
 0x1a1   : > { %v1201_v28 = vadd.f32 %v1153_v4, %v918_v45  ;;  %v624_v37 = vadd.f32 %v623_v46, %v4761_v12  ;;  %v4765_v46 = vld [vmem:[#allocation17_spill] sm:$0xff] }
 0x1a3   : > { %v4381_v54 = vadd.f32 %v1435_v38, %v1201_v28  ;;  %3085 = vmatmul.msk.f32.gmra.mxu1 %vm225_vm0, %v4756_v43  ;;  %3157 = vmatmul.msk.f32.gmra.mxu2 %vm225_vm0, %v4760_v58  ;;  %v4763_v43 = vld [vmem:[#allocation12_spill] sm:$0xff]  ;;  %v4767_v58 = vld [vmem:[#allocation10_spill] sm:$0xff] }
 0x1a4   : > { %v3191_v28 = vld [vmem:[%s3418_s28 + $0xb1] sm:$0xff] }
 0x1a5   : > { %3229 = vmatmul.msk.f32.gmra.mxu3 %vm225_vm0, %v3189_v29  ;;  %v1438_v51 = vpop.f32.mrf.mxu0 }
 0x1a6   : > { %v873_v8 = vpop.f32.mrf.mxu2 }
 0x1a7   : > { %v919_v25 = vadd.f32 %v873_v8, %v624_v37 }
 0x1a8   : > { %v626_v0 = vpop.f32.mrf.mxu1  ;;  %v1156_v21 = vpop.f32.mrf.mxu3  ;;  %3301 = vmatmul.msk.f32.gmra.mxu0 %vm225_vm0, %v4762_v30 }
 0x1a9   : > { %v1202_v31 = vadd.f32 %v1156_v21, %v919_v25  ;;  %v627_v61 = vadd.f32 %v626_v0, %v4764_v52  ;;  %v4768_v21 = vld [vmem:[#allocation21_spill] sm:$0xff] }
 0x1aa   : > { %v4770_v52 = vld [vmem:[#allocation13_spill] sm:$0xff] }
 0x1ab   : > { %v4392_v44 = vadd.f32 %v1438_v51, %v1202_v31  ;;  %3086 = vmatmul.msk.f32.gmra.mxu1 %vm225_vm0, %v4759_v18  ;;  %3158 = vmatmul.msk.f32.gmra.mxu2 %vm225_vm0, %v4763_v43  ;;  %v4766_v18 = vld [vmem:[#allocation15_spill] sm:$0xff] }
 0x1ad   : > { %3230 = vmatmul.msk.f32.gmra.mxu3 %vm225_vm0, %v3190_v7  ;;  %v1441_v53 = vpop.f32.mrf.mxu0  ;;  %v3192_v7 = vld [vmem:[%s3418_s28 + $0xc1] sm:$0xff] }
 0x1ae   : > { %v876_v22 = vpop.f32.mrf.mxu2 }
 0x1af   : > { %v920_v38 = vadd.f32 %v876_v22, %v627_v61 }
 0x1b0   : > { %v629_v32 = vpop.f32.mrf.mxu1  ;;  %v1159_v45 = vpop.f32.mrf.mxu3  ;;  %3302 = vmatmul.msk.f32.gmra.mxu0 %vm225_vm0, %v4765_v46 }
 0x1b1   : > { %v1203_v4 = vadd.f32 %v1159_v45, %v920_v38  ;;  %v630_v12 = vadd.f32 %v629_v32, %v4767_v58 }
 0x1b3   : > { %v4403_v29 = vadd.f32 %v1441_v53, %v1203_v4  ;;  %3087 = vmatmul.msk.f32.gmra.mxu1 %vm225_vm0, %v4762_v30  ;;  %3159 = vmatmul.msk.f32.gmra.mxu2 %vm225_vm0, %v4766_v18  ;;  %v4769_v30 = vld [vmem:[#allocation18_spill] sm:$0xff]  ;;  %v4771_v4 = vld [vmem:[#allocation24_spill] sm:$0xff] }
 0x1b4   : > { %v3193_v18 = vld [vmem:[%s3418_s28 + $0xc9] sm:$0xff] }
 0x1b5   : > { %3231 = vmatmul.msk.f32.gmra.mxu3 %vm225_vm0, %v3191_v28  ;;  %v1444_v37 = vpop.f32.mrf.mxu0 }
 0x1b6   : > { %v879_v51 = vpop.f32.mrf.mxu2 }
 0x1b7   : > { %v921_v8 = vadd.f32 %v879_v51, %v630_v12 }
 0x1b8   : > { %v632_v25 = vpop.f32.mrf.mxu1  ;;  %v1162_v0 = vpop.f32.mrf.mxu3  ;;  %3303 = vmatmul.msk.f32.gmra.mxu0 %vm225_vm0, %v4768_v21 }
 0x1b9   : > { %v1204_v31 = vadd.f32 %v1162_v0, %v921_v8  ;;  %v633_v61 = vadd.f32 %v632_v25, %v4770_v52 }
 0x1bb   : > { %v4414_v43 = vadd.f32 %v1444_v37, %v1204_v31  ;;  %3088 = vmatmul.msk.f32.gmra.mxu1 %vm225_vm0, %v4765_v46  ;;  %3160 = vmatmul.msk.f32.gmra.mxu2 %vm225_vm0, %v4769_v30  ;;  %v4772_v46 = vld [vmem:[#allocation16_spill] sm:$0xff] }
 0x1bd   : > { %3232 = vmatmul.msk.f32.gmra.mxu3 %vm225_vm0, %v3192_v7  ;;  %v1447_v53 = vpop.f32.mrf.mxu0  ;;  %v3194_v7 = vld [vmem:[%s3418_s28 + $0xd9] sm:$0xff] }
 0x1be   : > { %v882_v22 = vpop.f32.mrf.mxu2 }
 0x1bf   : > { %v922_v38 = vadd.f32 %v882_v22, %v633_v61 }
 0x1c0   : > { %v635_v32 = vpop.f32.mrf.mxu1  ;;  %v1165_v45 = vpop.f32.mrf.mxu3  ;;  %3304 = vmatmul.msk.f32.gmra.mxu0 %vm225_vm0, %v4771_v4 }
 0x1c1   : > { %v1205_v28 = vadd.f32 %v1165_v45, %v922_v38  ;;  %v636_v12 = vadd.f32 %v635_v32, %v4772_v46  ;;  %v3195_v45 = vld [vmem:[%s3418_s28 + $0xe1] sm:$0xff] }
 0x1c3   : > { %v4425_v58 = vadd.f32 %v1447_v53, %v1205_v28  ;;  %3089 = vmatmul.msk.f32.gmra.mxu1 %vm225_vm0, %v4768_v21  ;;  %3161 = vmatmul.msk.f32.gmra.mxu2 %vm225_vm0, %v3979_v35  ;;  %v4773_v35 = vld [vmem:[#allocation20_spill] sm:$0xff] }
 0x1c5   : > { %3233 = vmatmul.msk.f32.gmra.mxu3 %vm225_vm0, %v3193_v18  ;;  %v1450_v37 = vpop.f32.mrf.mxu0 }
 0x1c6   : > { %v885_v51 = vpop.f32.mrf.mxu2 }
 0x1c7   : > { %v923_v8 = vadd.f32 %v885_v51, %v636_v12 }
 0x1c8   : > { %v638_v25 = vpop.f32.mrf.mxu1  ;;  %v1168_v0 = vpop.f32.mrf.mxu3  ;;  %3305 = vmatmul.msk.f32.gmra.mxu0 %vm225_vm0, %v4018_v55 }
 0x1c9   : > { %v1206_v31 = vadd.f32 %v1168_v0, %v923_v8  ;;  %v639_v21 = vadd.f32 %v638_v25, %v4773_v35  ;;  %v3196_v25 = vld [vmem:[%s3418_s28 + $0xf1] sm:$0xff] }
 0x1cb   : > { %v4436_v30 = vadd.f32 %v1450_v37, %v1206_v31  ;;  %3090 = vmatmul.msk.f32.gmra.mxu1 %vm225_vm0, %v4771_v4  ;;  %3162 = vmatmul.msk.f32.gmra.mxu2 %vm225_vm0, %v3999_v9  ;;  %v4774_v9 = vld [vmem:[#allocation23_spill] sm:$0xff] }
 0x1cd   : > { %3234 = vmatmul.msk.f32.gmra.mxu3 %vm225_vm0, %v3194_v7  ;;  %v1453_v52 = vpop.f32.mrf.mxu0 }
 0x1ce   : > { %v888_v61 = vpop.f32.mrf.mxu2 }
 0x1cf   : > { %v924_v53 = vadd.f32 %v888_v61, %v639_v21 }
 0x1d0   : > { %v641_v22 = vpop.f32.mrf.mxu1  ;;  %v1171_v38 = vpop.f32.mrf.mxu3  ;;  %3306 = vmatmul.msk.f32.gmra.mxu0 %vm225_vm0, %v4038_v23 }
 0x1d1   : > { %v1207_v32 = vadd.f32 %v1171_v38, %v924_v53  ;;  %v642_v4 = vadd.f32 %v641_v22, %v4774_v9  ;;  %v3197_v53 = vld [vmem:[%s3418_s28 + $0xf9] sm:$0xff] }
 0x1d3   : > { %v4447_v28 = vadd.f32 %v1453_v52, %v1207_v32  ;;  %3091 = vmatmul.msk.f32.gmra.mxu1 %vm225_vm0, %v4018_v55  ;;  %3163 = vmatmul.msk.f32.gmra.mxu2 %vm225_vm0, %v4023_v16  ;;  %v4775_v16 = vld [vmem:[#allocation25_spill] sm:$0xff] }
 0x1d5   : > { %3235 = vmatmul.msk.f32.gmra.mxu3 %vm225_vm0, %v3195_v45  ;;  %v1456_v18 = vpop.f32.mrf.mxu0 }
 0x1d6   : > { %v891_v46 = vpop.f32.mrf.mxu2 }
 0x1d7   : > { %v925_v12 = vadd.f32 %v891_v46, %v642_v4  ;;  %v3198_v46 = vld [vmem:[%s3418_s28 + $0x109] sm:$0xff] }
 0x1d8   : > { %v1174_v37 = vpop.f32.mrf.mxu3  ;;  %v1645_v51 = vpop.f32.mrf.mxu1  ;;  %3307 = vmatmul.msk.f32.gmra.mxu0 %vm225_vm0, %v4055_v10 }
 0x1d9   : > { %v1208_v8 = vadd.f32 %v1174_v37, %v925_v12  ;;  %v1741_v0 = vadd.f32 %v1645_v51, %v4775_v16  ;;  %v4777_v37 = vld [vmem:[#allocation27_spill] sm:$0xff] }
 0x1db   : > { %v4458_v55 = vadd.f32 %v1456_v18, %v1208_v8  ;;  %3092 = vmatmul.msk.f32.gmra.mxu1 %vm225_vm0, %v4038_v23  ;;  %3164 = vmatmul.msk.f32.gmra.mxu2 %vm225_vm0, %v4043_v2  ;;  %v4776_v23 = vld [vmem:[#allocation26_spill] sm:$0xff] }
 0x1dd   : > { %3236 = vmatmul.msk.f32.gmra.mxu3 %vm225_vm0, %v3196_v25  ;;  %v2492_v31 = vpop.f32.mrf.mxu0 }
 0x1de   : > { %v1928_v7 = vpop.f32.mrf.mxu2 }
 0x1df   : > { %v2024_v35 = vadd.f32 %v1928_v7, %v1741_v0 }
 0x1e0   : > { %v1648_v21 = vpop.f32.mrf.mxu1  ;;  %v2210_v52 = vpop.f32.mrf.mxu3  ;;  %3308 = vmatmul.msk.f32.gmra.mxu0 %vm225_vm0, %v4072_v20 }
 0x1e1   : > { %v2306_v61 = vadd.f32 %v2210_v52, %v2024_v35  ;;  %v1742_v2 = vadd.f32 %v1648_v21, %v4776_v23  ;;  %v3199_v21 = vld [vmem:[%s3418_s28 + $0x111] sm:$0xff] }
 0x1e2   : > { %v4778_v52 = vld [vmem:[#allocation28_spill] sm:$0xff] }
 0x1e3   : > { %v2588_v22 = vadd.f32 %v2492_v31, %v2306_v61  ;;  %3093 = vmatmul.msk.f32.gmra.mxu1 %vm225_vm0, %v4055_v10  ;;  %3165 = vmatmul.msk.f32.gmra.mxu2 %vm225_vm0, %v4060_v62 }
 0x1e5   : > { %v2620_v38 = vmax.f32 %v2588_v22, 0.0  ;;  %3237 = vmatmul.msk.f32.gmra.mxu3 %vm225_vm0, %v3197_v53  ;;  %v2495_v32 = vpop.f32.mrf.mxu0 }
 0x1e6   : > { %v1931_v45 = vpop.f32.mrf.mxu2 }
 0x1e7   : > { %v2652_v9 = vmin.f32 %v2620_v38, 6.0  ;;  %v2025_v10 = vadd.f32 %v1931_v45, %v1742_v2 }
 0x1e8   : > { %v1651_v4 = vpop.f32.mrf.mxu1  ;;  %v2213_v18 = vpop.f32.mrf.mxu3  ;;  %3309 = vmatmul.msk.f32.gmra.mxu0 %vm225_vm0, %v4098_v47 }
 0x1e9   : > { %2685 = vst.msk [vmem:[%s4479_s11] sm:$0xff] %vm2684_vm1, %v2652_v9  ;;  %v2307_v62 = vadd.f32 %v2213_v18, %v2025_v10  ;;  %v1743_v51 = vadd.f32 %v1651_v4, %v4777_v37  ;;  %v3200_v9 = vld [vmem:[%s3418_s28 + $0x121] sm:$0xff]  ;;  %v4779_v10 = vld [vmem:[#allocation29_spill] sm:$0xff] }
 0x1eb   : > { %v2589_v12 = vadd.f32 %v2495_v32, %v2307_v62  ;;  %3094 = vmatmul.msk.f32.gmra.mxu1 %vm225_vm0, %v4072_v20  ;;  %3166 = vmatmul.msk.f32.gmra.mxu2 %vm225_vm0, %v4077_v39 }
 0x1ed   : > { %v2621_v8 = vmax.f32 %v2589_v12, 0.0  ;;  %3238 = vmatmul.msk.f32.gmra.mxu3 %vm225_vm0, %v3198_v46  ;;  %v2498_v25 = vpop.f32.mrf.mxu0 }
 0x1ee   : > { %v1934_v16 = vpop.f32.mrf.mxu2 }
 0x1ef   : > { %v2653_v0 = vmin.f32 %v2621_v8, 6.0  ;;  %v2026_v31 = vadd.f32 %v1934_v16, %v1743_v51  ;;  %v4780_v16 = vld [vmem:[#allocation31_spill] sm:$0xff] }
 0x1f0   : > { %v1654_v7 = vpop.f32.mrf.mxu1  ;;  %v2216_v35 = vpop.f32.mrf.mxu3  ;;  %3310 = vmatmul.msk.f32.gmra.mxu0 %vm225_vm0, %v4118_v60 }
 0x1f1   : > { %2686 = vst.msk [vmem:[%s4479_s11 + $0x8] sm:$0xff] %vm2684_vm1, %v2653_v0  ;;  %v2308_v20 = vadd.f32 %v2216_v35, %v2026_v31  ;;  %v1744_v61 = vadd.f32 %v1654_v7, %v4778_v52  ;;  %v4781_v0 = vld [vmem:[#allocation30_spill] sm:$0xff] }
 0x1f3   : > { %v2590_v39 = vadd.f32 %v2498_v25, %v2308_v20  ;;  %3095 = vmatmul.msk.f32.gmra.mxu1 %vm225_vm0, %v4098_v47  ;;  %3167 = vmatmul.msk.f32.gmra.mxu2 %vm225_vm0, %v4103_v15 }
 0x1f5   : > { %v2622_v53 = vmax.f32 %v2590_v39, 0.0  ;;  %3239 = vmatmul.msk.f32.gmra.mxu3 %vm225_vm0, %v3199_v21  ;;  %v2501_v22 = vpop.f32.mrf.mxu0 }
 0x1f6   : > { %v1937_v23 = vpop.f32.mrf.mxu2 }
 0x1f7   : > { %v2654_v2 = vmin.f32 %v2622_v53, 6.0  ;;  %v2027_v38 = vadd.f32 %v1937_v23, %v1744_v61  ;;  %v3058_v61 = vld [vmem:[%s3418_s28 + $0x122] sm:$0xff]  ;;  %v3130_v53 = vld [vmem:[%s3418_s28 + $0x138] sm:$0xff] }
 0x1f8   : > { %v1657_v32 = vpop.f32.mrf.mxu1  ;;  %v2219_v45 = vpop.f32.mrf.mxu3  ;;  %3311 = vmatmul.msk.f32.gmra.mxu0 %vm225_vm0, %v4135_v56  ;;  %v3202_v23 = vld [vmem:[%s3418_s28 + $0x139] sm:$0xff] }
 0x1f9   : > { %2687 = vst.msk [vmem:[%s4479_s11 + $0x10] sm:$0xff] %vm2684_vm1, %v2654_v2  ;;  %v2309_v47 = vadd.f32 %v2219_v45, %v2027_v38  ;;  %v1745_v4 = vadd.f32 %v1657_v32, %v4779_v10  ;;  %v4783_v38 = vld [vmem:[#allocation32_spill] sm:$0xff] }
 0x1fb   : > { %v2591_v15 = vadd.f32 %v2501_v22, %v2309_v47  ;;  %3096 = vmatmul.msk.f32.gmra.mxu1 %vm225_vm0, %v4118_v60  ;;  %3168 = vmatmul.msk.f32.gmra.mxu2 %vm225_vm0, %v4123_v48  ;;  %v3201_v48 = vld [vmem:[%s3418_s28 + $0x129] sm:$0xff]  ;;  %v4782_v22 = vld [vmem:[#allocation34_spill] sm:$0xff] }
 0x1fd   : > { %v2623_v18 = vmax.f32 %v2591_v15, 0.0  ;;  %3240 = vmatmul.msk.f32.gmra.mxu3 %vm225_vm0, %v3200_v9  ;;  %v2504_v62 = vpop.f32.mrf.mxu0 }
 0x1fe   : > { %v1940_v46 = vpop.f32.mrf.mxu2 }
 0x1ff   : > { %v2655_v12 = vmin.f32 %v2623_v18, 6.0  ;;  %v2028_v37 = vadd.f32 %v1940_v46, %v1745_v4  ;;  %v3203_v46 = vld [vmem:[%s3418_s28 + $0x141] sm:$0xff] }
 0x200   : > { %v1660_v51 = vpop.f32.mrf.mxu1  ;;  %v2222_v8 = vpop.f32.mrf.mxu3  ;;  %3312 = vmatmul.msk.f32.gmra.mxu0 %vm225_vm0, %v4152_v24 }
 0x201   : > { %2688 = vst.msk [vmem:[%s4479_s11 + $0x18] sm:$0xff] %vm2684_vm1, %v2655_v12  ;;  %v2310_v60 = vadd.f32 %v2222_v8, %v2028_v37  ;;  %v1746_v31 = vadd.f32 %v1660_v51, %v4781_v0  ;;  %v4784_v37 = vld [vmem:[#allocation33_spill] sm:$0xff] }
 0x203   : > { %v2592_v25 = vadd.f32 %v2504_v62, %v2310_v60  ;;  %3097 = vmatmul.msk.f32.gmra.mxu1 %vm225_vm0, %v4135_v56  ;;  %3169 = vmatmul.msk.f32.gmra.mxu2 %vm225_vm0, %v4780_v16 }
 0x205   : > { %v2624_v7 = vmax.f32 %v2592_v25, 0.0  ;;  %3241 = vmatmul.msk.f32.gmra.mxu3 %vm225_vm0, %v3201_v48  ;;  %v2507_v24 = vpop.f32.mrf.mxu0 }
 0x206   : > { %v1943_v35 = vpop.f32.mrf.mxu2 }
 0x207   : > { %v2656_v20 = vmin.f32 %v2624_v7, 6.0  ;;  %v2029_v21 = vadd.f32 %v1943_v35, %v1746_v31  ;;  %v3060_v31 = vld [vmem:[%s3418_s28 + $0x13a] sm:$0xff]  ;;  %v3132_v7 = vld [vmem:[%s3418_s28 + $0x150] sm:$0xff] }
 0x208   : > { %v1663_v39 = vpop.f32.mrf.mxu1  ;;  %v2225_v52 = vpop.f32.mrf.mxu3  ;;  %3313 = vmatmul.msk.f32.gmra.mxu0 %vm225_vm0, %v4782_v22 }
 0x209   : > { %2689 = vst.msk [vmem:[%s4479_s11 + $0x20] sm:$0xff] %vm2684_vm1, %v2656_v20  ;;  %v2311_v56 = vadd.f32 %v2225_v52, %v2029_v21  ;;  %v1747_v32 = vadd.f32 %v1663_v39, %v4783_v38  ;;  %v4785_v20 = vld [vmem:[#allocation35_spill] sm:$0xff] }
 0x20b   : > { %v2593_v2 = vadd.f32 %v2507_v24, %v2311_v56  ;;  %3098 = vmatmul.msk.f32.gmra.mxu1 %vm225_vm0, %v3058_v61  ;;  %3170 = vmatmul.msk.f32.gmra.mxu2 %vm225_vm0, %v3130_v53  ;;  %v3204_v24 = vld [vmem:[%s3418_s28 + $0x151] sm:$0xff] }
 0x20d   : > { %v2625_v45 = vmax.f32 %v2593_v2, 0.0  ;;  %3242 = vmatmul.msk.f32.gmra.mxu3 %vm225_vm0, %v3202_v23  ;;  %v2510_v47 = vpop.f32.mrf.mxu0  ;;  %v3061_v23 = vld [vmem:[%s3418_s28 + $0x142] sm:$0xff]  ;;  %v3133_v2 = vld [vmem:[%s3418_s28 + $0x158] sm:$0xff] }
 0x20e   : > { %v1946_v9 = vpop.f32.mrf.mxu2 }
 0x20f   : > { %v2657_v15 = vmin.f32 %v2625_v45, 6.0  ;;  %v2030_v10 = vadd.f32 %v1946_v9, %v1747_v32  ;;  %v3205_v32 = vld [vmem:[%s3418_s28 + $0x159] sm:$0xff] }
 0x210   : > { %v1666_v4 = vpop.f32.mrf.mxu1  ;;  %v2228_v18 = vpop.f32.mrf.mxu3  ;;  %3314 = vmatmul.msk.f32.gmra.mxu0 %vm225_vm0, %v4195_v17 }
 0x211   : > { %2690 = vst.msk [vmem:[%s4479_s11 + $0x28] sm:$0xff] %vm2684_vm1, %v2657_v15  ;;  %v2312_v62 = vadd.f32 %v2228_v18, %v2030_v10  ;;  %v1748_v51 = vadd.f32 %v1666_v4, %v4784_v37 }
 0x213   : > { %v2594_v12 = vadd.f32 %v2510_v47, %v2312_v62  ;;  %3099 = vmatmul.msk.f32.gmra.mxu1 %vm225_vm0, %v4782_v22  ;;  %3171 = vmatmul.msk.f32.gmra.mxu2 %vm225_vm0, %v4180_v36 }
 0x215   : > { %v2626_v8 = vmax.f32 %v2594_v12, 0.0  ;;  %3243 = vmatmul.msk.f32.gmra.mxu3 %vm225_vm0, %v3203_v46  ;;  %v2513_v17 = vpop.f32.mrf.mxu0  ;;  %v3062_v46 = vld [vmem:[%s3418_s28 + $0x152] sm:$0xff]  ;;  %v3134_v12 = vld [vmem:[%s3418_s28 + $0x168] sm:$0xff] }
 0x216   : > { %v1949_v60 = vpop.f32.mrf.mxu2 }
 0x217   : > { %v2658_v48 = vmin.f32 %v2626_v8, 6.0  ;;  %v2031_v25 = vadd.f32 %v1949_v60, %v1748_v51  ;;  %v4786_v8 = vld [vmem:[#allocation36_spill] sm:$0xff] }
 0x218   : > { %v1669_v16 = vpop.f32.mrf.mxu1  ;;  %v2231_v0 = vpop.f32.mrf.mxu3  ;;  %3315 = vmatmul.msk.f32.gmra.mxu0 %vm225_vm0, %v4208_v63 }
 0x219   : > { %2691 = vst.msk [vmem:[%s4479_s11 + $0x30] sm:$0xff] %vm2684_vm1, %v2658_v48  ;;  %v2313_v36 = vadd.f32 %v2231_v0, %v2031_v25  ;;  %v1749_v21 = vadd.f32 %v1669_v16, %v4785_v20 }
 0x21b   : > { %v2595_v35 = vadd.f32 %v2513_v17, %v2313_v36  ;;  %3100 = vmatmul.msk.f32.gmra.mxu1 %vm225_vm0, %v3060_v31  ;;  %3172 = vmatmul.msk.f32.gmra.mxu2 %vm225_vm0, %v3132_v7  ;;  %v3063_v7 = vld [vmem:[%s3418_s28 + $0x15a] sm:$0xff]  ;;  %v3135_v36 = vld [vmem:[%s3418_s28 + $0x170] sm:$0xff] }
 0x21d   : > { %v2627_v39 = vmax.f32 %v2595_v35, 0.0  ;;  %3244 = vmatmul.msk.f32.gmra.mxu3 %vm225_vm0, %v3204_v24  ;;  %v2516_v52 = vpop.f32.mrf.mxu0  ;;  %v3207_v35 = vld [vmem:[%s3418_s28 + $0x171] sm:$0xff] }
 0x21e   : > { %v1952_v63 = vpop.f32.mrf.mxu2 }
 0x21f   : > { %v2659_v61 = vmin.f32 %v2627_v39, 6.0  ;;  %v2032_v53 = vadd.f32 %v1952_v63, %v1749_v21 }
 0x220   : > { %v1672_v22 = vpop.f32.mrf.mxu1  ;;  %v2234_v56 = vpop.f32.mrf.mxu3  ;;  %3316 = vmatmul.msk.f32.gmra.mxu0 %vm225_vm0, %v4222_v14 }
 0x221   : > { %2692 = vst.msk [vmem:[%s4479_s11 + $0x38] sm:$0xff] %vm2684_vm1, %v2659_v61  ;;  %v2314_v38 = vadd.f32 %v2234_v56, %v2032_v53  ;;  %v1750_v47 = vadd.f32 %v1672_v22, %v4200_v50  ;;  %v3206_v50 = vld [vmem:[%s3418_s28 + $0x169] sm:$0xff] }
 0x222   : > { %v3064_v56 = vld [vmem:[%s3418_s28 + $0x16a] sm:$0xff] }
 0x223   : > { %v2596_v45 = vadd.f32 %v2516_v52, %v2314_v38  ;;  %3101 = vmatmul.msk.f32.gmra.mxu1 %vm225_vm0, %v3061_v23  ;;  %3173 = vmatmul.msk.f32.gmra.mxu2 %vm225_vm0, %v3133_v2  ;;  %v3136_v23 = vld [vmem:[%s3418_s28 + $0x180] sm:$0xff] }
 0x225   : > { %v2628_v9 = vmax.f32 %v2596_v45, 0.0  ;;  %3245 = vmatmul.msk.f32.gmra.mxu3 %vm225_vm0, %v3205_v32  ;;  %v2519_v15 = vpop.f32.mrf.mxu0 }
 0x226   : > { %v1955_v14 = vpop.f32.mrf.mxu2 }
 0x227   : > { %v2660_v10 = vmin.f32 %v2628_v9, 6.0  ;;  %v2033_v4 = vadd.f32 %v1955_v14, %v1750_v47  ;;  %v3280_v47 = vld [vmem:[%s3418_s28 + $0x182] sm:$0xff] }
 0x228   : > { %v1675_v18 = vpop.f32.mrf.mxu1  ;;  %v2237_v62 = vpop.f32.mrf.mxu3  ;;  %3317 = vmatmul.msk.f32.gmra.mxu0 %vm225_vm0, %v4235_v26 }
 0x229   : > { %2693 = vst.msk [vmem:[%s4479_s11 + $0x40] sm:$0xff] %vm2684_vm1, %v2660_v10  ;;  %v2315_v37 = vadd.f32 %v2237_v62, %v2033_v4  ;;  %v1751_v17 = vadd.f32 %v1675_v18, %v4786_v8  ;;  %v3065_v4 = vld [vmem:[%s3418_s28 + $0x172] sm:$0xff]  ;;  %v3137_v18 = vld [vmem:[%s3418_s28 + $0x188] sm:$0xff] }
 0x22b   : > { %v2597_v51 = vadd.f32 %v2519_v15, %v2315_v37  ;;  %3102 = vmatmul.msk.f32.gmra.mxu1 %vm225_vm0, %v3062_v46  ;;  %3174 = vmatmul.msk.f32.gmra.mxu2 %vm225_vm0, %v3134_v12 }
 0x22d   : > { %v2629_v60 = vmax.f32 %v2597_v51, 0.0  ;;  %3246 = vmatmul.msk.f32.gmra.mxu3 %vm225_vm0, %v3206_v50  ;;  %v2522_v48 = vpop.f32.mrf.mxu0  ;;  %v3281_v50 = vld [vmem:[%s3418_s28 + $0x18a] sm:$0xff] }
 0x22e   : > { %v1958_v26 = vpop.f32.mrf.mxu2 }
 0x22f   : > { %v2661_v25 = vmin.f32 %v2629_v60, 6.0  ;;  %v2034_v16 = vadd.f32 %v1958_v26, %v1751_v17  ;;  %v3138_v26 = vld [vmem:[%s3418_s28 + $0x198] sm:$0xff] }
 0x230   : > { %v1678_v0 = vpop.f32.mrf.mxu1  ;;  %v2240_v31 = vpop.f32.mrf.mxu3  ;;  %3318 = vmatmul.msk.f32.gmra.mxu0 %vm225_vm0, %v4248_v5 }
 0x231   : > { %2694 = vst.msk [vmem:[%s4479_s11 + $0x48] sm:$0xff] %vm2684_vm1, %v2661_v25  ;;  %v2316_v24 = vadd.f32 %v2240_v31, %v2034_v16  ;;  %v1752_v21 = vadd.f32 %v1678_v0, %v4227_v49  ;;  %v3210_v16 = vld [vmem:[%s3418_s28 + $0x199] sm:$0xff] }
 0x233   : > { %v2598_v20 = vadd.f32 %v2522_v48, %v2316_v24  ;;  %3103 = vmatmul.msk.f32.gmra.mxu1 %vm225_vm0, %v3063_v7  ;;  %3175 = vmatmul.msk.f32.gmra.mxu2 %vm225_vm0, %v3135_v36  ;;  %v3282_v36 = vld [vmem:[%s3418_s28 + $0x19a] sm:$0xff] }
 0x235   : > { %v2630_v39 = vmax.f32 %v2598_v20, 0.0  ;;  %3247 = vmatmul.msk.f32.gmra.mxu3 %vm225_vm0, %v3207_v35  ;;  %v2525_v52 = vpop.f32.mrf.mxu0 }
 0x236   : > { %v1961_v63 = vpop.f32.mrf.mxu2 }
 0x237   : > { %v2662_v5 = vmin.f32 %v2630_v39, 6.0  ;;  %v2035_v61 = vadd.f32 %v1961_v63, %v1752_v21 }
 0x238   : > { %v1681_v53 = vpop.f32.mrf.mxu1  ;;  %v2243_v22 = vpop.f32.mrf.mxu3  ;;  %3319 = vmatmul.msk.f32.gmra.mxu0 %vm225_vm0, %v4264_v3 }
 0x239   : > { %2695 = vst.msk [vmem:[%s4479_s11 + $0x50] sm:$0xff] %vm2684_vm1, %v2662_v5  ;;  %v2317_v49 = vadd.f32 %v2243_v22, %v2035_v61  ;;  %v1753_v38 = vadd.f32 %v1681_v53, %v4240_v59  ;;  %v3211_v5 = vld [vmem:[%s3418_s28 + $0x1a1] sm:$0xff] }
 0x23b   : > { %v2599_v2 = vadd.f32 %v2525_v52, %v2317_v49  ;;  %3104 = vmatmul.msk.f32.gmra.mxu1 %vm225_vm0, %v3064_v56  ;;  %3176 = vmatmul.msk.f32.gmra.mxu2 %vm225_vm0, %v3136_v23  ;;  %v3139_v52 = vld [vmem:[%s3418_s28 + $0x1a0] sm:$0xff] }
 0x23c   : > { %v3283_v56 = vld [vmem:[%s3418_s28 + $0x1a2] sm:$0xff] }
 0x23d   : > { %v2631_v32 = vmax.f32 %v2599_v2, 0.0  ;;  %3248 = vmatmul.msk.f32.gmra.mxu3 %vm225_vm0, %v4261_v1  ;;  %v2528_v45 = vpop.f32.mrf.mxu0  ;;  %v4787_v1 = vld [vmem:[#allocation37_spill] sm:$0xff] }
 0x23e   : > { %v1964_v3 = vpop.f32.mrf.mxu2 }
 0x23f   : > { %v2663_v9 = vmin.f32 %v2631_v32, 6.0  ;;  %v2036_v15 = vadd.f32 %v1964_v3, %v1753_v38 }
 0x240   : > { %v1684_v14 = vpop.f32.mrf.mxu1  ;;  %v2246_v10 = vpop.f32.mrf.mxu3  ;;  %3320 = vmatmul.msk.f32.gmra.mxu0 %vm225_vm0, %v3280_v47 }
 0x241   : > { %2696 = vst.msk [vmem:[%s4479_s11 + $0x58] sm:$0xff] %vm2684_vm1, %v2663_v9  ;;  %v2318_v59 = vadd.f32 %v2246_v10, %v2036_v15  ;;  %v1754_v46 = vadd.f32 %v1684_v14, %v4787_v1 }
 0x243   : > { %v2600_v62 = vadd.f32 %v2528_v45, %v2318_v59  ;;  %3105 = vmatmul.msk.f32.gmra.mxu1 %vm225_vm0, %v3065_v4  ;;  %3177 = vmatmul.msk.f32.gmra.mxu2 %vm225_vm0, %v3137_v18 }
 0x245   : > { %v2632_v12 = vmax.f32 %v2600_v62, 0.0  ;;  %3249 = vmatmul.msk.f32.gmra.mxu3 %vm225_vm0, %v4277_v41  ;;  %v2531_v37 = vpop.f32.mrf.mxu0 }
 0x246   : > { %v1967_v51 = vpop.f32.mrf.mxu2 }
 0x247   : > { %v2664_v8 = vmin.f32 %v2632_v12, 6.0  ;;  %v2037_v17 = vadd.f32 %v1967_v51, %v1754_v46 }
 0x248   : > { %v1687_v60 = vpop.f32.mrf.mxu1  ;;  %v2249_v48 = vpop.f32.mrf.mxu3  ;;  %3321 = vmatmul.msk.f32.gmra.mxu0 %vm225_vm0, %v3281_v50 }
 0x249   : > { %2697 = vst.msk [vmem:[%s4479_s11 + $0x60] sm:$0xff] %vm2684_vm1, %v2664_v8  ;;  %v2319_v25 = vadd.f32 %v2249_v48, %v2037_v17  ;;  %v1755_v41 = vadd.f32 %v1687_v60, %v4269_v6 }
 0x24b   : > { %v2601_v0 = vadd.f32 %v2531_v37, %v2319_v25  ;;  %3106 = vmatmul.msk.f32.gmra.mxu1 %vm225_vm0, %v3280_v47  ;;  %3178 = vmatmul.msk.f32.gmra.mxu2 %vm225_vm0, %v3138_v26 }
 0x24d   : > { %v2633_v31 = vmax.f32 %v2601_v0, 0.0  ;;  %3250 = vmatmul.msk.f32.gmra.mxu3 %vm225_vm0, %v3210_v16  ;;  %v2534_v7 = vpop.f32.mrf.mxu0 }
 0x24e   : > { %v1970_v24 = vpop.f32.mrf.mxu2 }
 0x24f   : > { %v2665_v35 = vmin.f32 %v2633_v31, 6.0  ;;  %v2038_v20 = vadd.f32 %v1970_v24, %v1755_v41 }
 0x250   : > { %v1690_v21 = vpop.f32.mrf.mxu1  ;;  %v2252_v39 = vpop.f32.mrf.mxu3  ;;  %3322 = vmatmul.msk.f32.gmra.mxu0 %vm225_vm0, %v3282_v36 }
 0x251   : > { %2698 = vst.msk [vmem:[%s4479_s11 + $0x68] sm:$0xff] %vm2684_vm1, %v2665_v35  ;;  %v2320_v63 = vadd.f32 %v2252_v39, %v2038_v20  ;;  %v1756_v61 = vadd.f32 %v1690_v21, %v4282_v13 }
 0x253   : > { %v2602_v6 = vadd.f32 %v2534_v7, %v2320_v63  ;;  %3107 = vmatmul.msk.f32.gmra.mxu1 %vm225_vm0, %v3281_v50  ;;  %3179 = vmatmul.msk.f32.gmra.mxu2 %vm225_vm0, %v3139_v52 }
 0x255   : > { %v2634_v53 = vmax.f32 %v2602_v6, 0.0  ;;  %3251 = vmatmul.msk.f32.gmra.mxu3 %vm225_vm0, %v3211_v5  ;;  %v2537_v22 = vpop.f32.mrf.mxu0 }
 0x256   : > { %v1973_v23 = vpop.f32.mrf.mxu2 }
 0x257   : > { %v2666_v49 = vmin.f32 %v2634_v53, 6.0  ;;  %v2039_v2 = vadd.f32 %v1973_v23, %v1756_v61 }
 0x258   : > { %v1693_v38 = vpop.f32.mrf.mxu1  ;;  %v2255_v32 = vpop.f32.mrf.mxu3  ;;  %3323 = vmatmul.msk.f32.gmra.mxu0 %vm225_vm0, %v3283_v56 }
 0x259   : > { %2699 = vst.msk [vmem:[%s4479_s11 + $0x70] sm:$0xff] %vm2684_vm1, %v2666_v49  ;;  %v2321_v45 = vadd.f32 %v2255_v32, %v2039_v2  ;;  %v1757_v3 = vadd.f32 %v1693_v38, %v4293_v42 }
 0x25b   : > { %v2603_v47 = vadd.f32 %v2537_v22, %v2321_v45 }
 0x25d   : > { %v2635_v13 = vmax.f32 %v2603_v47, 0.0  ;;  %v2540_v9 = vpop.f32.mrf.mxu0 }
 0x25e   : > { %v1976_v15 = vpop.f32.mrf.mxu2 }
 0x25f   : > { %v2667_v14 = vmin.f32 %v2635_v13, 6.0  ;;  %v2040_v10 = vadd.f32 %v1976_v15, %v1757_v3 }
 0x260   : > { %v1696_v4 = vpop.f32.mrf.mxu1  ;;  %v2258_v18 = vpop.f32.mrf.mxu3 }
 0x261   : > { %2700 = vst.msk [vmem:[%s4479_s11 + $0x78] sm:$0xff] %vm2684_vm1, %v2667_v14  ;;  %v2322_v59 = vadd.f32 %v2258_v18, %v2040_v10  ;;  %v1758_v1 = vadd.f32 %v1696_v4, %v4304_v27 }
 0x263   : > { %v2604_v62 = vadd.f32 %v2540_v9, %v2322_v59 }
 0x265   : > { %v2636_v46 = vmax.f32 %v2604_v62, 0.0  ;;  %v2543_v12 = vpop.f32.mrf.mxu0 }
 0x266   : > { %v1979_v37 = vpop.f32.mrf.mxu2 }
 0x267   : > { %v2668_v50 = vmin.f32 %v2636_v46, 6.0  ;;  %v2041_v42 = vadd.f32 %v1979_v37, %v1758_v1 }
 0x268   : > { %v1699_v51 = vpop.f32.mrf.mxu1  ;;  %v2261_v8 = vpop.f32.mrf.mxu3 }
 0x269   : > { %2701 = vst.msk [vmem:[%s4479_s11 + $0x80] sm:$0xff] %vm2684_vm1, %v2668_v50  ;;  %v2323_v17 = vadd.f32 %v2261_v8, %v2041_v42  ;;  %v1759_v48 = vadd.f32 %v1699_v51, %v4315_v19 }
 0x26b   : > { %v2605_v60 = vadd.f32 %v2543_v12, %v2323_v17 }
 0x26d   : > { %v2637_v26 = vmax.f32 %v2605_v60, 0.0  ;;  %v2546_v25 = vpop.f32.mrf.mxu0 }
 0x26e   : > { %v1982_v16 = vpop.f32.mrf.mxu2 }
 0x26f   : > { %v2669_v0 = vmin.f32 %v2637_v26, 6.0  ;;  %v2042_v27 = vadd.f32 %v1982_v16, %v1759_v48 }
 0x270   : > { %v1702_v41 = vpop.f32.mrf.mxu1  ;;  %v2264_v31 = vpop.f32.mrf.mxu3 }
 0x271   : > { %2702 = vst.msk [vmem:[%s4479_s11 + $0x88] sm:$0xff] %vm2684_vm1, %v2669_v0  ;;  %v2324_v7 = vadd.f32 %v2264_v31, %v2042_v27  ;;  %v1760_v24 = vadd.f32 %v1702_v41, %v4326_v11 }
 0x273   : > { %v2606_v36 = vadd.f32 %v2546_v25, %v2324_v7 }
 0x275   : > { %v2638_v35 = vmax.f32 %v2606_v36, 0.0  ;;  %v2549_v20 = vpop.f32.mrf.mxu0 }
 0x276   : > { %v1985_v21 = vpop.f32.mrf.mxu2 }
 0x277   : > { %v2670_v39 = vmin.f32 %v2638_v35, 6.0  ;;  %v2043_v19 = vadd.f32 %v1985_v21, %v1760_v24 }
 0x278   : > { %v1705_v52 = vpop.f32.mrf.mxu1  ;;  %v2267_v63 = vpop.f32.mrf.mxu3 }
 0x279   : > { %2703 = vst.msk [vmem:[%s4479_s11 + $0x90] sm:$0xff] %vm2684_vm1, %v2670_v39  ;;  %v2325_v5 = vadd.f32 %v2267_v63, %v2043_v19  ;;  %v1761_v61 = vadd.f32 %v1705_v52, %v4337_v57 }
 0x27b   : > { %v2607_v6 = vadd.f32 %v2549_v20, %v2325_v5 }
 0x27d   : > { %v2639_v53 = vmax.f32 %v2607_v6, 0.0  ;;  %v2552_v22 = vpop.f32.mrf.mxu0 }
 0x27e   : > { %v1988_v56 = vpop.f32.mrf.mxu2 }
 0x27f   : > { %v2671_v23 = vmin.f32 %v2639_v53, 6.0  ;;  %v2044_v11 = vadd.f32 %v1988_v56, %v1761_v61 }
 0x280   : > { %v1708_v49 = vpop.f32.mrf.mxu1  ;;  %v2270_v2 = vpop.f32.mrf.mxu3 }
 0x281   : > { %2704 = vst.msk [vmem:[%s4479_s11 + $0x98] sm:$0xff] %vm2684_vm1, %v2671_v23  ;;  %v2326_v38 = vadd.f32 %v2270_v2, %v2044_v11  ;;  %v1762_v45 = vadd.f32 %v1708_v49, %v4348_v33 }
 0x283   : > { %v2608_v32 = vadd.f32 %v2552_v22, %v2326_v38 }
 0x285   : > { %v2640_v47 = vmax.f32 %v2608_v32, 0.0  ;;  %v2555_v3 = vpop.f32.mrf.mxu0 }
 0x286   : > { %v1991_v13 = vpop.f32.mrf.mxu2 }
 0x287   : > { %v2672_v9 = vmin.f32 %v2640_v47, 6.0  ;;  %v2045_v57 = vadd.f32 %v1991_v13, %v1762_v45 }
 0x288   : > { %v1711_v15 = vpop.f32.mrf.mxu1  ;;  %v2273_v14 = vpop.f32.mrf.mxu3 }
 0x289   : > { %2705 = vst.msk [vmem:[%s4479_s11 + $0xa0] sm:$0xff] %vm2684_vm1, %v2672_v9  ;;  %v2327_v10 = vadd.f32 %v2273_v14, %v2045_v57  ;;  %v1763_v18 = vadd.f32 %v1711_v15, %v4359_v40 }
 0x28b   : > { %v2609_v4 = vadd.f32 %v2555_v3, %v2327_v10 }
 0x28d   : > { %v2641_v59 = vmax.f32 %v2609_v4, 0.0  ;;  %v2558_v62 = vpop.f32.mrf.mxu0 }
 0x28e   : > { %v1994_v1 = vpop.f32.mrf.mxu2 }
 0x28f   : > { %v2673_v46 = vmin.f32 %v2641_v59, 6.0  ;;  %v2046_v33 = vadd.f32 %v1994_v1, %v1763_v18 }
 0x290   : > { %v1714_v12 = vpop.f32.mrf.mxu1  ;;  %v2276_v37 = vpop.f32.mrf.mxu3 }
 0x291   : > { %2706 = vst.msk [vmem:[%s4479_s11 + $0xa8] sm:$0xff] %vm2684_vm1, %v2673_v46  ;;  %v2328_v50 = vadd.f32 %v2276_v37, %v2046_v33  ;;  %v1764_v51 = vadd.f32 %v1714_v12, %v4370_v34 }
 0x293   : > { %v2610_v42 = vadd.f32 %v2558_v62, %v2328_v50 }
 0x295   : > { %v2642_v8 = vmax.f32 %v2610_v42, 0.0  ;;  %v2561_v17 = vpop.f32.mrf.mxu0 }
 0x296   : > { %v1997_v60 = vpop.f32.mrf.mxu2 }
 0x297   : > { %v2674_v48 = vmin.f32 %v2642_v8, 6.0  ;;  %v2047_v40 = vadd.f32 %v1997_v60, %v1764_v51 }
 0x298   : > { %v1717_v26 = vpop.f32.mrf.mxu1  ;;  %v2279_v25 = vpop.f32.mrf.mxu3 }
 0x299   : > { %2707 = vst.msk [vmem:[%s4479_s11 + $0xb0] sm:$0xff] %vm2684_vm1, %v2674_v48  ;;  %v2329_v16 = vadd.f32 %v2279_v25, %v2047_v40  ;;  %v1765_v27 = vadd.f32 %v1717_v26, %v4381_v54 }
 0x29b   : > { %v2611_v0 = vadd.f32 %v2561_v17, %v2329_v16 }
 0x29d   : > { %v2643_v41 = vmax.f32 %v2611_v0, 0.0  ;;  %v2564_v31 = vpop.f32.mrf.mxu0 }
 0x29e   : > { %v2000_v7 = vpop.f32.mrf.mxu2 }
 0x29f   : > { %v2675_v36 = vmin.f32 %v2643_v41, 6.0  ;;  %v2048_v34 = vadd.f32 %v2000_v7, %v1765_v27 }
 0x2a0   : > { %v1720_v24 = vpop.f32.mrf.mxu1  ;;  %v2282_v35 = vpop.f32.mrf.mxu3 }
 0x2a1   : > { %2708 = vst.msk [vmem:[%s4479_s11 + $0xb8] sm:$0xff] %vm2684_vm1, %v2675_v36  ;;  %v2330_v20 = vadd.f32 %v2282_v35, %v2048_v34  ;;  %v1766_v39 = vadd.f32 %v1720_v24, %v4392_v44 }
 0x2a3   : > { %v2612_v21 = vadd.f32 %v2564_v31, %v2330_v20 }
 0x2a5   : > { %v2644_v19 = vmax.f32 %v2612_v21, 0.0  ;;  %v2567_v52 = vpop.f32.mrf.mxu0 }
 0x2a6   : > { %v2003_v63 = vpop.f32.mrf.mxu2 }
 0x2a7   : > { %v2676_v5 = vmin.f32 %v2644_v19, 6.0  ;;  %v2049_v54 = vadd.f32 %v2003_v63, %v1766_v39 }
 0x2a8   : > { %v1723_v6 = vpop.f32.mrf.mxu1  ;;  %v2285_v61 = vpop.f32.mrf.mxu3 }
 0x2a9   : > { %2709 = vst.msk [vmem:[%s4479_s11 + $0xc0] sm:$0xff] %vm2684_vm1, %v2676_v5  ;;  %v2331_v53 = vadd.f32 %v2285_v61, %v2049_v54  ;;  %v1767_v56 = vadd.f32 %v1723_v6, %v4403_v29 }
 0x2ab   : > { %v2613_v22 = vadd.f32 %v2567_v52, %v2331_v53 }
 0x2ad   : > { %v2645_v23 = vmax.f32 %v2613_v22, 0.0  ;;  %v2570_v11 = vpop.f32.mrf.mxu0 }
 0x2ae   : > { %v2006_v49 = vpop.f32.mrf.mxu2 }
 0x2af   : > { %v2677_v2 = vmin.f32 %v2645_v23, 6.0  ;;  %v2050_v44 = vadd.f32 %v2006_v49, %v1767_v56 }
 0x2b0   : > { %v1726_v38 = vpop.f32.mrf.mxu1  ;;  %v2288_v32 = vpop.f32.mrf.mxu3 }
 0x2b1   : > { %2710 = vst.msk [vmem:[%s4479_s11 + $0xc8] sm:$0xff] %vm2684_vm1, %v2677_v2  ;;  %v2332_v45 = vadd.f32 %v2288_v32, %v2050_v44  ;;  %v1768_v3 = vadd.f32 %v1726_v38, %v4414_v43 }
 0x2b3   : > { %v2614_v47 = vadd.f32 %v2570_v11, %v2332_v45 }
 0x2b5   : > { %v2646_v13 = vmax.f32 %v2614_v47, 0.0  ;;  %v2573_v9 = vpop.f32.mrf.mxu0 }
 0x2b6   : > { %v2009_v57 = vpop.f32.mrf.mxu2 }
 0x2b7   : > { %v2678_v15 = vmin.f32 %v2646_v13, 6.0  ;;  %v2051_v29 = vadd.f32 %v2009_v57, %v1768_v3 }
 0x2b8   : > { %v1729_v14 = vpop.f32.mrf.mxu1  ;;  %v2291_v10 = vpop.f32.mrf.mxu3 }
 0x2b9   : > { %2711 = vst.msk [vmem:[%s4479_s11 + $0xd0] sm:$0xff] %vm2684_vm1, %v2678_v15  ;;  %v2333_v4 = vadd.f32 %v2291_v10, %v2051_v29  ;;  %v1769_v59 = vadd.f32 %v1729_v14, %v4425_v58 }
 0x2bb   : > { %v2615_v18 = vadd.f32 %v2573_v9, %v2333_v4 }
 0x2bd   : > { %v2647_v62 = vmax.f32 %v2615_v18, 0.0  ;;  %v2576_v1 = vpop.f32.mrf.mxu0 }
 0x2be   : > { %v2012_v46 = vpop.f32.mrf.mxu2 }
 0x2bf   : > { %v2679_v33 = vmin.f32 %v2647_v62, 6.0  ;;  %v2052_v43 = vadd.f32 %v2012_v46, %v1769_v59 }
 0x2c0   : > { %v1732_v12 = vpop.f32.mrf.mxu1  ;;  %v2294_v37 = vpop.f32.mrf.mxu3 }
 0x2c1   : > { %2712 = vst.msk [vmem:[%s4479_s11 + $0xd8] sm:$0xff] %vm2684_vm1, %v2679_v33  ;;  %v2334_v50 = vadd.f32 %v2294_v37, %v2052_v43  ;;  %v1770_v51 = vadd.f32 %v1732_v12, %v4436_v30 }
 0x2c3   : > { %v2616_v42 = vadd.f32 %v2576_v1, %v2334_v50 }
 0x2c5   : > { %v2648_v8 = vmax.f32 %v2616_v42, 0.0  ;;  %v2579_v17 = vpop.f32.mrf.mxu0 }
 0x2c6   : > { %v2015_v60 = vpop.f32.mrf.mxu2 }
 0x2c7   : > { %v2680_v48 = vmin.f32 %v2648_v8, 6.0  ;;  %v2053_v58 = vadd.f32 %v2015_v60, %v1770_v51 }
 0x2c8   : > { %v1735_v40 = vpop.f32.mrf.mxu1  ;;  %v2297_v26 = vpop.f32.mrf.mxu3 }
 0x2c9   : > { %2713 = vst.msk [vmem:[%s4479_s11 + $0xe0] sm:$0xff] %vm2684_vm1, %v2680_v48  ;;  %v2335_v25 = vadd.f32 %v2297_v26, %v2053_v58  ;;  %v1771_v0 = vadd.f32 %v1735_v40, %v4447_v28 }
 0x2cb   : > { %v2617_v16 = vadd.f32 %v2579_v17, %v2335_v25 }
 0x2cd   : > { %v2649_v27 = vmax.f32 %v2617_v16, 0.0  ;;  %v2582_v31 = vpop.f32.mrf.mxu0 }
 0x2ce   : > { %v2018_v41 = vpop.f32.mrf.mxu2 }
 0x2cf   : > { %v2681_v7 = vmin.f32 %v2649_v27, 6.0  ;;  %v2054_v30 = vadd.f32 %v2018_v41, %v1771_v0 }
 0x2d0   : > { %v2300_v36 = vpop.f32.mrf.mxu3  ;;  %v1738_v24 = vpop.f32.mrf.mxu1 }
 0x2d1   : > { %2714 = vst.msk [vmem:[%s4479_s11 + $0xe8] sm:$0xff] %vm2684_vm1, %v2681_v7  ;;  %v2336_v34 = vadd.f32 %v2300_v36, %v2054_v30  ;;  %v1772_v20 = vadd.f32 %v1738_v24, %v4458_v55 }
 0x2d3   : > { %v2618_v35 = vadd.f32 %v2582_v31, %v2336_v34 }
 0x2d5   : > { %v2650_v21 = vmax.f32 %v2618_v35, 0.0  ;;  %v2585_v63 = vpop.f32.mrf.mxu0 }
 0x2d6   : > { %v2021_v39 = vpop.f32.mrf.mxu2 }
 0x2d7   : > { %v2682_v19 = vmin.f32 %v2650_v21, 6.0  ;;  %v2055_v52 = vadd.f32 %v2021_v39, %v1772_v20 }
 0x2d8   : > { %v2303_v28 = vpop.f32.mrf.mxu3 }
 0x2d9   : > { %2715 = vst.msk [vmem:[%s4479_s11 + $0xf0] sm:$0xff] %vm2684_vm1, %v2682_v19  ;;  %v2337_v5 = vadd.f32 %v2303_v28, %v2055_v52 }
 0x2db   : > { %v2619_v54 = vadd.f32 %v2585_v63, %v2337_v5 }
 0x2dd   : > { %v2651_v6 = vmax.f32 %v2619_v54, 0.0 }
 0x2df   : > { %v2683_v61 = vmin.f32 %v2651_v6, 6.0 }
 0x2e1   : > { %2716 = vst.msk [vmem:[%s4479_s11 + $0xf8] sm:$0xff] %vm2684_vm1, %v2683_v61 }
 0x2e2 PF: > { %s12_s9 = sadd.s32 1, %s3366_s9  }
 0x2e3   : > { %p9_p4 = scmp.ge.s32.totalorder %s12_s9, 4  }
 0x2e5   :  { %11 = sbr.rel (!%p9_p4) target bundleno = 1 (0x1), region = 68 }

// kernel: inceptionv2_dicount.5
= control target key start
LH: loop header
LB: loop body
LE: loop exit
PB: predicated region body
PF: predicated region fallthrough
CT: control target
= control target key end

     0   :  { %s3485_s24 = smov 0   ;;  %s5962_s0 = inlined_call_operand.vmem [shape: f32[2,4,9,9,128], index: 0, kind: input, shape index: {}]   ;;  %s5963_s1 = inlined_call_operand.vmem [shape: f32[2,4,9,9,96], index: 1, kind: input, shape index: {}]   ;;  %s5964_s2 = inlined_call_operand.vmem [shape: f32[2,4,9,9,4], index: 2, kind: input, shape index: {}]   ;;  %s5965_s3 = inlined_call_operand.vmem [shape: f32[9,128,160], index: 3, kind: input, shape index: {}]   ;;  %s5966_s4 = inlined_call_operand.vmem [shape: f32[9,96,96], index: 4, kind: input, shape index: {}]   ;;  %s5967_s5 = inlined_call_operand.vmem [shape: f32[2,8,8,160], index: 5, kind: output, shape index: {0}]   ;;  %s5968_s6 = inlined_call_operand.vmem [shape: f32[2,8,8,96], index: 6, kind: output, shape index: {1}]   ;;  %s5969_s7 = inlined_call_operand.vmem [shape: f32[2,8,8,4], index: 7, kind: output, shape index: {2}]  }
   0x1 LB: > { %s2770_s25 = sadd.s32 4294967295, %s3443_s24   ;;  %p2774_p0 = scmp.ge.s32.totalorder %s3443_s24, 1  ;;  %s3443_s24 = sphi %s3485_s24, %s18_s24  }
   0x2   : > { %p262_p1 = scmp.lt.s32.totalorder %s3443_s24, 3 }
   0x4   : > { %p263_p2 = pnand %p2774_p0, %p262_p1 }
   0x6   : > { %266 = sbr.rel (%p263_p2) target bundleno = 612 (0x264), region = 40 }
   0xb   : > { %v2822_v0 = vld [vmem:[%s5965_s3 + $0x1f0] sm:$0xff]  ;;  %v2823_v1 = vld [vmem:[%s5965_s3 + $0x1f8] sm:$0xff]  ;;  %v2820_v3 = vld [vmem:[%s5965_s3 + $0x1e0] sm:$0xff]  ;;  %p3576_p3 = scmp.lt.s32.totalorder %s2770_s25, 1  ;;  %vm1658_vm0 = vcmask 785408   ;;  %vm1600_vm1 = vcmask 261120  }
   0xc   : > { %v382_v2 = vld [vmem:[%s5965_s3 + $0xf0] sm:$0xff]  ;;  %426 = vmatpush.msra.mxu0 %v2822_v0  ;;  %3381 = vmatpush.msra.mxu3 %v2822_v0  ;;  %v2821_v4 = vld [vmem:[%s5965_s3 + $0x1e8] sm:$0xff]  ;;  %v380_v5 = vld [vmem:[%s5965_s3 + $0xe0] sm:$0xff]  ;;  %vm2616_vm2 = vcmask 31744  }
   0xd   : > { %467 = vmatpush.msra.mxu1 %v2823_v1  ;;  %508 = vmatpush.msra.mxu2 %v382_v2  ;;  %v2818_v6 = vld [vmem:[%s5965_s3 + $0x1d0] sm:$0xff]  ;;  %v2819_v7 = vld [vmem:[%s5965_s3 + $0x1d8] sm:$0xff]  ;;  %v2816_v9 = vld [vmem:[%s5965_s3 + $0x1c0] sm:$0xff]  ;;  %s6010_s25 = smov (!%p3576_p3, %s2770_s25), 1 }
   0xe   : > { %427 = vmatpush.msra.mxu0 %v2820_v3  ;;  %3382 = vmatpush.msra.mxu3 %v2820_v3  ;;  %v378_v8 = vld [vmem:[%s5965_s3 + $0xd0] sm:$0xff]  ;;  %v2817_v10 = vld [vmem:[%s5965_s3 + $0x1c8] sm:$0xff]  ;;  %v376_v11 = vld [vmem:[%s5965_s3 + $0xc0] sm:$0xff]  ;;  %s3623_s19 = smul.u32 576, %s6010_s25  ;;  %s3378_s12 = sshll.u32 %s6010_s25, 7 }
   0xf   : > { %468 = vmatpush.msra.mxu1 %v2821_v4  ;;  %509 = vmatpush.msra.mxu2 %v380_v5  ;;  %v2814_v12 = vld [vmem:[%s5965_s3 + $0x1b0] sm:$0xff]  ;;  %v2815_v13 = vld [vmem:[%s5965_s3 + $0x1b8] sm:$0xff]  ;;  %v2812_v15 = vld [vmem:[%s5965_s3 + $0x1a0] sm:$0xff]  ;;  %s5508_s22 = scalar_lea.vmem %s5967_s5, %s3378_s12 }
  0x10   : > { %428 = vmatpush.msra.mxu0 %v2818_v6  ;;  %3383 = vmatpush.msra.mxu3 %v2818_v6  ;;  %v374_v14 = vld [vmem:[%s5965_s3 + $0xb0] sm:$0xff]  ;;  %v2813_v16 = vld [vmem:[%s5965_s3 + $0x1a8] sm:$0xff]  ;;  %v372_v17 = vld [vmem:[%s5965_s3 + $0xa0] sm:$0xff]  ;;  %s3647_s13 = scalar_lea.vmem %s5962_s0, %s3623_s19  ;;  %s4968_s21 = scalar_lea.vmem %s5963_s1, %s3623_s19 }
  0x11   : > { %469 = vmatpush.msra.mxu1 %v2819_v7  ;;  %510 = vmatpush.msra.mxu2 %v378_v8  ;;  %v2810_v18 = vld [vmem:[%s5965_s3 + $0x190] sm:$0xff]  ;;  %v2811_v19 = vld [vmem:[%s5965_s3 + $0x198] sm:$0xff]  ;;  %v2808_v21 = vld [vmem:[%s5965_s3 + $0x180] sm:$0xff]  ;;  %s5716_s26 = scalar_lea.vmem %s5964_s2, %s3623_s19  ;;  %s3379_s19 = sshll.u32 %s6010_s25, 6 }
  0x12   : > { %429 = vmatpush.msra.mxu0 %v2816_v9  ;;  %3384 = vmatpush.msra.mxu3 %v2816_v9  ;;  %v370_v20 = vld [vmem:[%s5965_s3 + $0x90] sm:$0xff]  ;;  %v2809_v22 = vld [vmem:[%s5965_s3 + $0x188] sm:$0xff]  ;;  %v368_v23 = vld [vmem:[%s5965_s3 + $0x80] sm:$0xff]  ;;  %s5874_s29 = scalar_lea.vmem %s5969_s7, %s3379_s19 }
  0x13   : > { %470 = vmatpush.msra.mxu1 %v2817_v10  ;;  %511 = vmatpush.msra.mxu2 %v376_v11  ;;  %v2806_v24 = vld [vmem:[%s5965_s3 + $0x170] sm:$0xff]  ;;  %v2807_v25 = vld [vmem:[%s5965_s3 + $0x178] sm:$0xff]  ;;  %v2804_v27 = vld [vmem:[%s5965_s3 + $0x160] sm:$0xff] }
  0x14   : > { %430 = vmatpush.msra.mxu0 %v2814_v12  ;;  %3385 = vmatpush.msra.mxu3 %v2814_v12  ;;  %v366_v26 = vld [vmem:[%s5965_s3 + $0x70] sm:$0xff]  ;;  %v2805_v28 = vld [vmem:[%s5965_s3 + $0x168] sm:$0xff]  ;;  %v364_v29 = vld [vmem:[%s5965_s3 + $0x60] sm:$0xff] }
  0x15   : > { %471 = vmatpush.msra.mxu1 %v2815_v13  ;;  %512 = vmatpush.msra.mxu2 %v374_v14  ;;  %v2802_v30 = vld [vmem:[%s5965_s3 + $0x150] sm:$0xff]  ;;  %v2803_v31 = vld [vmem:[%s5965_s3 + $0x158] sm:$0xff]  ;;  %v2800_v33 = vld [vmem:[%s5965_s3 + $0x140] sm:$0xff] }
  0x16   : > { %431 = vmatpush.msra.mxu0 %v2812_v15  ;;  %3386 = vmatpush.msra.mxu3 %v2812_v15  ;;  %v362_v32 = vld [vmem:[%s5965_s3 + $0x50] sm:$0xff]  ;;  %v2801_v34 = vld [vmem:[%s5965_s3 + $0x148] sm:$0xff]  ;;  %v360_v35 = vld [vmem:[%s5965_s3 + $0x40] sm:$0xff] }
  0x17   : > { %472 = vmatpush.msra.mxu1 %v2813_v16  ;;  %513 = vmatpush.msra.mxu2 %v372_v17  ;;  %v2798_v36 = vld [vmem:[%s5965_s3 + $0x130] sm:$0xff]  ;;  %v2799_v37 = vld [vmem:[%s5965_s3 + $0x138] sm:$0xff]  ;;  %v2796_v39 = vld [vmem:[%s5965_s3 + $0x120] sm:$0xff] }
  0x18   : > { %432 = vmatpush.msra.mxu0 %v2810_v18  ;;  %3387 = vmatpush.msra.mxu3 %v2810_v18  ;;  %v358_v38 = vld [vmem:[%s5965_s3 + $0x30] sm:$0xff]  ;;  %v2797_v40 = vld [vmem:[%s5965_s3 + $0x128] sm:$0xff]  ;;  %v356_v41 = vld [vmem:[%s5965_s3 + $0x20] sm:$0xff] }
  0x19   : > { %473 = vmatpush.msra.mxu1 %v2811_v19  ;;  %514 = vmatpush.msra.mxu2 %v370_v20  ;;  %v2794_v42 = vld [vmem:[%s5965_s3 + $0x110] sm:$0xff]  ;;  %v2795_v43 = vld [vmem:[%s5965_s3 + $0x118] sm:$0xff]  ;;  %v2792_v45 = vld [vmem:[%s5965_s3 + $0x100] sm:$0xff] }
  0x1a   : > { %433 = vmatpush.msra.mxu0 %v2808_v21  ;;  %3388 = vmatpush.msra.mxu3 %v2808_v21  ;;  %v354_v44 = vld [vmem:[%s5965_s3 + $0x10] sm:$0xff]  ;;  %v2793_v46 = vld [vmem:[%s5965_s3 + $0x108] sm:$0xff]  ;;  %v352_v47 = vld [vmem:[%s5965_s3] sm:$0xff] }
  0x1b   : > { %474 = vmatpush.msra.mxu1 %v2809_v22  ;;  %515 = vmatpush.msra.mxu2 %v368_v23  ;;  %v2784_v48 = vld [vmem:[%s3647_s13 + $0x90] sm:$0xff]  ;;  %v3663_v50 = vld [vmem:[%s3647_s13] sm:$0xff]  ;;  %v383_v51 = vld [vmem:[%s5965_s3 + $0xf8] sm:$0xff] }
  0x1c   : > { %434 = vmatpush.msra.mxu0 %v2806_v24  ;;  %3389 = vmatpush.msra.mxu3 %v2806_v24  ;;  %v3660_v49 = vld [vmem:[%s3647_s13 + $0xd0] sm:$0xff]  ;;  %v2855_v54 = vld [vmem:[%s5965_s3 + $0x2f8] sm:$0xff]  ;;  %v381_v55 = vld [vmem:[%s5965_s3 + $0xe8] sm:$0xff] }
  0x1d   : > { %475 = vmatpush.msra.mxu1 %v2807_v25  ;;  %516 = vmatpush.msra.mxu2 %v366_v26  ;;  %v2894_v52 = vld [vmem:[%s5965_s3 + $0x3f0] sm:$0xff]  ;;  %v2892_v56 = vld [vmem:[%s5965_s3 + $0x3e0] sm:$0xff]  ;;  %v2853_v58 = vld [vmem:[%s5965_s3 + $0x2e8] sm:$0xff] }
  0x1e   : > { %435 = vmatpush.msra.mxu0 %v2804_v27  ;;  %3390 = vmatpush.msra.mxu3 %v2804_v27  ;;  %v2854_v53 = vld [vmem:[%s5965_s3 + $0x2f0] sm:$0xff]  ;;  %v2852_v57 = vld [vmem:[%s5965_s3 + $0x2e0] sm:$0xff]  ;;  %v379_v59 = vld [vmem:[%s5965_s3 + $0xd8] sm:$0xff] }
  0x1f   : > { %476 = vmatpush.msra.mxu1 %v2805_v28  ;;  %517 = vmatpush.msra.mxu2 %v364_v29  ;;  %v2890_v60 = vld [vmem:[%s5965_s3 + $0x3d0] sm:$0xff]  ;;  %v2851_v62 = vld [vmem:[%s5965_s3 + $0x2d8] sm:$0xff]  ;;  %v377_v63 = vld [vmem:[%s5965_s3 + $0xc8] sm:$0xff] }
  0x20   : > { %436 = vmatpush.msra.mxu0 %v2802_v30  ;;  %3391 = vmatpush.msra.mxu3 %v2802_v30  ;;  %v2850_v61 = vld [vmem:[%s5965_s3 + $0x2d0] sm:$0xff]  ;;  %v2785_v0 = vld [vmem:[%s3647_s13 + $0xa0] sm:$0xff]  ;;  %v375_v4 = vld [vmem:[%s5965_s3 + $0xb8] sm:$0xff] }
  0x21   : > { %477 = vmatpush.msra.mxu1 %v2803_v31  ;;  %518 = vmatpush.msra.mxu2 %v362_v32  ;;  %v2848_v1 = vld [vmem:[%s5965_s3 + $0x2c0] sm:$0xff]  ;;  %v3714_v3 = vld [vmem:[%s3647_s13 + $0x10] sm:$0xff]  ;;  %v2849_v7 = vld [vmem:[%s5965_s3 + $0x2c8] sm:$0xff] }
  0x22   : > { %437 = vmatpush.msra.mxu0 %v2800_v33  ;;  %3392 = vmatpush.msra.mxu3 %v2800_v33  ;;  %v3711_v2 = vld [vmem:[%s3647_s13 + $0xe0] sm:$0xff]  ;;  %v2846_v5 = vld [vmem:[%s5965_s3 + $0x2b0] sm:$0xff]  ;;  %v373_v8 = vld [vmem:[%s5965_s3 + $0xa8] sm:$0xff] }
  0x23   : > { %478 = vmatpush.msra.mxu1 %v2801_v34  ;;  %519 = vmatpush.msra.mxu2 %v360_v35  ;;  %v2888_v6 = vld [vmem:[%s5965_s3 + $0x3c0] sm:$0xff]  ;;  %v2886_v10 = vld [vmem:[%s5965_s3 + $0x3b0] sm:$0xff]  ;;  %v2847_v11 = vld [vmem:[%s5965_s3 + $0x2b8] sm:$0xff] }
  0x24   : > { %438 = vmatpush.msra.mxu0 %v2798_v36  ;;  %3393 = vmatpush.msra.mxu3 %v2798_v36  ;;  %v2844_v9 = vld [vmem:[%s5965_s3 + $0x2a0] sm:$0xff]  ;;  %v371_v12 = vld [vmem:[%s5965_s3 + $0x98] sm:$0xff]  ;;  %v2842_v13 = vld [vmem:[%s5965_s3 + $0x290] sm:$0xff] }
  0x25   : > { %479 = vmatpush.msra.mxu1 %v2799_v37  ;;  %520 = vmatpush.msra.mxu2 %v358_v38  ;;  %v2786_v14 = vld [vmem:[%s3647_s13 + $0xb0] sm:$0xff]  ;;  %v2884_v15 = vld [vmem:[%s5965_s3 + $0x3a0] sm:$0xff]  ;;  %v369_v16 = vld [vmem:[%s5965_s3 + $0x88] sm:$0xff] }
  0x26   : > { %439 = vmatpush.msra.mxu0 %v2796_v39  ;;  %3394 = vmatpush.msra.mxu3 %v2796_v39  ;;  %v2840_v17 = vld [vmem:[%s5965_s3 + $0x280] sm:$0xff]  ;;  %v3759_v18 = vld [vmem:[%s3647_s13 + $0xf0] sm:$0xff]  ;;  %v367_v20 = vld [vmem:[%s5965_s3 + $0x78] sm:$0xff] }
  0x27   : > { %480 = vmatpush.msra.mxu1 %v2797_v40  ;;  %521 = vmatpush.msra.mxu2 %v356_v41  ;;  %v3762_v19 = vld [vmem:[%s3647_s13 + $0x20] sm:$0xff]  ;;  %v2838_v21 = vld [vmem:[%s5965_s3 + $0x270] sm:$0xff]  ;;  %v2845_v22 = vld [vmem:[%s5965_s3 + $0x2a8] sm:$0xff] }
  0x28   : > { %440 = vmatpush.msra.mxu0 %v2794_v42  ;;  %3395 = vmatpush.msra.mxu3 %v2794_v42  ;;  %v365_v23 = vld [vmem:[%s5965_s3 + $0x68] sm:$0xff]  ;;  %v2882_v24 = vld [vmem:[%s5965_s3 + $0x390] sm:$0xff]  ;;  %v2836_v25 = vld [vmem:[%s5965_s3 + $0x260] sm:$0xff] }
  0x29   : > { %481 = vmatpush.msra.mxu1 %v2795_v43  ;;  %522 = vmatpush.msra.mxu2 %v354_v44  ;;  %v2843_v26 = vld [vmem:[%s5965_s3 + $0x298] sm:$0xff]  ;;  %v2880_v28 = vld [vmem:[%s5965_s3 + $0x380] sm:$0xff]  ;;  %v2834_v29 = vld [vmem:[%s5965_s3 + $0x250] sm:$0xff] }
  0x2a   : > { %441 = vmatpush.msra.mxu0 %v2792_v45  ;;  %3396 = vmatpush.msra.mxu3 %v2792_v45  ;;  %v363_v27 = vld [vmem:[%s5965_s3 + $0x58] sm:$0xff]  ;;  %v2841_v30 = vld [vmem:[%s5965_s3 + $0x288] sm:$0xff]  ;;  %v2787_v32 = vld [vmem:[%s3647_s13 + $0xc0] sm:$0xff] }
  0x2b   : > { %482 = vmatpush.msra.mxu1 %v2793_v46  ;;  %523 = vmatpush.msra.mxu2 %v352_v47  ;;  %v361_v31 = vld [vmem:[%s5965_s3 + $0x48] sm:$0xff]  ;;  %v2832_v33 = vld [vmem:[%s5965_s3 + $0x240] sm:$0xff]  ;;  %v3810_v35 = vld [vmem:[%s3647_s13 + $0x30] sm:$0xff] }
  0x2c   : > { %442 = vmatmul.f32.vlgmr.msra.gmra.mxu0 %v2784_v48  ;;  %454 = vmatmul.f32.vlgmr.msra.gmra.mxu3 %v3660_v49  ;;  %v3807_v34 = vld [vmem:[%s3647_s13 + $0x100] sm:$0xff]  ;;  %v359_v36 = vld [vmem:[%s5965_s3 + $0x38] sm:$0xff]  ;;  %v2830_v37 = vld [vmem:[%s5965_s3 + $0x230] sm:$0xff] }
  0x2d   : > { %483 = vmatmul.f32.vlgmr.msra.gmra.mxu1 %v2784_v48  ;;  %524 = vmatmul.f32.vlgmr.msra.gmra.mxu2 %v3663_v50  ;;  %v2878_v38 = vld [vmem:[%s5965_s3 + $0x370] sm:$0xff]  ;;  %v2839_v39 = vld [vmem:[%s5965_s3 + $0x278] sm:$0xff]  ;;  %v357_v40 = vld [vmem:[%s5965_s3 + $0x28] sm:$0xff] }
  0x2e   : > { %549 = vmatpush.msrb.mxu3 %v383_v51  ;;  %771 = vmatpush.msrb.mxu2 %v2894_v52  ;;  %v2828_v41 = vld [vmem:[%s5965_s3 + $0x220] sm:$0xff]  ;;  %v2837_v43 = vld [vmem:[%s5965_s3 + $0x268] sm:$0xff]  ;;  %v355_v44 = vld [vmem:[%s5965_s3 + $0x18] sm:$0xff] }
  0x2f   : > { %631 = vmatpush.msrb.mxu0 %v2854_v53  ;;  %672 = vmatpush.msrb.mxu1 %v2855_v54  ;;  %v2876_v42 = vld [vmem:[%s5965_s3 + $0x360] sm:$0xff]  ;;  %v2826_v45 = vld [vmem:[%s5965_s3 + $0x210] sm:$0xff]  ;;  %v2835_v47 = vld [vmem:[%s5965_s3 + $0x258] sm:$0xff] }
  0x30   : > { %550 = vmatpush.msrb.mxu3 %v381_v55  ;;  %772 = vmatpush.msrb.mxu2 %v2892_v56  ;;  %v2874_v46 = vld [vmem:[%s5965_s3 + $0x350] sm:$0xff]  ;;  %v353_v48 = vld [vmem:[%s5965_s3 + $0x8] sm:$0xff]  ;;  %v2824_v51 = vld [vmem:[%s5965_s3 + $0x200] sm:$0xff] }
  0x31   : > { %632 = vmatpush.msrb.mxu0 %v2852_v57  ;;  %673 = vmatpush.msrb.mxu1 %v2853_v58  ;;  %v3857_v52 = vld [vmem:[%s3647_s13 + $0x40] sm:$0xff]  ;;  %v2895_v54 = vld [vmem:[%s5965_s3 + $0x3f8] sm:$0xff]  ;;  %v2934_v55 = vld [vmem:[%s5965_s3 + $0x4f0] sm:$0xff] }
  0x32   : > { %551 = vmatpush.msrb.mxu3 %v379_v59  ;;  %773 = vmatpush.msrb.mxu2 %v2890_v60  ;;  %v3860_v53 = vld [vmem:[%s3647_s13 + $0x1] sm:$0xff]  ;;  %v2870_v59 = vld [vmem:[%s5965_s3 + $0x330] sm:$0xff]  ;;  %v2891_v60 = vld [vmem:[%s5965_s3 + $0x3d8] sm:$0xff] }
  0x33   : > { %633 = vmatpush.msrb.mxu0 %v2850_v61  ;;  %674 = vmatpush.msrb.mxu1 %v2851_v62  ;;  %v2872_v56 = vld [vmem:[%s5965_s3 + $0x340] sm:$0xff]  ;;  %v2833_v57 = vld [vmem:[%s5965_s3 + $0x248] sm:$0xff]  ;;  %v2930_v61 = vld [vmem:[%s5965_s3 + $0x4d0] sm:$0xff] }
  0x34   : > { %552 = vmatpush.msrb.mxu3 %v377_v63  ;;  %445 = vmatmul.f32.gmra.mxu0 %v2785_v0  ;;  %v2893_v58 = vld [vmem:[%s5965_s3 + $0x3e8] sm:$0xff]  ;;  %v2868_v62 = vld [vmem:[%s5965_s3 + $0x320] sm:$0xff] }
  0x35   : > { %634 = vmatpush.msrb.mxu0 %v2848_v1  ;;  %457 = vmatmul.f32.gmra.mxu3 %v3711_v2  ;;  %v2829_v63 = vld [vmem:[%s5965_s3 + $0x228] sm:$0xff]  ;;  %v3906_v1 = vld [vmem:[%s3647_s13 + $0x11] sm:$0xff] }
  0x36   : > { %486 = vmatmul.f32.gmra.mxu1 %v2785_v0  ;;  %527 = vmatmul.f32.gmra.mxu2 %v3714_v3  ;;  %v3903_v0 = vld [vmem:[%s3647_s13 + $0x50] sm:$0xff] }
  0x37   : > { %553 = vmatpush.msrb.mxu3 %v375_v4  ;;  %635 = vmatpush.msrb.mxu0 %v2846_v5  ;;  %v2889_v4 = vld [vmem:[%s5965_s3 + $0x3c8] sm:$0xff]  ;;  %v2928_v5 = vld [vmem:[%s5965_s3 + $0x4c0] sm:$0xff] }
  0x38   : > { %774 = vmatpush.msrb.mxu2 %v2888_v6  ;;  %675 = vmatpush.msrb.mxu1 %v2849_v7  ;;  %v2866_v6 = vld [vmem:[%s5965_s3 + $0x310] sm:$0xff]  ;;  %v2827_v7 = vld [vmem:[%s5965_s3 + $0x218] sm:$0xff] }
  0x39   : > { %554 = vmatpush.msrb.mxu3 %v373_v8  ;;  %636 = vmatpush.msrb.mxu0 %v2844_v9  ;;  %v2887_v8 = vld [vmem:[%s5965_s3 + $0x3b8] sm:$0xff]  ;;  %v2864_v9 = vld [vmem:[%s5965_s3 + $0x300] sm:$0xff] }
  0x3a   : > { %775 = vmatpush.msrb.mxu2 %v2886_v10  ;;  %676 = vmatpush.msrb.mxu1 %v2847_v11  ;;  %v2885_v10 = vld [vmem:[%s5965_s3 + $0x3a8] sm:$0xff]  ;;  %v2924_v11 = vld [vmem:[%s5965_s3 + $0x4a0] sm:$0xff] }
  0x3b   : > { %555 = vmatpush.msrb.mxu3 %v371_v12  ;;  %637 = vmatpush.msrb.mxu0 %v2842_v13  ;;  %v2974_v12 = vld [vmem:[%s5965_s3 + $0x5f0] sm:$0xff]  ;;  %v2935_v13 = vld [vmem:[%s5965_s3 + $0x4f8] sm:$0xff] }
  0x3c   : > { %448 = vmatmul.f32.gmra.mxu0 %v2786_v14  ;;  %776 = vmatpush.msrb.mxu2 %v2884_v15  ;;  %v3952_v15 = vld [vmem:[%s3647_s13 + $0x21] sm:$0xff] }
  0x3d   : > { %556 = vmatpush.msrb.mxu3 %v369_v16  ;;  %638 = vmatpush.msrb.mxu0 %v2840_v17  ;;  %v2883_v16 = vld [vmem:[%s5965_s3 + $0x398] sm:$0xff]  ;;  %v2922_v17 = vld [vmem:[%s5965_s3 + $0x490] sm:$0xff] }
  0x3e   : > { %460 = vmatmul.f32.gmra.mxu3 %v3759_v18  ;;  %489 = vmatmul.f32.gmra.mxu1 %v2786_v14  ;;  %v3949_v14 = vld [vmem:[%s3647_s13 + $0x60] sm:$0xff] }
  0x3f   : > { %530 = vmatmul.f32.gmra.mxu2 %v3762_v19  ;;  %557 = vmatpush.msrb.mxu3 %v367_v20  ;;  %v2972_v20 = vld [vmem:[%s5965_s3 + $0x5e0] sm:$0xff] }
  0x40   : > { %639 = vmatpush.msrb.mxu0 %v2838_v21  ;;  %677 = vmatpush.msrb.mxu1 %v2845_v22  ;;  %v2933_v21 = vld [vmem:[%s5965_s3 + $0x4e8] sm:$0xff] }
  0x41   : > { %558 = vmatpush.msrb.mxu3 %v365_v23  ;;  %777 = vmatpush.msrb.mxu2 %v2882_v24  ;;  %v2881_v22 = vld [vmem:[%s5965_s3 + $0x388] sm:$0xff]  ;;  %v2970_v23 = vld [vmem:[%s5965_s3 + $0x5d0] sm:$0xff]  ;;  %v2879_v24 = vld [vmem:[%s5965_s3 + $0x378] sm:$0xff] }
  0x42   : > { %640 = vmatpush.msrb.mxu0 %v2836_v25  ;;  %678 = vmatpush.msrb.mxu1 %v2843_v26  ;;  %v2918_v25 = vld [vmem:[%s5965_s3 + $0x470] sm:$0xff]  ;;  %v2968_v26 = vld [vmem:[%s5965_s3 + $0x5c0] sm:$0xff] }
  0x43   : > { %559 = vmatpush.msrb.mxu3 %v363_v27  ;;  %778 = vmatpush.msrb.mxu2 %v2880_v28  ;;  %v2929_v27 = vld [vmem:[%s5965_s3 + $0x4c8] sm:$0xff]  ;;  %v3995_v28 = vld [vmem:[%s3647_s13 + $0x70] sm:$0xff] }
  0x44   : > { %641 = vmatpush.msrb.mxu0 %v2834_v29  ;;  %679 = vmatpush.msrb.mxu1 %v2841_v30  ;;  %v3998_v29 = vld [vmem:[%s3647_s13 + $0x31] sm:$0xff]  ;;  %v2877_v30 = vld [vmem:[%s5965_s3 + $0x368] sm:$0xff] }
  0x45   : > { %560 = vmatpush.msrb.mxu3 %v361_v31  ;;  %451 = vmatmul.f32.gmra.mxu0 %v2787_v32  ;;  %v2916_v31 = vld [vmem:[%s5965_s3 + $0x460] sm:$0xff] }
  0x46   : > { %642 = vmatpush.msrb.mxu0 %v2832_v33  ;;  %463 = vmatmul.f32.gmra.mxu3 %v3807_v34  ;;  %v2927_v33 = vld [vmem:[%s5965_s3 + $0x4b8] sm:$0xff] }
  0x47   : > { %492 = vmatmul.f32.gmra.mxu1 %v2787_v32  ;;  %533 = vmatmul.f32.gmra.mxu2 %v3810_v35  ;;  %v2966_v32 = vld [vmem:[%s5965_s3 + $0x5b0] sm:$0xff] }
  0x48   : > { %561 = vmatpush.msrb.mxu3 %v359_v36  ;;  %643 = vmatpush.msrb.mxu0 %v2830_v37  ;;  %v2875_v36 = vld [vmem:[%s5965_s3 + $0x358] sm:$0xff]  ;;  %v2964_v37 = vld [vmem:[%s5965_s3 + $0x5a0] sm:$0xff] }
  0x49   : > { %779 = vmatpush.msrb.mxu2 %v2878_v38  ;;  %680 = vmatpush.msrb.mxu1 %v2839_v39  ;;  %v2873_v38 = vld [vmem:[%s5965_s3 + $0x348] sm:$0xff]  ;;  %v2912_v39 = vld [vmem:[%s5965_s3 + $0x440] sm:$0xff] }
  0x4a   : > { %562 = vmatpush.msrb.mxu3 %v357_v40  ;;  %644 = vmatpush.msrb.mxu0 %v2828_v41  ;;  %v2962_v40 = vld [vmem:[%s5965_s3 + $0x590] sm:$0xff]  ;;  %v2923_v41 = vld [vmem:[%s5965_s3 + $0x498] sm:$0xff] }
  0x4b   : > { %780 = vmatpush.msrb.mxu2 %v2876_v42  ;;  %681 = vmatpush.msrb.mxu1 %v2837_v43  ;;  %v4041_v42 = vld [vmem:[%s3647_s13 + $0x120] sm:$0xff] }
  0x4c   : > { %563 = vmatpush.msrb.mxu3 %v355_v44  ;;  %645 = vmatpush.msrb.mxu0 %v2826_v45  ;;  %v4044_v43 = vld [vmem:[%s3647_s13 + $0x41] sm:$0xff]  ;;  %v2871_v44 = vld [vmem:[%s5965_s3 + $0x338] sm:$0xff]  ;;  %v2910_v45 = vld [vmem:[%s5965_s3 + $0x430] sm:$0xff] }
  0x4d   : > { %781 = vmatpush.msrb.mxu2 %v2874_v46  ;;  %682 = vmatpush.msrb.mxu1 %v2835_v47  ;;  %v2960_v46 = vld [vmem:[%s5965_s3 + $0x580] sm:$0xff]  ;;  %v2869_v47 = vld [vmem:[%s5965_s3 + $0x328] sm:$0xff] }
  0x4e   : > { %564 = vmatpush.msrb.mxu3 %v353_v48  ;;  %646 = vmatpush.msrb.mxu0 %v2824_v51  ;;  %v2908_v48 = vld [vmem:[%s5965_s3 + $0x420] sm:$0xff]  ;;  %v2921_v51 = vld [vmem:[%s5965_s3 + $0x488] sm:$0xff] }
  0x4f   : > { %495 = vmatmul.f32.gmra.mxu1 %v3660_v49  ;;  %536 = vmatmul.f32.gmra.mxu2 %v3857_v52  ;;  %v2932_v49 = vld [vmem:[%s5965_s3 + $0x4e0] sm:$0xff] }
  0x50   : > { %565 = vmatmul.f32.vlgmr.msrb.gmra.mxu3 %v3663_v50  ;;  %647 = vmatmul.f32.vlgmr.msrb.gmra.mxu0 %v3860_v53  ;;  %v2831_v50 = vld [vmem:[%s5965_s3 + $0x238] sm:$0xff] }
  0x51   : > { %812 = vmatpush.msra.mxu3 %v2895_v54  ;;  %911 = vmatpush.msra.mxu0 %v2934_v55  ;;  %v2919_v54 = vld [vmem:[%s5965_s3 + $0x478] sm:$0xff] }
  0x52   : > { %782 = vmatpush.msrb.mxu2 %v2872_v56  ;;  %683 = vmatpush.msrb.mxu1 %v2833_v57  ;;  %v2867_v55 = vld [vmem:[%s5965_s3 + $0x318] sm:$0xff]  ;;  %v2906_v56 = vld [vmem:[%s5965_s3 + $0x410] sm:$0xff]  ;;  %v2956_v57 = vld [vmem:[%s5965_s3 + $0x560] sm:$0xff] }
  0x53   : > { %813 = vmatpush.msra.mxu3 %v2893_v58  ;;  %912 = vmatpush.msra.mxu0 %v2932_v49  ;;  %v4084_v58 = vld [vmem:[%s3647_s13 + $0x130] sm:$0xff] }
  0x54   : > { %783 = vmatpush.msrb.mxu2 %v2870_v59  ;;  %684 = vmatpush.msrb.mxu1 %v2831_v50  ;;  %v4087_v49 = vld [vmem:[%s3647_s13 + $0x51] sm:$0xff]  ;;  %v2865_v59 = vld [vmem:[%s5965_s3 + $0x308] sm:$0xff]  ;;  %v2904_v50 = vld [vmem:[%s5965_s3 + $0x400] sm:$0xff] }
  0x55   : > { %814 = vmatpush.msra.mxu3 %v2891_v60  ;;  %913 = vmatpush.msra.mxu0 %v2930_v61  ;;  %v2975_v60 = vld [vmem:[%s5965_s3 + $0x5f8] sm:$0xff]  ;;  %v3014_v61 = vld [vmem:[%s5965_s3 + $0x6f0] sm:$0xff] }
  0x56   : > { %784 = vmatpush.msrb.mxu2 %v2868_v62  ;;  %685 = vmatpush.msrb.mxu1 %v2829_v63  ;;  %v2917_v62 = vld [vmem:[%s5965_s3 + $0x468] sm:$0xff]  ;;  %v2954_v63 = vld [vmem:[%s5965_s3 + $0x550] sm:$0xff] }
  0x57   : > { %498 = vmatmul.f32.gmra.mxu1 %v3711_v2  ;;  %539 = vmatmul.f32.gmra.mxu2 %v3903_v0  ;;  %v2926_v2 = vld [vmem:[%s5965_s3 + $0x4b0] sm:$0xff] }
  0x58   : > { %568 = vmatmul.f32.gmra.mxu3 %v3714_v3  ;;  %650 = vmatmul.f32.gmra.mxu0 %v3906_v1  ;;  %v2825_v3 = vld [vmem:[%s5965_s3 + $0x208] sm:$0xff] }
  0x59   : > { %815 = vmatpush.msra.mxu3 %v2889_v4  ;;  %914 = vmatpush.msra.mxu0 %v2928_v5  ;;  %v3012_v4 = vld [vmem:[%s5965_s3 + $0x6e0] sm:$0xff]  ;;  %v2915_v5 = vld [vmem:[%s5965_s3 + $0x458] sm:$0xff] }
  0x5a   : > { %785 = vmatpush.msrb.mxu2 %v2866_v6  ;;  %686 = vmatpush.msrb.mxu1 %v2827_v7  ;;  %v2952_v6 = vld [vmem:[%s5965_s3 + $0x540] sm:$0xff]  ;;  %v2971_v7 = vld [vmem:[%s5965_s3 + $0x5d8] sm:$0xff] }
  0x5b   : > { %816 = vmatpush.msra.mxu3 %v2887_v8  ;;  %915 = vmatpush.msra.mxu0 %v2926_v2  ;;  %v3010_v8 = vld [vmem:[%s5965_s3 + $0x6d0] sm:$0xff]  ;;  %v4130_v2 = vld [vmem:[%s3647_s13 + $0x140] sm:$0xff] }
  0x5c   : > { %786 = vmatpush.msrb.mxu2 %v2864_v9  ;;  %687 = vmatpush.msrb.mxu1 %v2825_v3  ;;  %v4133_v9 = vld [vmem:[%s3647_s13 + $0x61] sm:$0xff] }
  0x5d   : > { %817 = vmatpush.msra.mxu3 %v2885_v10  ;;  %916 = vmatpush.msra.mxu0 %v2924_v11  ;;  %v2969_v3 = vld [vmem:[%s5965_s3 + $0x5c8] sm:$0xff]  ;;  %v2950_v11 = vld [vmem:[%s5965_s3 + $0x530] sm:$0xff] }
  0x5e   : > { %1050 = vmatpush.msra.mxu2 %v2974_v12  ;;  %952 = vmatpush.msra.mxu1 %v2935_v13  ;;  %v2913_v10 = vld [vmem:[%s5965_s3 + $0x448] sm:$0xff]  ;;  %v2967_v12 = vld [vmem:[%s5965_s3 + $0x5b8] sm:$0xff]  ;;  %v3008_v13 = vld [vmem:[%s5965_s3 + $0x6c0] sm:$0xff] }
  0x5f   : > { %501 = vmatmul.f32.gmra.mxu1 %v3759_v18  ;;  %542 = vmatmul.f32.gmra.mxu2 %v3949_v14  ;;  %v2920_v18 = vld [vmem:[%s5965_s3 + $0x480] sm:$0xff] }
  0x60   : > { %571 = vmatmul.f32.gmra.mxu3 %v3762_v19  ;;  %653 = vmatmul.f32.gmra.mxu0 %v3952_v15  ;;  %v2931_v19 = vld [vmem:[%s5965_s3 + $0x4d8] sm:$0xff] }
  0x61   : > { %818 = vmatpush.msra.mxu3 %v2883_v16  ;;  %917 = vmatpush.msra.mxu0 %v2922_v17  ;;  %v2948_v16 = vld [vmem:[%s5965_s3 + $0x520] sm:$0xff]  ;;  %v2965_v17 = vld [vmem:[%s5965_s3 + $0x5a8] sm:$0xff] }
  0x62   : > { %1051 = vmatpush.msra.mxu2 %v2972_v20  ;;  %953 = vmatpush.msra.mxu1 %v2933_v21  ;;  %v3006_v20 = vld [vmem:[%s5965_s3 + $0x6b0] sm:$0xff] }
  0x63   : > { %819 = vmatpush.msra.mxu3 %v2881_v22  ;;  %918 = vmatpush.msra.mxu0 %v2920_v18  ;;  %v4167_v21 = vld [vmem:[%s3647_s13 + $0x150] sm:$0xff]  ;;  %v2909_v18 = vld [vmem:[%s5965_s3 + $0x428] sm:$0xff] }
  0x64   : > { %1052 = vmatpush.msra.mxu2 %v2970_v23  ;;  %954 = vmatpush.msra.mxu1 %v2931_v19  ;;  %v4170_v22 = vld [vmem:[%s3647_s13 + $0x71] sm:$0xff] }
  0x65   : > { %820 = vmatpush.msra.mxu3 %v2879_v24  ;;  %919 = vmatpush.msra.mxu0 %v2918_v25  ;;  %v2946_v23 = vld [vmem:[%s5965_s3 + $0x510] sm:$0xff]  ;;  %v2963_v19 = vld [vmem:[%s5965_s3 + $0x598] sm:$0xff]  ;;  %v3004_v24 = vld [vmem:[%s5965_s3 + $0x6a0] sm:$0xff] }
  0x66   : > { %1053 = vmatpush.msra.mxu2 %v2968_v26  ;;  %955 = vmatpush.msra.mxu1 %v2929_v27  ;;  %v2907_v25 = vld [vmem:[%s5965_s3 + $0x418] sm:$0xff]  ;;  %v2944_v26 = vld [vmem:[%s5965_s3 + $0x500] sm:$0xff]  ;;  %v2961_v27 = vld [vmem:[%s5965_s3 + $0x588] sm:$0xff] }
  0x67   : > { %504 = vmatmul.f32.gmra.mxu1 %v3807_v34  ;;  %545 = vmatmul.f32.gmra.mxu2 %v3995_v28  ;;  %v2914_v34 = vld [vmem:[%s5965_s3 + $0x450] sm:$0xff] }
  0x68   : > { %574 = vmatmul.f32.gmra.mxu3 %v3810_v35  ;;  %656 = vmatmul.f32.gmra.mxu0 %v3998_v29  ;;  %v2925_v35 = vld [vmem:[%s5965_s3 + $0x4a8] sm:$0xff] }
  0x69   : > { %821 = vmatpush.msra.mxu3 %v2877_v30  ;;  %920 = vmatpush.msra.mxu0 %v2916_v31  ;;  %v2905_v30 = vld [vmem:[%s5965_s3 + $0x408] sm:$0xff]  ;;  %v4204_v31 = vld [vmem:[%s3647_s13 + $0x160] sm:$0xff] }
  0x6a   : > { %1054 = vmatpush.msra.mxu2 %v2966_v32  ;;  %956 = vmatpush.msra.mxu1 %v2927_v33  ;;  %v4207_v32 = vld [vmem:[%s3647_s13 + $0x1b0] sm:$0xff]  ;;  %v2959_v33 = vld [vmem:[%s5965_s3 + $0x578] sm:$0xff] }
  0x6b   : > { %822 = vmatpush.msra.mxu3 %v2875_v36  ;;  %921 = vmatpush.msra.mxu0 %v2914_v34  ;;  %v3000_v36 = vld [vmem:[%s5965_s3 + $0x680] sm:$0xff]  ;;  %v3054_v34 = vld [vmem:[%s5965_s3 + $0x7f0] sm:$0xff] }
  0x6c   : > { %1055 = vmatpush.msra.mxu2 %v2964_v37  ;;  %957 = vmatpush.msra.mxu1 %v2925_v35  ;;  %v2957_v37 = vld [vmem:[%s5965_s3 + $0x568] sm:$0xff]  ;;  %v2998_v35 = vld [vmem:[%s5965_s3 + $0x670] sm:$0xff] }
  0x6d   : > { %823 = vmatpush.msra.mxu3 %v2873_v38  ;;  %922 = vmatpush.msra.mxu0 %v2912_v39  ;;  %v3015_v38 = vld [vmem:[%s5965_s3 + $0x6f8] sm:$0xff]  ;;  %v3052_v39 = vld [vmem:[%s5965_s3 + $0x7e0] sm:$0xff] }
  0x6e   : > { %1056 = vmatpush.msra.mxu2 %v2962_v40  ;;  %958 = vmatpush.msra.mxu1 %v2923_v41  ;;  %v4235_v40 = vld [vmem:[%s3647_s13 + $0x170] sm:$0xff]  ;;  %v4238_v41 = vld [vmem:[%s3647_s13 + $0x1c0] sm:$0xff] }
  0x6f   : > { %688 = vmatmul.f32.vlgmr.msrb.gmra.mxu1 %v3860_v53  ;;  %787 = vmatmul.f32.vlgmr.msrb.gmra.mxu2 %v4041_v42  ;;  %v2958_v53 = vld [vmem:[%s5965_s3 + $0x570] sm:$0xff] }
  0x70   : > { %577 = vmatmul.f32.gmra.mxu3 %v3857_v52  ;;  %659 = vmatmul.f32.gmra.mxu0 %v4044_v43 }
  0x71   : > { %824 = vmatpush.msra.mxu3 %v2871_v44  ;;  %923 = vmatpush.msra.mxu0 %v2910_v45  ;;  %v3013_v44 = vld [vmem:[%s5965_s3 + $0x6e8] sm:$0xff]  ;;  %v3050_v45 = vld [vmem:[%s5965_s3 + $0x7d0] sm:$0xff] }
  0x72   : > { %1057 = vmatpush.msra.mxu2 %v2960_v46  ;;  %959 = vmatpush.msra.mxu1 %v2921_v51  ;;  %v2953_v46 = vld [vmem:[%s5965_s3 + $0x548] sm:$0xff]  ;;  %v3048_v51 = vld [vmem:[%s5965_s3 + $0x7c0] sm:$0xff] }
  0x73   : > { %825 = vmatpush.msra.mxu3 %v2869_v47  ;;  %924 = vmatpush.msra.mxu0 %v2908_v48  ;;  %v2994_v47 = vld [vmem:[%s5965_s3 + $0x650] sm:$0xff]  ;;  %v3011_v48 = vld [vmem:[%s5965_s3 + $0x6d8] sm:$0xff] }
  0x74   : > { %1058 = vmatpush.msra.mxu2 %v2958_v53  ;;  %960 = vmatpush.msra.mxu1 %v2919_v54  ;;  %v4269_v53 = vld [vmem:[%s3647_s13 + $0x180] sm:$0xff]  ;;  %v4272_v54 = vld [vmem:[%s3647_s13 + $0x1d0] sm:$0xff] }
  0x75   : > { %826 = vmatpush.msra.mxu3 %v2867_v55  ;;  %925 = vmatpush.msra.mxu0 %v2906_v56  ;;  %v2951_v55 = vld [vmem:[%s5965_s3 + $0x538] sm:$0xff]  ;;  %v2992_v56 = vld [vmem:[%s5965_s3 + $0x640] sm:$0xff] }
  0x76   : > { %1059 = vmatpush.msra.mxu2 %v2956_v57  ;;  %961 = vmatpush.msra.mxu1 %v2917_v62  ;;  %v3009_v57 = vld [vmem:[%s5965_s3 + $0x6c8] sm:$0xff]  ;;  %v4306_v62 = vld [vmem:[%s3647_s13 + $0x1e0] sm:$0xff] }
  0x77   : > { %691 = vmatmul.f32.gmra.mxu1 %v3906_v1  ;;  %790 = vmatmul.f32.gmra.mxu2 %v4084_v58  ;;  %v2973_v1 = vld [vmem:[%s5965_s3 + $0x5e8] sm:$0xff] }
  0x78   : > { %580 = vmatmul.f32.gmra.mxu3 %v3903_v0  ;;  %662 = vmatmul.f32.gmra.mxu0 %v4087_v49 }
  0x79   : > { %827 = vmatpush.msra.mxu3 %v2865_v59  ;;  %926 = vmatpush.msra.mxu0 %v2904_v50  ;;  %v2990_v59 = vld [vmem:[%s5965_s3 + $0x630] sm:$0xff]  ;;  %v3007_v50 = vld [vmem:[%s5965_s3 + $0x6b8] sm:$0xff] }
  0x7a   : > { %1060 = vmatpush.msra.mxu2 %v2954_v63  ;;  %962 = vmatpush.msra.mxu1 %v2915_v5  ;;  %v2947_v63 = vld [vmem:[%s5965_s3 + $0x518] sm:$0xff] }
  0x7b   : > { %1091 = vmatpush.msrb.mxu3 %v2975_v60  ;;  %1190 = vmatpush.msrb.mxu0 %v3014_v61  ;;  %v4300_v60 = vld [vmem:[%s3647_s13 + $0x190] sm:$0xff]  ;;  %v3044_v61 = vld [vmem:[%s5965_s3 + $0x7a0] sm:$0xff] }
  0x7c   : > { %1061 = vmatpush.msra.mxu2 %v2952_v6  ;;  %963 = vmatpush.msra.mxu1 %v2913_v10  ;;  %v3042_v6 = vld [vmem:[%s5965_s3 + $0x790] sm:$0xff]  ;;  %v3040_v10 = vld [vmem:[%s5965_s3 + $0x780] sm:$0xff] }
  0x7d   : > { %1092 = vmatpush.msrb.mxu3 %v2973_v1  ;;  %1191 = vmatpush.msrb.mxu0 %v3012_v4  ;;  %v2988_v1 = vld [vmem:[%s5965_s3 + $0x620] sm:$0xff]  ;;  %v3005_v4 = vld [vmem:[%s5965_s3 + $0x6a8] sm:$0xff] }
  0x7e   : > { %1062 = vmatpush.msra.mxu2 %v2950_v11  ;;  %v4342_v11 = vld [vmem:[%s3647_s13 + $0x1f0] sm:$0xff] }
  0x7f   : > { %1093 = vmatpush.msrb.mxu3 %v2971_v7  ;;  %1192 = vmatpush.msrb.mxu0 %v3010_v8  ;;  %v2945_v8 = vld [vmem:[%s5965_s3 + $0x508] sm:$0xff] }
  0x80   : > { %694 = vmatmul.f32.gmra.mxu1 %v3952_v15  ;;  %793 = vmatmul.f32.gmra.mxu2 %v4130_v2  ;;  %v2911_v15 = vld [vmem:[%s5965_s3 + $0x438] sm:$0xff] }
  0x81   : > { %583 = vmatmul.f32.gmra.mxu3 %v3949_v14  ;;  %665 = vmatmul.f32.gmra.mxu0 %v4133_v9 }
  0x82   : > { %1094 = vmatpush.msrb.mxu3 %v2969_v3  ;;  %1193 = vmatpush.msrb.mxu0 %v3008_v13  ;;  %v4336_v3 = vld [vmem:[%s3647_s13 + $0x121] sm:$0xff] }
  0x83   : > { %964 = vmatpush.msra.mxu1 %v2911_v15  ;;  %1063 = vmatpush.msra.mxu2 %v2948_v16  ;;  %v3001_v16 = vld [vmem:[%s5965_s3 + $0x688] sm:$0xff] }
  0x84   : > { %1095 = vmatpush.msrb.mxu3 %v2967_v12  ;;  %1194 = vmatpush.msrb.mxu0 %v3006_v20  ;;  %v2984_v12 = vld [vmem:[%s5965_s3 + $0x600] sm:$0xff]  ;;  %v3055_v20 = vld [vmem:[%s5965_s3 + $0x7f8] sm:$0xff] }
  0x85   : > { %965 = vmatpush.msra.mxu1 %v2909_v18  ;;  %1064 = vmatpush.msra.mxu2 %v2946_v23  ;;  %v4367_v23 = vld [vmem:[%s3647_s13 + $0x131] sm:$0xff] }
  0x86   : > { %1096 = vmatpush.msrb.mxu3 %v2965_v17  ;;  %1195 = vmatpush.msrb.mxu0 %v3004_v24  ;;  %v3038_v17 = vld [vmem:[%s5965_s3 + $0x770] sm:$0xff]  ;;  %v3036_v24 = vld [vmem:[%s5965_s3 + $0x760] sm:$0xff] }
  0x87   : > { %966 = vmatpush.msra.mxu1 %v2907_v25  ;;  %1065 = vmatpush.msra.mxu2 %v2944_v26  ;;  %v3053_v25 = vld [vmem:[%s5965_s3 + $0x7e8] sm:$0xff]  ;;  %v4379_v26 = vld [vmem:[%s3647_s13 + $0x200] sm:$0xff] }
  0x88   : > { %697 = vmatmul.f32.gmra.mxu1 %v3998_v29  ;;  %796 = vmatmul.f32.gmra.mxu2 %v4167_v21  ;;  %v3002_v29 = vld [vmem:[%s5965_s3 + $0x690] sm:$0xff] }
  0x89   : > { %586 = vmatmul.f32.gmra.mxu3 %v3995_v28  ;;  %668 = vmatmul.f32.gmra.mxu0 %v4170_v22 }
  0x8a   : > { %1097 = vmatpush.msrb.mxu3 %v2963_v19  ;;  %1196 = vmatpush.msrb.mxu0 %v3002_v29  ;;  %v2999_v19 = vld [vmem:[%s5965_s3 + $0x678] sm:$0xff] }
  0x8b   : > { %967 = vmatpush.msra.mxu1 %v2905_v30  ;;  %1330 = vmatpush.msrb.mxu2 %v3054_v34  ;;  %v2997_v30 = vld [vmem:[%s5965_s3 + $0x668] sm:$0xff]  ;;  %v3092_v34 = vld [vmem:[%s5965_s3 + $0x8e0] sm:$0xff] }
  0x8c   : > { %1098 = vmatpush.msrb.mxu3 %v2961_v27  ;;  %1197 = vmatpush.msrb.mxu0 %v3000_v36  ;;  %v3094_v27 = vld [vmem:[%s5965_s3 + $0x8f0] sm:$0xff] }
  0x8d   : > { %1231 = vmatpush.msrb.mxu1 %v3015_v38  ;;  %1331 = vmatpush.msrb.mxu2 %v3052_v39  ;;  %v4407_v38 = vld [vmem:[%s3647_s13 + $0x141] sm:$0xff]  ;;  %v2995_v39 = vld [vmem:[%s5965_s3 + $0x658] sm:$0xff] }
  0x8e   : > { %1099 = vmatpush.msrb.mxu3 %v2959_v33  ;;  %1198 = vmatpush.msrb.mxu0 %v2998_v35 }
  0x8f   : > { %1232 = vmatpush.msrb.mxu1 %v3013_v44  ;;  %1332 = vmatpush.msrb.mxu2 %v3050_v45  ;;  %v2993_v44 = vld [vmem:[%s5965_s3 + $0x648] sm:$0xff]  ;;  %v3030_v45 = vld [vmem:[%s5965_s3 + $0x730] sm:$0xff] }
  0x90   : > { %700 = vmatmul.f32.gmra.mxu1 %v4044_v43  ;;  %799 = vmatmul.f32.gmra.mxu2 %v4204_v31  ;;  %v2996_v43 = vld [vmem:[%s5965_s3 + $0x660] sm:$0xff] }
  0x91   : > { %828 = vmatmul.f32.vlgmr.msra.gmra.mxu3 %v4041_v42  ;;  %927 = vmatmul.f32.vlgmr.msra.gmra.mxu0 %v4207_v32  ;;  %v2955_v42 = vld [vmem:[%s5965_s3 + $0x558] sm:$0xff] }
  0x92   : > { %1100 = vmatpush.msrb.mxu3 %v2957_v37  ;;  %1199 = vmatpush.msrb.mxu0 %v2996_v43  ;;  %v3090_v43 = vld [vmem:[%s5965_s3 + $0x8d0] sm:$0xff] }
  0x93   : > { %1233 = vmatpush.msrb.mxu1 %v3011_v48  ;;  %1333 = vmatpush.msrb.mxu2 %v3048_v51  ;;  %v3088_v48 = vld [vmem:[%s5965_s3 + $0x8c0] sm:$0xff] }
  0x94   : > { %1101 = vmatpush.msrb.mxu3 %v2955_v42  ;;  %1200 = vmatpush.msrb.mxu0 %v2994_v47  ;;  %v4419_v42 = vld [vmem:[%s3647_s13 + $0x210] sm:$0xff] }
  0x95   : > { %1234 = vmatpush.msrb.mxu1 %v3009_v57  ;;  %v2991_v57 = vld [vmem:[%s5965_s3 + $0x638] sm:$0xff] }
  0x96   : > { %1102 = vmatpush.msrb.mxu3 %v2953_v46  ;;  %1201 = vmatpush.msrb.mxu0 %v2992_v56  ;;  %v3047_v46 = vld [vmem:[%s5965_s3 + $0x7b8] sm:$0xff] }
  0x97   : > { %1235 = vmatpush.msrb.mxu1 %v3007_v50  ;;  %v3086_v50 = vld [vmem:[%s5965_s3 + $0x8b0] sm:$0xff] }
  0x98   : > { %703 = vmatmul.f32.gmra.mxu1 %v4087_v49  ;;  %802 = vmatmul.f32.gmra.mxu2 %v4235_v40  ;;  %v2949_v49 = vld [vmem:[%s5965_s3 + $0x528] sm:$0xff] }
  0x99   : > { %831 = vmatmul.f32.gmra.mxu3 %v4084_v58  ;;  %930 = vmatmul.f32.gmra.mxu0 %v4238_v41  ;;  %v3046_v58 = vld [vmem:[%s5965_s3 + $0x7b0] sm:$0xff] }
  0x9a   : > { %1103 = vmatpush.msrb.mxu3 %v2951_v55  ;;  %1334 = vmatpush.msrb.mxu2 %v3046_v58  ;;  %v4445_v55 = vld [vmem:[%s3647_s13 + $0x151] sm:$0xff]  ;;  %v3028_v58 = vld [vmem:[%s5965_s3 + $0x720] sm:$0xff] }
  0x9b   : > { %1202 = vmatpush.msrb.mxu0 %v2990_v59  ;;  %1236 = vmatpush.msrb.mxu1 %v3005_v4  ;;  %v4459_v59 = vld [vmem:[%s3647_s13 + $0x220] sm:$0xff] }
  0x9c   : > { %1104 = vmatpush.msrb.mxu3 %v2949_v49  ;;  %1335 = vmatpush.msrb.mxu2 %v3044_v61  ;;  %v3045_v49 = vld [vmem:[%s5965_s3 + $0x7a8] sm:$0xff] }
  0x9d   : > { %1203 = vmatpush.msrb.mxu0 %v2988_v1  ;;  %v2989_v61 = vld [vmem:[%s5965_s3 + $0x628] sm:$0xff]  ;;  %v3043_v1 = vld [vmem:[%s5965_s3 + $0x798] sm:$0xff] }
  0x9e   : > { %1105 = vmatpush.msrb.mxu3 %v2947_v63  ;;  %1336 = vmatpush.msrb.mxu2 %v3042_v6  ;;  %v3026_v63 = vld [vmem:[%s5965_s3 + $0x710] sm:$0xff]  ;;  %v4485_v6 = vld [vmem:[%s3647_s13 + $0x161] sm:$0xff] }
  0xa0   : > { %706 = vmatmul.f32.gmra.mxu1 %v4133_v9  ;;  %805 = vmatmul.f32.gmra.mxu2 %v4269_v53  ;;  %v3003_v9 = vld [vmem:[%s5965_s3 + $0x698] sm:$0xff] }
  0xa1   : > { %834 = vmatmul.f32.gmra.mxu3 %v4130_v2  ;;  %933 = vmatmul.f32.gmra.mxu0 %v4272_v54  ;;  %v2986_v2 = vld [vmem:[%s5965_s3 + $0x610] sm:$0xff] }
  0xa2   : > { %1106 = vmatpush.msrb.mxu3 %v2945_v8  ;;  %1204 = vmatpush.msrb.mxu0 %v2986_v2  ;;  %v2987_v2 = vld [vmem:[%s5965_s3 + $0x618] sm:$0xff] }
  0xa3   : > { %1237 = vmatpush.msrb.mxu1 %v3003_v9  ;;  %1337 = vmatpush.msrb.mxu2 %v3040_v10  ;;  %v3024_v9 = vld [vmem:[%s5965_s3 + $0x700] sm:$0xff]  ;;  %v3041_v10 = vld [vmem:[%s5965_s3 + $0x788] sm:$0xff] }
  0xa4   : > { %1205 = vmatpush.msrb.mxu0 %v2984_v12  ;;  %1371 = vmatpush.msra.mxu3 %v3055_v20  ;;  %v3039_v20 = vld [vmem:[%s5965_s3 + $0x778] sm:$0xff] }
  0xa5   : > { %1238 = vmatpush.msrb.mxu1 %v3001_v16  ;;  %1338 = vmatpush.msrb.mxu2 %v3038_v17  ;;  %v2985_v16 = vld [vmem:[%s5965_s3 + $0x608] sm:$0xff]  ;;  %v4510_v17 = vld [vmem:[%s3647_s13 + $0x10] sm:$0xff] }
  0xa6   : > { %1372 = vmatpush.msra.mxu3 %v3053_v25  ;;  %1469 = vmatpush.msra.mxu0 %v3094_v27  ;;  %v4526_v25 = vld [vmem:[%s3647_s13 + $0x171] sm:$0xff] }
  0xa7   : > { %1239 = vmatpush.msrb.mxu1 %v2999_v19  ;;  %1339 = vmatpush.msrb.mxu2 %v3036_v24 }
  0xa8   : > { %709 = vmatmul.f32.gmra.mxu1 %v4170_v22  ;;  %808 = vmatmul.f32.gmra.mxu2 %v4300_v60 }
  0xa9   : > { %837 = vmatmul.f32.gmra.mxu3 %v4167_v21  ;;  %936 = vmatmul.f32.gmra.mxu0 %v4306_v62  ;;  %v443_v5 = vpop.f32.mrf.mxu0 }
  0xaa   : > { %v4324_v7 = vpop.f32.mrf.mxu1  ;;  %1240 = vmatpush.msrb.mxu1 %v2997_v30  ;;  %1470 = vmatpush.msra.mxu0 %v3092_v34  ;;  %v3035_v34 = vld [vmem:[%s5965_s3 + $0x758] sm:$0xff] }
  0xac   : > { %1241 = vmatpush.msrb.mxu1 %v2995_v39  ;;  %1471 = vmatpush.msra.mxu0 %v3090_v43  ;;  %v3076_v39 = vld [vmem:[%s5965_s3 + $0x860] sm:$0xff] }
  0xad   : > { %v4567_v43 = vld [vmem:[%s3647_s13 + $0x181] sm:$0xff] }
  0xae   : > { %1242 = vmatpush.msrb.mxu1 %v2993_v44  ;;  %1472 = vmatpush.msra.mxu0 %v3088_v48  ;;  %v3033_v48 = vld [vmem:[%s5965_s3 + $0x748] sm:$0xff] }
  0xaf   : > { %v4349_v13 = vpop.f32.mrf.mxu3 }
  0xb0   : > { %968 = vmatmul.f32.vlgmr.msra.gmra.mxu1 %v4207_v32  ;;  %1066 = vmatmul.f32.vlgmr.msra.gmra.mxu2 %v4336_v3  ;;  %v525_v15 = vpop.f32.mrf.mxu2  ;;  %v3051_v32 = vld [vmem:[%s5965_s3 + $0x7d8] sm:$0xff] }
  0xb1   : > { %840 = vmatmul.f32.gmra.mxu3 %v4204_v31  ;;  %939 = vmatmul.f32.gmra.mxu0 %v4342_v11  ;;  %v4362_v21 = vadd.f32 %v525_v15, %v443_v5  ;;  %v446_v22 = vpop.f32.mrf.mxu0  ;;  %v3034_v31 = vld [vmem:[%s5965_s3 + $0x750] sm:$0xff] }
  0xb2   : > { %1340 = vmatpush.msrb.mxu2 %v3034_v31  ;;  %1373 = vmatpush.msra.mxu3 %v3051_v32  ;;  %v3082_v15 = vld [vmem:[%s5965_s3 + $0x890] sm:$0xff]  ;;  %v3037_v31 = vld [vmem:[%s5965_s3 + $0x768] sm:$0xff] }
  0xb3   : > { %v4364_v18 = vpop.f32.mrf.mxu1  ;;  %1243 = vmatpush.msrb.mxu1 %v2991_v57  ;;  %1473 = vmatpush.msra.mxu0 %v3086_v50  ;;  %v3078_v32 = vld [vmem:[%s5965_s3 + $0x870] sm:$0xff]  ;;  %v3031_v57 = vld [vmem:[%s5965_s3 + $0x738] sm:$0xff] }
  0xb5   : > { %1244 = vmatpush.msrb.mxu1 %v2989_v61 }
  0xb7   : > { %1245 = vmatpush.msrb.mxu1 %v2987_v2  ;;  %v3070_v2 = vld [vmem:[%s5965_s3 + $0x830] sm:$0xff] }
  0xb8   : > { %971 = vmatmul.f32.gmra.mxu1 %v4238_v41  ;;  %1069 = vmatmul.f32.gmra.mxu2 %v4367_v23  ;;  %v4388_v29 = vpop.f32.mrf.mxu3  ;;  %v3049_v41 = vld [vmem:[%s5965_s3 + $0x7c8] sm:$0xff] }
  0xb9   : > { %843 = vmatmul.f32.gmra.mxu3 %v4235_v40  ;;  %942 = vmatmul.f32.gmra.mxu0 %v4379_v26  ;;  %v528_v33 = vpop.f32.mrf.mxu2  ;;  %v449_v36 = vpop.f32.mrf.mxu0  ;;  %v3032_v40 = vld [vmem:[%s5965_s3 + $0x740] sm:$0xff] }
  0xba   : > { %v4402_v37 = vadd.f32 %v528_v33, %v446_v22  ;;  %1341 = vmatpush.msrb.mxu2 %v3032_v40  ;;  %1374 = vmatpush.msra.mxu3 %v3049_v41  ;;  %v3080_v22 = vld [vmem:[%s5965_s3 + $0x880] sm:$0xff] }
  0xbb   : > { %v4404_v35 = vpop.f32.mrf.mxu1  ;;  %1246 = vmatpush.msrb.mxu1 %v2985_v16  ;;  %v3085_v16 = vld [vmem:[%s5965_s3 + $0x8a8] sm:$0xff] }
  0xbc   : > { %1342 = vmatpush.msrb.mxu2 %v3030_v45  ;;  %1375 = vmatpush.msra.mxu3 %v3047_v46  ;;  %v3113_v46 = vld [vmem:[%s5966_s4 + $0xa8] sm:$0xff] }
  0xbe   : > { %1343 = vmatpush.msrb.mxu2 %v3028_v58  ;;  %1376 = vmatpush.msra.mxu3 %v3045_v49  ;;  %v3072_v58 = vld [vmem:[%s5965_s3 + $0x840] sm:$0xff] }
  0xc0   : > { %974 = vmatmul.f32.gmra.mxu1 %v4272_v54  ;;  %1072 = vmatmul.f32.gmra.mxu2 %v4407_v38 }
  0xc1   : > { %846 = vmatmul.f32.gmra.mxu3 %v4269_v53  ;;  %945 = vmatmul.f32.gmra.mxu0 %v4419_v42  ;;  %v4437_v47 = vpop.f32.mrf.mxu3 }
  0xc2   : > { %v531_v51 = vpop.f32.mrf.mxu2  ;;  %v452_v54 = vpop.f32.mrf.mxu0  ;;  %1344 = vmatpush.msrb.mxu2 %v3026_v63  ;;  %1377 = vmatpush.msra.mxu3 %v3043_v1  ;;  %v4611_v63 = vld [vmem:[%s3647_s13 + $0x191] sm:$0xff] }
  0xc3   : > { %v4442_v53 = vadd.f32 %v531_v51, %v449_v36  ;;  %v4551_v36 = vld [vmem:[%s3647_s13 + $0x20] sm:$0xff] }
  0xc4   : > { %v4447_v56 = vpop.f32.mrf.mxu1  ;;  %1345 = vmatpush.msrb.mxu2 %v3024_v9  ;;  %1378 = vmatpush.msra.mxu3 %v3041_v10  ;;  %v3027_v10 = vld [vmem:[%s5965_s3 + $0x718] sm:$0xff] }
  0xc6   : > { %1379 = vmatpush.msra.mxu3 %v3039_v20  ;;  %v4649_v20 = vld [vmem:[%s3647_s13 + $0xa0] sm:$0xff] }
  0xc8   : > { %977 = vmatmul.f32.gmra.mxu1 %v4306_v62  ;;  %1075 = vmatmul.f32.gmra.mxu2 %v4445_v55 }
  0xc9   : > { %849 = vmatmul.f32.gmra.mxu3 %v4300_v60  ;;  %948 = vmatmul.f32.gmra.mxu0 %v4459_v59  ;;  %v4477_v4 = vpop.f32.mrf.mxu3  ;;  %v3084_v60 = vld [vmem:[%s5965_s3 + $0x8a0] sm:$0xff] }
  0xca   : > { %v534_v62 = vpop.f32.mrf.mxu2  ;;  %1474 = vmatpush.msra.mxu0 %v3084_v60  ;;  %1380 = vmatpush.msra.mxu3 %v3037_v31 }
  0xcb   : > { %v4482_v5 = vadd.f32 %v534_v62, %v452_v54  ;;  %v4592_v54 = vld [vmem:[%s3647_s13 + $0x30] sm:$0xff]  ;;  %v3029_v62 = vld [vmem:[%s5965_s3 + $0x728] sm:$0xff] }
  0xcc   : > { %v4487_v8 = vpop.f32.mrf.mxu1  ;;  %1475 = vmatpush.msra.mxu0 %v3082_v15  ;;  %1381 = vmatpush.msra.mxu3 %v3035_v34  ;;  %v3068_v15 = vld [vmem:[%s5965_s3 + $0x820] sm:$0xff]  ;;  %v1635_v34 = vld [vmem:[%s5966_s4 + $0x58] sm:$0xff] }
  0xcd   : > { %v4498_v12 = vpop.f32.mrf.mxu0 }
  0xce   : > { %1476 = vmatpush.msra.mxu0 %v3080_v22  ;;  %1382 = vmatpush.msra.mxu3 %v3033_v48  ;;  %v1634_v48 = vld [vmem:[%s5966_s4 + $0x50] sm:$0xff] }
  0xd0   : > { %980 = vmatmul.f32.gmra.mxu1 %v4342_v11  ;;  %1078 = vmatmul.f32.gmra.mxu2 %v4485_v6  ;;  %v3115_v11 = vld [vmem:[%s5966_s4 + $0xb8] sm:$0xff] }
  0xd1   : > { %1107 = vmatmul.f32.vlgmr.msrb.gmra.mxu3 %v4336_v3  ;;  %1206 = vmatmul.f32.vlgmr.msrb.gmra.mxu0 %v4510_v17 }
  0xd2   : > { %v537_v19 = vpop.f32.mrf.mxu2  ;;  %1687 = vmatpush.msra.mxu2 %v3115_v11  ;;  %1477 = vmatpush.msra.mxu0 %v3078_v32  ;;  %v3064_v32 = vld [vmem:[%s5965_s3 + $0x800] sm:$0xff] }
  0xd3   : > { %v4523_v3 = vadd.f32 %v537_v19, %v4349_v13  ;;  %v566_v24 = vpop.f32.mrf.mxu3  ;;  %v3095_v13 = vld [vmem:[%s5965_s3 + $0x8f8] sm:$0xff]  ;;  %1383 = vmatpush.msra.mxu3 %v3031_v57  ;;  %v3110_v19 = vld [vmem:[%s5966_s4 + $0x90] sm:$0xff] }
  0xd4   : > { %v4529_v27 = vadd.f32 %v566_v24, %v4324_v7  ;;  %v4531_v30 = vpop.f32.mrf.mxu1  ;;  %1510 = vmatpush.msra.mxu1 %v3095_v13  ;;  %v3114_v7 = vld [vmem:[%s5966_s4 + $0xb0] sm:$0xff]  ;;  %1478 = vmatpush.msra.mxu0 %v3076_v39  ;;  %v3025_v24 = vld [vmem:[%s5965_s3 + $0x708] sm:$0xff] }
  0xd5   : > { %v4542_v33 = vpop.f32.mrf.mxu0  ;;  %1688 = vmatpush.msra.mxu2 %v3114_v7  ;;  %1384 = vmatpush.msra.mxu3 %v3029_v62  ;;  %v3081_v13 = vld [vmem:[%s5965_s3 + $0x888] sm:$0xff] }
  0xd6   : > { %v3109_v7 = vld [vmem:[%s5966_s4 + $0x88] sm:$0xff]  ;;  %v715_v57 = vadd.f32 %v4542_v33, %v4402_v37  ;;  %v3075_v33 = vld [vmem:[%s5965_s3 + $0x858] sm:$0xff] }
  0xd7   : > { %1689 = vmatpush.msra.mxu2 %v3113_v46  ;;  %1385 = vmatpush.msra.mxu3 %v3027_v10  ;;  %v3079_v46 = vld [vmem:[%s5965_s3 + $0x878] sm:$0xff]  ;;  %v1633_v37 = vld [vmem:[%s5966_s4 + $0x48] sm:$0xff] }
  0xd8   : > { %983 = vmatmul.f32.gmra.mxu1 %v4379_v26  ;;  %1081 = vmatmul.f32.gmra.mxu2 %v4526_v25  ;;  %v3093_v26 = vld [vmem:[%s5965_s3 + $0x8e8] sm:$0xff] }
  0xd9   : > { %1110 = vmatmul.f32.gmra.mxu3 %v4367_v23  ;;  %1209 = vmatmul.f32.gmra.mxu0 %v4551_v36  ;;  %v3073_v62 = vld [vmem:[%s5965_s3 + $0x848] sm:$0xff] }
  0xda   : > { %v540_v40 = vpop.f32.mrf.mxu2  ;;  %1511 = vmatpush.msra.mxu1 %v3093_v26  ;;  %1386 = vmatpush.msra.mxu3 %v3025_v24  ;;  %v3433_v24 = vld [vmem:[%s3647_s13 + $0x40] sm:$0xff] }
  0xdb   : > { %v4564_v23 = vadd.f32 %v540_v40, %v4388_v29  ;;  %v569_v41 = vpop.f32.mrf.mxu3  ;;  %v3074_v29 = vld [vmem:[%s5965_s3 + $0x850] sm:$0xff] }
  0xdc   : > { %v4570_v44 = vadd.f32 %v569_v41, %v4364_v18  ;;  %v4572_v45 = vpop.f32.mrf.mxu1  ;;  %v3091_v18 = vld [vmem:[%s5965_s3 + $0x8d8] sm:$0xff]  ;;  %1479 = vmatpush.msra.mxu0 %v3074_v29  ;;  %1752 = vmatpush.msrb.mxu3 %v1635_v34  ;;  %v4696_v41 = vld [vmem:[%s3647_s13 + $0xb0] sm:$0xff]  ;;  %v3077_v29 = vld [vmem:[%s5965_s3 + $0x868] sm:$0xff] }
  0xdd   : > { %v4583_v51 = vpop.f32.mrf.mxu0  ;;  %1512 = vmatpush.msra.mxu1 %v3091_v18  ;;  %v3142_v18 = vld [vmem:[%s5966_s4 + $0x110] sm:$0xff]  ;;  %v4805_v34 = vld [vmem:[%s3647_s13 + $0xe0] sm:$0xff] }
  0xde   : > { %1480 = vmatpush.msra.mxu0 %v3072_v58  ;;  %1753 = vmatpush.msrb.mxu3 %v1634_v48  ;;  %v3434_v48 = vld [vmem:[%s3647_s13 + $0x50] sm:$0xff] }
  0xe0   : > { %986 = vmatmul.f32.gmra.mxu1 %v4419_v42  ;;  %1084 = vmatmul.f32.gmra.mxu2 %v4567_v43  ;;  %v3089_v42 = vld [vmem:[%s5965_s3 + $0x8c8] sm:$0xff] }
  0xe1   : > { %1113 = vmatmul.f32.gmra.mxu3 %v4407_v38  ;;  %1212 = vmatmul.f32.gmra.mxu0 %v4592_v54  ;;  %v3112_v38 = vld [vmem:[%s5966_s4 + $0xa0] sm:$0xff] }
  0xe2   : > { %v543_v49 = vpop.f32.mrf.mxu2  ;;  %1513 = vmatpush.msra.mxu1 %v3089_v42  ;;  %1690 = vmatpush.msra.mxu2 %v3112_v38 }
  0xe3   : > { %v4608_v50 = vadd.f32 %v543_v49, %v4437_v47  ;;  %v572_v61 = vpop.f32.mrf.mxu3  ;;  %v3087_v47 = vld [vmem:[%s5965_s3 + $0x8b8] sm:$0xff]  ;;  %1481 = vmatpush.msra.mxu0 %v3070_v2  ;;  %1754 = vmatpush.msrb.mxu3 %v1633_v37  ;;  %v3106_v2 = vld [vmem:[%s5966_s4 + $0x70] sm:$0xff] }
  0xe4   : > { %v4614_v1 = vadd.f32 %v572_v61, %v4404_v35  ;;  %v4616_v60 = vpop.f32.mrf.mxu1  ;;  %1514 = vmatpush.msra.mxu1 %v3087_v47  ;;  %v3111_v35 = vld [vmem:[%s5966_s4 + $0x98] sm:$0xff]  ;;  %v717_v47 = vadd.f32 %v4583_v51, %v4442_v53  ;;  %v3140_v51 = vld [vmem:[%s5966_s4 + $0x100] sm:$0xff] }
  0xe5   : > { %v4627_v9 = vpop.f32.mrf.mxu0  ;;  %1691 = vmatpush.msra.mxu2 %v3111_v35  ;;  %1482 = vmatpush.msra.mxu0 %v3068_v15  ;;  %v3107_v49 = vld [vmem:[%s5966_s4 + $0x78] sm:$0xff] }
  0xe6   : > { %1515 = vmatpush.msra.mxu1 %v3085_v16  ;;  %v4771_v16 = vld [vmem:[%s3647_s13 + $0xd0] sm:$0xff]  ;;  %v3071_v53 = vld [vmem:[%s5965_s3 + $0x838] sm:$0xff] }
  0xe7   : > { %1692 = vmatpush.msra.mxu2 %v3110_v19  ;;  %v1631_v19 = vld [vmem:[%s5966_s4 + $0x38] sm:$0xff] }
  0xe8   : > { %989 = vmatmul.f32.gmra.mxu1 %v4459_v59  ;;  %1087 = vmatmul.f32.gmra.mxu2 %v4611_v63 }
  0xe9   : > { %1116 = vmatmul.f32.gmra.mxu3 %v4445_v55  ;;  %1215 = vmatmul.f32.gmra.mxu0 %v3857_v52 }
  0xea   : > { %v546_v59 = vpop.f32.mrf.mxu2  ;;  %1693 = vmatpush.msra.mxu2 %v3109_v7 }
  0xeb   : > { %v4646_v55 = vadd.f32 %v546_v59, %v4477_v4  ;;  %v575_v52 = vpop.f32.mrf.mxu3  ;;  %v3066_v4 = vld [vmem:[%s5965_s3 + $0x810] sm:$0xff] }
  0xec   : > { %v4652_v22 = vadd.f32 %v575_v52, %v4447_v56  ;;  %v4654_v11 = vpop.f32.mrf.mxu1  ;;  %v3083_v56 = vld [vmem:[%s5965_s3 + $0x898] sm:$0xff]  ;;  %1483 = vmatpush.msra.mxu0 %v3066_v4  ;;  %v4782_v52 = vld [vmem:[%s3647_s13 + $0x80] sm:$0xff]  ;;  %v3069_v4 = vld [vmem:[%s5965_s3 + $0x828] sm:$0xff] }
  0xed   : > { %v4665_v31 = vpop.f32.mrf.mxu0  ;;  %1516 = vmatpush.msra.mxu1 %v3083_v56  ;;  %v3139_v56 = vld [vmem:[%s5966_s4 + $0xf8] sm:$0xff] }
  0xee   : > { %1484 = vmatpush.msra.mxu0 %v3064_v32  ;;  %v719_v32 = vadd.f32 %v4627_v9, %v4482_v5  ;;  %v3104_v5 = vld [vmem:[%s5966_s4 + $0x60] sm:$0xff]  ;;  %v1630_v9 = vld [vmem:[%s5966_s4 + $0x30] sm:$0xff] }
  0xef   : > { %1517 = vmatpush.msra.mxu1 %v3081_v13 }
  0xf0   : > { %1247 = vmatmul.f32.vlgmr.msrb.gmra.mxu1 %v4510_v17  ;;  %1346 = vmatmul.f32.vlgmr.msrb.gmra.mxu2 %v4649_v20  ;;  %v713_v17 = vadd.f32 %v4498_v12, %v4362_v21  ;;  %v3143_v21 = vld [vmem:[%s5966_s4 + $0x118] sm:$0xff] }
  0xf1   : > { %1119 = vmatmul.f32.gmra.mxu3 %v4485_v6  ;;  %1218 = vmatmul.f32.gmra.mxu0 %v3903_v0 }
  0xf2   : > { %v788_v6 = vpop.f32.mrf.mxu2  ;;  %1518 = vmatpush.msra.mxu1 %v3079_v46  ;;  %1838 = vmatpush.msrb.mxu0 %v3143_v21  ;;  %v4824_v21 = vld [vmem:[%s3647_s13 + $0x11] sm:$0xff] }
  0xf3   : > { %v578_v0 = vpop.f32.mrf.mxu3  ;;  %v4688_v39 = vadd.f32 %v788_v6, %v713_v17 }
  0xf4   : > { %v4691_v26 = vadd.f32 %v578_v0, %v4487_v8  ;;  %v4693_v40 = vpop.f32.mrf.mxu1  ;;  %v3108_v8 = vld [vmem:[%s5966_s4 + $0x80] sm:$0xff]  ;;  %1519 = vmatpush.msra.mxu1 %v3077_v29  ;;  %1839 = vmatpush.msrb.mxu0 %v3142_v18  ;;  %v3067_v0 = vld [vmem:[%s5965_s3 + $0x818] sm:$0xff]  ;;  %v1629_v29 = vld [vmem:[%s5966_s4 + $0x28] sm:$0xff] }
  0xf5   : > { %v4704_v12 = vpop.f32.mrf.mxu0  ;;  %1694 = vmatpush.msra.mxu2 %v3108_v8  ;;  %v3138_v8 = vld [vmem:[%s5966_s4 + $0xf0] sm:$0xff]  ;;  %v3199_v18 = vld [vmem:[%s5966_s4 + $0x1d8] sm:$0xff] }
  0xf6   : > { %1520 = vmatpush.msra.mxu1 %v3075_v33 }
  0xf7   : > { %1695 = vmatpush.msra.mxu2 %v3107_v49 }
  0xf8   : > { %1250 = vmatmul.f32.gmra.mxu1 %v4551_v36  ;;  %1349 = vmatmul.f32.gmra.mxu2 %v4696_v41 }
  0xf9   : > { %1122 = vmatmul.f32.gmra.mxu3 %v4526_v25  ;;  %1221 = vmatmul.f32.gmra.mxu0 %v3949_v14  ;;  %v4727_v14 = vld [vmem:[%s3647_s13 + $0xc0] sm:$0xff] }
  0xfa   : > { %v791_v36 = vpop.f32.mrf.mxu2  ;;  %1521 = vmatpush.msra.mxu1 %v3073_v62  ;;  %1696 = vmatpush.msra.mxu2 %v3106_v2  ;;  %v1628_v62 = vld [vmem:[%s5966_s4 + $0x20] sm:$0xff]  ;;  %v3198_v2 = vld [vmem:[%s5966_s4 + $0x1d0] sm:$0xff] }
  0xfb   : > { %v581_v58 = vpop.f32.mrf.mxu3  ;;  %v4724_v25 = vadd.f32 %v791_v36, %v715_v57  ;;  %v721_v57 = vadd.f32 %v4665_v31, %v4523_v3  ;;  %v714_v36 = vadd.f32 %v4654_v11, %v4529_v27  ;;  %v3137_v3 = vld [vmem:[%s5966_s4 + $0xe8] sm:$0xff]  ;;  %v3171_v27 = vld [vmem:[%s5966_s4 + $0x178] sm:$0xff] }
  0xfc   : > { %v4730_v42 = vadd.f32 %v581_v58, %v4531_v30  ;;  %v3141_v30 = vld [vmem:[%s5966_s4 + $0x108] sm:$0xff]  ;;  %1522 = vmatpush.msra.mxu1 %v3071_v53  ;;  %v716_v53 = vadd.f32 %v4693_v40, %v4570_v44 }
  0xfd   : > { %v4732_v38 = vpop.f32.mrf.mxu1  ;;  %1840 = vmatpush.msrb.mxu0 %v3141_v30  ;;  %v4853_v30 = vld [vmem:[%s3647_s13 + $0xf0] sm:$0xff]  ;;  %v4864_v31 = vld [vmem:[%s3647_s13 + $0x21] sm:$0xff] }
  0xfe   : > { %v4743_v61 = vpop.f32.mrf.mxu0  ;;  %1523 = vmatpush.msra.mxu1 %v3069_v4  ;;  %v4893_v4 = vld [vmem:[%s3647_s13 + $0x100] sm:$0xff]  ;;  %v3197_v44 = vld [vmem:[%s5966_s4 + $0x1c8] sm:$0xff] }
  0xff   : > { %1841 = vmatpush.msrb.mxu0 %v3140_v51 }
 0x100   : > { %1253 = vmatmul.f32.gmra.mxu1 %v4592_v54  ;;  %1352 = vmatmul.f32.gmra.mxu2 %v4727_v14  ;;  %v1632_v54 = vld [vmem:[%s5966_s4 + $0x40] sm:$0xff] }
 0x101   : > { %1125 = vmatmul.f32.gmra.mxu3 %v4567_v43  ;;  %1224 = vmatmul.f32.gmra.mxu0 %v3995_v28 }
 0x102   : > { %1755 = vmatpush.msrb.mxu3 %v1632_v54  ;;  %1842 = vmatpush.msrb.mxu0 %v3139_v56  ;;  %v3435_v54 = vld [vmem:[%s3647_s13 + $0x60] sm:$0xff]  ;;  %v3135_v56 = vld [vmem:[%s5966_s4 + $0xd8] sm:$0xff] }
 0x103   : > { %v794_v43 = vpop.f32.mrf.mxu2  ;;  %1524 = vmatpush.msra.mxu1 %v3067_v0  ;;  %v718_v0 = vadd.f32 %v4732_v38, %v4614_v1  ;;  %v3168_v1 = vld [vmem:[%s5966_s4 + $0x160] sm:$0xff] }
 0x104   : > { %v584_v28 = vpop.f32.mrf.mxu3  ;;  %v4763_v35 = vadd.f32 %v794_v43, %v717_v47  ;;  %1756 = vmatpush.msrb.mxu3 %v1631_v19  ;;  %1843 = vmatpush.msrb.mxu0 %v3138_v8  ;;  %v3136_v47 = vld [vmem:[%s5966_s4 + $0xe0] sm:$0xff]  ;;  %v3170_v43 = vld [vmem:[%s5966_s4 + $0x170] sm:$0xff] }
 0x105   : > { %v4766_v10 = vadd.f32 %v584_v28, %v4572_v45  ;;  %v4768_v15 = vpop.f32.mrf.mxu1  ;;  %v3105_v45 = vld [vmem:[%s5966_s4 + $0x68] sm:$0xff]  ;;  %v723_v28 = vadd.f32 %v4704_v12, %v4564_v23  ;;  %v1627_v23 = vld [vmem:[%s5966_s4 + $0x18] sm:$0xff] }
 0x106   : > { %v4779_v59 = vpop.f32.mrf.mxu0  ;;  %1697 = vmatpush.msra.mxu2 %v3105_v45  ;;  %1757 = vmatpush.msrb.mxu3 %v1630_v9  ;;  %v4904_v12 = vld [vmem:[%s3647_s13 + $0x31] sm:$0xff]  ;;  %v725_v9 = vadd.f32 %v4743_v61, %v4608_v50  ;;  %v4944_v61 = vld [vmem:[%s3647_s13 + $0x41] sm:$0xff] }
 0x107   : > { %1844 = vmatpush.msrb.mxu0 %v3137_v3  ;;  %v3134_v50 = vld [vmem:[%s5966_s4 + $0xd0] sm:$0xff]  ;;  %v727_v3 = vadd.f32 %v4779_v59, %v4646_v55 }
 0x108   : > { %1256 = vmatmul.f32.gmra.mxu1 %v3433_v24  ;;  %1355 = vmatmul.f32.gmra.mxu2 %v4771_v16  ;;  %v3096_v59 = vld [vmem:[%s4968_s21 + $0x90] sm:$0xff] }
 0x109   : > { %1128 = vmatmul.f32.gmra.mxu3 %v4611_v63  ;;  %1227 = vmatmul.f32.gmra.mxu0 %v4782_v52 }
 0x10a   : > { %1698 = vmatpush.msra.mxu2 %v3104_v5  ;;  %1758 = vmatpush.msrb.mxu3 %v1629_v29  ;;  %v3196_v5 = vld [vmem:[%s5966_s4 + $0x1c0] sm:$0xff] }
 0x10b   : > { %v797_v13 = vpop.f32.mrf.mxu2  ;;  %1845 = vmatpush.msrb.mxu0 %v3136_v47  ;;  %v4988_v47 = vld [vmem:[%s3647_s13 + $0x51] sm:$0xff] }
 0x10c   : > { %v587_v63 = vpop.f32.mrf.mxu3  ;;  %v4802_v7 = vadd.f32 %v797_v13, %v719_v32  ;;  %2028 = vmatpush.msrb.mxu2 %v3199_v18  ;;  %1759 = vmatpush.msrb.mxu3 %v1628_v62  ;;  %v3169_v32 = vld [vmem:[%s5966_s4 + $0x168] sm:$0xff]  ;;  %v3436_v13 = vld [vmem:[%s3647_s13 + $0x70] sm:$0xff] }
 0x10d   : > { %v4808_v17 = vadd.f32 %v587_v63, %v4616_v60  ;;  %v4810_v6 = vpop.f32.mrf.mxu1  ;;  %v3065_v60 = vld [vmem:[%s5965_s3 + $0x808] sm:$0xff]  ;;  %v1626_v63 = vld [vmem:[%s5966_s4 + $0x10] sm:$0xff]  ;;  %1846 = vmatpush.msrb.mxu0 %v3135_v56 }
 0x10e   : > { %v4821_v46 = vpop.f32.mrf.mxu0  ;;  %1525 = vmatpush.msra.mxu1 %v3065_v60  ;;  %2029 = vmatpush.msrb.mxu2 %v3198_v2  ;;  %v4933_v18 = vld [vmem:[%s3647_s13 + $0x110] sm:$0xff] }
 0x10f   : > { %1760 = vmatpush.msrb.mxu3 %v1627_v23  ;;  %1847 = vmatpush.msrb.mxu0 %v3134_v50 }
 0x110   : > { %1259 = vmatmul.f32.gmra.mxu1 %v3434_v48  ;;  %1358 = vmatmul.f32.gmra.mxu2 %v4805_v34 }
 0x111   : > { %1387 = vmatmul.f32.vlgmr.msra.gmra.mxu3 %v4649_v20  ;;  %1485 = vmatmul.f32.vlgmr.msra.gmra.mxu0 %v4824_v21 }
 0x112   : > { %1933 = vmatpush.msrb.mxu1 %v3171_v27  ;;  %2030 = vmatpush.msrb.mxu2 %v3197_v44 }
 0x113   : > { %v800_v20 = vpop.f32.mrf.mxu2  ;;  %1761 = vmatpush.msrb.mxu3 %v1626_v63  ;;  %v3192_v63 = vld [vmem:[%s5966_s4 + $0x1a0] sm:$0xff] }
 0x114   : > { %v4846_v58 = vadd.f32 %v800_v20, %v721_v57  ;;  %v829_v49 = vpop.f32.mrf.mxu3  ;;  %1934 = vmatpush.msrb.mxu1 %v3170_v43  ;;  %2031 = vmatpush.msrb.mxu2 %v3196_v5  ;;  %v1625_v57 = vld [vmem:[%s5966_s4 + $0x8] sm:$0xff]  ;;  %v3132_v43 = vld [vmem:[%s5966_s4 + $0xc0] sm:$0xff]  ;;  %v3226_v5 = vld [vmem:[%s5966_s4 + $0x230] sm:$0xff] }
 0x115   : > { %v4848_v37 = vadd.f32 %v829_v49, %v714_v36  ;;  %v4850_v33 = vpop.f32.mrf.mxu1  ;;  %v3195_v36 = vld [vmem:[%s5966_s4 + $0x1b8] sm:$0xff]  ;;  %v3133_v20 = vld [vmem:[%s5966_s4 + $0xc8] sm:$0xff]  ;;  %1762 = vmatpush.msrb.mxu3 %v1625_v57 }
 0x116   : > { %v4861_v11 = vpop.f32.mrf.mxu0  ;;  %1935 = vmatpush.msrb.mxu1 %v3169_v32  ;;  %v3167_v49 = vld [vmem:[%s5966_s4 + $0x158] sm:$0xff]  ;;  %2032 = vmatpush.msrb.mxu2 %v3195_v36  ;;  %v5058_v36 = vld [vmem:[%s4968_s21 + $0xb0] sm:$0xff] }
 0x117   : > { %1848 = vmatpush.msrb.mxu0 %v3133_v20  ;;  %v3163_v20 = vld [vmem:[%s5966_s4 + $0x138] sm:$0xff] }
 0x118   : > { %1262 = vmatmul.f32.gmra.mxu1 %v3435_v54  ;;  %1361 = vmatmul.f32.gmra.mxu2 %v4853_v30  ;;  %v1624_v54 = vld [vmem:[%s5966_s4] sm:$0xff] }
 0x119   : > { %1390 = vmatmul.f32.gmra.mxu3 %v4696_v41  ;;  %1488 = vmatmul.f32.gmra.mxu0 %v4864_v31 }
 0x11a   : > { %1936 = vmatpush.msrb.mxu1 %v3168_v1  ;;  %1763 = vmatpush.msrb.mxu3 %v1624_v54 }
 0x11b   : > { %v803_v41 = vpop.f32.mrf.mxu2  ;;  %1849 = vmatpush.msrb.mxu0 %v3132_v43  ;;  %v5099_v43 = vld [vmem:[%s4968_s21 + $0xc0] sm:$0xff] }
 0x11c   : > { %v4886_v51 = vadd.f32 %v803_v41, %v723_v28  ;;  %v832_v45 = vpop.f32.mrf.mxu3  ;;  %1937 = vmatpush.msrb.mxu1 %v3167_v49  ;;  %v3166_v28 = vld [vmem:[%s5966_s4 + $0x150] sm:$0xff]  ;;  %v3227_v41 = vld [vmem:[%s5966_s4 + $0x238] sm:$0xff]  ;;  %v3253_v49 = vld [vmem:[%s5966_s4 + $0x288] sm:$0xff] }
 0x11d   : > { %v4888_v19 = vadd.f32 %v832_v45, %v716_v53  ;;  %v4890_v24 = vpop.f32.mrf.mxu1  ;;  %v3193_v53 = vld [vmem:[%s5966_s4 + $0x1a8] sm:$0xff]  ;;  %v993_v45 = vadd.f32 %v4821_v46, %v4688_v39  ;;  %2122 = vmatpush.msra.mxu3 %v3227_v41 }
 0x11e   : > { %v4901_v40 = vpop.f32.mrf.mxu0  ;;  %1938 = vmatpush.msrb.mxu1 %v3166_v28  ;;  %v3165_v39 = vld [vmem:[%s5966_s4 + $0x148] sm:$0xff] }
 0x11f   : > { %v5028_v46 = vld [vmem:[%s3647_s13 + $0x61] sm:$0xff]  ;;  %2123 = vmatpush.msra.mxu3 %v3226_v5 }
 0x120   : > { %1265 = vmatmul.f32.gmra.mxu1 %v3436_v13  ;;  %1364 = vmatmul.f32.gmra.mxu2 %v4893_v4  ;;  %v5017_v13 = vld [vmem:[%s4968_s21 + $0xa0] sm:$0xff]  ;;  %v3189_v28 = vld [vmem:[%s5966_s4 + $0x188] sm:$0xff] }
 0x121   : > { %1393 = vmatmul.f32.gmra.mxu3 %v4727_v14  ;;  %1491 = vmatmul.f32.gmra.mxu0 %v4904_v12  ;;  %v3161_v41 = vld [vmem:[%s5966_s4 + $0x128] sm:$0xff] }
 0x122   : > { %1939 = vmatpush.msrb.mxu1 %v3165_v39  ;;  %v1789_v5 = vld [vmem:[%s4968_s21 + $0x1] sm:$0xff] }
 0x123   : > { %v806_v14 = vpop.f32.mrf.mxu2 }
 0x124   : > { %v4926_v60 = vadd.f32 %v806_v14, %v725_v9  ;;  %v835_v8 = vpop.f32.mrf.mxu3  ;;  %v3164_v9 = vld [vmem:[%s5966_s4 + $0x140] sm:$0xff]  ;;  %v724_v14 = vadd.f32 %v4850_v33, %v4730_v42  ;;  %v3225_v42 = vld [vmem:[%s5966_s4 + $0x228] sm:$0xff] }
 0x125   : > { %v4928_v48 = vadd.f32 %v835_v8, %v718_v0  ;;  %v4930_v29 = vpop.f32.mrf.mxu1  ;;  %v3254_v0 = vld [vmem:[%s5966_s4 + $0x290] sm:$0xff]  ;;  %1940 = vmatpush.msrb.mxu1 %v3164_v9  ;;  %2124 = vmatpush.msra.mxu3 %v3225_v42  ;;  %v3160_v9 = vld [vmem:[%s5966_s4 + $0x120] sm:$0xff] }
 0x126   : > { %v4941_v38 = vpop.f32.mrf.mxu0 }
 0x127   : > { %1941 = vmatpush.msrb.mxu1 %v3163_v20 }
 0x128   : > { %1268 = vmatmul.f32.gmra.mxu1 %v4782_v52  ;;  %1367 = vmatmul.f32.gmra.mxu2 %v4933_v18 }
 0x129   : > { %1396 = vmatmul.f32.gmra.mxu3 %v4771_v16  ;;  %1494 = vmatmul.f32.gmra.mxu0 %v4944_v61  ;;  %v720_v16 = vadd.f32 %v4768_v15, %v4652_v22  ;;  %v3194_v22 = vld [vmem:[%s5966_s4 + $0x1b0] sm:$0xff] }
 0x12a   : > { %2033 = vmatpush.msrb.mxu2 %v3194_v22 }
 0x12b   : > { %v809_v52 = vpop.f32.mrf.mxu2 }
 0x12c   : > { %v4972_v27 = vadd.f32 %v809_v52, %v727_v3  ;;  %v838_v62 = vpop.f32.mrf.mxu3  ;;  %2034 = vmatpush.msrb.mxu2 %v3193_v53  ;;  %v3190_v3 = vld [vmem:[%s5966_s4 + $0x190] sm:$0xff]  ;;  %v726_v52 = vadd.f32 %v4890_v24, %v4766_v10  ;;  %v3252_v10 = vld [vmem:[%s5966_s4 + $0x280] sm:$0xff]  ;;  %v3223_v53 = vld [vmem:[%s5966_s4 + $0x218] sm:$0xff] }
 0x12d   : > { %v4974_v2 = vadd.f32 %v838_v62, %v720_v16  ;;  %v4976_v55 = vpop.f32.mrf.mxu1  ;;  %v3224_v16 = vld [vmem:[%s5966_s4 + $0x220] sm:$0xff] }
 0x12e   : > { %v4985_v15 = vpop.f32.mrf.mxu0  ;;  %2035 = vmatpush.msrb.mxu2 %v3192_v63  ;;  %2125 = vmatpush.msra.mxu3 %v3224_v16  ;;  %v5140_v63 = vld [vmem:[%s4968_s21 + $0xd0] sm:$0xff] }
 0x12f   : > { %v5199_v16 = vld [vmem:[%s4968_s21 + $0x11] sm:$0xff] }
 0x130   : > { %1526 = vmatmul.f32.vlgmr.msra.gmra.mxu1 %v4824_v21  ;;  %3116 = vmatmul.msk.f32.vlgmr.msra.gmra.mxu2 %vm1658_vm0, %v3096_v59  ;;  %v722_v21 = vadd.f32 %v4810_v6, %v4691_v26  ;;  %v3255_v26 = vld [vmem:[%s5966_s4 + $0x298] sm:$0xff] }
 0x131   : > { %1399 = vmatmul.f32.gmra.mxu3 %v4805_v34  ;;  %1497 = vmatmul.f32.gmra.mxu0 %v4988_v47 }
 0x132   : > { %2217 = vmatpush.msra.mxu0 %v3255_v26  ;;  %2126 = vmatpush.msra.mxu3 %v3223_v53 }
 0x133   : > { %v1067_v34 = vpop.f32.mrf.mxu2 }
 0x134   : > { %v841_v23 = vpop.f32.mrf.mxu3  ;;  %v5010_v44 = vadd.f32 %v1067_v34, %v993_v45  ;;  %2218 = vmatpush.msra.mxu0 %v3254_v0  ;;  %v3251_v45 = vld [vmem:[%s5966_s4 + $0x278] sm:$0xff]  ;;  %v3250_v0 = vld [vmem:[%s5966_s4 + $0x270] sm:$0xff] }
 0x135   : > { %v5012_v56 = vadd.f32 %v841_v23, %v722_v21  ;;  %v5014_v32 = vpop.f32.mrf.mxu1 }
 0x136   : > { %v5025_v6 = vpop.f32.mrf.mxu0  ;;  %2219 = vmatpush.msra.mxu0 %v3253_v49 }
 0x138   : > { %1529 = vmatmul.f32.gmra.mxu1 %v4864_v31  ;;  %3117 = vmatmul.msk.f32.gmra.mxu2 %vm1658_vm0, %v5017_v13  ;;  %v995_v31 = vadd.f32 %v4861_v11, %v4724_v25  ;;  %v3191_v25 = vld [vmem:[%s5966_s4 + $0x198] sm:$0xff] }
 0x139   : > { %1402 = vmatmul.f32.gmra.mxu3 %v4853_v30  ;;  %1500 = vmatmul.f32.gmra.mxu0 %v5028_v46  ;;  %v5069_v11 = vld [vmem:[%s3647_s13 + $0x71] sm:$0xff] }
 0x13a   : > { %2036 = vmatpush.msrb.mxu2 %v3191_v25  ;;  %2220 = vmatpush.msra.mxu0 %v3252_v10 }
 0x13b   : > { %v1070_v30 = vpop.f32.mrf.mxu2 }
 0x13c   : > { %v844_v8 = vpop.f32.mrf.mxu3  ;;  %v5051_v50 = vadd.f32 %v1070_v30, %v995_v31  ;;  %2037 = vmatpush.msrb.mxu2 %v3190_v3  ;;  %2221 = vmatpush.msra.mxu0 %v3251_v45  ;;  %v3221_v31 = vld [vmem:[%s5966_s4 + $0x208] sm:$0xff]  ;;  %v994_v30 = vadd.f32 %v4976_v55, %v4848_v37  ;;  %v5183_v3 = vld [vmem:[%s4968_s21 + $0xe0] sm:$0xff]  ;;  %v5191_v37 = vld [vmem:[%s5966_s4 + $0x2f8] sm:$0xff] }
 0x13d   : > { %v5053_v1 = vadd.f32 %v844_v8, %v724_v14  ;;  %v5055_v57 = vpop.f32.mrf.mxu1  ;;  %v5169_v14 = vld [vmem:[%s5966_s4 + $0x358] sm:$0xff] }
 0x13e   : > { %v5066_v33 = vpop.f32.mrf.mxu0  ;;  %2038 = vmatpush.msrb.mxu2 %v3189_v28  ;;  %2222 = vmatpush.msra.mxu0 %v3250_v0 }
 0x140   : > { %1532 = vmatmul.f32.gmra.mxu1 %v4904_v12  ;;  %3118 = vmatmul.msk.f32.gmra.mxu2 %vm1658_vm0, %v5058_v36  ;;  %v997_v12 = vadd.f32 %v4901_v40, %v4763_v35  ;;  %v3162_v35 = vld [vmem:[%s5966_s4 + $0x130] sm:$0xff]  ;;  %v5110_v40 = vld [vmem:[%s3647_s13 + $0x81] sm:$0xff]  ;;  %s5910_s13 = scalar_lea.vmem %s5968_s6, %s3379_s19 }
 0x141   : > { %1405 = vmatmul.f32.gmra.mxu3 %v4893_v4  ;;  %1503 = vmatmul.f32.gmra.mxu0 %v5069_v11 }
 0x142   : > { %1942 = vmatpush.msrb.mxu1 %v3162_v35  ;;  %v996_v35 = vadd.f32 %v5014_v32, %v4888_v19  ;;  %v5246_v19 = vld [vmem:[%s5966_s4 + $0x348] sm:$0xff] }
 0x143   : > { %v1073_v4 = vpop.f32.mrf.mxu2 }
 0x144   : > { %v847_v62 = vpop.f32.mrf.mxu3  ;;  %v5092_v59 = vadd.f32 %v1073_v4, %v997_v12  ;;  %1943 = vmatpush.msrb.mxu1 %v3161_v41  ;;  %v3220_v12 = vld [vmem:[%s5966_s4 + $0x200] sm:$0xff] }
 0x145   : > { %v5094_v54 = vadd.f32 %v847_v62, %v726_v52  ;;  %v5096_v22 = vpop.f32.mrf.mxu1  ;;  %v5208_v52 = vld [vmem:[%s5966_s4 + $0x350] sm:$0xff]  ;;  %v3248_v4 = vld [vmem:[%s5966_s4 + $0x260] sm:$0xff] }
 0x146   : > { %v5107_v24 = vpop.f32.mrf.mxu0  ;;  %1944 = vmatpush.msrb.mxu1 %v3160_v9  ;;  %v5223_v62 = vld [vmem:[%s5966_s4 + $0x2f0] sm:$0xff] }
 0x148   : > { %1535 = vmatmul.f32.gmra.mxu1 %v4944_v61  ;;  %3119 = vmatmul.msk.f32.gmra.mxu2 %vm1658_vm0, %v5099_v43  ;;  %v999_v61 = vadd.f32 %v4941_v38, %v4802_v7  ;;  %v3188_v7 = vld [vmem:[%s5966_s4 + $0x180] sm:$0xff] }
 0x149   : > { %1408 = vmatmul.f32.gmra.mxu3 %v4933_v18  ;;  %1506 = vmatmul.f32.gmra.mxu0 %v5110_v40  ;;  %v728_v18 = vadd.f32 %v4930_v29, %v4808_v17  ;;  %v3222_v17 = vld [vmem:[%s5966_s4 + $0x210] sm:$0xff]  ;;  %v1616_v38 = vld [vmem:[%s4968_s21] sm:$0xff] }
 0x14a   : > { %2039 = vmatpush.msrb.mxu2 %v3188_v7  ;;  %2127 = vmatpush.msra.mxu3 %v3222_v17  ;;  %v3218_v7 = vld [vmem:[%s5966_s4 + $0x1f0] sm:$0xff]  ;;  %v5278_v17 = vld [vmem:[%s5966_s4 + $0x340] sm:$0xff] }
 0x14b   : > { %v1076_v21 = vpop.f32.mrf.mxu2  ;;  %3397 = vmatpush.msra.mxu1 %v5191_v37 }
 0x14c   : > { %v850_v34 = vpop.f32.mrf.mxu3  ;;  %v5133_v23 = vadd.f32 %v1076_v21, %v999_v61  ;;  %2128 = vmatpush.msra.mxu3 %v3221_v31  ;;  %2406 = vmatpush.msra.mxu2 %v5169_v14  ;;  %v5238_v61 = vld [vmem:[%s4968_s21 + $0xf0] sm:$0xff]  ;;  %v3247_v21 = vld [vmem:[%s5966_s4 + $0x258] sm:$0xff] }
 0x14d   : > { %v5135_v39 = vadd.f32 %v850_v34, %v728_v18  ;;  %v5137_v26 = vpop.f32.mrf.mxu1  ;;  %3398 = vmatpush.msra.mxu1 %v5223_v62  ;;  %v5254_v18 = vld [vmem:[%s4968_s21 + $0x21] sm:$0xff] }
 0x14e   : > { %v5148_v29 = vpop.f32.mrf.mxu0  ;;  %2129 = vmatpush.msra.mxu3 %v3220_v12  ;;  %2407 = vmatpush.msra.mxu2 %v5208_v52  ;;  %v5263_v34 = vld [vmem:[%s5966_s4 + $0x2e8] sm:$0xff] }
 0x14f   : > { %3399 = vmatpush.msra.mxu1 %v5263_v34  ;;  %v3245_v12 = vld [vmem:[%s5966_s4 + $0x248] sm:$0xff] }
 0x150   : > { %1538 = vmatmul.f32.gmra.mxu1 %v4988_v47  ;;  %3120 = vmatmul.msk.f32.gmra.mxu2 %vm1658_vm0, %v5140_v63  ;;  %v1001_v47 = vadd.f32 %v4985_v15, %v4846_v58  ;;  %v3249_v58 = vld [vmem:[%s5966_s4 + $0x268] sm:$0xff]  ;;  %v5196_v15 = vld [vmem:[%s4968_s21 + $0x10] sm:$0xff] }
 0x151   : > { %3124 = vmatmul.msk.f32.vlgmr.msrb.gmra.mxu3 %vm1658_vm0, %v1616_v38  ;;  %3144 = vmatmul.msk.f32.vlgmr.msrb.gmra.mxu0 %vm1658_vm0, %v1789_v5  ;;  %v998_v38 = vadd.f32 %v5055_v57, %v4928_v48  ;;  %v5301_v48 = vld [vmem:[%s5966_s4 + $0x2e0] sm:$0xff] }
 0x152   : > { %2223 = vmatpush.msra.mxu0 %v3249_v58  ;;  %2408 = vmatpush.msra.mxu2 %v5246_v19  ;;  %v3307_v58 = vld [vmem:[%s5966_s4 + $0x338] sm:$0xff] }
 0x153   : > { %v1079_v8 = vpop.f32.mrf.mxu2  ;;  %3400 = vmatpush.msra.mxu1 %v5301_v48 }
 0x154   : > { %v5176_v25 = vadd.f32 %v1079_v8, %v1001_v47  ;;  %v1108_v42 = vpop.f32.mrf.mxu3  ;;  %2224 = vmatpush.msra.mxu0 %v3248_v4  ;;  %2409 = vmatpush.msra.mxu2 %v5278_v17  ;;  %v5309_v8 = vld [vmem:[%s4968_s21 + $0x31] sm:$0xff] }
 0x155   : > { %v5178_v20 = vadd.f32 %v1108_v42, %v994_v30  ;;  %v5180_v49 = vpop.f32.mrf.mxu1  ;;  %v5293_v30 = vld [vmem:[%s4968_s21 + $0x100] sm:$0xff]  ;;  %v3217_v42 = vld [vmem:[%s5966_s4 + $0x1e8] sm:$0xff]  ;;  %v3279_v4 = vld [vmem:[%s5966_s4 + $0x2d8] sm:$0xff] }
 0x156   : > { %v5193_v55 = vpop.f32.mrf.mxu0  ;;  %2225 = vmatpush.msra.mxu0 %v3247_v21  ;;  %2410 = vmatpush.msra.mxu2 %v3307_v58 }
 0x157   : > { %3401 = vmatpush.msra.mxu1 %v3279_v4 }
 0x158   : > { %1541 = vmatmul.f32.gmra.mxu1 %v5028_v46  ;;  %3121 = vmatmul.msk.f32.gmra.mxu2 %vm1658_vm0, %v5183_v3  ;;  %v1003_v46 = vadd.f32 %v5025_v6, %v4886_v51  ;;  %v3219_v51 = vld [vmem:[%s5966_s4 + $0x1f8] sm:$0xff]  ;;  %v5251_v6 = vld [vmem:[%s4968_s21 + $0x20] sm:$0xff] }
 0x159   : > { %3125 = vmatmul.msk.f32.gmra.mxu3 %vm1658_vm0, %v5196_v15  ;;  %3145 = vmatmul.msk.f32.gmra.mxu0 %vm1658_vm0, %v5199_v16 }
 0x15a   : > { %2130 = vmatpush.msra.mxu3 %v3219_v51  ;;  %v3152_v51 = vld [vmem:[%s4968_s21 + $0x120] sm:$0xff] }
 0x15b   : > { %v1082_v10 = vpop.f32.mrf.mxu2 }
 0x15c   : > { %v5231_v28 = vadd.f32 %v1082_v10, %v1003_v46  ;;  %v1111_v53 = vpop.f32.mrf.mxu3  ;;  %2131 = vmatpush.msra.mxu3 %v3218_v7  ;;  %v1000_v46 = vadd.f32 %v5096_v22, %v4974_v2  ;;  %v3306_v2 = vld [vmem:[%s5966_s4 + $0x330] sm:$0xff] }
 0x15d   : > { %v5233_v41 = vadd.f32 %v1111_v53, %v996_v35  ;;  %v5235_v45 = vpop.f32.mrf.mxu1  ;;  %2411 = vmatpush.msra.mxu2 %v3306_v2 }
 0x15e   : > { %v5248_v32 = vpop.f32.mrf.mxu0  ;;  %2132 = vmatpush.msra.mxu3 %v3217_v42  ;;  %v3153_v42 = vld [vmem:[%s4968_s21 + $0x130] sm:$0xff] }
 0x160   : > { %1544 = vmatmul.f32.gmra.mxu1 %v5069_v11  ;;  %3122 = vmatmul.msk.f32.gmra.mxu2 %vm1658_vm0, %v5238_v61  ;;  %v1005_v11 = vadd.f32 %v5066_v33, %v4926_v60  ;;  %v3246_v60 = vld [vmem:[%s5966_s4 + $0x250] sm:$0xff] }
 0x161   : > { %3126 = vmatmul.msk.f32.gmra.mxu3 %vm1658_vm0, %v5251_v6  ;;  %3146 = vmatmul.msk.f32.gmra.mxu0 %vm1658_vm0, %v5254_v18  ;;  %v5306_v33 = vld [vmem:[%s4968_s21 + $0x30] sm:$0xff] }
 0x162   : > { %2226 = vmatpush.msra.mxu0 %v3246_v60 }
 0x163   : > { %v1085_v5 = vpop.f32.mrf.mxu2 }
 0x164   : > { %v5286_v9 = vadd.f32 %v1085_v5, %v1005_v11  ;;  %v1114_v0 = vpop.f32.mrf.mxu3  ;;  %2227 = vmatpush.msra.mxu0 %v3245_v12  ;;  %v3180_v11 = vld [vmem:[%s4968_s21 + $0x1b0] sm:$0xff]  ;;  %v3244_v5 = vld [vmem:[%s5966_s4 + $0x240] sm:$0xff] }
 0x165   : > { %v5288_v31 = vadd.f32 %v1114_v0, %v998_v38  ;;  %v5290_v47 = vpop.f32.mrf.mxu1  ;;  %v5355_v38 = vld [vmem:[%s4968_s21 + $0x41] sm:$0xff]  ;;  %v1002_v0 = vadd.f32 %v5137_v26, %v5012_v56 }
 0x166   : > { %v5303_v57 = vpop.f32.mrf.mxu0  ;;  %2228 = vmatpush.msra.mxu0 %v3244_v5  ;;  %v3305_v56 = vld [vmem:[%s5966_s4 + $0x328] sm:$0xff]  ;;  %v3304_v5 = vld [vmem:[%s5966_s4 + $0x320] sm:$0xff] }
 0x167   : > { %2412 = vmatpush.msra.mxu2 %v3305_v56 }
 0x168   : > { %1547 = vmatmul.f32.gmra.mxu1 %v5110_v40  ;;  %3123 = vmatmul.msk.f32.gmra.mxu2 %vm1658_vm0, %v5293_v30  ;;  %v1007_v40 = vadd.f32 %v5107_v24, %v4972_v27  ;;  %v3216_v27 = vld [vmem:[%s5966_s4 + $0x1e0] sm:$0xff] }
 0x169   : > { %3127 = vmatmul.msk.f32.gmra.mxu3 %vm1658_vm0, %v5306_v33  ;;  %3147 = vmatmul.msk.f32.gmra.mxu0 %vm1658_vm0, %v5309_v8  ;;  %v5352_v24 = vld [vmem:[%s4968_s21 + $0x40] sm:$0xff] }
 0x16a   : > { %2133 = vmatpush.msra.mxu3 %v3216_v27  ;;  %2312 = vmatpush.msrb.mxu0 %v5191_v37  ;;  %v5390_v37 = vld [vmem:[%s4968_s21 + $0x50] sm:$0xff] }
 0x16b   : > { %v1088_v35 = vpop.f32.mrf.mxu2  ;;  %v3182_v27 = vld [vmem:[%s4968_s21 + $0x1d0] sm:$0xff]  ;;  %2413 = vmatpush.msra.mxu2 %v3304_v5 }
 0x16c   : > { %v5335_v10 = vadd.f32 %v1088_v35, %v1007_v40  ;;  %v1117_v53 = vpop.f32.mrf.mxu3  ;;  %3409 = vmatpush.msrb.mxu3 %v5169_v14  ;;  %2313 = vmatpush.msrb.mxu0 %v5223_v62  ;;  %v3277_v35 = vld [vmem:[%s5966_s4 + $0x2c8] sm:$0xff]  ;;  %v1004_v62 = vadd.f32 %v5180_v49, %v5053_v1  ;;  %v5426_v49 = vld [vmem:[%s4968_s21 + $0x60] sm:$0xff] }
 0x16d   : > { %v5338_v21 = vadd.f32 %v1117_v53, %v1000_v46  ;;  %v5340_v7 = vpop.f32.mrf.mxu1  ;;  %v3181_v46 = vld [vmem:[%s4968_s21 + $0x1c0] sm:$0xff] }
 0x16e   : > { %v5349_v22 = vpop.f32.mrf.mxu0  ;;  %3410 = vmatpush.msrb.mxu3 %v5208_v52  ;;  %v3278_v52 = vld [vmem:[%s5966_s4 + $0x2d0] sm:$0xff]  ;;  %2314 = vmatpush.msrb.mxu0 %v5263_v34  ;;  %v3154_v53 = vld [vmem:[%s4968_s21 + $0x140] sm:$0xff] }
 0x16f   : > { %3402 = vmatpush.msra.mxu1 %v3278_v52 }
 0x170   : > { %3172 = vmatmul.msk.f32.vlgmr.msrb.gmra.mxu1 %vm1658_vm0, %v3152_v51  ;;  %3200 = vmatmul.msk.f32.vlgmr.msrb.gmra.mxu2 %vm1658_vm0, %v3180_v11 }
 0x171   : > { %3128 = vmatmul.msk.f32.gmra.mxu3 %vm1658_vm0, %v5352_v24  ;;  %3148 = vmatmul.msk.f32.gmra.mxu0 %vm1658_vm0, %v5355_v38 }
 0x172   : > { %3411 = vmatpush.msrb.mxu3 %v5246_v19  ;;  %v5393_v19 = vld [vmem:[%s4968_s21 + $0x51] sm:$0xff]  ;;  %3403 = vmatpush.msra.mxu1 %v3277_v35 }
 0x173   : > { %v5370_v60 = vpop.f32.mrf.mxu2  ;;  %2315 = vmatpush.msrb.mxu0 %v5301_v48  ;;  %v3276_v48 = vld [vmem:[%s5966_s4 + $0x2c0] sm:$0xff] }
 0x174   : > { %v1120_v14 = vpop.f32.mrf.mxu3  ;;  %3412 = vmatpush.msrb.mxu3 %v5278_v17  ;;  %3404 = vmatpush.msra.mxu1 %v3276_v48 }
 0x175   : > { %v5375_v12 = vadd.f32 %v1120_v14, %v1002_v0  ;;  %v5377_v40 = vpop.f32.mrf.mxu1  ;;  %2316 = vmatpush.msrb.mxu0 %v3279_v4  ;;  %v3303_v4 = vld [vmem:[%s5966_s4 + $0x318] sm:$0xff] }
 0x176   : > { %v5387_v26 = vpop.f32.mrf.mxu0  ;;  %3413 = vmatpush.msrb.mxu3 %v3307_v58  ;;  %v5429_v58 = vld [vmem:[%s4968_s21 + $0x61] sm:$0xff]  ;;  %2414 = vmatpush.msra.mxu2 %v3303_v4 }
 0x177   : > { %2317 = vmatpush.msrb.mxu0 %v3278_v52 }
 0x178   : > { %3173 = vmatmul.msk.f32.gmra.mxu1 %vm1658_vm0, %v3153_v42  ;;  %3201 = vmatmul.msk.f32.gmra.mxu2 %vm1658_vm0, %v3181_v46  ;;  %v3155_v42 = vld [vmem:[%s4968_s21 + $0x150] sm:$0xff] }
 0x179   : > { %3129 = vmatmul.msk.f32.gmra.mxu3 %vm1658_vm0, %v5390_v37  ;;  %3149 = vmatmul.msk.f32.gmra.mxu0 %vm1658_vm0, %v5393_v19 }
 0x17a   : > { %3414 = vmatpush.msrb.mxu3 %v3306_v2  ;;  %2318 = vmatpush.msrb.mxu0 %v3277_v35  ;;  %v1006_v2 = vadd.f32 %v5235_v45, %v5094_v54  ;;  %v3302_v35 = vld [vmem:[%s5966_s4 + $0x310] sm:$0xff] }
 0x17b   : > { %v5409_v34 = vpop.f32.mrf.mxu2  ;;  %v5459_v45 = vld [vmem:[%s4968_s21 + $0x70] sm:$0xff]  ;;  %2415 = vmatpush.msra.mxu2 %v3302_v35 }
 0x17c   : > { %v1123_v17 = vpop.f32.mrf.mxu3  ;;  %3415 = vmatpush.msrb.mxu3 %v3305_v56  ;;  %2319 = vmatpush.msrb.mxu0 %v3276_v48  ;;  %v3183_v56 = vld [vmem:[%s4968_s21 + $0x1e0] sm:$0xff] }
 0x17d   : > { %v5412_v51 = vadd.f32 %v1123_v17, %v1004_v62  ;;  %v5414_v11 = vpop.f32.mrf.mxu1  ;;  %v3275_v62 = vld [vmem:[%s5966_s4 + $0x2b8] sm:$0xff] }
 0x17e   : > { %v5423_v1 = vpop.f32.mrf.mxu0  ;;  %3416 = vmatpush.msrb.mxu3 %v3304_v5  ;;  %v5462_v17 = vld [vmem:[%s4968_s21 + $0x71] sm:$0xff]  ;;  %3405 = vmatpush.msra.mxu1 %v3275_v62  ;;  %v1008_v5 = vadd.f32 %v5290_v47, %v5135_v39 }
 0x17f   : > { %2320 = vmatpush.msrb.mxu0 %v3275_v62  ;;  %v3184_v62 = vld [vmem:[%s4968_s21 + $0x1f0] sm:$0xff] }
 0x180   : > { %3174 = vmatmul.msk.f32.gmra.mxu1 %vm1658_vm0, %v3154_v53  ;;  %3202 = vmatmul.msk.f32.gmra.mxu2 %vm1658_vm0, %v3182_v27  ;;  %v3274_v53 = vld [vmem:[%s5966_s4 + $0x2b0] sm:$0xff]  ;;  %v1272_v27 = vadd.f32 %v5148_v29, %v5010_v44  ;;  %v3273_v44 = vld [vmem:[%s5966_s4 + $0x2a8] sm:$0xff] }
 0x181   : > { %3130 = vmatmul.msk.f32.gmra.mxu3 %vm1658_vm0, %v5426_v49  ;;  %3150 = vmatmul.msk.f32.gmra.mxu0 %vm1658_vm0, %v5429_v58  ;;  %v3208_v29 = vld [vmem:[%s4968_s21 + $0x121] sm:$0xff] }
 0x182   : > { %3417 = vmatpush.msrb.mxu3 %v3303_v4  ;;  %3406 = vmatpush.msra.mxu1 %v3274_v53 }
 0x183   : > { %v5442_v0 = vpop.f32.mrf.mxu2  ;;  %2321 = vmatpush.msrb.mxu0 %v3274_v53  ;;  %v3272_v53 = vld [vmem:[%s5966_s4 + $0x2a0] sm:$0xff] }
 0x184   : > { %v1126_v14 = vpop.f32.mrf.mxu3  ;;  %3418 = vmatpush.msrb.mxu3 %v3302_v35  ;;  %v3301_v35 = vld [vmem:[%s5966_s4 + $0x308] sm:$0xff]  ;;  %3407 = vmatpush.msra.mxu1 %v3273_v44 }
 0x185   : > { %v5445_v46 = vadd.f32 %v1126_v14, %v1006_v2  ;;  %v5447_v52 = vpop.f32.mrf.mxu1  ;;  %v3156_v2 = vld [vmem:[%s4968_s21 + $0x160] sm:$0xff]  ;;  %v1412_v14 = vadd.f32 %v5370_v60, %v1272_v27  ;;  %2416 = vmatpush.msra.mxu2 %v3301_v35  ;;  %2322 = vmatpush.msrb.mxu0 %v3273_v44 }
 0x186   : > { %v5456_v54 = vpop.f32.mrf.mxu0  ;;  %v3300_v60 = vld [vmem:[%s5966_s4 + $0x300] sm:$0xff]  ;;  %3419 = vmatpush.msrb.mxu3 %v3301_v35  ;;  %3408 = vmatpush.msra.mxu1 %v3272_v53  ;;  %v3157_v35 = vld [vmem:[%s4968_s21 + $0x170] sm:$0xff] }
 0x187   : > { %2417 = vmatpush.msra.mxu2 %v3300_v60  ;;  %2323 = vmatpush.msrb.mxu0 %v3272_v53  ;;  %v3185_v44 = vld [vmem:[%s4968_s21 + $0x200] sm:$0xff] }
 0x188   : > { %3175 = vmatmul.msk.f32.gmra.mxu1 %vm1658_vm0, %v3155_v42  ;;  %3203 = vmatmul.msk.f32.gmra.mxu2 %vm1658_vm0, %v3183_v56 }
 0x189   : > { %3131 = vmatmul.msk.f32.gmra.mxu3 %vm1658_vm0, %v5459_v45  ;;  %3151 = vmatmul.msk.f32.gmra.mxu0 %vm1658_vm0, %v5462_v17 }
 0x18a   : > { %3420 = vmatpush.msrb.mxu3 %v3300_v60 }
 0x18b   : > { %v5477_v48 = vpop.f32.mrf.mxu2 }
 0x18c   : > { %v1129_v4 = vpop.f32.mrf.mxu3 }
 0x18d   : > { %v5481_v42 = vadd.f32 %v1129_v4, %v1008_v5  ;;  %v5483_v56 = vpop.f32.mrf.mxu1  ;;  %v1274_v5 = vadd.f32 %v5193_v55, %v5051_v50  ;;  %v1276_v55 = vadd.f32 %v5248_v32, %v5092_v59  ;;  %v1278_v32 = vadd.f32 %v5303_v57, %v5133_v23 }
 0x18e   : > { %v1486_v39 = vpop.f32.mrf.mxu0  ;;  %v1273_v57 = vadd.f32 %v5340_v7, %v5178_v20  ;;  %v1275_v20 = vadd.f32 %v5377_v40, %v5233_v41  ;;  %v1277_v40 = vadd.f32 %v5414_v11, %v5288_v31 }
 0x18f   : > { %v1551_v47 = vadd.f32 %v1486_v39, %v1412_v14 }
 0x190   : > { %3176 = vmatmul.msk.f32.gmra.mxu1 %vm1658_vm0, %v3156_v2  ;;  %3204 = vmatmul.msk.f32.gmra.mxu2 %vm1658_vm0, %v3184_v62  ;;  %v1414_v62 = vadd.f32 %v5409_v34, %v1274_v5 }
 0x191   : > { %v1567_v27 = vmax.f32 %v1551_v47, 0.0  ;;  %3228 = vmatmul.msk.f32.vlgmr.msra.gmra.mxu3 %vm1658_vm0, %v3208_v29  ;;  %3256 = vmatmul.msk.f32.vlgmr.msra.gmra.mxu0 %vm1658_vm0, %v5196_v15  ;;  %v3209_v29 = vld [vmem:[%s4968_s21 + $0x131] sm:$0xff] }
 0x193   : > { %v1583_v4 = vmin.f32 %v1567_v27, 6.0  ;;  %v1359_v2 = vpop.f32.mrf.mxu2  ;;  %v1416_v27 = vadd.f32 %v5442_v0, %v1276_v55  ;;  %v3159_v55 = vld [vmem:[%s4968_s21 + $0x190] sm:$0xff] }
 0x194   : > { %v1388_v14 = vpop.f32.mrf.mxu3 }
 0x195   : > { %1599 = vst [vmem:[%s5508_s22] sm:$0xff] %v1583_v4  ;;  %v5514_v15 = vpop.f32.mrf.mxu1  ;;  %v3158_v4 = vld [vmem:[%s4968_s21 + $0x180] sm:$0xff] }
 0x196   : > { %v1489_v39 = vpop.f32.mrf.mxu0 }
 0x197   : > { %v1553_v47 = vadd.f32 %v1489_v39, %v1414_v62  ;;  %v3186_v62 = vld [vmem:[%s4968_s21 + $0x210] sm:$0xff] }
 0x198   : > { %3177 = vmatmul.msk.f32.gmra.mxu1 %vm1658_vm0, %v3157_v35  ;;  %3205 = vmatmul.msk.f32.gmra.mxu2 %vm1658_vm0, %v3185_v44  ;;  %v3210_v44 = vld [vmem:[%s4968_s21 + $0x141] sm:$0xff] }
 0x199   : > { %v1569_v50 = vmax.f32 %v1553_v47, 0.0  ;;  %3229 = vmatmul.msk.f32.gmra.mxu3 %vm1658_vm0, %v3209_v29  ;;  %3257 = vmatmul.msk.f32.gmra.mxu0 %vm1658_vm0, %v5251_v6  ;;  %v1418_v47 = vadd.f32 %v5477_v48, %v1278_v32 }
 0x19b   : > { %v1585_v34 = vmin.f32 %v1569_v50, 6.0  ;;  %v1362_v60 = vpop.f32.mrf.mxu2 }
 0x19c   : > { %v1391_v53 = vpop.f32.mrf.mxu3 }
 0x19d   : > { %1602 = vst [vmem:[%s5508_s22 + $0x10] sm:$0xff] %v1585_v34  ;;  %v5528_v5 = vpop.f32.mrf.mxu1  ;;  %v3187_v34 = vld [vmem:[%s4968_s21 + $0x220] sm:$0xff] }
 0x19e   : > { %v1492_v35 = vpop.f32.mrf.mxu0 }
 0x19f   : > { %v1555_v39 = vadd.f32 %v1492_v35, %v1416_v27 }
 0x1a0   : > { %3178 = vmatmul.msk.f32.gmra.mxu1 %vm1658_vm0, %v3158_v4  ;;  %3206 = vmatmul.msk.f32.gmra.mxu2 %vm1658_vm0, %v3186_v62  ;;  %v3211_v4 = vld [vmem:[%s4968_s21 + $0x151] sm:$0xff] }
 0x1a1   : > { %v1571_v59 = vmax.f32 %v1555_v39, 0.0  ;;  %3230 = vmatmul.msk.f32.gmra.mxu3 %vm1658_vm0, %v3210_v44  ;;  %3258 = vmatmul.msk.f32.gmra.mxu0 %vm1658_vm0, %v5306_v33  ;;  %v1280_v33 = vadd.f32 %v5349_v22, %v5176_v25  ;;  %v1413_v44 = vadd.f32 %v1388_v14, %v1273_v57  ;;  %v1282_v22 = vadd.f32 %v5387_v26, %v5231_v28 }
 0x1a2   : > { %v1415_v14 = vadd.f32 %v1391_v53, %v1275_v20 }
 0x1a3   : > { %v1587_v6 = vmin.f32 %v1571_v59, 6.0  ;;  %v5540_v0 = vpop.f32.mrf.mxu2  ;;  %v1420_v59 = vadd.f32 %v1359_v2, %v1280_v33 }
 0x1a4   : > { %v1394_v29 = vpop.f32.mrf.mxu3 }
 0x1a5   : > { %1604 = vst [vmem:[%s5508_s22 + $0x20] sm:$0xff] %v1587_v6  ;;  %v5544_v50 = vpop.f32.mrf.mxu1 }
 0x1a6   : > { %v1495_v27 = vpop.f32.mrf.mxu0 }
 0x1a7   : > { %v1557_v62 = vadd.f32 %v1495_v27, %v1418_v47  ;;  %v1422_v27 = vadd.f32 %v1362_v60, %v1282_v22  ;;  %v1284_v60 = vadd.f32 %v5423_v1, %v5286_v9  ;;  %v1279_v1 = vadd.f32 %v5447_v52, %v5338_v21  ;;  %v3243_v21 = vld [vmem:[%s4968_s21 + $0x80] sm:$0xff] }
 0x1a8   : > { %3179 = vmatmul.msk.f32.gmra.mxu1 %vm1658_vm0, %v3159_v55  ;;  %3207 = vmatmul.msk.f32.gmra.mxu2 %vm1658_vm0, %v3187_v34  ;;  %v3212_v55 = vld [vmem:[%s4968_s21 + $0x161] sm:$0xff] }
 0x1a9   : > { %v1573_v23 = vmax.f32 %v1557_v62, 0.0  ;;  %3231 = vmatmul.msk.f32.gmra.mxu3 %vm1658_vm0, %v3211_v4  ;;  %3259 = vmatmul.msk.f32.gmra.mxu0 %vm1658_vm0, %v5352_v24 }
 0x1ab   : > { %v1589_v48 = vmin.f32 %v1573_v23, 6.0  ;;  %v5558_v35 = vpop.f32.mrf.mxu2  ;;  %v3213_v23 = vld [vmem:[%s4968_s21 + $0x171] sm:$0xff] }
 0x1ac   : > { %v1397_v39 = vpop.f32.mrf.mxu3 }
 0x1ad   : > { %1606 = vst [vmem:[%s5508_s22 + $0x30] sm:$0xff] %v1589_v48  ;;  %v1527_v32 = vpop.f32.mrf.mxu1  ;;  %v1424_v48 = vadd.f32 %v5540_v0, %v1284_v60 }
 0x1ae   : > { %v1498_v6 = vpop.f32.mrf.mxu0  ;;  %v1552_v47 = vadd.f32 %v1527_v32, %v1413_v44  ;;  %v3214_v32 = vld [vmem:[%s4968_s21 + $0x181] sm:$0xff] }
 0x1af   : > { %v1559_v34 = vadd.f32 %v1498_v6, %v1420_v59 }
 0x1b0   : > { %v1568_v24 = vmax.f32 %v1552_v47, 0.0  ;;  %3286 = vmatmul.msk.f32.vlgmr.msra.gmra.mxu1 %vm1658_vm0, %v5099_v43  ;;  %3312 = vmatmul.msk.f32.vlgmr.msra.gmra.mxu2 %vm1658_vm0, %v5199_v16  ;;  %v1419_v47 = vadd.f32 %v1397_v39, %v1279_v1 }
 0x1b1   : > { %v1575_v25 = vmax.f32 %v1559_v34, 0.0  ;;  %3232 = vmatmul.msk.f32.gmra.mxu3 %vm1658_vm0, %v3212_v55  ;;  %3260 = vmatmul.msk.f32.gmra.mxu0 %vm1658_vm0, %v5390_v37 }
 0x1b2   : > { %v1584_v7 = vmin.f32 %v1568_v24, 6.0 }
 0x1b3   : > { %v1591_v2 = vmin.f32 %v1575_v25, 6.0  ;;  %v5573_v43 = vpop.f32.mrf.mxu2  ;;  %v3215_v25 = vld [vmem:[%s4968_s21 + $0x191] sm:$0xff] }
 0x1b4   : > { %1601 = vst.msk [vmem:[%s5508_s22 + $0x8] sm:$0xff] %vm1600_vm1, %v1584_v7  ;;  %v1400_v16 = vpop.f32.mrf.mxu3 }
 0x1b5   : > { %1608 = vst [vmem:[%s5508_s22 + $0x40] sm:$0xff] %v1591_v2  ;;  %v1530_v4 = vpop.f32.mrf.mxu1 }
 0x1b6   : > { %v1501_v62 = vpop.f32.mrf.mxu0  ;;  %v1554_v37 = vadd.f32 %v1530_v4, %v1415_v14 }
 0x1b7   : > { %v1561_v57 = vadd.f32 %v1501_v62, %v1422_v27 }
 0x1b8   : > { %v1570_v41 = vmax.f32 %v1554_v37, 0.0  ;;  %3287 = vmatmul.msk.f32.gmra.mxu1 %vm1658_vm0, %v5140_v63  ;;  %3313 = vmatmul.msk.f32.gmra.mxu2 %vm1658_vm0, %v5254_v18  ;;  %v1417_v63 = vadd.f32 %v1394_v29, %v1277_v40  ;;  %v1286_v29 = vadd.f32 %v5456_v54, %v5335_v10  ;;  %v1281_v54 = vadd.f32 %v5483_v56, %v5375_v12 }
 0x1b9   : > { %v1577_v28 = vmax.f32 %v1561_v57, 0.0  ;;  %3233 = vmatmul.msk.f32.gmra.mxu3 %vm1658_vm0, %v3213_v23  ;;  %3261 = vmatmul.msk.f32.gmra.mxu0 %vm1658_vm0, %v5426_v49  ;;  %v1283_v12 = vadd.f32 %v5514_v15, %v5412_v51  ;;  %v1285_v51 = vadd.f32 %v5528_v5, %v5445_v46 }
 0x1ba   : > { %v1586_v26 = vmin.f32 %v1570_v41, 6.0  ;;  %v1426_v55 = vadd.f32 %v5558_v35, %v1286_v29  ;;  %v1421_v22 = vadd.f32 %v1400_v16, %v1281_v54 }
 0x1bb   : > { %v1593_v53 = vmin.f32 %v1577_v28, 6.0  ;;  %v5590_v33 = vpop.f32.mrf.mxu2 }
 0x1bc   : > { %1603 = vst.msk [vmem:[%s5508_s22 + $0x18] sm:$0xff] %vm1600_vm1, %v1586_v26  ;;  %v1403_v18 = vpop.f32.mrf.mxu3 }
 0x1bd   : > { %1610 = vst [vmem:[%s5508_s22 + $0x50] sm:$0xff] %v1593_v53  ;;  %v1533_v44 = vpop.f32.mrf.mxu1  ;;  %v1423_v4 = vadd.f32 %v1403_v18, %v1283_v12  ;;  %v1287_v18 = vadd.f32 %v5544_v50, %v5481_v42 }
 0x1be   : > { %v1504_v59 = vpop.f32.mrf.mxu0  ;;  %v1556_v49 = vadd.f32 %v1533_v44, %v1417_v63 }
 0x1bf   : > { %v1563_v31 = vadd.f32 %v1504_v59, %v1424_v48 }
 0x1c0   : > { %v1572_v11 = vmax.f32 %v1556_v49, 0.0  ;;  %3288 = vmatmul.msk.f32.gmra.mxu1 %vm1658_vm0, %v5183_v3  ;;  %3314 = vmatmul.msk.f32.gmra.mxu2 %vm1658_vm0, %v5309_v8 }
 0x1c1   : > { %v1579_v9 = vmax.f32 %v1563_v31, 0.0  ;;  %3234 = vmatmul.msk.f32.gmra.mxu3 %vm1658_vm0, %v3214_v32  ;;  %3262 = vmatmul.msk.f32.gmra.mxu0 %vm1658_vm0, %v5459_v45 }
 0x1c2   : > { %v1588_v0 = vmin.f32 %v1572_v11, 6.0 }
 0x1c3   : > { %v1595_v6 = vmin.f32 %v1579_v9, 6.0  ;;  %v5608_v3 = vpop.f32.mrf.mxu2 }
 0x1c4   : > { %1605 = vst.msk [vmem:[%s5508_s22 + $0x28] sm:$0xff] %vm1600_vm1, %v1588_v0  ;;  %v1406_v8 = vpop.f32.mrf.mxu3 }
 0x1c5   : > { %1612 = vst [vmem:[%s5508_s22 + $0x60] sm:$0xff] %v1595_v6  ;;  %v1536_v34 = vpop.f32.mrf.mxu1 }
 0x1c6   : > { %v1507_v24 = vpop.f32.mrf.mxu0  ;;  %v1558_v45 = vadd.f32 %v1536_v34, %v1419_v47 }
 0x1c7   : > { %v1565_v52 = vadd.f32 %v1507_v24, %v1426_v55 }
 0x1c8   : > { %v1574_v20 = vmax.f32 %v1558_v45, 0.0  ;;  %3289 = vmatmul.msk.f32.gmra.mxu1 %vm1658_vm0, %v5238_v61  ;;  %3315 = vmatmul.msk.f32.gmra.mxu2 %vm1658_vm0, %v5355_v38 }
 0x1c9   : > { %v1581_v10 = vmax.f32 %v1565_v52, 0.0  ;;  %3235 = vmatmul.msk.f32.gmra.mxu3 %vm1658_vm0, %v3215_v25  ;;  %3263 = vmatmul.msk.f32.gmra.mxu0 %vm1658_vm0, %v3243_v21 }
 0x1ca   : > { %v1590_v35 = vmin.f32 %v1574_v20, 6.0 }
 0x1cb   : > { %v1597_v39 = vmin.f32 %v1581_v10, 6.0  ;;  %v1709_v7 = vpop.f32.mrf.mxu2 }
 0x1cc   : > { %1607 = vst.msk [vmem:[%s5508_s22 + $0x38] sm:$0xff] %vm1600_vm1, %v1590_v35  ;;  %v1409_v2 = vpop.f32.mrf.mxu3 }
 0x1cd   : > { %1614 = vst [vmem:[%s5508_s22 + $0x70] sm:$0xff] %v1597_v39  ;;  %v1539_v61 = vpop.f32.mrf.mxu1  ;;  %v1427_v5 = vadd.f32 %v1409_v2, %v1287_v18  ;;  %v5734_v18 = vld [vmem:[%s5716_s26 + $0x50] sm:$0xff] }
 0x1ce   : > { %v1560_v38 = vadd.f32 %v1539_v61, %v1421_v22  ;;  %v1851_v14 = vpop.f32.mrf.mxu0 }
 0x1d0   : > { %v1576_v27 = vmax.f32 %v1560_v38, 0.0  ;;  %3290 = vmatmul.msk.f32.gmra.mxu1 %vm1658_vm0, %v5293_v30  ;;  %3316 = vmatmul.msk.f32.gmra.mxu2 %vm1658_vm0, %v5393_v19  ;;  %v3271_v19 = vld [vmem:[%s4968_s21 + $0x110] sm:$0xff] }
 0x1d1   : > { %3284 = vmatmul.msk.f32.vlgmr.msrb.gmra.mxu0 %vm1658_vm0, %v5017_v13  ;;  %3318 = vmatmul.msk.f32.vlgmr.msrb.gmra.mxu3 %vm1658_vm0, %v5462_v17  ;;  %v3299_v13 = vld [vmem:[%s4968_s21 + $0x81] sm:$0xff] }
 0x1d2   : > { %v1592_v56 = vmin.f32 %v1576_v27, 6.0 }
 0x1d3   : > { %v1712_v16 = vpop.f32.mrf.mxu2 }
 0x1d4   : > { %1609 = vst.msk [vmem:[%s5508_s22 + $0x48] sm:$0xff] %vm1600_vm1, %v1592_v56  ;;  %v1765_v62 = vpop.f32.mrf.mxu3 }
 0x1d5   : > { %v1766_v30 = vadd.f32 %v1765_v62, %v5573_v43  ;;  %v1542_v37 = vpop.f32.mrf.mxu1  ;;  %v1425_v43 = vadd.f32 %v1406_v8, %v1285_v51 }
 0x1d6   : > { %v1562_v23 = vadd.f32 %v1542_v37, %v1423_v4  ;;  %v1854_v57 = vpop.f32.mrf.mxu0 }
 0x1d7   : > { %v1875_v41 = vadd.f32 %v1851_v14, %v1766_v30 }
 0x1d8   : > { %v1578_v28 = vmax.f32 %v1562_v23, 0.0  ;;  %3291 = vmatmul.msk.f32.gmra.mxu1 %vm1658_vm0, %v3271_v19  ;;  %3317 = vmatmul.msk.f32.gmra.mxu2 %vm1658_vm0, %v5429_v58 }
 0x1d9   : > { %3285 = vmatmul.msk.f32.gmra.mxu0 %vm1658_vm0, %v5058_v36  ;;  %3319 = vmatmul.msk.f32.gmra.mxu3 %vm1658_vm0, %v3299_v13 }
 0x1da   : > { %v1594_v17 = vmin.f32 %v1578_v28, 6.0 }
 0x1db   : > { %v1715_v15 = vpop.f32.mrf.mxu2 }
 0x1dc   : > { %1611 = vst.msk [vmem:[%s5508_s22 + $0x58] sm:$0xff] %vm1600_vm1, %v1594_v17  ;;  %v1768_v40 = vpop.f32.mrf.mxu3 }
 0x1dd   : > { %v1769_v26 = vadd.f32 %v1768_v40, %v5590_v33  ;;  %v1545_v60 = vpop.f32.mrf.mxu1 }
 0x1de   : > { %v1564_v53 = vadd.f32 %v1545_v60, %v1425_v43  ;;  %v1857_v58 = vpop.f32.mrf.mxu0  ;;  %v5720_v60 = vld [vmem:[%s5716_s26 + $0x10] sm:$0xff] }
 0x1df   : > { %v1876_v63 = vadd.f32 %v1854_v57, %v1769_v26  ;;  %v2475_v26 = vld [vmem:[%s5716_s26] sm:$0xff] }
 0x1e0   : > { %v1580_v36 = vmax.f32 %v1564_v53, 0.0  ;;  %v5723_v53 = vld [vmem:[%s5716_s26 + $0x20] sm:$0xff] }
 0x1e2   : > { %v1596_v48 = vmin.f32 %v1580_v36, 6.0  ;;  %v5731_v36 = vld [vmem:[%s5716_s26 + $0x40] sm:$0xff] }
 0x1e3   : > { %v1718_v46 = vpop.f32.mrf.mxu2 }
 0x1e4   : > { %1613 = vst.msk [vmem:[%s5508_s22 + $0x68] sm:$0xff] %vm1600_vm1, %v1596_v48  ;;  %v1771_v44 = vpop.f32.mrf.mxu3 }
 0x1e5   : > { %v1772_v59 = vadd.f32 %v1771_v44, %v5608_v3  ;;  %v1548_v49 = vpop.f32.mrf.mxu1  ;;  %v3320_v44 = vld [vmem:[%s5716_s26 + $0x90] sm:$0xff] }
 0x1e6   : > { %v1566_v32 = vadd.f32 %v1548_v49, %v1427_v5  ;;  %v1860_v33 = vpop.f32.mrf.mxu0  ;;  %v5742_v5 = vld [vmem:[%s5716_s26 + $0x70] sm:$0xff]  ;;  %v5748_v49 = vld [vmem:[%s5716_s26 + $0xa0] sm:$0xff] }
 0x1e7   : > { %v5658_v31 = vadd.f32 %v1857_v58, %v1772_v59 }
 0x1e8   : > { %v1582_v11 = vmax.f32 %v1566_v32, 0.0  ;;  %v5751_v32 = vld [vmem:[%s5716_s26 + $0xb0] sm:$0xff] }
 0x1ea   : > { %v1598_v9 = vmin.f32 %v1582_v11, 6.0  ;;  %v2492_v11 = vmax.f32 %v2475_v26, %v3320_v44 }
 0x1eb   : > { %v1721_v1 = vpop.f32.mrf.mxu2 }
 0x1ec   : > { %1615 = vst.msk [vmem:[%s5508_s22 + $0x78] sm:$0xff] %vm1600_vm1, %v1598_v9  ;;  %v1774_v0 = vpop.f32.mrf.mxu3 }
 0x1ed   : > { %v1775_v42 = vadd.f32 %v1774_v0, %v1709_v7  ;;  %v1946_v50 = vpop.f32.mrf.mxu1  ;;  %v5762_v0 = vld [vmem:[%s5716_s26 + $0xe0] sm:$0xff] }
 0x1ee   : > { %v1863_v29 = vpop.f32.mrf.mxu0  ;;  %v1970_v6 = vadd.f32 %v1946_v50, %v1875_v41  ;;  %v2493_v50 = vmax.f32 %v5720_v60, %v5748_v49 }
 0x1ef   : > { %v5662_v47 = vadd.f32 %v1860_v33, %v1775_v42  ;;  %v5754_v33 = vld [vmem:[%s5716_s26 + $0xc0] sm:$0xff]  ;;  %v5765_v42 = vld [vmem:[%s5716_s26 + $0xf0] sm:$0xff] }
 0x1f3   : > { %v2041_v8 = vpop.f32.mrf.mxu2 }
 0x1f4   : > { %v1777_v55 = vpop.f32.mrf.mxu3  ;;  %v5664_v3 = vadd.f32 %v2041_v8, %v1970_v6  ;;  %v5774_v8 = vld [vmem:[%s5716_s26 + $0x100] sm:$0xff] }
 0x1f5   : > { %v1778_v34 = vadd.f32 %v1777_v55, %v1712_v16  ;;  %v1949_v24 = vpop.f32.mrf.mxu1 }
 0x1f6   : > { %v1866_v45 = vpop.f32.mrf.mxu0  ;;  %v1971_v25 = vadd.f32 %v1949_v24, %v1876_v63  ;;  %v5728_v63 = vld [vmem:[%s5716_s26 + $0x30] sm:$0xff] }
 0x1f7   : > { %v5666_v21 = vadd.f32 %v1863_v29, %v1778_v34  ;;  %v2494_v29 = vmax.f32 %v5723_v53, %v5751_v32  ;;  %v2495_v6 = vmax.f32 %v5728_v63, %v5754_v33  ;;  %v2497_v34 = vmax.f32 %v5734_v18, %v5762_v0 }
 0x1fb   : > { %v2044_v52 = vpop.f32.mrf.mxu2 }
 0x1fc   : > { %v1780_v20 = vpop.f32.mrf.mxu3  ;;  %v5668_v10 = vadd.f32 %v2044_v52, %v1971_v25  ;;  %v5784_v25 = vld [vmem:[%s5716_s26 + $0x11] sm:$0xff]  ;;  %v2499_v52 = vmax.f32 %v5742_v5, %v5774_v8 }
 0x1fd   : > { %v1781_v54 = vadd.f32 %v1780_v20, %v1715_v15  ;;  %v5670_v35 = vpop.f32.mrf.mxu1  ;;  %v5789_v20 = vld [vmem:[%s5716_s26 + $0x21] sm:$0xff] }
 0x1fe   : > { %5971 = vst [vmem:[#allocation2_spill] sm:$0xff] %v5668_v10  ;;  %v1869_v39 = vpop.f32.mrf.mxu0  ;;  %v2510_v26 = vmax.f32 %v2494_v29, %v5789_v20  ;;  %v3332_v29 = vld [vmem:[%s5716_s26 + $0x160] sm:$0xff] }
 0x1ff   : > { %v5672_v7 = vadd.f32 %v1866_v45, %v1781_v54  ;;  %v2500_v45 = vld [vmem:[%s5716_s26 + $0x1] sm:$0xff]  ;;  %v5792_v54 = vld [vmem:[%s5716_s26 + $0x31] sm:$0xff] }
 0x200   : > { %v2511_v44 = vmax.f32 %v2495_v6, %v5792_v54  ;;  %v3333_v6 = vld [vmem:[%s5716_s26 + $0x170] sm:$0xff] }
 0x201   : > { %5972 = vst [vmem:[#allocation3_spill] sm:$0xff] %v5672_v7 }
 0x203   : > { %v5674_v22 = vpop.f32.mrf.mxu2 }
 0x204   : > { %v1783_v2 = vpop.f32.mrf.mxu3 }
 0x205   : > { %v1784_v61 = vadd.f32 %v1783_v2, %v1718_v46  ;;  %v5676_v38 = vpop.f32.mrf.mxu1  ;;  %v5739_v46 = vld [vmem:[%s5716_s26 + $0x60] sm:$0xff]  ;;  %v2508_v2 = vmax.f32 %v2492_v11, %v2500_v45 }
 0x206   : > { %v1872_v14 = vpop.f32.mrf.mxu0  ;;  %v2498_v24 = vmax.f32 %v5739_v46, %v5765_v42 }
 0x207   : > { %v5678_v27 = vadd.f32 %v1869_v39, %v1784_v61  ;;  %v5795_v39 = vld [vmem:[%s5716_s26 + $0x41] sm:$0xff]  ;;  %v2509_v61 = vmax.f32 %v2493_v50, %v5784_v25 }
 0x209   : > { %5973 = vst [vmem:[#allocation4_spill] sm:$0xff] %v5678_v27 }
 0x20b   : > { %v5680_v12 = vpop.f32.mrf.mxu2 }
 0x20c   : > { %v1786_v56 = vpop.f32.mrf.mxu3 }
 0x20d   : > { %v1787_v16 = vadd.f32 %v1786_v56, %v1721_v1  ;;  %v5682_v4 = vpop.f32.mrf.mxu1  ;;  %v5759_v1 = vld [vmem:[%s5716_s26 + $0xd0] sm:$0xff]  ;;  %v5802_v56 = vld [vmem:[%s5716_s26 + $0x61] sm:$0xff] }
 0x20e   : > { %v5684_v62 = vpop.f32.mrf.mxu0  ;;  %v2496_v55 = vmax.f32 %v5731_v36, %v5759_v1  ;;  %v2514_v45 = vmax.f32 %v2498_v24, %v5802_v56  ;;  %v3334_v24 = vld [vmem:[%s5716_s26 + $0x180] sm:$0xff] }
 0x20f   : > { %5974 = vst [vmem:[#allocation5_spill] sm:$0xff] %v5684_v62  ;;  %v5686_v30 = vadd.f32 %v1872_v14, %v1787_v16  ;;  %v5799_v14 = vld [vmem:[%s5716_s26 + $0x51] sm:$0xff] }
 0x210   : > { %v5805_v16 = vld [vmem:[%s5716_s26 + $0x71] sm:$0xff]  ;;  %v2513_v11 = vmax.f32 %v2497_v34, %v5799_v14 }
 0x211   : > { %5975 = vst [vmem:[#allocation6_spill] sm:$0xff] %v5686_v30  ;;  %v2515_v50 = vmax.f32 %v2499_v52, %v5805_v16  ;;  %v3335_v52 = vld [vmem:[%s5716_s26 + $0x190] sm:$0xff] }
 0x212   : > { %v2530_v62 = vmax.f32 %v2513_v11, %v3333_v6 }
 0x213   : > { %v5688_v37 = vpop.f32.mrf.mxu2 }
 0x214   : > { %5976 = vst [vmem:[#allocation7_spill] sm:$0xff] %v5688_v37  ;;  %v5690_v19 = vpop.f32.mrf.mxu3 }
 0x215   : > { %v5692_v23 = vpop.f32.mrf.mxu1 }
 0x216   : > { %5977 = vst [vmem:[#allocation8_spill] sm:$0xff] %v5692_v23  ;;  %v5694_v57 = vpop.f32.mrf.mxu0 }
 0x217   : > { %5978 = vst [vmem:[#allocation9_spill] sm:$0xff] %v5694_v57  ;;  %v2512_v57 = vmax.f32 %v2496_v55, %v5795_v39 }
 0x219   : > { %v2529_v7 = vmax.f32 %v2512_v57, %v3332_v29  ;;  %v3340_v57 = vld [vmem:[%s5716_s26 + $0x1f0] sm:$0xff] }
 0x21b   : > { %v5696_v13 = vpop.f32.mrf.mxu2  ;;  %v2546_v29 = vmax.f32 %v2529_v7, %v3340_v57 }
 0x21c   : > { %5979 = vst [vmem:[#allocation10_spill] sm:$0xff] %v5696_v13  ;;  %v5698_v41 = vpop.f32.mrf.mxu3  ;;  %v3329_v13 = vld [vmem:[%s5716_s26 + $0x130] sm:$0xff] }
 0x21d   : > { %5980 = vst [vmem:[#allocation11_spill] sm:$0xff] %v5698_v41  ;;  %v5700_v28 = vpop.f32.mrf.mxu1  ;;  %v3331_v41 = vld [vmem:[%s5716_s26 + $0x150] sm:$0xff]  ;;  %v2526_v55 = vmax.f32 %v2509_v61, %v3329_v13  ;;  %v2532_v13 = vmax.f32 %v2515_v50, %v3335_v52  ;;  %v3339_v61 = vld [vmem:[%s5716_s26 + $0x1e0] sm:$0xff] }
 0x21e   : > { %5981 = vst [vmem:[#allocation12_spill] sm:$0xff] %v5700_v28  ;;  %v5702_v51 = vpop.f32.mrf.mxu0  ;;  %v2528_v23 = vmax.f32 %v2511_v44, %v3331_v41  ;;  %v3341_v41 = vld [vmem:[%s5716_s26 + $0x200] sm:$0xff]  ;;  %v3342_v44 = vld [vmem:[%s5716_s26 + $0x210] sm:$0xff] }
 0x21f   : > { %v3343_v50 = vld [vmem:[%s5716_s26 + $0x220] sm:$0xff]  ;;  %v2547_v6 = vmax.f32 %v2530_v62, %v3341_v41 }
 0x220   : > { %v2545_v11 = vmax.f32 %v2528_v23, %v3339_v61  ;;  %v2549_v52 = vmax.f32 %v2532_v13, %v3343_v50  ;;  %v3348_v28 = vld [vmem:[%s5716_s26 + $0x161] sm:$0xff]  ;;  %v3349_v23 = vld [vmem:[%s5716_s26 + $0x171] sm:$0xff] }
 0x221   : > { %v2562_v61 = vmax.f32 %v2546_v29, %v3348_v28  ;;  %v2563_v7 = vmax.f32 %v2547_v6, %v3349_v23  ;;  %v3359_v13 = vld [vmem:[%s5716_s26 + $0x80] sm:$0xff] }
 0x223   : > { %v5704_v17 = vpop.f32.mrf.mxu2 }
 0x224   : > { %5982 = vst [vmem:[#allocation13_spill] sm:$0xff] %v5704_v17  ;;  %v5706_v15 = vpop.f32.mrf.mxu3  ;;  %v1972_v17 = vadd.f32 %v5670_v35, %v5658_v31 }
 0x225   : > { %v5708_v43 = vpop.f32.mrf.mxu1 }
 0x226   : > { %5983 = vst [vmem:[#allocation14_spill] sm:$0xff] %v5708_v43  ;;  %v5710_v40 = vpop.f32.mrf.mxu0  ;;  %v3330_v43 = vld [vmem:[%s5716_s26 + $0x140] sm:$0xff] }
 0x22b   : > { %v5725_v58 = vpop.f32.mrf.mxu2 }
 0x22c   : > { %5984 = vst [vmem:[#allocation15_spill] sm:$0xff] %v5725_v58  ;;  %v5736_v48 = vpop.f32.mrf.mxu3  ;;  %v3328_v58 = vld [vmem:[%s5716_s26 + $0x120] sm:$0xff] }
 0x22d   : > { %v5745_v59 = vpop.f32.mrf.mxu1  ;;  %v2525_v10 = vmax.f32 %v2508_v2, %v3328_v58  ;;  %v2531_v58 = vmax.f32 %v2514_v45, %v3334_v24  ;;  %v3338_v2 = vld [vmem:[%s5716_s26 + $0x1d0] sm:$0xff]  ;;  %v2067_v45 = vadd.f32 %v5674_v22, %v1972_v17 }
 0x22e   : > { %v5756_v9 = vpop.f32.mrf.mxu0  ;;  %v3345_v24 = vld [vmem:[%s5716_s26 + $0x131] sm:$0xff] }
 0x22f   : > { %5985 = vst [vmem:[#allocation16_spill] sm:$0xff] %v5756_v9  ;;  %v2527_v9 = vmax.f32 %v2510_v26, %v3330_v43  ;;  %v3337_v43 = vld [vmem:[%s5716_s26 + $0x1c0] sm:$0xff] }
 0x230   : > { %v2543_v31 = vmax.f32 %v2526_v55, %v3337_v43  ;;  %v3350_v43 = vld [vmem:[%s5716_s26 + $0x181] sm:$0xff] }
 0x231   : > { %v2544_v35 = vmax.f32 %v2527_v9, %v3338_v2  ;;  %v2161_v9 = vadd.f32 %v5706_v15, %v2067_v45  ;;  %v3351_v2 = vld [vmem:[%s5716_s26 + $0x191] sm:$0xff]  ;;  %v1973_v45 = vadd.f32 %v5676_v38, %v5662_v47 }
 0x232   : > { %v2559_v55 = vmax.f32 %v2543_v31, %v3345_v24  ;;  %v5990_v24 = vld [vmem:[#allocation4_spill] sm:$0xff] }
 0x233   : > { %v5816_v30 = vpop.f32.mrf.mxu2  ;;  %v2256_v50 = vadd.f32 %v5702_v51, %v2161_v9  ;;  %v5992_v9 = vld [vmem:[#allocation7_spill] sm:$0xff] }
 0x234   : > { %5986 = vst [vmem:[#allocation17_spill] sm:$0xff] %v5816_v30  ;;  %v5821_v34 = vpop.f32.mrf.mxu3  ;;  %v3336_v30 = vld [vmem:[%s5716_s26 + $0x1b0] sm:$0xff] }
 0x235   : > { %5987 = vst [vmem:[#allocation18_spill] sm:$0xff] %v5821_v34  ;;  %v5828_v37 = vpop.f32.mrf.mxu1  ;;  %v2542_v26 = vmax.f32 %v2525_v10, %v3336_v30  ;;  %v2548_v10 = vmax.f32 %v2531_v58, %v3342_v44  ;;  %v3344_v30 = vld [vmem:[%s5716_s26 + $0x121] sm:$0xff]  ;;  %v2565_v58 = vmax.f32 %v2549_v52, %v3351_v2  ;;  %v5991_v52 = vld [vmem:[#allocation12_spill] sm:$0xff] }
 0x236   : > { %5988 = vst [vmem:[#allocation19_spill] sm:$0xff] %v5828_v37  ;;  %v5833_v34 = vpop.f32.mrf.mxu0  ;;  %v3347_v37 = vld [vmem:[%s5716_s26 + $0x151] sm:$0xff] }
 0x237   : > { %5989 = vst [vmem:[#allocation20_spill] sm:$0xff] %v5833_v34  ;;  %v3346_v34 = vld [vmem:[%s5716_s26 + $0x141] sm:$0xff]  ;;  %v2558_v27 = vmax.f32 %v2542_v26, %v3344_v30  ;;  %v2561_v17 = vmax.f32 %v2545_v11, %v3347_v37  ;;  %v2564_v62 = vmax.f32 %v2548_v10, %v3350_v43  ;;  %v2576_v26 = vmax.f32 %v2559_v55, %v5723_v53  ;;  %v3367_v53 = vld [vmem:[%s5716_s26 + $0x110] sm:$0xff] }
 0x238   : > { %v2560_v22 = vmax.f32 %v2544_v35, %v3346_v34  ;;  %v2579_v37 = vmax.f32 %v2562_v61, %v5734_v18  ;;  %v2580_v34 = vmax.f32 %v2563_v7, %v5739_v46  ;;  %v2582_v35 = vmax.f32 %v2565_v58, %v3359_v13  ;;  %v5996_v58 = vld [vmem:[#allocation5_spill] sm:$0xff] }
 0x239   : > { %v2575_v57 = vmax.f32 %v2558_v27, %v5720_v60  ;;  %v2578_v44 = vmax.f32 %v2561_v17, %v5731_v36  ;;  %v2581_v31 = vmax.f32 %v2564_v62, %v5742_v5  ;;  %v2593_v11 = vmax.f32 %v2576_v26, %v5751_v32 }
 0x23a   : > { %v2577_v15 = vmax.f32 %v2560_v22, %v5728_v63  ;;  %v2596_v46 = vmax.f32 %v2579_v37, %v5762_v0  ;;  %v2597_v5 = vmax.f32 %v2580_v34, %v5765_v42  ;;  %v2599_v29 = vmax.f32 %v2582_v35, %v3367_v53  ;;  %v3375_v42 = vld [vmem:[%s5716_s26 + $0x81] sm:$0xff]  ;;  %v5994_v22 = vld [vmem:[#allocation13_spill] sm:$0xff]  ;;  %v5999_v34 = vld [vmem:[#allocation16_spill] sm:$0xff] }
 0x23b   : > { %v5851_v41 = vpop.f32.mrf.mxu2  ;;  %v2592_v27 = vmax.f32 %v2575_v57, %v5748_v49  ;;  %v2595_v36 = vmax.f32 %v2578_v44, %v5759_v1  ;;  %v2598_v49 = vmax.f32 %v2581_v31, %v5774_v8  ;;  %v2159_v30 = vadd.f32 %v5690_v19, %v5664_v3  ;;  %v5998_v44 = vld [vmem:[#allocation8_spill] sm:$0xff]  ;;  %v6001_v53 = vld [vmem:[#allocation11_spill] sm:$0xff] }
 0x23c   : > { %v5857_v28 = vpop.f32.mrf.mxu3  ;;  %v2594_v63 = vmax.f32 %v2577_v15, %v5754_v33  ;;  %v2609_v33 = vmax.f32 %v2593_v11, %v5789_v20  ;;  %v2612_v8 = vmax.f32 %v2596_v46, %v5799_v14  ;;  %v2351_v20 = vadd.f32 %v5745_v59, %v2256_v50  ;;  %v5997_v15 = vld [vmem:[#allocation3_spill] sm:$0xff] }
 0x23d   : > { %v5862_v60 = vpop.f32.mrf.mxu1  ;;  %v2608_v32 = vmax.f32 %v2592_v27, %v5784_v25  ;;  %v2611_v0 = vmax.f32 %v2595_v36, %v5795_v39  ;;  %v2068_v25 = vadd.f32 %v5680_v12, %v1973_v45  ;;  %v2613_v47 = vmax.f32 %v2597_v5, %v5802_v56  ;;  %v5993_v43 = vld [vmem:[#allocation19_spill] sm:$0xff]  ;;  %v6000_v27 = vld [vmem:[#allocation2_spill] sm:$0xff]  ;;  %v6004_v5 = vld [vmem:[#allocation17_spill] sm:$0xff] }
 0x23e   : > { %v2248_v18 = vpop.f32.mrf.mxu0  ;;  %v2610_v1 = vmax.f32 %v2594_v63, %v5792_v54  ;;  %2618 = vst.msk [vmem:[%s5874_s29 + $0x8] sm:$0xff] %vm2616_vm2, %v2609_v33  ;;  %v2614_v51 = vmax.f32 %v2598_v49, %v5805_v16  ;;  %v2615_v6 = vmax.f32 %v2599_v29, %v3375_v42  ;;  %v1976_v55 = vadd.f32 %v5991_v52, %v5990_v24  ;;  %v6002_v63 = vld [vmem:[#allocation6_spill] sm:$0xff]  ;;  %v6006_v50 = vld [vmem:[#allocation15_spill] sm:$0xff] }
 0x23f   : > { %2617 = vst.msk [vmem:[%s5874_s29] sm:$0xff] %vm2616_vm2, %v2608_v32  ;;  %v2162_v54 = vadd.f32 %v5736_v48, %v2068_v25  ;;  %v1974_v48 = vadd.f32 %v5682_v4, %v5666_v21  ;;  %v5995_v4 = vld [vmem:[#allocation18_spill] sm:$0xff]  ;;  %v2254_v3 = vadd.f32 %v5996_v58, %v2159_v30  ;;  %v1975_v37 = vadd.f32 %v5998_v44, %v5997_v15 }
 0x240   : > { %2619 = vst.msk [vmem:[%s5874_s29 + $0x10] sm:$0xff] %vm2616_vm2, %v2610_v1  ;;  %v2071_v17 = vadd.f32 %v5994_v22, %v1976_v55  ;;  %v2160_v11 = vadd.f32 %v6001_v53, %v6000_v27  ;;  %v6003_v36 = vld [vmem:[#allocation14_spill] sm:$0xff] }
 0x241   : > { %2620 = vst.msk [vmem:[%s5874_s29 + $0x18] sm:$0xff] %vm2616_vm2, %v2611_v0  ;;  %v2257_v16 = vadd.f32 %v5710_v40, %v2162_v54  ;;  %v2069_v23 = vadd.f32 %v5992_v9, %v1974_v48  ;;  %v1977_v46 = vadd.f32 %v6003_v36, %v6002_v63  ;;  %v6005_v33 = vld [vmem:[#allocation10_spill] sm:$0xff]  ;;  %v6007_v54 = vld [vmem:[#allocation9_spill] sm:$0xff]  ;;  %v6008_v48 = vld [vmem:[#allocation20_spill] sm:$0xff] }
 0x242   : > { %2621 = vst.msk [vmem:[%s5874_s29 + $0x20] sm:$0xff] %vm2616_vm2, %v2612_v8  ;;  %v2070_v1 = vadd.f32 %v6005_v33, %v1975_v37 }
 0x243   : > { %v2425_v38 = vpop.f32.mrf.mxu2  ;;  %2622 = vst.msk [vmem:[%s5874_s29 + $0x28] sm:$0xff] %vm2616_vm2, %v2613_v47  ;;  %v2352_v2 = vadd.f32 %v5993_v43, %v2257_v16  ;;  %v2163_v40 = vadd.f32 %v5995_v4, %v2069_v23  ;;  %v2072_v29 = vadd.f32 %v6006_v50, %v1977_v46 }
 0x244   : > { %v2153_v39 = vpop.f32.mrf.mxu3  ;;  %v2445_v14 = vadd.f32 %v2425_v38, %v2351_v20  ;;  %2623 = vst.msk [vmem:[%s5874_s29 + $0x30] sm:$0xff] %vm2616_vm2, %v2614_v51  ;;  %v2164_v25 = vadd.f32 %v5857_v28, %v2070_v1 }
 0x245   : > { %v2340_v12 = vpop.f32.mrf.mxu1  ;;  %2624 = vst.msk [vmem:[%s5874_s29 + $0x38] sm:$0xff] %vm2616_vm2, %v2615_v6  ;;  %v2165_v62 = vadd.f32 %v2153_v39, %v2071_v17  ;;  %v2258_v31 = vadd.f32 %v5999_v34, %v2163_v40  ;;  %v2255_v39 = vadd.f32 %v6007_v54, %v2160_v11 }
 0x246   : > { %v2453_v59 = vmax.f32 %v2445_v14, 0.0  ;;  %v2251_v56 = vpop.f32.mrf.mxu0  ;;  %v2259_v16 = vadd.f32 %v6008_v48, %v2164_v25 }
 0x247   : > { %v2260_v32 = vadd.f32 %v2248_v18, %v2165_v62  ;;  %v2353_v45 = vadd.f32 %v5862_v60, %v2258_v31 }
 0x248   : > { %v2461_v10 = vmin.f32 %v2453_v59, 6.0  ;;  %v2354_v55 = vadd.f32 %v2340_v12, %v2259_v16 }
 0x24a   : > { %2469 = vst.msk [vmem:[%s5910_s13 + $0x10] sm:$0xff] %vm1658_vm0, %v2461_v10 }
 0x24b   : > { %v2428_v21 = vpop.f32.mrf.mxu2 }
 0x24c   : > { %v2156_v61 = vpop.f32.mrf.mxu3  ;;  %v2446_v7 = vadd.f32 %v2428_v21, %v2352_v2 }
 0x24d   : > { %v2343_v57 = vpop.f32.mrf.mxu1  ;;  %v2166_v38 = vadd.f32 %v2156_v61, %v2072_v29 }
 0x24e   : > { %v2454_v19 = vmax.f32 %v2446_v7, 0.0  ;;  %v2325_v13 = vpop.f32.mrf.mxu0  ;;  %v2355_v42 = vadd.f32 %v2343_v57, %v2260_v32 }
 0x24f   : > { %v2349_v26 = vadd.f32 %v2325_v13, %v2254_v3  ;;  %v2261_v52 = vadd.f32 %v2251_v56, %v2166_v38 }
 0x250   : > { %v2462_v35 = vmin.f32 %v2454_v19, 6.0 }
 0x251   : > { %v2443_v49 = vadd.f32 %v6004_v5, %v2349_v26 }
 0x252   : > { %2470 = vst.msk [vmem:[%s5910_s13 + $0x18] sm:$0xff] %vm1658_vm0, %v2462_v35 }
 0x253   : > { %v2451_v0 = vmax.f32 %v2443_v49, 0.0  ;;  %v2431_v8 = vpop.f32.mrf.mxu2 }
 0x254   : > { %v2447_v20 = vadd.f32 %v2431_v8, %v2353_v45  ;;  %v2437_v47 = vpop.f32.mrf.mxu3 }
 0x255   : > { %v2459_v51 = vmin.f32 %v2451_v0, 6.0  ;;  %v2449_v18 = vadd.f32 %v2437_v47, %v2355_v42  ;;  %v2346_v28 = vpop.f32.mrf.mxu1 }
 0x256   : > { %v2455_v14 = vmax.f32 %v2447_v20, 0.0  ;;  %v2328_v60 = vpop.f32.mrf.mxu0  ;;  %v2356_v23 = vadd.f32 %v2346_v28, %v2261_v52 }
 0x257   : > { %2467 = vst.msk [vmem:[%s5910_s13] sm:$0xff] %vm1658_vm0, %v2459_v51  ;;  %v2457_v6 = vmax.f32 %v2449_v18, 0.0  ;;  %v2350_v59 = vadd.f32 %v2328_v60, %v2255_v39 }
 0x258   : > { %v2463_v10 = vmin.f32 %v2455_v14, 6.0 }
 0x259   : > { %v2465_v30 = vmin.f32 %v2457_v6, 6.0  ;;  %v2444_v24 = vadd.f32 %v5851_v41, %v2350_v59 }
 0x25a   : > { %2471 = vst.msk [vmem:[%s5910_s13 + $0x20] sm:$0xff] %vm1658_vm0, %v2463_v10 }
 0x25b   : > { %2473 = vst.msk [vmem:[%s5910_s13 + $0x30] sm:$0xff] %vm1658_vm0, %v2465_v30  ;;  %v2452_v9 = vmax.f32 %v2444_v24, 0.0  ;;  %v2434_v43 = vpop.f32.mrf.mxu2 }
 0x25c   : > { %v2448_v2 = vadd.f32 %v2434_v43, %v2354_v55  ;;  %v2440_v22 = vpop.f32.mrf.mxu3 }
 0x25d   : > { %v2460_v17 = vmin.f32 %v2452_v9, 6.0  ;;  %v2450_v21 = vadd.f32 %v2440_v22, %v2356_v23 }
 0x25e   : > { %v2456_v4 = vmax.f32 %v2448_v2, 0.0 }
 0x25f   : > { %2468 = vst.msk [vmem:[%s5910_s13 + $0x8] sm:$0xff] %vm1658_vm0, %v2460_v17  ;;  %v2458_v40 = vmax.f32 %v2450_v21, 0.0 }
 0x260   : > { %v2464_v41 = vmin.f32 %v2456_v4, 6.0 }
 0x261   : > { %v2466_v56 = vmin.f32 %v2458_v40, 6.0 }
 0x262   : > { %2472 = vst.msk [vmem:[%s5910_s13 + $0x28] sm:$0xff] %vm1658_vm0, %v2464_v41 }
 0x263   : > { %2474 = vst.msk [vmem:[%s5910_s13 + $0x38] sm:$0xff] %vm1658_vm0, %v2466_v56 }
 0x264 PF: > { %s18_s24 = sadd.s32 1, %s3443_s24  }
 0x265   : > { %p15_p4 = scmp.ge.s32.totalorder %s18_s24, 4  }
 0x267   :  { %17 = sbr.rel (!%p15_p4) target bundleno = 1 (0x1), region = 131 }

</bundles_post_ra>
